<compile_context>
chip_gen: v7x
topology: tpu7x:2x2x1
jax: 0.10.0
libtpu: 0.0.40
codegen_flags: <defaults>
</compile_context>

<pallas_src>
import functools

import jax
import jax.numpy as jnp
from jax.experimental import pallas as pl
from jax.experimental.pallas import tpu as pltpu

# ---------------- scaled-down HuBERT config (same structure as HubertConfig) ----------------
CONV_DIM     = (16, 16, 16)     # HF default: (512,)*7
CONV_KERNEL  = (10, 3, 2)       # HF default: (10,3,3,3,3,2,2)
CONV_STRIDE  = (5, 2, 2)        # HF default: (5,2,2,2,2,2,2)
HIDDEN       = 32               # HF default: 768
NUM_LAYERS   = 2                # HF default: 12
NUM_HEADS    = 4                # HF default: 12
HEAD_DIM     = HIDDEN // NUM_HEADS
INTERMEDIATE = 64               # HF default: 3072
POS_KERNEL   = 16               # HF default: 128
POS_GROUPS   = 4                # HF default: 16
EPS          = 1e-5

_VMEM = pl.BlockSpec(memory_space=pltpu.MemorySpace.VMEM)


# ------------------------------- in-kernel helpers -------------------------------
def _gelu(x):
    # TODO(synk): HF HuBERT default activation is the exact erf-based GELU; the tanh
    # approximation is used here for robust Mosaic lowering of the transcendental.
    return jax.nn.gelu(x, approximate=True)


def _mm(a, b):
    # MXU matmul: bf16 operands, f32 accumulation.
    return jnp.dot(a.astype(jnp.bfloat16), b.astype(jnp.bfloat16),
                   preferred_element_type=jnp.float32)


def _mm_t(a, b):
    # a @ b.T without an explicit transpose: contract the last dim of both operands.
    return jax.lax.dot_general(
        a.astype(jnp.bfloat16), b.astype(jnp.bfloat16),
        (((1,), (1,)), ((), ())), preferred_element_type=jnp.float32)


def _layernorm(x, g, b, eps):
    mu = jnp.mean(x, axis=-1, keepdims=True)
    var = jnp.mean(jnp.square(x - mu), axis=-1, keepdims=True)
    return (x - mu) * jax.lax.rsqrt(var + eps) * g + b


def _conv_taps(x_ref, w_ref, bb, k, s, c_in, t_out):
    # x_ref: (B, T_pad//s, s*C_in)   (time axis pre-folded by the stride at the host)
    # w_ref: (k, C_in, C_out)        (per-tap weight)
    # out  : (t_out, C_out) f32 accumulator == conv1d(x, w, stride=s) for batch bb
    c_out = w_ref.shape[2]
    acc = jnp.zeros((t_out, c_out), jnp.float32)
    for j in range(k):
        q, r = divmod(j, s)
        xa = x_ref[bb, q:q + t_out, r * c_in:(r + 1) * c_in]
        if c_in == 1:
            acc = acc + xa * w_ref[j]          # degenerate K=1 contraction: VPU broadcast-mul
        else:
            acc = acc + _mm(xa, w_ref[j])
    return acc


# ------------------------------------ Pallas kernels ------------------------------------
def _conv_gelu_kernel(x_ref, w_ref, o_ref, *, k, s, c_in, t_out):
    # conv1d (no bias, conv_bias=False) -> GELU, time-major layout
    for bb in range(o_ref.shape[0]):
        o_ref[bb] = _gelu(_conv_taps(x_ref, w_ref, bb, k, s, c_in, t_out))


def _conv_gn_gelu_kernel(x_ref, w_ref, g_ref, b_ref, o_ref, *, k, s, c_in, t_out, eps):
    # first conv layer: conv1d -> GroupNorm(num_groups == num_channels) -> GELU
    # GroupNorm with one channel per group == per-channel stats over time (axis 0 here).
    for bb in range(o_ref.shape[0]):
        acc = _conv_taps(x_ref, w_ref, bb, k, s, c_in, t_out)
        mu = jnp.mean(acc, axis=0, keepdims=True)
        var = jnp.mean(jnp.square(acc - mu), axis=0, keepdims=True)
        y = (acc - mu) * jax.lax.rsqrt(var + eps)
        o_ref[bb] = _gelu(y * g_ref[...] + b_ref[...])


def _ln_linear_kernel(x_ref, g_ref, b_ref, w_ref, bias_ref, o_ref, *, eps):
    # feature projection: LayerNorm -> Linear (dropout = identity in eval)
    y = _layernorm(x_ref[...], g_ref[...], b_ref[...], eps)
    o_ref[...] = _mm(y, w_ref[...]) + bias_ref[...]


def _posconv_add_ln_kernel(xp_ref, w_ref, b_ref, g_ref, beta_ref, o_ref, *, ksize, pad, eps):
    # grouped positional conv (block-diagonal per-tap weights) + SamePad + GELU
    # + residual add + encoder LayerNorm, all fused.
    nb, seq, hidden = o_ref.shape
    for bb in range(nb):
        acc = jnp.zeros((seq, hidden), jnp.float32) + b_ref[...]
        for j in range(ksize):
            acc = acc + _mm(xp_ref[bb, j:j + seq, :], w_ref[j])
        pos = _gelu(acc)                                # only first `seq` outputs == SamePad trim
        h = xp_ref[bb, pad:pad + seq, :] + pos          # residual = unpadded center of xp
        o_ref[bb] = _layernorm(h, g_ref[...], beta_ref[...], eps)


def _encoder_layer_kernel(x_ref, wqkv_ref, bqkv_ref, wo_ref, bo_ref,
                          ln1g_ref, ln1b_ref, wf1_ref, bf1_ref,
                          wf2_ref, bf2_ref, ln2g_ref, ln2b_ref, o_ref,
                          *, batch, seq, hidden, heads, head_dim, scale, eps):
    # whole post-LN transformer encoder layer in one kernel; all intermediates stay in
    # vregs/VMEM, no HBM round trips between sub-ops.
    x = x_ref[...]                                      # (B*S, H)
    qkv = _mm(x, wqkv_ref[...]) + bqkv_ref[...]         # fused Q|K|V projection, (B*S, 3H)

    rows = []
    for bb in range(batch):                             # static unroll, B small
        r0 = bb * seq
        heads_out = []
        for h in range(heads):                          # per-head view via static lane slices
            c = h * head_dim
            qh = qkv[r0:r0 + seq, c:c + head_dim] * scale
            kh = qkv[r0:r0 + seq, hidden + c:hidden + c + head_dim]
            vh = qkv[r0:r0 + seq, 2 * hidden + c:2 * hidden + c + head_dim]
            sc = _mm_t(qh, kh)                          # (S, S)
            sc = sc - jnp.max(sc, axis=-1, keepdims=True)
            p = jnp.exp(sc)
            p = p * pl.reciprocal(jnp.sum(p, axis=-1, keepdims=True), approx=True)
            heads_out.append(_mm(p, vh))                # (S, head_dim)
        rows.append(jnp.concatenate(heads_out, axis=-1))   # (S, H) lane-dense
    attn = jnp.concatenate(rows, axis=0)                # (B*S, H)

    attn = _mm(attn, wo_ref[...]) + bo_ref[...]
    x1 = _layernorm(attn + x, ln1g_ref[...], ln1b_ref[...], eps)
    ff = _gelu(_mm(x1, wf1_ref[...]) + bf1_ref[...])
    ff = _mm(ff, wf2_ref[...]) + bf2_ref[...]
    o_ref[...] = _layernorm(ff + x1, ln2g_ref[...], ln2b_ref[...], eps)


# ------------------------------------ host wrappers ------------------------------------
def _pallas(kernel, out_shape, n_in):
    return pl.pallas_call(kernel, out_shape=out_shape,
                          in_specs=[_VMEM] * n_in, out_specs=_VMEM)


def _conv_layer(x, w_taps, k, s, gn=None):
    # x: (B, T, C_in) time-major; w_taps: (k, C_in, C_out); returns (B, T_out, C_out)
    bsz, t, c_in = x.shape
    t_out = (t - k) // s + 1
    t_pad = -(-t // s) * s                               # round T up to a multiple of the stride
    if t_pad != t:
        x = jnp.pad(x, ((0, 0), (0, t_pad - t), (0, 0)))
    # fold the stride into the lane dim (pure reshape, no data movement): row m holds
    # times m*s .. m*s+s-1, so tap j = q*s + r reads rows q:q+T_out, lanes r*C_in:(r+1)*C_in.
    x = x.reshape(bsz, t_pad // s, s * c_in)
    c_out = w_taps.shape[2]
    out_shape = jax.ShapeDtypeStruct((bsz, t_out, c_out), jnp.float32)
    if gn is None:
        kern = functools.partial(_conv_gelu_kernel, k=k, s=s, c_in=c_in, t_out=t_out)
        return _pallas(kern, out_shape, 2)(x, w_taps)
    kern = functools.partial(_conv_gn_gelu_kernel, k=k, s=s, c_in=c_in, t_out=t_out, eps=EPS)
    return _pallas(kern, out_shape, 4)(x, w_taps, gn[0], gn[1])


def _feature_projection(feat2d, prep):
    m = feat2d.shape[0]
    kern = functools.partial(_ln_linear_kernel, eps=EPS)
    return _pallas(kern, jax.ShapeDtypeStruct((m, HIDDEN), jnp.float32), 5)(
        feat2d, prep["fp_ln_g"], prep["fp_ln_b"], prep["fp_w"], prep["fp_b"])


def _pos_conv_encode(hidden3d, prep):
    b, s, d = hidden3d.shape
    pad = POS_KERNEL // 2
    xp = jnp.pad(hidden3d, ((0, 0), (pad, pad), (0, 0)))
    kern = functools.partial(_posconv_add_ln_kernel, ksize=POS_KERNEL, pad=pad, eps=EPS)
    return _pallas(kern, jax.ShapeDtypeStruct((b, s, d), jnp.float32), 5)(
        xp, prep["pos_w"], prep["pos_b"], prep["enc_ln_g"], prep["enc_ln_b"])


def _encoder_layer(x2d, lp, bsz, seq):
    kern = functools.partial(
        _encoder_layer_kernel, batch=bsz, seq=seq, hidden=HIDDEN,
        heads=NUM_HEADS, head_dim=HEAD_DIM, scale=HEAD_DIM ** -0.5, eps=EPS)
    return _pallas(kern, jax.ShapeDtypeStruct(x2d.shape, jnp.float32), 13)(
        x2d, lp["wqkv"], lp["bqkv"], lp["wo"], lp["bo"],
        lp["ln1_g"], lp["ln1_b"], lp["wf1"], lp["bf1"],
        lp["wf2"], lp["bf2"], lp["ln2_g"], lp["ln2_b"])


def hubert_forward(prep, data):
    # data: (B, T_samples) raw waveform; returns last_hidden_state (B, S, HIDDEN)
    b = data.shape[0]

    # -- feature extractor: time-major (B, T, C) throughout (no NCW transposes) --
    h = data[:, :, None]                                             # (B, T, 1)
    h = _conv_layer(h, prep["conv_w"][0], CONV_KERNEL[0], CONV_STRIDE[0],
                    gn=(prep["gn_g"], prep["gn_b"]))                 # conv+GroupNorm+GELU fused
    for i in range(1, len(CONV_DIM)):
        h = _conv_layer(h, prep["conv_w"][i], CONV_KERNEL[i], CONV_STRIDE[i])
    s, c_last = h.shape[1], h.shape[2]                               # == extract_features (B,S,C)

    # -- feature projection: LayerNorm -> Linear fused in one kernel --
    hidden = _feature_projection(h.reshape(b * s, c_last), prep)     # (B*S, H)

    # -- positional conv + SamePad + GELU + residual + encoder LayerNorm, fused --
    x = _pos_conv_encode(hidden.reshape(b, s, HIDDEN), prep)         # (B, S, H)
    x = x.reshape(b * s, HIDDEN)

    # -- post-LN transformer encoder: one fused kernel per layer --
    for lp in prep["layers"]:
        x = _encoder_layer(x, lp, b, s)

    return x.reshape(b, s, HIDDEN)   # == HubertModel output[0] (last_hidden_state)


# ------------------------------------ params ------------------------------------
def _init_params(key):
    keys = iter(jax.random.split(key, 64))

    def nrm(shape, std=0.02):
        return std * jax.random.normal(next(keys), shape, jnp.float32)

    params = {}
    convs = []
    c_in = 1
    for c_out, k in zip(CONV_DIM, CONV_KERNEL):
        convs.append(nrm((c_out, c_in, k)))           # PyTorch conv1d layout (C_out, C_in, k)
        c_in = c_out
    params["conv_w"] = convs
    c0 = CONV_DIM[0]
    params["gn_g"] = jnp.ones((c0,), jnp.float32)
    params["gn_b"] = jnp.zeros((c0,), jnp.float32)
    c_last = CONV_DIM[-1]
    params["fp_ln_g"] = jnp.ones((c_last,), jnp.float32)
    params["fp_ln_b"] = jnp.zeros((c_last,), jnp.float32)
    params["fp_w"] = nrm((c_last, HIDDEN))
    params["fp_b"] = jnp.zeros((HIDDEN,), jnp.float32)
    # positional conv (weight-normed in PyTorch; effective weight initialized directly)
    params["pos_w"] = nrm((HIDDEN, HIDDEN // POS_GROUPS, POS_KERNEL))
    params["pos_b"] = jnp.zeros((HIDDEN,), jnp.float32)
    params["enc_ln_g"] = jnp.ones((HIDDEN,), jnp.float32)
    params["enc_ln_b"] = jnp.zeros((HIDDEN,), jnp.float32)
    layers = []
    for _ in range(NUM_LAYERS):
        layers.append(dict(
            q_w=nrm((HIDDEN, HIDDEN)), q_b=jnp.zeros((HIDDEN,), jnp.float32),
            k_w=nrm((HIDDEN, HIDDEN)), k_b=jnp.zeros((HIDDEN,), jnp.float32),
            v_w=nrm((HIDDEN, HIDDEN)), v_b=jnp.zeros((HIDDEN,), jnp.float32),
            o_w=nrm((HIDDEN, HIDDEN)), o_b=jnp.zeros((HIDDEN,), jnp.float32),
            ln1_g=jnp.ones((HIDDEN,), jnp.float32), ln1_b=jnp.zeros((HIDDEN,), jnp.float32),
            ff1_w=nrm((HIDDEN, INTERMEDIATE)), ff1_b=jnp.zeros((INTERMEDIATE,), jnp.float32),
            ff2_w=nrm((INTERMEDIATE, HIDDEN)), ff2_b=jnp.zeros((HIDDEN,), jnp.float32),
            ln2_g=jnp.ones((HIDDEN,), jnp.float32), ln2_b=jnp.zeros((HIDDEN,), jnp.float32),
        ))
    params["layers"] = layers
    return params


def prepare_params(params):
    """One-time repack of PyTorch-layout params into kernel-friendly layouts.
    Called once OUTSIDE the jitted forward (no reshapes/tiles/concats on the hot path)."""
    prep = {}
    # conv weights: (C_out, C_in, k) -> per-tap (k, C_in, C_out)
    prep["conv_w"] = [jnp.transpose(w, (2, 1, 0)) for w in params["conv_w"]]
    prep["gn_g"] = params["gn_g"].reshape(1, -1)
    prep["gn_b"] = params["gn_b"].reshape(1, -1)
    prep["fp_ln_g"] = params["fp_ln_g"].reshape(1, -1)
    prep["fp_ln_b"] = params["fp_ln_b"].reshape(1, -1)
    prep["fp_w"] = params["fp_w"]
    prep["fp_b"] = params["fp_b"].reshape(1, -1)
    # grouped positional conv -> per-tap block-diagonal (K, H, H) weights
    hg = HIDDEN // POS_GROUPS
    wbd = jnp.zeros((POS_KERNEL, HIDDEN, HIDDEN), jnp.float32)
    for g in range(POS_GROUPS):
        blk = jnp.transpose(params["pos_w"][g * hg:(g + 1) * hg], (2, 1, 0))  # (K, hg_in, hg_out)
        wbd = wbd.at[:, g * hg:(g + 1) * hg, g * hg:(g + 1) * hg].set(blk)
    prep["pos_w"] = wbd
    prep["pos_b"] = params["pos_b"].reshape(1, -1)
    prep["enc_ln_g"] = params["enc_ln_g"].reshape(1, -1)
    prep["enc_ln_b"] = params["enc_ln_b"].reshape(1, -1)
    layers = []
    for lp in params["layers"]:
        layers.append(dict(
            wqkv=jnp.concatenate([lp["q_w"], lp["k_w"], lp["v_w"]], axis=1),   # (H, 3H)
            bqkv=jnp.concatenate([lp["q_b"], lp["k_b"], lp["v_b"]]).reshape(1, -1),
            wo=lp["o_w"], bo=lp["o_b"].reshape(1, -1),
            ln1_g=lp["ln1_g"].reshape(1, -1), ln1_b=lp["ln1_b"].reshape(1, -1),
            wf1=lp["ff1_w"], bf1=lp["ff1_b"].reshape(1, -1),
            wf2=lp["ff2_w"], bf2=lp["ff2_b"].reshape(1, -1),
            ln2_g=lp["ln2_g"].reshape(1, -1), ln2_b=lp["ln2_b"].reshape(1, -1),
        ))
    prep["layers"] = layers
    return prep


if __name__ == "__main__":
    key = jax.random.PRNGKey(0)
    pkey, dkey = jax.random.split(key)
    params = _init_params(pkey)
    prep = prepare_params(params)                               # hoisted weight repack
    data = jax.random.normal(dkey, (2, 400), jnp.float32)       # (batch, raw-audio samples)
    out = jax.jit(hubert_forward)(prep, data)
    out = jax.block_until_ready(out)
    assert out.shape == (2, 19, HIDDEN), out.shape
    print("KERNEL_OK")
</pallas_src>

<mosaic_0001>
module attributes {stable_mosaic.version = 11 : i64} {
  func.func @_conv_gn_gelu_kernel(%arg0: memref<2x80x5xf32, #tpu.memory_space<vmem>>, %arg1: memref<10x1x16xf32, #tpu.memory_space<vmem>>, %arg2: memref<1x16xf32, #tpu.memory_space<vmem>>, %arg3: memref<1x16xf32, #tpu.memory_space<vmem>>, %arg4: memref<2x79x16xf32, #tpu.memory_space<vmem>>) attributes {dimension_semantics = [], scalar_prefetch = 0 : i64, scratch_operands = 0 : i64, tpu.core_type = #tpu.core_type<tc>} {
    %cst = arith.constant 0.000000e+00 : f32
    %0 = vector.broadcast %cst : f32 to vector<79x16xf32>
    %c0 = arith.constant 0 : index
    %c0_0 = arith.constant 0 : index
    %c0_1 = arith.constant 0 : index
    %1 = vector.load %arg0[%c0, %c0_0, %c0_1] : memref<2x80x5xf32, #tpu.memory_space<vmem>>, vector<1x79x1xf32>
    %2 = vector.shape_cast %1 : vector<1x79x1xf32> to vector<79x1xf32>
    %c0_2 = arith.constant 0 : index
    %c0_3 = arith.constant 0 : index
    %c0_4 = arith.constant 0 : index
    %3 = vector.load %arg1[%c0_2, %c0_3, %c0_4] : memref<10x1x16xf32, #tpu.memory_space<vmem>>, vector<1x1x16xf32>
    %4 = vector.shape_cast %3 : vector<1x1x16xf32> to vector<1x16xf32>
    %5 = vector.broadcast %2 : vector<79x1xf32> to vector<79x16xf32>
    %6 = vector.broadcast %4 : vector<1x16xf32> to vector<79x16xf32>
    %7 = arith.mulf %5, %6 : vector<79x16xf32>
    %8 = arith.addf %0, %7 : vector<79x16xf32>
    %c0_5 = arith.constant 0 : index
    %c0_6 = arith.constant 0 : index
    %c1 = arith.constant 1 : index
    %9 = vector.load %arg0[%c0_5, %c0_6, %c1] : memref<2x80x5xf32, #tpu.memory_space<vmem>>, vector<1x79x1xf32>
    %10 = vector.shape_cast %9 : vector<1x79x1xf32> to vector<79x1xf32>
    %c1_7 = arith.constant 1 : index
    %c0_8 = arith.constant 0 : index
    %c0_9 = arith.constant 0 : index
    %11 = vector.load %arg1[%c1_7, %c0_8, %c0_9] : memref<10x1x16xf32, #tpu.memory_space<vmem>>, vector<1x1x16xf32>
    %12 = vector.shape_cast %11 : vector<1x1x16xf32> to vector<1x16xf32>
    %13 = vector.broadcast %10 : vector<79x1xf32> to vector<79x16xf32>
    %14 = vector.broadcast %12 : vector<1x16xf32> to vector<79x16xf32>
    %15 = arith.mulf %13, %14 : vector<79x16xf32>
    %16 = arith.addf %8, %15 : vector<79x16xf32>
    %c0_10 = arith.constant 0 : index
    %c0_11 = arith.constant 0 : index
    %c2 = arith.constant 2 : index
    %17 = vector.load %arg0[%c0_10, %c0_11, %c2] : memref<2x80x5xf32, #tpu.memory_space<vmem>>, vector<1x79x1xf32>
    %18 = vector.shape_cast %17 : vector<1x79x1xf32> to vector<79x1xf32>
    %c2_12 = arith.constant 2 : index
    %c0_13 = arith.constant 0 : index
    %c0_14 = arith.constant 0 : index
    %19 = vector.load %arg1[%c2_12, %c0_13, %c0_14] : memref<10x1x16xf32, #tpu.memory_space<vmem>>, vector<1x1x16xf32>
    %20 = vector.shape_cast %19 : vector<1x1x16xf32> to vector<1x16xf32>
    %21 = vector.broadcast %18 : vector<79x1xf32> to vector<79x16xf32>
    %22 = vector.broadcast %20 : vector<1x16xf32> to vector<79x16xf32>
    %23 = arith.mulf %21, %22 : vector<79x16xf32>
    %24 = arith.addf %16, %23 : vector<79x16xf32>
    %c0_15 = arith.constant 0 : index
    %c0_16 = arith.constant 0 : index
    %c3 = arith.constant 3 : index
    %25 = vector.load %arg0[%c0_15, %c0_16, %c3] : memref<2x80x5xf32, #tpu.memory_space<vmem>>, vector<1x79x1xf32>
    %26 = vector.shape_cast %25 : vector<1x79x1xf32> to vector<79x1xf32>
    %c3_17 = arith.constant 3 : index
    %c0_18 = arith.constant 0 : index
    %c0_19 = arith.constant 0 : index
    %27 = vector.load %arg1[%c3_17, %c0_18, %c0_19] : memref<10x1x16xf32, #tpu.memory_space<vmem>>, vector<1x1x16xf32>
    %28 = vector.shape_cast %27 : vector<1x1x16xf32> to vector<1x16xf32>
    %29 = vector.broadcast %26 : vector<79x1xf32> to vector<79x16xf32>
    %30 = vector.broadcast %28 : vector<1x16xf32> to vector<79x16xf32>
    %31 = arith.mulf %29, %30 : vector<79x16xf32>
    %32 = arith.addf %24, %31 : vector<79x16xf32>
    %c0_20 = arith.constant 0 : index
    %c0_21 = arith.constant 0 : index
    %c4 = arith.constant 4 : index
    %33 = vector.load %arg0[%c0_20, %c0_21, %c4] : memref<2x80x5xf32, #tpu.memory_space<vmem>>, vector<1x79x1xf32>
    %34 = vector.shape_cast %33 : vector<1x79x1xf32> to vector<79x1xf32>
    %c4_22 = arith.constant 4 : index
    %c0_23 = arith.constant 0 : index
    %c0_24 = arith.constant 0 : index
    %35 = vector.load %arg1[%c4_22, %c0_23, %c0_24] : memref<10x1x16xf32, #tpu.memory_space<vmem>>, vector<1x1x16xf32>
    %36 = vector.shape_cast %35 : vector<1x1x16xf32> to vector<1x16xf32>
    %37 = vector.broadcast %34 : vector<79x1xf32> to vector<79x16xf32>
    %38 = vector.broadcast %36 : vector<1x16xf32> to vector<79x16xf32>
    %39 = arith.mulf %37, %38 : vector<79x16xf32>
    %40 = arith.addf %32, %39 : vector<79x16xf32>
    %c0_25 = arith.constant 0 : index
    %c1_26 = arith.constant 1 : index
    %c0_27 = arith.constant 0 : index
    %41 = vector.load %arg0[%c0_25, %c1_26, %c0_27] : memref<2x80x5xf32, #tpu.memory_space<vmem>>, vector<1x79x1xf32>
    %42 = vector.shape_cast %41 : vector<1x79x1xf32> to vector<79x1xf32>
    %c5 = arith.constant 5 : index
    %c0_28 = arith.constant 0 : index
    %c0_29 = arith.constant 0 : index
    %43 = vector.load %arg1[%c5, %c0_28, %c0_29] : memref<10x1x16xf32, #tpu.memory_space<vmem>>, vector<1x1x16xf32>
    %44 = vector.shape_cast %43 : vector<1x1x16xf32> to vector<1x16xf32>
    %45 = vector.broadcast %42 : vector<79x1xf32> to vector<79x16xf32>
    %46 = vector.broadcast %44 : vector<1x16xf32> to vector<79x16xf32>
    %47 = arith.mulf %45, %46 : vector<79x16xf32>
    %48 = arith.addf %40, %47 : vector<79x16xf32>
    %c0_30 = arith.constant 0 : index
    %c1_31 = arith.constant 1 : index
    %c1_32 = arith.constant 1 : index
    %49 = vector.load %arg0[%c0_30, %c1_31, %c1_32] : memref<2x80x5xf32, #tpu.memory_space<vmem>>, vector<1x79x1xf32>
    %50 = vector.shape_cast %49 : vector<1x79x1xf32> to vector<79x1xf32>
    %c6 = arith.constant 6 : index
    %c0_33 = arith.constant 0 : index
    %c0_34 = arith.constant 0 : index
    %51 = vector.load %arg1[%c6, %c0_33, %c0_34] : memref<10x1x16xf32, #tpu.memory_space<vmem>>, vector<1x1x16xf32>
    %52 = vector.shape_cast %51 : vector<1x1x16xf32> to vector<1x16xf32>
    %53 = vector.broadcast %50 : vector<79x1xf32> to vector<79x16xf32>
    %54 = vector.broadcast %52 : vector<1x16xf32> to vector<79x16xf32>
    %55 = arith.mulf %53, %54 : vector<79x16xf32>
    %56 = arith.addf %48, %55 : vector<79x16xf32>
    %c0_35 = arith.constant 0 : index
    %c1_36 = arith.constant 1 : index
    %c2_37 = arith.constant 2 : index
    %57 = vector.load %arg0[%c0_35, %c1_36, %c2_37] : memref<2x80x5xf32, #tpu.memory_space<vmem>>, vector<1x79x1xf32>
    %58 = vector.shape_cast %57 : vector<1x79x1xf32> to vector<79x1xf32>
    %c7 = arith.constant 7 : index
    %c0_38 = arith.constant 0 : index
    %c0_39 = arith.constant 0 : index
    %59 = vector.load %arg1[%c7, %c0_38, %c0_39] : memref<10x1x16xf32, #tpu.memory_space<vmem>>, vector<1x1x16xf32>
    %60 = vector.shape_cast %59 : vector<1x1x16xf32> to vector<1x16xf32>
    %61 = vector.broadcast %58 : vector<79x1xf32> to vector<79x16xf32>
    %62 = vector.broadcast %60 : vector<1x16xf32> to vector<79x16xf32>
    %63 = arith.mulf %61, %62 : vector<79x16xf32>
    %64 = arith.addf %56, %63 : vector<79x16xf32>
    %c0_40 = arith.constant 0 : index
    %c1_41 = arith.constant 1 : index
    %c3_42 = arith.constant 3 : index
    %65 = vector.load %arg0[%c0_40, %c1_41, %c3_42] : memref<2x80x5xf32, #tpu.memory_space<vmem>>, vector<1x79x1xf32>
    %66 = vector.shape_cast %65 : vector<1x79x1xf32> to vector<79x1xf32>
    %c8 = arith.constant 8 : index
    %c0_43 = arith.constant 0 : index
    %c0_44 = arith.constant 0 : index
    %67 = vector.load %arg1[%c8, %c0_43, %c0_44] : memref<10x1x16xf32, #tpu.memory_space<vmem>>, vector<1x1x16xf32>
    %68 = vector.shape_cast %67 : vector<1x1x16xf32> to vector<1x16xf32>
    %69 = vector.broadcast %66 : vector<79x1xf32> to vector<79x16xf32>
    %70 = vector.broadcast %68 : vector<1x16xf32> to vector<79x16xf32>
    %71 = arith.mulf %69, %70 : vector<79x16xf32>
    %72 = arith.addf %64, %71 : vector<79x16xf32>
    %c0_45 = arith.constant 0 : index
    %c1_46 = arith.constant 1 : index
    %c4_47 = arith.constant 4 : index
    %73 = vector.load %arg0[%c0_45, %c1_46, %c4_47] : memref<2x80x5xf32, #tpu.memory_space<vmem>>, vector<1x79x1xf32>
    %74 = vector.shape_cast %73 : vector<1x79x1xf32> to vector<79x1xf32>
    %c9 = arith.constant 9 : index
    %c0_48 = arith.constant 0 : index
    %c0_49 = arith.constant 0 : index
    %75 = vector.load %arg1[%c9, %c0_48, %c0_49] : memref<10x1x16xf32, #tpu.memory_space<vmem>>, vector<1x1x16xf32>
    %76 = vector.shape_cast %75 : vector<1x1x16xf32> to vector<1x16xf32>
    %77 = vector.broadcast %74 : vector<79x1xf32> to vector<79x16xf32>
    %78 = vector.broadcast %76 : vector<1x16xf32> to vector<79x16xf32>
    %79 = arith.mulf %77, %78 : vector<79x16xf32>
    %80 = arith.addf %72, %79 : vector<79x16xf32>
    %cst_50 = arith.constant dense<0.000000e+00> : vector<16xf32>
    %81 = vector.multi_reduction <add>, %80, %cst_50 [0] : vector<79x16xf32> to vector<16xf32>
    %82 = vector.shape_cast %81 : vector<16xf32> to vector<1x16xf32>
    %cst_51 = arith.constant 7.900000e+01 : f32
    %83 = vector.broadcast %cst_51 : f32 to vector<1x16xf32>
    %84 = arith.divf %82, %83 : vector<1x16xf32>
    %85 = vector.broadcast %84 : vector<1x16xf32> to vector<79x16xf32>
    %86 = arith.subf %80, %85 : vector<79x16xf32>
    %87 = arith.mulf %86, %86 : vector<79x16xf32>
    %cst_52 = arith.constant dense<0.000000e+00> : vector<16xf32>
    %88 = vector.multi_reduction <add>, %87, %cst_52 [0] : vector<79x16xf32> to vector<16xf32>
    %89 = vector.shape_cast %88 : vector<16xf32> to vector<1x16xf32>
    %cst_53 = arith.constant 7.900000e+01 : f32
    %90 = vector.broadcast %cst_53 : f32 to vector<1x16xf32>
    %91 = arith.divf %89, %90 : vector<1x16xf32>
    %92 = vector.broadcast %84 : vector<1x16xf32> to vector<79x16xf32>
    %93 = arith.subf %80, %92 : vector<79x16xf32>
    %cst_54 = arith.constant 9.99999974E-6 : f32
    %94 = vector.broadcast %cst_54 : f32 to vector<1x16xf32>
    %95 = arith.addf %91, %94 : vector<1x16xf32>
    %96 = math.rsqrt %95 : vector<1x16xf32>
    %97 = vector.broadcast %96 : vector<1x16xf32> to vector<79x16xf32>
    %98 = arith.mulf %93, %97 : vector<79x16xf32>
    %c0_55 = arith.constant 0 : index
    %c0_56 = arith.constant 0 : index
    %99 = vector.load %arg2[%c0_55, %c0_56] : memref<1x16xf32, #tpu.memory_space<vmem>>, vector<1x16xf32>
    %100 = vector.broadcast %99 : vector<1x16xf32> to vector<79x16xf32>
    %101 = arith.mulf %98, %100 : vector<79x16xf32>
    %c0_57 = arith.constant 0 : index
    %c0_58 = arith.constant 0 : index
    %102 = vector.load %arg3[%c0_57, %c0_58] : memref<1x16xf32, #tpu.memory_space<vmem>>, vector<1x16xf32>
    %103 = vector.broadcast %102 : vector<1x16xf32> to vector<79x16xf32>
    %104 = arith.addf %101, %103 : vector<79x16xf32>
    %105 = arith.mulf %104, %104 : vector<79x16xf32>
    %106 = arith.mulf %104, %105 : vector<79x16xf32>
    %cst_59 = arith.constant 4.471500e-02 : f32
    %107 = vector.broadcast %cst_59 : f32 to vector<79x16xf32>
    %108 = arith.mulf %107, %106 : vector<79x16xf32>
    %109 = arith.addf %104, %108 : vector<79x16xf32>
    %cst_60 = arith.constant 0.797884583 : f32
    %110 = vector.broadcast %cst_60 : f32 to vector<79x16xf32>
    %111 = arith.mulf %110, %109 : vector<79x16xf32>
    %112 = math.tanh %111 : vector<79x16xf32>
    %cst_61 = arith.constant 1.000000e+00 : f32
    %113 = vector.broadcast %cst_61 : f32 to vector<79x16xf32>
    %114 = arith.addf %113, %112 : vector<79x16xf32>
    %cst_62 = arith.constant 5.000000e-01 : f32
    %115 = vector.broadcast %cst_62 : f32 to vector<79x16xf32>
    %116 = arith.mulf %115, %114 : vector<79x16xf32>
    %117 = arith.mulf %104, %116 : vector<79x16xf32>
    %c0_63 = arith.constant 0 : index
    %c0_64 = arith.constant 0 : index
    %c0_65 = arith.constant 0 : index
    %118 = vector.load %arg4[%c0_63, %c0_64, %c0_65] : memref<2x79x16xf32, #tpu.memory_space<vmem>>, vector<1x79x16xf32>
    %119 = vector.shape_cast %118 : vector<1x79x16xf32> to vector<79x16xf32>
    %120 = vector.shape_cast %117 : vector<79x16xf32> to vector<1x79x16xf32>
    tpu.vector_store %arg4[%c0_63, %c0_64, %c0_65], %120 {strides = array<i32>} : memref<2x79x16xf32, #tpu.memory_space<vmem>>, vector<1x79x16xf32>,
    %cst_66 = arith.constant 0.000000e+00 : f32
    %121 = vector.broadcast %cst_66 : f32 to vector<79x16xf32>
    %c1_67 = arith.constant 1 : index
    %c0_68 = arith.constant 0 : index
    %c0_69 = arith.constant 0 : index
    %122 = vector.load %arg0[%c1_67, %c0_68, %c0_69] : memref<2x80x5xf32, #tpu.memory_space<vmem>>, vector<1x79x1xf32>
    %123 = vector.shape_cast %122 : vector<1x79x1xf32> to vector<79x1xf32>
    %c0_70 = arith.constant 0 : index
    %c0_71 = arith.constant 0 : index
    %c0_72 = arith.constant 0 : index
    %124 = vector.load %arg1[%c0_70, %c0_71, %c0_72] : memref<10x1x16xf32, #tpu.memory_space<vmem>>, vector<1x1x16xf32>
    %125 = vector.shape_cast %124 : vector<1x1x16xf32> to vector<1x16xf32>
    %126 = vector.broadcast %123 : vector<79x1xf32> to vector<79x16xf32>
    %127 = vector.broadcast %125 : vector<1x16xf32> to vector<79x16xf32>
    %128 = arith.mulf %126, %127 : vector<79x16xf32>
    %129 = arith.addf %121, %128 : vector<79x16xf32>
    %c1_73 = arith.constant 1 : index
    %c0_74 = arith.constant 0 : index
    %c1_75 = arith.constant 1 : index
    %130 = vector.load %arg0[%c1_73, %c0_74, %c1_75] : memref<2x80x5xf32, #tpu.memory_space<vmem>>, vector<1x79x1xf32>
    %131 = vector.shape_cast %130 : vector<1x79x1xf32> to vector<79x1xf32>
    %c1_76 = arith.constant 1 : index
    %c0_77 = arith.constant 0 : index
    %c0_78 = arith.constant 0 : index
    %132 = vector.load %arg1[%c1_76, %c0_77, %c0_78] : memref<10x1x16xf32, #tpu.memory_space<vmem>>, vector<1x1x16xf32>
    %133 = vector.shape_cast %132 : vector<1x1x16xf32> to vector<1x16xf32>
    %134 = vector.broadcast %131 : vector<79x1xf32> to vector<79x16xf32>
    %135 = vector.broadcast %133 : vector<1x16xf32> to vector<79x16xf32>
    %136 = arith.mulf %134, %135 : vector<79x16xf32>
    %137 = arith.addf %129, %136 : vector<79x16xf32>
    %c1_79 = arith.constant 1 : index
    %c0_80 = arith.constant 0 : index
    %c2_81 = arith.constant 2 : index
    %138 = vector.load %arg0[%c1_79, %c0_80, %c2_81] : memref<2x80x5xf32, #tpu.memory_space<vmem>>, vector<1x79x1xf32>
    %139 = vector.shape_cast %138 : vector<1x79x1xf32> to vector<79x1xf32>
    %c2_82 = arith.constant 2 : index
    %c0_83 = arith.constant 0 : index
    %c0_84 = arith.constant 0 : index
    %140 = vector.load %arg1[%c2_82, %c0_83, %c0_84] : memref<10x1x16xf32, #tpu.memory_space<vmem>>, vector<1x1x16xf32>
    %141 = vector.shape_cast %140 : vector<1x1x16xf32> to vector<1x16xf32>
    %142 = vector.broadcast %139 : vector<79x1xf32> to vector<79x16xf32>
    %143 = vector.broadcast %141 : vector<1x16xf32> to vector<79x16xf32>
    %144 = arith.mulf %142, %143 : vector<79x16xf32>
    %145 = arith.addf %137, %144 : vector<79x16xf32>
    %c1_85 = arith.constant 1 : index
    %c0_86 = arith.constant 0 : index
    %c3_87 = arith.constant 3 : index
    %146 = vector.load %arg0[%c1_85, %c0_86, %c3_87] : memref<2x80x5xf32, #tpu.memory_space<vmem>>, vector<1x79x1xf32>
    %147 = vector.shape_cast %146 : vector<1x79x1xf32> to vector<79x1xf32>
    %c3_88 = arith.constant 3 : index
    %c0_89 = arith.constant 0 : index
    %c0_90 = arith.constant 0 : index
    %148 = vector.load %arg1[%c3_88, %c0_89, %c0_90] : memref<10x1x16xf32, #tpu.memory_space<vmem>>, vector<1x1x16xf32>
    %149 = vector.shape_cast %148 : vector<1x1x16xf32> to vector<1x16xf32>
    %150 = vector.broadcast %147 : vector<79x1xf32> to vector<79x16xf32>
    %151 = vector.broadcast %149 : vector<1x16xf32> to vector<79x16xf32>
    %152 = arith.mulf %150, %151 : vector<79x16xf32>
    %153 = arith.addf %145, %152 : vector<79x16xf32>
    %c1_91 = arith.constant 1 : index
    %c0_92 = arith.constant 0 : index
    %c4_93 = arith.constant 4 : index
    %154 = vector.load %arg0[%c1_91, %c0_92, %c4_93] : memref<2x80x5xf32, #tpu.memory_space<vmem>>, vector<1x79x1xf32>
    %155 = vector.shape_cast %154 : vector<1x79x1xf32> to vector<79x1xf32>
    %c4_94 = arith.constant 4 : index
    %c0_95 = arith.constant 0 : index
    %c0_96 = arith.constant 0 : index
    %156 = vector.load %arg1[%c4_94, %c0_95, %c0_96] : memref<10x1x16xf32, #tpu.memory_space<vmem>>, vector<1x1x16xf32>
    %157 = vector.shape_cast %156 : vector<1x1x16xf32> to vector<1x16xf32>
    %158 = vector.broadcast %155 : vector<79x1xf32> to vector<79x16xf32>
    %159 = vector.broadcast %157 : vector<1x16xf32> to vector<79x16xf32>
    %160 = arith.mulf %158, %159 : vector<79x16xf32>
    %161 = arith.addf %153, %160 : vector<79x16xf32>
    %c1_97 = arith.constant 1 : index
    %c1_98 = arith.constant 1 : index
    %c0_99 = arith.constant 0 : index
    %162 = vector.load %arg0[%c1_97, %c1_98, %c0_99] : memref<2x80x5xf32, #tpu.memory_space<vmem>>, vector<1x79x1xf32>
    %163 = vector.shape_cast %162 : vector<1x79x1xf32> to vector<79x1xf32>
    %c5_100 = arith.constant 5 : index
    %c0_101 = arith.constant 0 : index
    %c0_102 = arith.constant 0 : index
    %164 = vector.load %arg1[%c5_100, %c0_101, %c0_102] : memref<10x1x16xf32, #tpu.memory_space<vmem>>, vector<1x1x16xf32>
    %165 = vector.shape_cast %164 : vector<1x1x16xf32> to vector<1x16xf32>
    %166 = vector.broadcast %163 : vector<79x1xf32> to vector<79x16xf32>
    %167 = vector.broadcast %165 : vector<1x16xf32> to vector<79x16xf32>
    %168 = arith.mulf %166, %167 : vector<79x16xf32>
    %169 = arith.addf %161, %168 : vector<79x16xf32>
    %c1_103 = arith.constant 1 : index
    %c1_104 = arith.constant 1 : index
    %c1_105 = arith.constant 1 : index
    %170 = vector.load %arg0[%c1_103, %c1_104, %c1_105] : memref<2x80x5xf32, #tpu.memory_space<vmem>>, vector<1x79x1xf32>
    %171 = vector.shape_cast %170 : vector<1x79x1xf32> to vector<79x1xf32>
    %c6_106 = arith.constant 6 : index
    %c0_107 = arith.constant 0 : index
    %c0_108 = arith.constant 0 : index
    %172 = vector.load %arg1[%c6_106, %c0_107, %c0_108] : memref<10x1x16xf32, #tpu.memory_space<vmem>>, vector<1x1x16xf32>
    %173 = vector.shape_cast %172 : vector<1x1x16xf32> to vector<1x16xf32>
    %174 = vector.broadcast %171 : vector<79x1xf32> to vector<79x16xf32>
    %175 = vector.broadcast %173 : vector<1x16xf32> to vector<79x16xf32>
    %176 = arith.mulf %174, %175 : vector<79x16xf32>
    %177 = arith.addf %169, %176 : vector<79x16xf32>
    %c1_109 = arith.constant 1 : index
    %c1_110 = arith.constant 1 : index
    %c2_111 = arith.constant 2 : index
    %178 = vector.load %arg0[%c1_109, %c1_110, %c2_111] : memref<2x80x5xf32, #tpu.memory_space<vmem>>, vector<1x79x1xf32>
    %179 = vector.shape_cast %178 : vector<1x79x1xf32> to vector<79x1xf32>
    %c7_112 = arith.constant 7 : index
    %c0_113 = arith.constant 0 : index
    %c0_114 = arith.constant 0 : index
    %180 = vector.load %arg1[%c7_112, %c0_113, %c0_114] : memref<10x1x16xf32, #tpu.memory_space<vmem>>, vector<1x1x16xf32>
    %181 = vector.shape_cast %180 : vector<1x1x16xf32> to vector<1x16xf32>
    %182 = vector.broadcast %179 : vector<79x1xf32> to vector<79x16xf32>
    %183 = vector.broadcast %181 : vector<1x16xf32> to vector<79x16xf32>
    %184 = arith.mulf %182, %183 : vector<79x16xf32>
    %185 = arith.addf %177, %184 : vector<79x16xf32>
    %c1_115 = arith.constant 1 : index
    %c1_116 = arith.constant 1 : index
    %c3_117 = arith.constant 3 : index
    %186 = vector.load %arg0[%c1_115, %c1_116, %c3_117] : memref<2x80x5xf32, #tpu.memory_space<vmem>>, vector<1x79x1xf32>
    %187 = vector.shape_cast %186 : vector<1x79x1xf32> to vector<79x1xf32>
    %c8_118 = arith.constant 8 : index
    %c0_119 = arith.constant 0 : index
    %c0_120 = arith.constant 0 : index
    %188 = vector.load %arg1[%c8_118, %c0_119, %c0_120] : memref<10x1x16xf32, #tpu.memory_space<vmem>>, vector<1x1x16xf32>
    %189 = vector.shape_cast %188 : vector<1x1x16xf32> to vector<1x16xf32>
    %190 = vector.broadcast %187 : vector<79x1xf32> to vector<79x16xf32>
    %191 = vector.broadcast %189 : vector<1x16xf32> to vector<79x16xf32>
    %192 = arith.mulf %190, %191 : vector<79x16xf32>
    %193 = arith.addf %185, %192 : vector<79x16xf32>
    %c1_121 = arith.constant 1 : index
    %c1_122 = arith.constant 1 : index
    %c4_123 = arith.constant 4 : index
    %194 = vector.load %arg0[%c1_121, %c1_122, %c4_123] : memref<2x80x5xf32, #tpu.memory_space<vmem>>, vector<1x79x1xf32>
    %195 = vector.shape_cast %194 : vector<1x79x1xf32> to vector<79x1xf32>
    %c9_124 = arith.constant 9 : index
    %c0_125 = arith.constant 0 : index
    %c0_126 = arith.constant 0 : index
    %196 = vector.load %arg1[%c9_124, %c0_125, %c0_126] : memref<10x1x16xf32, #tpu.memory_space<vmem>>, vector<1x1x16xf32>
    %197 = vector.shape_cast %196 : vector<1x1x16xf32> to vector<1x16xf32>
    %198 = vector.broadcast %195 : vector<79x1xf32> to vector<79x16xf32>
    %199 = vector.broadcast %197 : vector<1x16xf32> to vector<79x16xf32>
    %200 = arith.mulf %198, %199 : vector<79x16xf32>
    %201 = arith.addf %193, %200 : vector<79x16xf32>
    %cst_127 = arith.constant dense<0.000000e+00> : vector<16xf32>
    %202 = vector.multi_reduction <add>, %201, %cst_127 [0] : vector<79x16xf32> to vector<16xf32>
    %203 = vector.shape_cast %202 : vector<16xf32> to vector<1x16xf32>
    %cst_128 = arith.constant 7.900000e+01 : f32
    %204 = vector.broadcast %cst_128 : f32 to vector<1x16xf32>
    %205 = arith.divf %203, %204 : vector<1x16xf32>
    %206 = vector.broadcast %205 : vector<1x16xf32> to vector<79x16xf32>
    %207 = arith.subf %201, %206 : vector<79x16xf32>
    %208 = arith.mulf %207, %207 : vector<79x16xf32>
    %cst_129 = arith.constant dense<0.000000e+00> : vector<16xf32>
    %209 = vector.multi_reduction <add>, %208, %cst_129 [0] : vector<79x16xf32> to vector<16xf32>
    %210 = vector.shape_cast %209 : vector<16xf32> to vector<1x16xf32>
    %cst_130 = arith.constant 7.900000e+01 : f32
    %211 = vector.broadcast %cst_130 : f32 to vector<1x16xf32>
    %212 = arith.divf %210, %211 : vector<1x16xf32>
    %213 = vector.broadcast %205 : vector<1x16xf32> to vector<79x16xf32>
    %214 = arith.subf %201, %213 : vector<79x16xf32>
    %cst_131 = arith.constant 9.99999974E-6 : f32
    %215 = vector.broadcast %cst_131 : f32 to vector<1x16xf32>
    %216 = arith.addf %212, %215 : vector<1x16xf32>
    %217 = math.rsqrt %216 : vector<1x16xf32>
    %218 = vector.broadcast %217 : vector<1x16xf32> to vector<79x16xf32>
    %219 = arith.mulf %214, %218 : vector<79x16xf32>
    %c0_132 = arith.constant 0 : index
    %c0_133 = arith.constant 0 : index
    %220 = vector.load %arg2[%c0_132, %c0_133] : memref<1x16xf32, #tpu.memory_space<vmem>>, vector<1x16xf32>
    %221 = vector.broadcast %220 : vector<1x16xf32> to vector<79x16xf32>
    %222 = arith.mulf %219, %221 : vector<79x16xf32>
    %c0_134 = arith.constant 0 : index
    %c0_135 = arith.constant 0 : index
    %223 = vector.load %arg3[%c0_134, %c0_135] : memref<1x16xf32, #tpu.memory_space<vmem>>, vector<1x16xf32>
    %224 = vector.broadcast %223 : vector<1x16xf32> to vector<79x16xf32>
    %225 = arith.addf %222, %224 : vector<79x16xf32>
    %226 = arith.mulf %225, %225 : vector<79x16xf32>
    %227 = arith.mulf %225, %226 : vector<79x16xf32>
    %cst_136 = arith.constant 4.471500e-02 : f32
    %228 = vector.broadcast %cst_136 : f32 to vector<79x16xf32>
    %229 = arith.mulf %228, %227 : vector<79x16xf32>
    %230 = arith.addf %225, %229 : vector<79x16xf32>
    %cst_137 = arith.constant 0.797884583 : f32
    %231 = vector.broadcast %cst_137 : f32 to vector<79x16xf32>
    %232 = arith.mulf %231, %230 : vector<79x16xf32>
    %233 = math.tanh %232 : vector<79x16xf32>
    %cst_138 = arith.constant 1.000000e+00 : f32
    %234 = vector.broadcast %cst_138 : f32 to vector<79x16xf32>
    %235 = arith.addf %234, %233 : vector<79x16xf32>
    %cst_139 = arith.constant 5.000000e-01 : f32
    %236 = vector.broadcast %cst_139 : f32 to vector<79x16xf32>
    %237 = arith.mulf %236, %235 : vector<79x16xf32>
    %238 = arith.mulf %225, %237 : vector<79x16xf32>
    %c1_140 = arith.constant 1 : index
    %c0_141 = arith.constant 0 : index
    %c0_142 = arith.constant 0 : index
    %239 = vector.load %arg4[%c1_140, %c0_141, %c0_142] : memref<2x79x16xf32, #tpu.memory_space<vmem>>, vector<1x79x16xf32>
    %240 = vector.shape_cast %239 : vector<1x79x16xf32> to vector<79x16xf32>
    %241 = vector.shape_cast %238 : vector<79x16xf32> to vector<1x79x16xf32>
    tpu.vector_store %arg4[%c1_140, %c0_141, %c0_142], %241 {strides = array<i32>} : memref<2x79x16xf32, #tpu.memory_space<vmem>>, vector<1x79x16xf32>,
    return
  }
}

module attributes {stable_mosaic.version = 11 : i64} {
  func.func @_conv_gelu_kernel(%arg0: memref<2x20x32xf32, #tpu.memory_space<vmem>>, %arg1: memref<2x16x16xf32, #tpu.memory_space<vmem>>, %arg2: memref<2x19x16xf32, #tpu.memory_space<vmem>>) attributes {dimension_semantics = [], scalar_prefetch = 0 : i64, scratch_operands = 0 : i64, tpu.core_type = #tpu.core_type<tc>} {
    %cst = arith.constant 0.000000e+00 : f32
    %0 = vector.broadcast %cst : f32 to vector<19x16xf32>
    %c0 = arith.constant 0 : index
    %c0_0 = arith.constant 0 : index
    %c0_1 = arith.constant 0 : index
    %1 = vector.load %arg0[%c0, %c0_0, %c0_1] : memref<2x20x32xf32, #tpu.memory_space<vmem>>, vector<1x19x16xf32>
    %2 = vector.shape_cast %1 : vector<1x19x16xf32> to vector<19x16xf32>
    %c0_2 = arith.constant 0 : index
    %c0_3 = arith.constant 0 : index
    %c0_4 = arith.constant 0 : index
    %3 = vector.load %arg1[%c0_2, %c0_3, %c0_4] : memref<2x16x16xf32, #tpu.memory_space<vmem>>, vector<1x16x16xf32>
    %4 = vector.shape_cast %3 : vector<1x16x16xf32> to vector<16x16xf32>
    %5 = arith.truncf %2 : vector<19x16xf32> to vector<19x16xbf16>
    %6 = arith.truncf %4 : vector<16x16xf32> to vector<16x16xbf16>
    %cst_5 = arith.constant dense<0.000000e+00> : vector<19x16xf32>
    %7 = tpu.matmul %5, %6, %cst_5 {dimension_numbers = #tpu.dot_dimension_numbers<[1], [0], [0], [1], [0, 0, 1, 1], [], []>} : vector<19x16xbf16>, vector<16x16xbf16>, vector<19x16xf32> -> vector<19x16xf32>
    %8 = arith.addf %0, %7 : vector<19x16xf32>
    %c0_6 = arith.constant 0 : index
    %c0_7 = arith.constant 0 : index
    %c16 = arith.constant 16 : index
    %9 = vector.load %arg0[%c0_6, %c0_7, %c16] : memref<2x20x32xf32, #tpu.memory_space<vmem>>, vector<1x19x16xf32>
    %10 = vector.shape_cast %9 : vector<1x19x16xf32> to vector<19x16xf32>
    %c1 = arith.constant 1 : index
    %c0_8 = arith.constant 0 : index
    %c0_9 = arith.constant 0 : index
    %11 = vector.load %arg1[%c1, %c0_8, %c0_9] : memref<2x16x16xf32, #tpu.memory_space<vmem>>, vector<1x16x16xf32>
    %12 = vector.shape_cast %11 : vector<1x16x16xf32> to vector<16x16xf32>
    %13 = arith.truncf %10 : vector<19x16xf32> to vector<19x16xbf16>
    %14 = arith.truncf %12 : vector<16x16xf32> to vector<16x16xbf16>
    %cst_10 = arith.constant dense<0.000000e+00> : vector<19x16xf32>
    %15 = tpu.matmul %13, %14, %cst_10 {dimension_numbers = #tpu.dot_dimension_numbers<[1], [0], [0], [1], [0, 0, 1, 1], [], []>} : vector<19x16xbf16>, vector<16x16xbf16>, vector<19x16xf32> -> vector<19x16xf32>
    %16 = arith.addf %8, %15 : vector<19x16xf32>
    %17 = arith.mulf %16, %16 : vector<19x16xf32>
    %18 = arith.mulf %16, %17 : vector<19x16xf32>
    %cst_11 = arith.constant 4.471500e-02 : f32
    %19 = vector.broadcast %cst_11 : f32 to vector<19x16xf32>
    %20 = arith.mulf %19, %18 : vector<19x16xf32>
    %21 = arith.addf %16, %20 : vector<19x16xf32>
    %cst_12 = arith.constant 0.797884583 : f32
    %22 = vector.broadcast %cst_12 : f32 to vector<19x16xf32>
    %23 = arith.mulf %22, %21 : vector<19x16xf32>
    %24 = math.tanh %23 : vector<19x16xf32>
    %cst_13 = arith.constant 1.000000e+00 : f32
    %25 = vector.broadcast %cst_13 : f32 to vector<19x16xf32>
    %26 = arith.addf %25, %24 : vector<19x16xf32>
    %cst_14 = arith.constant 5.000000e-01 : f32
    %27 = vector.broadcast %cst_14 : f32 to vector<19x16xf32>
    %28 = arith.mulf %27, %26 : vector<19x16xf32>
    %29 = arith.mulf %16, %28 : vector<19x16xf32>
    %c0_15 = arith.constant 0 : index
    %c0_16 = arith.constant 0 : index
    %c0_17 = arith.constant 0 : index
    %30 = vector.load %arg2[%c0_15, %c0_16, %c0_17] : memref<2x19x16xf32, #tpu.memory_space<vmem>>, vector<1x19x16xf32>
    %31 = vector.shape_cast %30 : vector<1x19x16xf32> to vector<19x16xf32>
    %32 = vector.shape_cast %29 : vector<19x16xf32> to vector<1x19x16xf32>
    tpu.vector_store %arg2[%c0_15, %c0_16, %c0_17], %32 {strides = array<i32>} : memref<2x19x16xf32, #tpu.memory_space<vmem>>, vector<1x19x16xf32>,
    %cst_18 = arith.constant 0.000000e+00 : f32
    %33 = vector.broadcast %cst_18 : f32 to vector<19x16xf32>
    %c1_19 = arith.constant 1 : index
    %c0_20 = arith.constant 0 : index
    %c0_21 = arith.constant 0 : index
    %34 = vector.load %arg0[%c1_19, %c0_20, %c0_21] : memref<2x20x32xf32, #tpu.memory_space<vmem>>, vector<1x19x16xf32>
    %35 = vector.shape_cast %34 : vector<1x19x16xf32> to vector<19x16xf32>
    %c0_22 = arith.constant 0 : index
    %c0_23 = arith.constant 0 : index
    %c0_24 = arith.constant 0 : index
    %36 = vector.load %arg1[%c0_22, %c0_23, %c0_24] : memref<2x16x16xf32, #tpu.memory_space<vmem>>, vector<1x16x16xf32>
    %37 = vector.shape_cast %36 : vector<1x16x16xf32> to vector<16x16xf32>
    %38 = arith.truncf %35 : vector<19x16xf32> to vector<19x16xbf16>
    %39 = arith.truncf %37 : vector<16x16xf32> to vector<16x16xbf16>
    %cst_25 = arith.constant dense<0.000000e+00> : vector<19x16xf32>
    %40 = tpu.matmul %38, %39, %cst_25 {dimension_numbers = #tpu.dot_dimension_numbers<[1], [0], [0], [1], [0, 0, 1, 1], [], []>} : vector<19x16xbf16>, vector<16x16xbf16>, vector<19x16xf32> -> vector<19x16xf32>
    %41 = arith.addf %33, %40 : vector<19x16xf32>
    %c1_26 = arith.constant 1 : index
    %c0_27 = arith.constant 0 : index
    %c16_28 = arith.constant 16 : index
    %42 = vector.load %arg0[%c1_26, %c0_27, %c16_28] : memref<2x20x32xf32, #tpu.memory_space<vmem>>, vector<1x19x16xf32>
    %43 = vector.shape_cast %42 : vector<1x19x16xf32> to vector<19x16xf32>
    %c1_29 = arith.constant 1 : index
    %c0_30 = arith.constant 0 : index
    %c0_31 = arith.constant 0 : index
    %44 = vector.load %arg1[%c1_29, %c0_30, %c0_31] : memref<2x16x16xf32, #tpu.memory_space<vmem>>, vector<1x16x16xf32>
    %45 = vector.shape_cast %44 : vector<1x16x16xf32> to vector<16x16xf32>
    %46 = arith.truncf %43 : vector<19x16xf32> to vector<19x16xbf16>
    %47 = arith.truncf %45 : vector<16x16xf32> to vector<16x16xbf16>
    %cst_32 = arith.constant dense<0.000000e+00> : vector<19x16xf32>
    %48 = tpu.matmul %46, %47, %cst_32 {dimension_numbers = #tpu.dot_dimension_numbers<[1], [0], [0], [1], [0, 0, 1, 1], [], []>} : vector<19x16xbf16>, vector<16x16xbf16>, vector<19x16xf32> -> vector<19x16xf32>
    %49 = arith.addf %41, %48 : vector<19x16xf32>
    %50 = arith.mulf %49, %49 : vector<19x16xf32>
    %51 = arith.mulf %49, %50 : vector<19x16xf32>
    %cst_33 = arith.constant 4.471500e-02 : f32
    %52 = vector.broadcast %cst_33 : f32 to vector<19x16xf32>
    %53 = arith.mulf %52, %51 : vector<19x16xf32>
    %54 = arith.addf %49, %53 : vector<19x16xf32>
    %cst_34 = arith.constant 0.797884583 : f32
    %55 = vector.broadcast %cst_34 : f32 to vector<19x16xf32>
    %56 = arith.mulf %55, %54 : vector<19x16xf32>
    %57 = math.tanh %56 : vector<19x16xf32>
    %cst_35 = arith.constant 1.000000e+00 : f32
    %58 = vector.broadcast %cst_35 : f32 to vector<19x16xf32>
    %59 = arith.addf %58, %57 : vector<19x16xf32>
    %cst_36 = arith.constant 5.000000e-01 : f32
    %60 = vector.broadcast %cst_36 : f32 to vector<19x16xf32>
    %61 = arith.mulf %60, %59 : vector<19x16xf32>
    %62 = arith.mulf %49, %61 : vector<19x16xf32>
    %c1_37 = arith.constant 1 : index
    %c0_38 = arith.constant 0 : index
    %c0_39 = arith.constant 0 : index
    %63 = vector.load %arg2[%c1_37, %c0_38, %c0_39] : memref<2x19x16xf32, #tpu.memory_space<vmem>>, vector<1x19x16xf32>
    %64 = vector.shape_cast %63 : vector<1x19x16xf32> to vector<19x16xf32>
    %65 = vector.shape_cast %62 : vector<19x16xf32> to vector<1x19x16xf32>
    tpu.vector_store %arg2[%c1_37, %c0_38, %c0_39], %65 {strides = array<i32>} : memref<2x19x16xf32, #tpu.memory_space<vmem>>, vector<1x19x16xf32>,
    return
  }
}

module attributes {stable_mosaic.version = 11 : i64} {
  func.func @_conv_gelu_kernel(%arg0: memref<2x40x32xf32, #tpu.memory_space<vmem>>, %arg1: memref<3x16x16xf32, #tpu.memory_space<vmem>>, %arg2: memref<2x39x16xf32, #tpu.memory_space<vmem>>) attributes {dimension_semantics = [], scalar_prefetch = 0 : i64, scratch_operands = 0 : i64, tpu.core_type = #tpu.core_type<tc>} {
    %cst = arith.constant 0.000000e+00 : f32
    %0 = vector.broadcast %cst : f32 to vector<39x16xf32>
    %c0 = arith.constant 0 : index
    %c0_0 = arith.constant 0 : index
    %c0_1 = arith.constant 0 : index
    %1 = vector.load %arg0[%c0, %c0_0, %c0_1] : memref<2x40x32xf32, #tpu.memory_space<vmem>>, vector<1x39x16xf32>
    %2 = vector.shape_cast %1 : vector<1x39x16xf32> to vector<39x16xf32>
    %c0_2 = arith.constant 0 : index
    %c0_3 = arith.constant 0 : index
    %c0_4 = arith.constant 0 : index
    %3 = vector.load %arg1[%c0_2, %c0_3, %c0_4] : memref<3x16x16xf32, #tpu.memory_space<vmem>>, vector<1x16x16xf32>
    %4 = vector.shape_cast %3 : vector<1x16x16xf32> to vector<16x16xf32>
    %5 = arith.truncf %2 : vector<39x16xf32> to vector<39x16xbf16>
    %6 = arith.truncf %4 : vector<16x16xf32> to vector<16x16xbf16>
    %cst_5 = arith.constant dense<0.000000e+00> : vector<39x16xf32>
    %7 = tpu.matmul %5, %6, %cst_5 {dimension_numbers = #tpu.dot_dimension_numbers<[1], [0], [0], [1], [0, 0, 1, 1], [], []>} : vector<39x16xbf16>, vector<16x16xbf16>, vector<39x16xf32> -> vector<39x16xf32>
    %8 = arith.addf %0, %7 : vector<39x16xf32>
    %c0_6 = arith.constant 0 : index
    %c0_7 = arith.constant 0 : index
    %c16 = arith.constant 16 : index
    %9 = vector.load %arg0[%c0_6, %c0_7, %c16] : memref<2x40x32xf32, #tpu.memory_space<vmem>>, vector<1x39x16xf32>
    %10 = vector.shape_cast %9 : vector<1x39x16xf32> to vector<39x16xf32>
    %c1 = arith.constant 1 : index
    %c0_8 = arith.constant 0 : index
    %c0_9 = arith.constant 0 : index
    %11 = vector.load %arg1[%c1, %c0_8, %c0_9] : memref<3x16x16xf32, #tpu.memory_space<vmem>>, vector<1x16x16xf32>
    %12 = vector.shape_cast %11 : vector<1x16x16xf32> to vector<16x16xf32>
    %13 = arith.truncf %10 : vector<39x16xf32> to vector<39x16xbf16>
    %14 = arith.truncf %12 : vector<16x16xf32> to vector<16x16xbf16>
    %cst_10 = arith.constant dense<0.000000e+00> : vector<39x16xf32>
    %15 = tpu.matmul %13, %14, %cst_10 {dimension_numbers = #tpu.dot_dimension_numbers<[1], [0], [0], [1], [0, 0, 1, 1], [], []>} : vector<39x16xbf16>, vector<16x16xbf16>, vector<39x16xf32> -> vector<39x16xf32>
    %16 = arith.addf %8, %15 : vector<39x16xf32>
    %c0_11 = arith.constant 0 : index
    %c1_12 = arith.constant 1 : index
    %c0_13 = arith.constant 0 : index
    %17 = vector.load %arg0[%c0_11, %c1_12, %c0_13] : memref<2x40x32xf32, #tpu.memory_space<vmem>>, vector<1x39x16xf32>
    %18 = vector.shape_cast %17 : vector<1x39x16xf32> to vector<39x16xf32>
    %c2 = arith.constant 2 : index
    %c0_14 = arith.constant 0 : index
    %c0_15 = arith.constant 0 : index
    %19 = vector.load %arg1[%c2, %c0_14, %c0_15] : memref<3x16x16xf32, #tpu.memory_space<vmem>>, vector<1x16x16xf32>
    %20 = vector.shape_cast %19 : vector<1x16x16xf32> to vector<16x16xf32>
    %21 = arith.truncf %18 : vector<39x16xf32> to vector<39x16xbf16>
    %22 = arith.truncf %20 : vector<16x16xf32> to vector<16x16xbf16>
    %cst_16 = arith.constant dense<0.000000e+00> : vector<39x16xf32>
    %23 = tpu.matmul %21, %22, %cst_16 {dimension_numbers = #tpu.dot_dimension_numbers<[1], [0], [0], [1], [0, 0, 1, 1], [], []>} : vector<39x16xbf16>, vector<16x16xbf16>, vector<39x16xf32> -> vector<39x16xf32>
    %24 = arith.addf %16, %23 : vector<39x16xf32>
    %25 = arith.mulf %24, %24 : vector<39x16xf32>
    %26 = arith.mulf %24, %25 : vector<39x16xf32>
    %cst_17 = arith.constant 4.471500e-02 : f32
    %27 = vector.broadcast %cst_17 : f32 to vector<39x16xf32>
    %28 = arith.mulf %27, %26 : vector<39x16xf32>
    %29 = arith.addf %24, %28 : vector<39x16xf32>
    %cst_18 = arith.constant 0.797884583 : f32
    %30 = vector.broadcast %cst_18 : f32 to vector<39x16xf32>
    %31 = arith.mulf %30, %29 : vector<39x16xf32>
    %32 = math.tanh %31 : vector<39x16xf32>
    %cst_19 = arith.constant 1.000000e+00 : f32
    %33 = vector.broadcast %cst_19 : f32 to vector<39x16xf32>
    %34 = arith.addf %33, %32 : vector<39x16xf32>
    %cst_20 = arith.constant 5.000000e-01 : f32
    %35 = vector.broadcast %cst_20 : f32 to vector<39x16xf32>
    %36 = arith.mulf %35, %34 : vector<39x16xf32>
    %37 = arith.mulf %24, %36 : vector<39x16xf32>
    %c0_21 = arith.constant 0 : index
    %c0_22 = arith.constant 0 : index
    %c0_23 = arith.constant 0 : index
    %38 = vector.load %arg2[%c0_21, %c0_22, %c0_23] : memref<2x39x16xf32, #tpu.memory_space<vmem>>, vector<1x39x16xf32>
    %39 = vector.shape_cast %38 : vector<1x39x16xf32> to vector<39x16xf32>
    %40 = vector.shape_cast %37 : vector<39x16xf32> to vector<1x39x16xf32>
    tpu.vector_store %arg2[%c0_21, %c0_22, %c0_23], %40 {strides = array<i32>} : memref<2x39x16xf32, #tpu.memory_space<vmem>>, vector<1x39x16xf32>,
    %cst_24 = arith.constant 0.000000e+00 : f32
    %41 = vector.broadcast %cst_24 : f32 to vector<39x16xf32>
    %c1_25 = arith.constant 1 : index
    %c0_26 = arith.constant 0 : index
    %c0_27 = arith.constant 0 : index
    %42 = vector.load %arg0[%c1_25, %c0_26, %c0_27] : memref<2x40x32xf32, #tpu.memory_space<vmem>>, vector<1x39x16xf32>
    %43 = vector.shape_cast %42 : vector<1x39x16xf32> to vector<39x16xf32>
    %c0_28 = arith.constant 0 : index
    %c0_29 = arith.constant 0 : index
    %c0_30 = arith.constant 0 : index
    %44 = vector.load %arg1[%c0_28, %c0_29, %c0_30] : memref<3x16x16xf32, #tpu.memory_space<vmem>>, vector<1x16x16xf32>
    %45 = vector.shape_cast %44 : vector<1x16x16xf32> to vector<16x16xf32>
    %46 = arith.truncf %43 : vector<39x16xf32> to vector<39x16xbf16>
    %47 = arith.truncf %45 : vector<16x16xf32> to vector<16x16xbf16>
    %cst_31 = arith.constant dense<0.000000e+00> : vector<39x16xf32>
    %48 = tpu.matmul %46, %47, %cst_31 {dimension_numbers = #tpu.dot_dimension_numbers<[1], [0], [0], [1], [0, 0, 1, 1], [], []>} : vector<39x16xbf16>, vector<16x16xbf16>, vector<39x16xf32> -> vector<39x16xf32>
    %49 = arith.addf %41, %48 : vector<39x16xf32>
    %c1_32 = arith.constant 1 : index
    %c0_33 = arith.constant 0 : index
    %c16_34 = arith.constant 16 : index
    %50 = vector.load %arg0[%c1_32, %c0_33, %c16_34] : memref<2x40x32xf32, #tpu.memory_space<vmem>>, vector<1x39x16xf32>
    %51 = vector.shape_cast %50 : vector<1x39x16xf32> to vector<39x16xf32>
    %c1_35 = arith.constant 1 : index
    %c0_36 = arith.constant 0 : index
    %c0_37 = arith.constant 0 : index
    %52 = vector.load %arg1[%c1_35, %c0_36, %c0_37] : memref<3x16x16xf32, #tpu.memory_space<vmem>>, vector<1x16x16xf32>
    %53 = vector.shape_cast %52 : vector<1x16x16xf32> to vector<16x16xf32>
    %54 = arith.truncf %51 : vector<39x16xf32> to vector<39x16xbf16>
    %55 = arith.truncf %53 : vector<16x16xf32> to vector<16x16xbf16>
    %cst_38 = arith.constant dense<0.000000e+00> : vector<39x16xf32>
    %56 = tpu.matmul %54, %55, %cst_38 {dimension_numbers = #tpu.dot_dimension_numbers<[1], [0], [0], [1], [0, 0, 1, 1], [], []>} : vector<39x16xbf16>, vector<16x16xbf16>, vector<39x16xf32> -> vector<39x16xf32>
    %57 = arith.addf %49, %56 : vector<39x16xf32>
    %c1_39 = arith.constant 1 : index
    %c1_40 = arith.constant 1 : index
    %c0_41 = arith.constant 0 : index
    %58 = vector.load %arg0[%c1_39, %c1_40, %c0_41] : memref<2x40x32xf32, #tpu.memory_space<vmem>>, vector<1x39x16xf32>
    %59 = vector.shape_cast %58 : vector<1x39x16xf32> to vector<39x16xf32>
    %c2_42 = arith.constant 2 : index
    %c0_43 = arith.constant 0 : index
    %c0_44 = arith.constant 0 : index
    %60 = vector.load %arg1[%c2_42, %c0_43, %c0_44] : memref<3x16x16xf32, #tpu.memory_space<vmem>>, vector<1x16x16xf32>
    %61 = vector.shape_cast %60 : vector<1x16x16xf32> to vector<16x16xf32>
    %62 = arith.truncf %59 : vector<39x16xf32> to vector<39x16xbf16>
    %63 = arith.truncf %61 : vector<16x16xf32> to vector<16x16xbf16>
    %cst_45 = arith.constant dense<0.000000e+00> : vector<39x16xf32>
    %64 = tpu.matmul %62, %63, %cst_45 {dimension_numbers = #tpu.dot_dimension_numbers<[1], [0], [0], [1], [0, 0, 1, 1], [], []>} : vector<39x16xbf16>, vector<16x16xbf16>, vector<39x16xf32> -> vector<39x16xf32>
    %65 = arith.addf %57, %64 : vector<39x16xf32>
    %66 = arith.mulf %65, %65 : vector<39x16xf32>
    %67 = arith.mulf %65, %66 : vector<39x16xf32>
    %cst_46 = arith.constant 4.471500e-02 : f32
    %68 = vector.broadcast %cst_46 : f32 to vector<39x16xf32>
    %69 = arith.mulf %68, %67 : vector<39x16xf32>
    %70 = arith.addf %65, %69 : vector<39x16xf32>
    %cst_47 = arith.constant 0.797884583 : f32
    %71 = vector.broadcast %cst_47 : f32 to vector<39x16xf32>
    %72 = arith.mulf %71, %70 : vector<39x16xf32>
    %73 = math.tanh %72 : vector<39x16xf32>
    %cst_48 = arith.constant 1.000000e+00 : f32
    %74 = vector.broadcast %cst_48 : f32 to vector<39x16xf32>
    %75 = arith.addf %74, %73 : vector<39x16xf32>
    %cst_49 = arith.constant 5.000000e-01 : f32
    %76 = vector.broadcast %cst_49 : f32 to vector<39x16xf32>
    %77 = arith.mulf %76, %75 : vector<39x16xf32>
    %78 = arith.mulf %65, %77 : vector<39x16xf32>
    %c1_50 = arith.constant 1 : index
    %c0_51 = arith.constant 0 : index
    %c0_52 = arith.constant 0 : index
    %79 = vector.load %arg2[%c1_50, %c0_51, %c0_52] : memref<2x39x16xf32, #tpu.memory_space<vmem>>, vector<1x39x16xf32>
    %80 = vector.shape_cast %79 : vector<1x39x16xf32> to vector<39x16xf32>
    %81 = vector.shape_cast %78 : vector<39x16xf32> to vector<1x39x16xf32>
    tpu.vector_store %arg2[%c1_50, %c0_51, %c0_52], %81 {strides = array<i32>} : memref<2x39x16xf32, #tpu.memory_space<vmem>>, vector<1x39x16xf32>,
    return
  }
}

module attributes {stable_mosaic.version = 11 : i64} {
  func.func @_ln_linear_kernel(%arg0: memref<38x16xf32, #tpu.memory_space<vmem>>, %arg1: memref<1x16xf32, #tpu.memory_space<vmem>>, %arg2: memref<1x16xf32, #tpu.memory_space<vmem>>, %arg3: memref<16x32xf32, #tpu.memory_space<vmem>>, %arg4: memref<1x32xf32, #tpu.memory_space<vmem>>, %arg5: memref<38x32xf32, #tpu.memory_space<vmem>>) attributes {dimension_semantics = [], scalar_prefetch = 0 : i64, scratch_operands = 0 : i64, tpu.core_type = #tpu.core_type<tc>} {
    %c0 = arith.constant 0 : index
    %c0_0 = arith.constant 0 : index
    %0 = vector.load %arg0[%c0, %c0_0] : memref<38x16xf32, #tpu.memory_space<vmem>>, vector<38x16xf32>
    %c0_1 = arith.constant 0 : index
    %c0_2 = arith.constant 0 : index
    %1 = vector.load %arg1[%c0_1, %c0_2] : memref<1x16xf32, #tpu.memory_space<vmem>>, vector<1x16xf32>
    %c0_3 = arith.constant 0 : index
    %c0_4 = arith.constant 0 : index
    %2 = vector.load %arg2[%c0_3, %c0_4] : memref<1x16xf32, #tpu.memory_space<vmem>>, vector<1x16xf32>
    %cst = arith.constant dense<0.000000e+00> : vector<38xf32>
    %3 = vector.multi_reduction <add>, %0, %cst [1] : vector<38x16xf32> to vector<38xf32>
    %4 = vector.shape_cast %3 : vector<38xf32> to vector<38x1xf32>
    %cst_5 = arith.constant 1.600000e+01 : f32
    %5 = vector.broadcast %cst_5 : f32 to vector<38x1xf32>
    %6 = arith.divf %4, %5 : vector<38x1xf32>
    %7 = vector.broadcast %6 : vector<38x1xf32> to vector<38x16xf32>
    %8 = arith.subf %0, %7 : vector<38x16xf32>
    %9 = arith.mulf %8, %8 : vector<38x16xf32>
    %cst_6 = arith.constant dense<0.000000e+00> : vector<38xf32>
    %10 = vector.multi_reduction <add>, %9, %cst_6 [1] : vector<38x16xf32> to vector<38xf32>
    %11 = vector.shape_cast %10 : vector<38xf32> to vector<38x1xf32>
    %cst_7 = arith.constant 1.600000e+01 : f32
    %12 = vector.broadcast %cst_7 : f32 to vector<38x1xf32>
    %13 = arith.divf %11, %12 : vector<38x1xf32>
    %14 = vector.broadcast %6 : vector<38x1xf32> to vector<38x16xf32>
    %15 = arith.subf %0, %14 : vector<38x16xf32>
    %cst_8 = arith.constant 9.99999974E-6 : f32
    %16 = vector.broadcast %cst_8 : f32 to vector<38x1xf32>
    %17 = arith.addf %13, %16 : vector<38x1xf32>
    %18 = math.rsqrt %17 : vector<38x1xf32>
    %19 = vector.broadcast %18 : vector<38x1xf32> to vector<38x16xf32>
    %20 = arith.mulf %15, %19 : vector<38x16xf32>
    %21 = vector.broadcast %1 : vector<1x16xf32> to vector<38x16xf32>
    %22 = arith.mulf %20, %21 : vector<38x16xf32>
    %23 = vector.broadcast %2 : vector<1x16xf32> to vector<38x16xf32>
    %24 = arith.addf %22, %23 : vector<38x16xf32>
    %c0_9 = arith.constant 0 : index
    %c0_10 = arith.constant 0 : index
    %25 = vector.load %arg3[%c0_9, %c0_10] : memref<16x32xf32, #tpu.memory_space<vmem>>, vector<16x32xf32>
    %26 = arith.truncf %24 : vector<38x16xf32> to vector<38x16xbf16>
    %27 = arith.truncf %25 : vector<16x32xf32> to vector<16x32xbf16>
    %cst_11 = arith.constant dense<0.000000e+00> : vector<38x32xf32>
    %28 = tpu.matmul %26, %27, %cst_11 {dimension_numbers = #tpu.dot_dimension_numbers<[1], [0], [0], [1], [0, 0, 1, 1], [], []>} : vector<38x16xbf16>, vector<16x32xbf16>, vector<38x32xf32> -> vector<38x32xf32>
    %c0_12 = arith.constant 0 : index
    %c0_13 = arith.constant 0 : index
    %29 = vector.load %arg4[%c0_12, %c0_13] : memref<1x32xf32, #tpu.memory_space<vmem>>, vector<1x32xf32>
    %30 = vector.broadcast %29 : vector<1x32xf32> to vector<38x32xf32>
    %31 = arith.addf %28, %30 : vector<38x32xf32>
    %c0_14 = arith.constant 0 : index
    %c0_15 = arith.constant 0 : index
    %32 = vector.load %arg5[%c0_14, %c0_15] : memref<38x32xf32, #tpu.memory_space<vmem>>, vector<38x32xf32>
    tpu.vector_store %arg5[%c0_14, %c0_15], %31 {strides = array<i32>} : memref<38x32xf32, #tpu.memory_space<vmem>>, vector<38x32xf32>,
    return
  }
}

module attributes {stable_mosaic.version = 11 : i64} {
  func.func @_encoder_layer_kernel(%arg0: memref<38x32xf32, #tpu.memory_space<vmem>>, %arg1: memref<32x96xf32, #tpu.memory_space<vmem>>, %arg2: memref<1x96xf32, #tpu.memory_space<vmem>>, %arg3: memref<32x32xf32, #tpu.memory_space<vmem>>, %arg4: memref<1x32xf32, #tpu.memory_space<vmem>>, %arg5: memref<1x32xf32, #tpu.memory_space<vmem>>, %arg6: memref<1x32xf32, #tpu.memory_space<vmem>>, %arg7: memref<32x64xf32, #tpu.memory_space<vmem>>, %arg8: memref<1x64xf32, #tpu.memory_space<vmem>>, %arg9: memref<64x32xf32, #tpu.memory_space<vmem>>, %arg10: memref<1x32xf32, #tpu.memory_space<vmem>>, %arg11: memref<1x32xf32, #tpu.memory_space<vmem>>, %arg12: memref<1x32xf32, #tpu.memory_space<vmem>>, %arg13: memref<38x32xf32, #tpu.memory_space<vmem>>) attributes {dimension_semantics = [], scalar_prefetch = 0 : i64, scratch_operands = 0 : i64, tpu.core_type = #tpu.core_type<tc>} {
    %c0 = arith.constant 0 : index
    %c0_0 = arith.constant 0 : index
    %0 = vector.load %arg0[%c0, %c0_0] : memref<38x32xf32, #tpu.memory_space<vmem>>, vector<38x32xf32>
    %c0_1 = arith.constant 0 : index
    %c0_2 = arith.constant 0 : index
    %1 = vector.load %arg1[%c0_1, %c0_2] : memref<32x96xf32, #tpu.memory_space<vmem>>, vector<32x96xf32>
    %2 = arith.truncf %0 : vector<38x32xf32> to vector<38x32xbf16>
    %3 = arith.truncf %1 : vector<32x96xf32> to vector<32x96xbf16>
    %cst = arith.constant dense<0.000000e+00> : vector<38x96xf32>
    %4 = tpu.matmul %2, %3, %cst {dimension_numbers = #tpu.dot_dimension_numbers<[1], [0], [0], [1], [0, 0, 1, 1], [], []>} : vector<38x32xbf16>, vector<32x96xbf16>, vector<38x96xf32> -> vector<38x96xf32>
    %c0_3 = arith.constant 0 : index
    %c0_4 = arith.constant 0 : index
    %5 = vector.load %arg2[%c0_3, %c0_4] : memref<1x96xf32, #tpu.memory_space<vmem>>, vector<1x96xf32>
    %6 = vector.broadcast %5 : vector<1x96xf32> to vector<38x96xf32>
    %7 = arith.addf %4, %6 : vector<38x96xf32>
    %8 = vector.extract_strided_slice %7 {offsets = [0, 0], sizes = [19, 8], strides = [1, 1]} : vector<38x96xf32> to vector<19x8xf32>
    %cst_5 = arith.constant 0.353553385 : f32
    %9 = vector.broadcast %cst_5 : f32 to vector<19x8xf32>
    %10 = arith.mulf %8, %9 : vector<19x8xf32>
    %11 = vector.extract_strided_slice %7 {offsets = [0, 32], sizes = [19, 8], strides = [1, 1]} : vector<38x96xf32> to vector<19x8xf32>
    %12 = vector.extract_strided_slice %7 {offsets = [0, 64], sizes = [19, 8], strides = [1, 1]} : vector<38x96xf32> to vector<19x8xf32>
    %13 = arith.truncf %10 : vector<19x8xf32> to vector<19x8xbf16>
    %14 = arith.truncf %11 : vector<19x8xf32> to vector<19x8xbf16>
    %cst_6 = arith.constant dense<0.000000e+00> : vector<19x19xf32>
    %15 = tpu.matmul %13, %14, %cst_6 {dimension_numbers = #tpu.dot_dimension_numbers<[1], [1], [0], [0], [0, 0, 1, 0], [], []>} : vector<19x8xbf16>, vector<19x8xbf16>, vector<19x19xf32> -> vector<19x19xf32>
    %cst_7 = arith.constant dense<0xFF800000> : vector<19xf32>
    %16 = vector.multi_reduction <maximumf>, %15, %cst_7 [1] : vector<19x19xf32> to vector<19xf32>
    %17 = vector.shape_cast %16 : vector<19xf32> to vector<19x1xf32>
    %18 = vector.broadcast %17 : vector<19x1xf32> to vector<19x19xf32>
    %19 = arith.subf %15, %18 : vector<19x19xf32>
    %20 = math.exp %19 : vector<19x19xf32>
    %cst_8 = arith.constant dense<0.000000e+00> : vector<19xf32>
    %21 = vector.multi_reduction <add>, %20, %cst_8 [1] : vector<19x19xf32> to vector<19xf32>
    %22 = vector.shape_cast %21 : vector<19xf32> to vector<19x1xf32>
    %23 = tpu.reciprocal %22 {approx = true} : vector<19x1xf32> -> vector<19x1xf32>
    %24 = vector.broadcast %23 : vector<19x1xf32> to vector<19x19xf32>
    %25 = arith.mulf %20, %24 : vector<19x19xf32>
    %26 = arith.truncf %25 : vector<19x19xf32> to vector<19x19xbf16>
    %27 = arith.truncf %12 : vector<19x8xf32> to vector<19x8xbf16>
    %cst_9 = arith.constant dense<0.000000e+00> : vector<19x8xf32>
    %28 = tpu.matmul %26, %27, %cst_9 {dimension_numbers = #tpu.dot_dimension_numbers<[1], [0], [0], [1], [0, 0, 1, 1], [], []>} : vector<19x19xbf16>, vector<19x8xbf16>, vector<19x8xf32> -> vector<19x8xf32>
    %29 = vector.extract_strided_slice %7 {offsets = [0, 8], sizes = [19, 8], strides = [1, 1]} : vector<38x96xf32> to vector<19x8xf32>
    %cst_10 = arith.constant 0.353553385 : f32
    %30 = vector.broadcast %cst_10 : f32 to vector<19x8xf32>
    %31 = arith.mulf %29, %30 : vector<19x8xf32>
    %32 = vector.extract_strided_slice %7 {offsets = [0, 40], sizes = [19, 8], strides = [1, 1]} : vector<38x96xf32> to vector<19x8xf32>
    %33 = vector.extract_strided_slice %7 {offsets = [0, 72], sizes = [19, 8], strides = [1, 1]} : vector<38x96xf32> to vector<19x8xf32>
    %34 = arith.truncf %31 : vector<19x8xf32> to vector<19x8xbf16>
    %35 = arith.truncf %32 : vector<19x8xf32> to vector<19x8xbf16>
    %cst_11 = arith.constant dense<0.000000e+00> : vector<19x19xf32>
    %36 = tpu.matmul %34, %35, %cst_11 {dimension_numbers = #tpu.dot_dimension_numbers<[1], [1], [0], [0], [0, 0, 1, 0], [], []>} : vector<19x8xbf16>, vector<19x8xbf16>, vector<19x19xf32> -> vector<19x19xf32>
    %cst_12 = arith.constant dense<0xFF800000> : vector<19xf32>
    %37 = vector.multi_reduction <maximumf>, %36, %cst_12 [1] : vector<19x19xf32> to vector<19xf32>
    %38 = vector.shape_cast %37 : vector<19xf32> to vector<19x1xf32>
    %39 = vector.broadcast %38 : vector<19x1xf32> to vector<19x19xf32>
    %40 = arith.subf %36, %39 : vector<19x19xf32>
    %41 = math.exp %40 : vector<19x19xf32>
    %cst_13 = arith.constant dense<0.000000e+00> : vector<19xf32>
    %42 = vector.multi_reduction <add>, %41, %cst_13 [1] : vector<19x19xf32> to vector<19xf32>
    %43 = vector.shape_cast %42 : vector<19xf32> to vector<19x1xf32>
    %44 = tpu.reciprocal %43 {approx = true} : vector<19x1xf32> -> vector<19x1xf32>
    %45 = vector.broadcast %44 : vector<19x1xf32> to vector<19x19xf32>
    %46 = arith.mulf %41, %45 : vector<19x19xf32>
    %47 = arith.truncf %46 : vector<19x19xf32> to vector<19x19xbf16>
    %48 = arith.truncf %33 : vector<19x8xf32> to vector<19x8xbf16>
    %cst_14 = arith.constant dense<0.000000e+00> : vector<19x8xf32>
    %49 = tpu.matmul %47, %48, %cst_14 {dimension_numbers = #tpu.dot_dimension_numbers<[1], [0], [0], [1], [0, 0, 1, 1], [], []>} : vector<19x19xbf16>, vector<19x8xbf16>, vector<19x8xf32> -> vector<19x8xf32>
    %50 = vector.extract_strided_slice %7 {offsets = [0, 16], sizes = [19, 8], strides = [1, 1]} : vector<38x96xf32> to vector<19x8xf32>
    %cst_15 = arith.constant 0.353553385 : f32
    %51 = vector.broadcast %cst_15 : f32 to vector<19x8xf32>
    %52 = arith.mulf %50, %51 : vector<19x8xf32>
    %53 = vector.extract_strided_slice %7 {offsets = [0, 48], sizes = [19, 8], strides = [1, 1]} : vector<38x96xf32> to vector<19x8xf32>
    %54 = vector.extract_strided_slice %7 {offsets = [0, 80], sizes = [19, 8], strides = [1, 1]} : vector<38x96xf32> to vector<19x8xf32>
    %55 = arith.truncf %52 : vector<19x8xf32> to vector<19x8xbf16>
    %56 = arith.truncf %53 : vector<19x8xf32> to vector<19x8xbf16>
    %cst_16 = arith.constant dense<0.000000e+00> : vector<19x19xf32>
    %57 = tpu.matmul %55, %56, %cst_16 {dimension_numbers = #tpu.dot_dimension_numbers<[1], [1], [0], [0], [0, 0, 1, 0], [], []>} : vector<19x8xbf16>, vector<19x8xbf16>, vector<19x19xf32> -> vector<19x19xf32>
    %cst_17 = arith.constant dense<0xFF800000> : vector<19xf32>
    %58 = vector.multi_reduction <maximumf>, %57, %cst_17 [1] : vector<19x19xf32> to vector<19xf32>
    %59 = vector.shape_cast %58 : vector<19xf32> to vector<19x1xf32>
    %60 = vector.broadcast %59 : vector<19x1xf32> to vector<19x19xf32>
    %61 = arith.subf %57, %60 : vector<19x19xf32>
    %62 = math.exp %61 : vector<19x19xf32>
    %cst_18 = arith.constant dense<0.000000e+00> : vector<19xf32>
    %63 = vector.multi_reduction <add>, %62, %cst_18 [1] : vector<19x19xf32> to vector<19xf32>
    %64 = vector.shape_cast %63 : vector<19xf32> to vector<19x1xf32>
    %65 = tpu.reciprocal %64 {approx = true} : vector<19x1xf32> -> vector<19x1xf32>
    %66 = vector.broadcast %65 : vector<19x1xf32> to vector<19x19xf32>
    %67 = arith.mulf %62, %66 : vector<19x19xf32>
    %68 = arith.truncf %67 : vector<19x19xf32> to vector<19x19xbf16>
    %69 = arith.truncf %54 : vector<19x8xf32> to vector<19x8xbf16>
    %cst_19 = arith.constant dense<0.000000e+00> : vector<19x8xf32>
    %70 = tpu.matmul %68, %69, %cst_19 {dimension_numbers = #tpu.dot_dimension_numbers<[1], [0], [0], [1], [0, 0, 1, 1], [], []>} : vector<19x19xbf16>, vector<19x8xbf16>, vector<19x8xf32> -> vector<19x8xf32>
    %71 = vector.extract_strided_slice %7 {offsets = [0, 24], sizes = [19, 8], strides = [1, 1]} : vector<38x96xf32> to vector<19x8xf32>
    %cst_20 = arith.constant 0.353553385 : f32
    %72 = vector.broadcast %cst_20 : f32 to vector<19x8xf32>
    %73 = arith.mulf %71, %72 : vector<19x8xf32>
    %74 = vector.extract_strided_slice %7 {offsets = [0, 56], sizes = [19, 8], strides = [1, 1]} : vector<38x96xf32> to vector<19x8xf32>
    %75 = vector.extract_strided_slice %7 {offsets = [0, 88], sizes = [19, 8], strides = [1, 1]} : vector<38x96xf32> to vector<19x8xf32>
    %76 = arith.truncf %73 : vector<19x8xf32> to vector<19x8xbf16>
    %77 = arith.truncf %74 : vector<19x8xf32> to vector<19x8xbf16>
    %cst_21 = arith.constant dense<0.000000e+00> : vector<19x19xf32>
    %78 = tpu.matmul %76, %77, %cst_21 {dimension_numbers = #tpu.dot_dimension_numbers<[1], [1], [0], [0], [0, 0, 1, 0], [], []>} : vector<19x8xbf16>, vector<19x8xbf16>, vector<19x19xf32> -> vector<19x19xf32>
    %cst_22 = arith.constant dense<0xFF800000> : vector<19xf32>
    %79 = vector.multi_reduction <maximumf>, %78, %cst_22 [1] : vector<19x19xf32> to vector<19xf32>
    %80 = vector.shape_cast %79 : vector<19xf32> to vector<19x1xf32>
    %81 = vector.broadcast %80 : vector<19x1xf32> to vector<19x19xf32>
    %82 = arith.subf %78, %81 : vector<19x19xf32>
    %83 = math.exp %82 : vector<19x19xf32>
    %cst_23 = arith.constant dense<0.000000e+00> : vector<19xf32>
    %84 = vector.multi_reduction <add>, %83, %cst_23 [1] : vector<19x19xf32> to vector<19xf32>
    %85 = vector.shape_cast %84 : vector<19xf32> to vector<19x1xf32>
    %86 = tpu.reciprocal %85 {approx = true} : vector<19x1xf32> -> vector<19x1xf32>
    %87 = vector.broadcast %86 : vector<19x1xf32> to vector<19x19xf32>
    %88 = arith.mulf %83, %87 : vector<19x19xf32>
    %89 = arith.truncf %88 : vector<19x19xf32> to vector<19x19xbf16>
    %90 = arith.truncf %75 : vector<19x8xf32> to vector<19x8xbf16>
    %cst_24 = arith.constant dense<0.000000e+00> : vector<19x8xf32>
    %91 = tpu.matmul %89, %90, %cst_24 {dimension_numbers = #tpu.dot_dimension_numbers<[1], [0], [0], [1], [0, 0, 1, 1], [], []>} : vector<19x19xbf16>, vector<19x8xbf16>, vector<19x8xf32> -> vector<19x8xf32>
    %92 = tpu.concatenate %28, %49, %70, %91 in 1 : vector<19x8xf32>, vector<19x8xf32>, vector<19x8xf32>, vector<19x8xf32> -> vector<19x32xf32>
    %93 = vector.extract_strided_slice %7 {offsets = [19, 0], sizes = [19, 8], strides = [1, 1]} : vector<38x96xf32> to vector<19x8xf32>
    %cst_25 = arith.constant 0.353553385 : f32
    %94 = vector.broadcast %cst_25 : f32 to vector<19x8xf32>
    %95 = arith.mulf %93, %94 : vector<19x8xf32>
    %96 = vector.extract_strided_slice %7 {offsets = [19, 32], sizes = [19, 8], strides = [1, 1]} : vector<38x96xf32> to vector<19x8xf32>
    %97 = vector.extract_strided_slice %7 {offsets = [19, 64], sizes = [19, 8], strides = [1, 1]} : vector<38x96xf32> to vector<19x8xf32>
    %98 = arith.truncf %95 : vector<19x8xf32> to vector<19x8xbf16>
    %99 = arith.truncf %96 : vector<19x8xf32> to vector<19x8xbf16>
    %cst_26 = arith.constant dense<0.000000e+00> : vector<19x19xf32>
    %100 = tpu.matmul %98, %99, %cst_26 {dimension_numbers = #tpu.dot_dimension_numbers<[1], [1], [0], [0], [0, 0, 1, 0], [], []>} : vector<19x8xbf16>, vector<19x8xbf16>, vector<19x19xf32> -> vector<19x19xf32>
    %cst_27 = arith.constant dense<0xFF800000> : vector<19xf32>
    %101 = vector.multi_reduction <maximumf>, %100, %cst_27 [1] : vector<19x19xf32> to vector<19xf32>
    %102 = vector.shape_cast %101 : vector<19xf32> to vector<19x1xf32>
    %103 = vector.broadcast %102 : vector<19x1xf32> to vector<19x19xf32>
    %104 = arith.subf %100, %103 : vector<19x19xf32>
    %105 = math.exp %104 : vector<19x19xf32>
    %cst_28 = arith.constant dense<0.000000e+00> : vector<19xf32>
    %106 = vector.multi_reduction <add>, %105, %cst_28 [1] : vector<19x19xf32> to vector<19xf32>
    %107 = vector.shape_cast %106 : vector<19xf32> to vector<19x1xf32>
    %108 = tpu.reciprocal %107 {approx = true} : vector<19x1xf32> -> vector<19x1xf32>
    %109 = vector.broadcast %108 : vector<19x1xf32> to vector<19x19xf32>
    %110 = arith.mulf %105, %109 : vector<19x19xf32>
    %111 = arith.truncf %110 : vector<19x19xf32> to vector<19x19xbf16>
    %112 = arith.truncf %97 : vector<19x8xf32> to vector<19x8xbf16>
    %cst_29 = arith.constant dense<0.000000e+00> : vector<19x8xf32>
    %113 = tpu.matmul %111, %112, %cst_29 {dimension_numbers = #tpu.dot_dimension_numbers<[1], [0], [0], [1], [0, 0, 1, 1], [], []>} : vector<19x19xbf16>, vector<19x8xbf16>, vector<19x8xf32> -> vector<19x8xf32>
    %114 = vector.extract_strided_slice %7 {offsets = [19, 8], sizes = [19, 8], strides = [1, 1]} : vector<38x96xf32> to vector<19x8xf32>
    %cst_30 = arith.constant 0.353553385 : f32
    %115 = vector.broadcast %cst_30 : f32 to vector<19x8xf32>
    %116 = arith.mulf %114, %115 : vector<19x8xf32>
    %117 = vector.extract_strided_slice %7 {offsets = [19, 40], sizes = [19, 8], strides = [1, 1]} : vector<38x96xf32> to vector<19x8xf32>
    %118 = vector.extract_strided_slice %7 {offsets = [19, 72], sizes = [19, 8], strides = [1, 1]} : vector<38x96xf32> to vector<19x8xf32>
    %119 = arith.truncf %116 : vector<19x8xf32> to vector<19x8xbf16>
    %120 = arith.truncf %117 : vector<19x8xf32> to vector<19x8xbf16>
    %cst_31 = arith.constant dense<0.000000e+00> : vector<19x19xf32>
    %121 = tpu.matmul %119, %120, %cst_31 {dimension_numbers = #tpu.dot_dimension_numbers<[1], [1], [0], [0], [0, 0, 1, 0], [], []>} : vector<19x8xbf16>, vector<19x8xbf16>, vector<19x19xf32> -> vector<19x19xf32>
    %cst_32 = arith.constant dense<0xFF800000> : vector<19xf32>
    %122 = vector.multi_reduction <maximumf>, %121, %cst_32 [1] : vector<19x19xf32> to vector<19xf32>
    %123 = vector.shape_cast %122 : vector<19xf32> to vector<19x1xf32>
    %124 = vector.broadcast %123 : vector<19x1xf32> to vector<19x19xf32>
    %125 = arith.subf %121, %124 : vector<19x19xf32>
    %126 = math.exp %125 : vector<19x19xf32>
    %cst_33 = arith.constant dense<0.000000e+00> : vector<19xf32>
    %127 = vector.multi_reduction <add>, %126, %cst_33 [1] : vector<19x19xf32> to vector<19xf32>
    %128 = vector.shape_cast %127 : vector<19xf32> to vector<19x1xf32>
    %129 = tpu.reciprocal %128 {approx = true} : vector<19x1xf32> -> vector<19x1xf32>
    %130 = vector.broadcast %129 : vector<19x1xf32> to vector<19x19xf32>
    %131 = arith.mulf %126, %130 : vector<19x19xf32>
    %132 = arith.truncf %131 : vector<19x19xf32> to vector<19x19xbf16>
    %133 = arith.truncf %118 : vector<19x8xf32> to vector<19x8xbf16>
    %cst_34 = arith.constant dense<0.000000e+00> : vector<19x8xf32>
    %134 = tpu.matmul %132, %133, %cst_34 {dimension_numbers = #tpu.dot_dimension_numbers<[1], [0], [0], [1], [0, 0, 1, 1], [], []>} : vector<19x19xbf16>, vector<19x8xbf16>, vector<19x8xf32> -> vector<19x8xf32>
    %135 = vector.extract_strided_slice %7 {offsets = [19, 16], sizes = [19, 8], strides = [1, 1]} : vector<38x96xf32> to vector<19x8xf32>
    %cst_35 = arith.constant 0.353553385 : f32
    %136 = vector.broadcast %cst_35 : f32 to vector<19x8xf32>
    %137 = arith.mulf %135, %136 : vector<19x8xf32>
    %138 = vector.extract_strided_slice %7 {offsets = [19, 48], sizes = [19, 8], strides = [1, 1]} : vector<38x96xf32> to vector<19x8xf32>
    %139 = vector.extract_strided_slice %7 {offsets = [19, 80], sizes = [19, 8], strides = [1, 1]} : vector<38x96xf32> to vector<19x8xf32>
    %140 = arith.truncf %137 : vector<19x8xf32> to vector<19x8xbf16>
    %141 = arith.truncf %138 : vector<19x8xf32> to vector<19x8xbf16>
    %cst_36 = arith.constant dense<0.000000e+00> : vector<19x19xf32>
    %142 = tpu.matmul %140, %141, %cst_36 {dimension_numbers = #tpu.dot_dimension_numbers<[1], [1], [0], [0], [0, 0, 1, 0], [], []>} : vector<19x8xbf16>, vector<19x8xbf16>, vector<19x19xf32> -> vector<19x19xf32>
    %cst_37 = arith.constant dense<0xFF800000> : vector<19xf32>
    %143 = vector.multi_reduction <maximumf>, %142, %cst_37 [1] : vector<19x19xf32> to vector<19xf32>
    %144 = vector.shape_cast %143 : vector<19xf32> to vector<19x1xf32>
    %145 = vector.broadcast %144 : vector<19x1xf32> to vector<19x19xf32>
    %146 = arith.subf %142, %145 : vector<19x19xf32>
    %147 = math.exp %146 : vector<19x19xf32>
    %cst_38 = arith.constant dense<0.000000e+00> : vector<19xf32>
    %148 = vector.multi_reduction <add>, %147, %cst_38 [1] : vector<19x19xf32> to vector<19xf32>
    %149 = vector.shape_cast %148 : vector<19xf32> to vector<19x1xf32>
    %150 = tpu.reciprocal %149 {approx = true} : vector<19x1xf32> -> vector<19x1xf32>
    %151 = vector.broadcast %150 : vector<19x1xf32> to vector<19x19xf32>
    %152 = arith.mulf %147, %151 : vector<19x19xf32>
    %153 = arith.truncf %152 : vector<19x19xf32> to vector<19x19xbf16>
    %154 = arith.truncf %139 : vector<19x8xf32> to vector<19x8xbf16>
    %cst_39 = arith.constant dense<0.000000e+00> : vector<19x8xf32>
    %155 = tpu.matmul %153, %154, %cst_39 {dimension_numbers = #tpu.dot_dimension_numbers<[1], [0], [0], [1], [0, 0, 1, 1], [], []>} : vector<19x19xbf16>, vector<19x8xbf16>, vector<19x8xf32> -> vector<19x8xf32>
    %156 = vector.extract_strided_slice %7 {offsets = [19, 24], sizes = [19, 8], strides = [1, 1]} : vector<38x96xf32> to vector<19x8xf32>
    %cst_40 = arith.constant 0.353553385 : f32
    %157 = vector.broadcast %cst_40 : f32 to vector<19x8xf32>
    %158 = arith.mulf %156, %157 : vector<19x8xf32>
    %159 = vector.extract_strided_slice %7 {offsets = [19, 56], sizes = [19, 8], strides = [1, 1]} : vector<38x96xf32> to vector<19x8xf32>
    %160 = vector.extract_strided_slice %7 {offsets = [19, 88], sizes = [19, 8], strides = [1, 1]} : vector<38x96xf32> to vector<19x8xf32>
    %161 = arith.truncf %158 : vector<19x8xf32> to vector<19x8xbf16>
    %162 = arith.truncf %159 : vector<19x8xf32> to vector<19x8xbf16>
    %cst_41 = arith.constant dense<0.000000e+00> : vector<19x19xf32>
    %163 = tpu.matmul %161, %162, %cst_41 {dimension_numbers = #tpu.dot_dimension_numbers<[1], [1], [0], [0], [0, 0, 1, 0], [], []>} : vector<19x8xbf16>, vector<19x8xbf16>, vector<19x19xf32> -> vector<19x19xf32>
    %cst_42 = arith.constant dense<0xFF800000> : vector<19xf32>
    %164 = vector.multi_reduction <maximumf>, %163, %cst_42 [1] : vector<19x19xf32> to vector<19xf32>
    %165 = vector.shape_cast %164 : vector<19xf32> to vector<19x1xf32>
    %166 = vector.broadcast %165 : vector<19x1xf32> to vector<19x19xf32>
    %167 = arith.subf %163, %166 : vector<19x19xf32>
    %168 = math.exp %167 : vector<19x19xf32>
    %cst_43 = arith.constant dense<0.000000e+00> : vector<19xf32>
    %169 = vector.multi_reduction <add>, %168, %cst_43 [1] : vector<19x19xf32> to vector<19xf32>
    %170 = vector.shape_cast %169 : vector<19xf32> to vector<19x1xf32>
    %171 = tpu.reciprocal %170 {approx = true} : vector<19x1xf32> -> vector<19x1xf32>
    %172 = vector.broadcast %171 : vector<19x1xf32> to vector<19x19xf32>
    %173 = arith.mulf %168, %172 : vector<19x19xf32>
    %174 = arith.truncf %173 : vector<19x19xf32> to vector<19x19xbf16>
    %175 = arith.truncf %160 : vector<19x8xf32> to vector<19x8xbf16>
    %cst_44 = arith.constant dense<0.000000e+00> : vector<19x8xf32>
    %176 = tpu.matmul %174, %175, %cst_44 {dimension_numbers = #tpu.dot_dimension_numbers<[1], [0], [0], [1], [0, 0, 1, 1], [], []>} : vector<19x19xbf16>, vector<19x8xbf16>, vector<19x8xf32> -> vector<19x8xf32>
    %177 = tpu.concatenate %113, %134, %155, %176 in 1 : vector<19x8xf32>, vector<19x8xf32>, vector<19x8xf32>, vector<19x8xf32> -> vector<19x32xf32>
    %178 = tpu.concatenate %92, %177 in 0 : vector<19x32xf32>, vector<19x32xf32> -> vector<38x32xf32>
    %c0_45 = arith.constant 0 : index
    %c0_46 = arith.constant 0 : index
    %179 = vector.load %arg3[%c0_45, %c0_46] : memref<32x32xf32, #tpu.memory_space<vmem>>, vector<32x32xf32>
    %180 = arith.truncf %178 : vector<38x32xf32> to vector<38x32xbf16>
    %181 = arith.truncf %179 : vector<32x32xf32> to vector<32x32xbf16>
    %cst_47 = arith.constant dense<0.000000e+00> : vector<38x32xf32>
    %182 = tpu.matmul %180, %181, %cst_47 {dimension_numbers = #tpu.dot_dimension_numbers<[1], [0], [0], [1], [0, 0, 1, 1], [], []>} : vector<38x32xbf16>, vector<32x32xbf16>, vector<38x32xf32> -> vector<38x32xf32>
    %c0_48 = arith.constant 0 : index
    %c0_49 = arith.constant 0 : index
    %183 = vector.load %arg4[%c0_48, %c0_49] : memref<1x32xf32, #tpu.memory_space<vmem>>, vector<1x32xf32>
    %184 = vector.broadcast %183 : vector<1x32xf32> to vector<38x32xf32>
    %185 = arith.addf %182, %184 : vector<38x32xf32>
    %186 = arith.addf %185, %0 : vector<38x32xf32>
    %c0_50 = arith.constant 0 : index
    %c0_51 = arith.constant 0 : index
    %187 = vector.load %arg5[%c0_50, %c0_51] : memref<1x32xf32, #tpu.memory_space<vmem>>, vector<1x32xf32>
    %c0_52 = arith.constant 0 : index
    %c0_53 = arith.constant 0 : index
    %188 = vector.load %arg6[%c0_52, %c0_53] : memref<1x32xf32, #tpu.memory_space<vmem>>, vector<1x32xf32>
    %cst_54 = arith.constant dense<0.000000e+00> : vector<38xf32>
    %189 = vector.multi_reduction <add>, %186, %cst_54 [1] : vector<38x32xf32> to vector<38xf32>
    %190 = vector.shape_cast %189 : vector<38xf32> to vector<38x1xf32>
    %cst_55 = arith.constant 3.200000e+01 : f32
    %191 = vector.broadcast %cst_55 : f32 to vector<38x1xf32>
    %192 = arith.divf %190, %191 : vector<38x1xf32>
    %193 = vector.broadcast %192 : vector<38x1xf32> to vector<38x32xf32>
    %194 = arith.subf %186, %193 : vector<38x32xf32>
    %195 = arith.mulf %194, %194 : vector<38x32xf32>
    %cst_56 = arith.constant dense<0.000000e+00> : vector<38xf32>
    %196 = vector.multi_reduction <add>, %195, %cst_56 [1] : vector<38x32xf32> to vector<38xf32>
    %197 = vector.shape_cast %196 : vector<38xf32> to vector<38x1xf32>
    %cst_57 = arith.constant 3.200000e+01 : f32
    %198 = vector.broadcast %cst_57 : f32 to vector<38x1xf32>
    %199 = arith.divf %197, %198 : vector<38x1xf32>
    %200 = vector.broadcast %192 : vector<38x1xf32> to vector<38x32xf32>
    %201 = arith.subf %186, %200 : vector<38x32xf32>
    %cst_58 = arith.constant 9.99999974E-6 : f32
    %202 = vector.broadcast %cst_58 : f32 to vector<38x1xf32>
    %203 = arith.addf %199, %202 : vector<38x1xf32>
    %204 = math.rsqrt %203 : vector<38x1xf32>
    %205 = vector.broadcast %204 : vector<38x1xf32> to vector<38x32xf32>
    %206 = arith.mulf %201, %205 : vector<38x32xf32>
    %207 = vector.broadcast %187 : vector<1x32xf32> to vector<38x32xf32>
    %208 = arith.mulf %206, %207 : vector<38x32xf32>
    %209 = vector.broadcast %188 : vector<1x32xf32> to vector<38x32xf32>
    %210 = arith.addf %208, %209 : vector<38x32xf32>
    %c0_59 = arith.constant 0 : index
    %c0_60 = arith.constant 0 : index
    %211 = vector.load %arg7[%c0_59, %c0_60] : memref<32x64xf32, #tpu.memory_space<vmem>>, vector<32x64xf32>
    %212 = arith.truncf %210 : vector<38x32xf32> to vector<38x32xbf16>
    %213 = arith.truncf %211 : vector<32x64xf32> to vector<32x64xbf16>
    %cst_61 = arith.constant dense<0.000000e+00> : vector<38x64xf32>
    %214 = tpu.matmul %212, %213, %cst_61 {dimension_numbers = #tpu.dot_dimension_numbers<[1], [0], [0], [1], [0, 0, 1, 1], [], []>} : vector<38x32xbf16>, vector<32x64xbf16>, vector<38x64xf32> -> vector<38x64xf32>
    %c0_62 = arith.constant 0 : index
    %c0_63 = arith.constant 0 : index
    %215 = vector.load %arg8[%c0_62, %c0_63] : memref<1x64xf32, #tpu.memory_space<vmem>>, vector<1x64xf32>
    %216 = vector.broadcast %215 : vector<1x64xf32> to vector<38x64xf32>
    %217 = arith.addf %214, %216 : vector<38x64xf32>
    %218 = arith.mulf %217, %217 : vector<38x64xf32>
    %219 = arith.mulf %217, %218 : vector<38x64xf32>
    %cst_64 = arith.constant 4.471500e-02 : f32
    %220 = vector.broadcast %cst_64 : f32 to vector<38x64xf32>
    %221 = arith.mulf %220, %219 : vector<38x64xf32>
    %222 = arith.addf %217, %221 : vector<38x64xf32>
    %cst_65 = arith.constant 0.797884583 : f32
    %223 = vector.broadcast %cst_65 : f32 to vector<38x64xf32>
    %224 = arith.mulf %223, %222 : vector<38x64xf32>
    %225 = math.tanh %224 : vector<38x64xf32>
    %cst_66 = arith.constant 1.000000e+00 : f32
    %226 = vector.broadcast %cst_66 : f32 to vector<38x64xf32>
    %227 = arith.addf %226, %225 : vector<38x64xf32>
    %cst_67 = arith.constant 5.000000e-01 : f32
    %228 = vector.broadcast %cst_67 : f32 to vector<38x64xf32>
    %229 = arith.mulf %228, %227 : vector<38x64xf32>
    %230 = arith.mulf %217, %229 : vector<38x64xf32>
    %c0_68 = arith.constant 0 : index
    %c0_69 = arith.constant 0 : index
    %231 = vector.load %arg9[%c0_68, %c0_69] : memref<64x32xf32, #tpu.memory_space<vmem>>, vector<64x32xf32>
    %232 = arith.truncf %230 : vector<38x64xf32> to vector<38x64xbf16>
    %233 = arith.truncf %231 : vector<64x32xf32> to vector<64x32xbf16>
    %cst_70 = arith.constant dense<0.000000e+00> : vector<38x32xf32>
    %234 = tpu.matmul %232, %233, %cst_70 {dimension_numbers = #tpu.dot_dimension_numbers<[1], [0], [0], [1], [0, 0, 1, 1], [], []>} : vector<38x64xbf16>, vector<64x32xbf16>, vector<38x32xf32> -> vector<38x32xf32>
    %c0_71 = arith.constant 0 : index
    %c0_72 = arith.constant 0 : index
    %235 = vector.load %arg10[%c0_71, %c0_72] : memref<1x32xf32, #tpu.memory_space<vmem>>, vector<1x32xf32>
    %236 = vector.broadcast %235 : vector<1x32xf32> to vector<38x32xf32>
    %237 = arith.addf %234, %236 : vector<38x32xf32>
    %238 = arith.addf %237, %210 : vector<38x32xf32>
    %c0_73 = arith.constant 0 : index
    %c0_74 = arith.constant 0 : index
    %239 = vector.load %arg11[%c0_73, %c0_74] : memref<1x32xf32, #tpu.memory_space<vmem>>, vector<1x32xf32>
    %c0_75 = arith.constant 0 : index
    %c0_76 = arith.constant 0 : index
    %240 = vector.load %arg12[%c0_75, %c0_76] : memref<1x32xf32, #tpu.memory_space<vmem>>, vector<1x32xf32>
    %cst_77 = arith.constant dense<0.000000e+00> : vector<38xf32>
    %241 = vector.multi_reduction <add>, %238, %cst_77 [1] : vector<38x32xf32> to vector<38xf32>
    %242 = vector.shape_cast %241 : vector<38xf32> to vector<38x1xf32>
    %cst_78 = arith.constant 3.200000e+01 : f32
    %243 = vector.broadcast %cst_78 : f32 to vector<38x1xf32>
    %244 = arith.divf %242, %243 : vector<38x1xf32>
    %245 = vector.broadcast %244 : vector<38x1xf32> to vector<38x32xf32>
    %246 = arith.subf %238, %245 : vector<38x32xf32>
    %247 = arith.mulf %246, %246 : vector<38x32xf32>
    %cst_79 = arith.constant dense<0.000000e+00> : vector<38xf32>
    %248 = vector.multi_reduction <add>, %247, %cst_79 [1] : vector<38x32xf32> to vector<38xf32>
    %249 = vector.shape_cast %248 : vector<38xf32> to vector<38x1xf32>
    %cst_80 = arith.constant 3.200000e+01 : f32
    %250 = vector.broadcast %cst_80 : f32 to vector<38x1xf32>
    %251 = arith.divf %249, %250 : vector<38x1xf32>
    %252 = vector.broadcast %244 : vector<38x1xf32> to vector<38x32xf32>
    %253 = arith.subf %238, %252 : vector<38x32xf32>
    %cst_81 = arith.constant 9.99999974E-6 : f32
    %254 = vector.broadcast %cst_81 : f32 to vector<38x1xf32>
    %255 = arith.addf %251, %254 : vector<38x1xf32>
    %256 = math.rsqrt %255 : vector<38x1xf32>
    %257 = vector.broadcast %256 : vector<38x1xf32> to vector<38x32xf32>
    %258 = arith.mulf %253, %257 : vector<38x32xf32>
    %259 = vector.broadcast %239 : vector<1x32xf32> to vector<38x32xf32>
    %260 = arith.mulf %258, %259 : vector<38x32xf32>
    %261 = vector.broadcast %240 : vector<1x32xf32> to vector<38x32xf32>
    %262 = arith.addf %260, %261 : vector<38x32xf32>
    %c0_82 = arith.constant 0 : index
    %c0_83 = arith.constant 0 : index
    %263 = vector.load %arg13[%c0_82, %c0_83] : memref<38x32xf32, #tpu.memory_space<vmem>>, vector<38x32xf32>
    tpu.vector_store %arg13[%c0_82, %c0_83], %262 {strides = array<i32>} : memref<38x32xf32, #tpu.memory_space<vmem>>, vector<38x32xf32>,
    return
  }
}

module attributes {stable_mosaic.version = 11 : i64} {
  func.func @_posconv_add_ln_kernel(%arg0: memref<2x35x32xf32, #tpu.memory_space<vmem>>, %arg1: memref<16x32x32xf32, #tpu.memory_space<vmem>>, %arg2: memref<1x32xf32, #tpu.memory_space<vmem>>, %arg3: memref<1x32xf32, #tpu.memory_space<vmem>>, %arg4: memref<1x32xf32, #tpu.memory_space<vmem>>, %arg5: memref<2x19x32xf32, #tpu.memory_space<vmem>>) attributes {dimension_semantics = [], scalar_prefetch = 0 : i64, scratch_operands = 0 : i64, tpu.core_type = #tpu.core_type<tc>} {
    %cst = arith.constant 0.000000e+00 : f32
    %0 = vector.broadcast %cst : f32 to vector<19x32xf32>
    %c0 = arith.constant 0 : index
    %c0_0 = arith.constant 0 : index
    %1 = vector.load %arg2[%c0, %c0_0] : memref<1x32xf32, #tpu.memory_space<vmem>>, vector<1x32xf32>
    %2 = vector.broadcast %1 : vector<1x32xf32> to vector<19x32xf32>
    %3 = arith.addf %0, %2 : vector<19x32xf32>
    %c0_1 = arith.constant 0 : index
    %c0_2 = arith.constant 0 : index
    %c0_3 = arith.constant 0 : index
    %4 = vector.load %arg0[%c0_1, %c0_2, %c0_3] : memref<2x35x32xf32, #tpu.memory_space<vmem>>, vector<1x19x32xf32>
    %5 = vector.shape_cast %4 : vector<1x19x32xf32> to vector<19x32xf32>
    %c0_4 = arith.constant 0 : index
    %c0_5 = arith.constant 0 : index
    %c0_6 = arith.constant 0 : index
    %6 = vector.load %arg1[%c0_4, %c0_5, %c0_6] : memref<16x32x32xf32, #tpu.memory_space<vmem>>, vector<1x32x32xf32>
    %7 = vector.shape_cast %6 : vector<1x32x32xf32> to vector<32x32xf32>
    %8 = arith.truncf %5 : vector<19x32xf32> to vector<19x32xbf16>
    %9 = arith.truncf %7 : vector<32x32xf32> to vector<32x32xbf16>
    %cst_7 = arith.constant dense<0.000000e+00> : vector<19x32xf32>
    %10 = tpu.matmul %8, %9, %cst_7 {dimension_numbers = #tpu.dot_dimension_numbers<[1], [0], [0], [1], [0, 0, 1, 1], [], []>} : vector<19x32xbf16>, vector<32x32xbf16>, vector<19x32xf32> -> vector<19x32xf32>
    %11 = arith.addf %3, %10 : vector<19x32xf32>
    %c0_8 = arith.constant 0 : index
    %c1 = arith.constant 1 : index
    %c0_9 = arith.constant 0 : index
    %12 = vector.load %arg0[%c0_8, %c1, %c0_9] : memref<2x35x32xf32, #tpu.memory_space<vmem>>, vector<1x19x32xf32>
    %13 = vector.shape_cast %12 : vector<1x19x32xf32> to vector<19x32xf32>
    %c1_10 = arith.constant 1 : index
    %c0_11 = arith.constant 0 : index
    %c0_12 = arith.constant 0 : index
    %14 = vector.load %arg1[%c1_10, %c0_11, %c0_12] : memref<16x32x32xf32, #tpu.memory_space<vmem>>, vector<1x32x32xf32>
    %15 = vector.shape_cast %14 : vector<1x32x32xf32> to vector<32x32xf32>
    %16 = arith.truncf %13 : vector<19x32xf32> to vector<19x32xbf16>
    %17 = arith.truncf %15 : vector<32x32xf32> to vector<32x32xbf16>
    %cst_13 = arith.constant dense<0.000000e+00> : vector<19x32xf32>
    %18 = tpu.matmul %16, %17, %cst_13 {dimension_numbers = #tpu.dot_dimension_numbers<[1], [0], [0], [1], [0, 0, 1, 1], [], []>} : vector<19x32xbf16>, vector<32x32xbf16>, vector<19x32xf32> -> vector<19x32xf32>
    %19 = arith.addf %11, %18 : vector<19x32xf32>
    %c0_14 = arith.constant 0 : index
    %c2 = arith.constant 2 : index
    %c0_15 = arith.constant 0 : index
    %20 = vector.load %arg0[%c0_14, %c2, %c0_15] : memref<2x35x32xf32, #tpu.memory_space<vmem>>, vector<1x19x32xf32>
    %21 = vector.shape_cast %20 : vector<1x19x32xf32> to vector<19x32xf32>
    %c2_16 = arith.constant 2 : index
    %c0_17 = arith.constant 0 : index
    %c0_18 = arith.constant 0 : index
    %22 = vector.load %arg1[%c2_16, %c0_17, %c0_18] : memref<16x32x32xf32, #tpu.memory_space<vmem>>, vector<1x32x32xf32>
    %23 = vector.shape_cast %22 : vector<1x32x32xf32> to vector<32x32xf32>
    %24 = arith.truncf %21 : vector<19x32xf32> to vector<19x32xbf16>
    %25 = arith.truncf %23 : vector<32x32xf32> to vector<32x32xbf16>
    %cst_19 = arith.constant dense<0.000000e+00> : vector<19x32xf32>
    %26 = tpu.matmul %24, %25, %cst_19 {dimension_numbers = #tpu.dot_dimension_numbers<[1], [0], [0], [1], [0, 0, 1, 1], [], []>} : vector<19x32xbf16>, vector<32x32xbf16>, vector<19x32xf32> -> vector<19x32xf32>
    %27 = arith.addf %19, %26 : vector<19x32xf32>
    %c0_20 = arith.constant 0 : index
    %c3 = arith.constant 3 : index
    %c0_21 = arith.constant 0 : index
    %28 = vector.load %arg0[%c0_20, %c3, %c0_21] : memref<2x35x32xf32, #tpu.memory_space<vmem>>, vector<1x19x32xf32>
    %29 = vector.shape_cast %28 : vector<1x19x32xf32> to vector<19x32xf32>
    %c3_22 = arith.constant 3 : index
    %c0_23 = arith.constant 0 : index
    %c0_24 = arith.constant 0 : index
    %30 = vector.load %arg1[%c3_22, %c0_23, %c0_24] : memref<16x32x32xf32, #tpu.memory_space<vmem>>, vector<1x32x32xf32>
    %31 = vector.shape_cast %30 : vector<1x32x32xf32> to vector<32x32xf32>
    %32 = arith.truncf %29 : vector<19x32xf32> to vector<19x32xbf16>
    %33 = arith.truncf %31 : vector<32x32xf32> to vector<32x32xbf16>
    %cst_25 = arith.constant dense<0.000000e+00> : vector<19x32xf32>
    %34 = tpu.matmul %32, %33, %cst_25 {dimension_numbers = #tpu.dot_dimension_numbers<[1], [0], [0], [1], [0, 0, 1, 1], [], []>} : vector<19x32xbf16>, vector<32x32xbf16>, vector<19x32xf32> -> vector<19x32xf32>
    %35 = arith.addf %27, %34 : vector<19x32xf32>
    %c0_26 = arith.constant 0 : index
    %c4 = arith.constant 4 : index
    %c0_27 = arith.constant 0 : index
    %36 = vector.load %arg0[%c0_26, %c4, %c0_27] : memref<2x35x32xf32, #tpu.memory_space<vmem>>, vector<1x19x32xf32>
    %37 = vector.shape_cast %36 : vector<1x19x32xf32> to vector<19x32xf32>
    %c4_28 = arith.constant 4 : index
    %c0_29 = arith.constant 0 : index
    %c0_30 = arith.constant 0 : index
    %38 = vector.load %arg1[%c4_28, %c0_29, %c0_30] : memref<16x32x32xf32, #tpu.memory_space<vmem>>, vector<1x32x32xf32>
    %39 = vector.shape_cast %38 : vector<1x32x32xf32> to vector<32x32xf32>
    %40 = arith.truncf %37 : vector<19x32xf32> to vector<19x32xbf16>
    %41 = arith.truncf %39 : vector<32x32xf32> to vector<32x32xbf16>
    %cst_31 = arith.constant dense<0.000000e+00> : vector<19x32xf32>
    %42 = tpu.matmul %40, %41, %cst_31 {dimension_numbers = #tpu.dot_dimension_numbers<[1], [0], [0], [1], [0, 0, 1, 1], [], []>} : vector<19x32xbf16>, vector<32x32xbf16>, vector<19x32xf32> -> vector<19x32xf32>
    %43 = arith.addf %35, %42 : vector<19x32xf32>
    %c0_32 = arith.constant 0 : index
    %c5 = arith.constant 5 : index
    %c0_33 = arith.constant 0 : index
    %44 = vector.load %arg0[%c0_32, %c5, %c0_33] : memref<2x35x32xf32, #tpu.memory_space<vmem>>, vector<1x19x32xf32>
    %45 = vector.shape_cast %44 : vector<1x19x32xf32> to vector<19x32xf32>
    %c5_34 = arith.constant 5 : index
    %c0_35 = arith.constant 0 : index
    %c0_36 = arith.constant 0 : index
    %46 = vector.load %arg1[%c5_34, %c0_35, %c0_36] : memref<16x32x32xf32, #tpu.memory_space<vmem>>, vector<1x32x32xf32>
    %47 = vector.shape_cast %46 : vector<1x32x32xf32> to vector<32x32xf32>
    %48 = arith.truncf %45 : vector<19x32xf32> to vector<19x32xbf16>
    %49 = arith.truncf %47 : vector<32x32xf32> to vector<32x32xbf16>
    %cst_37 = arith.constant dense<0.000000e+00> : vector<19x32xf32>
    %50 = tpu.matmul %48, %49, %cst_37 {dimension_numbers = #tpu.dot_dimension_numbers<[1], [0], [0], [1], [0, 0, 1, 1], [], []>} : vector<19x32xbf16>, vector<32x32xbf16>, vector<19x32xf32> -> vector<19x32xf32>
    %51 = arith.addf %43, %50 : vector<19x32xf32>
    %c0_38 = arith.constant 0 : index
    %c6 = arith.constant 6 : index
    %c0_39 = arith.constant 0 : index
    %52 = vector.load %arg0[%c0_38, %c6, %c0_39] : memref<2x35x32xf32, #tpu.memory_space<vmem>>, vector<1x19x32xf32>
    %53 = vector.shape_cast %52 : vector<1x19x32xf32> to vector<19x32xf32>
    %c6_40 = arith.constant 6 : index
    %c0_41 = arith.constant 0 : index
    %c0_42 = arith.constant 0 : index
    %54 = vector.load %arg1[%c6_40, %c0_41, %c0_42] : memref<16x32x32xf32, #tpu.memory_space<vmem>>, vector<1x32x32xf32>
    %55 = vector.shape_cast %54 : vector<1x32x32xf32> to vector<32x32xf32>
    %56 = arith.truncf %53 : vector<19x32xf32> to vector<19x32xbf16>
    %57 = arith.truncf %55 : vector<32x32xf32> to vector<32x32xbf16>
    %cst_43 = arith.constant dense<0.000000e+00> : vector<19x32xf32>
    %58 = tpu.matmul %56, %57, %cst_43 {dimension_numbers = #tpu.dot_dimension_numbers<[1], [0], [0], [1], [0, 0, 1, 1], [], []>} : vector<19x32xbf16>, vector<32x32xbf16>, vector<19x32xf32> -> vector<19x32xf32>
    %59 = arith.addf %51, %58 : vector<19x32xf32>
    %c0_44 = arith.constant 0 : index
    %c7 = arith.constant 7 : index
    %c0_45 = arith.constant 0 : index
    %60 = vector.load %arg0[%c0_44, %c7, %c0_45] : memref<2x35x32xf32, #tpu.memory_space<vmem>>, vector<1x19x32xf32>
    %61 = vector.shape_cast %60 : vector<1x19x32xf32> to vector<19x32xf32>
    %c7_46 = arith.constant 7 : index
    %c0_47 = arith.constant 0 : index
    %c0_48 = arith.constant 0 : index
    %62 = vector.load %arg1[%c7_46, %c0_47, %c0_48] : memref<16x32x32xf32, #tpu.memory_space<vmem>>, vector<1x32x32xf32>
    %63 = vector.shape_cast %62 : vector<1x32x32xf32> to vector<32x32xf32>
    %64 = arith.truncf %61 : vector<19x32xf32> to vector<19x32xbf16>
    %65 = arith.truncf %63 : vector<32x32xf32> to vector<32x32xbf16>
    %cst_49 = arith.constant dense<0.000000e+00> : vector<19x32xf32>
    %66 = tpu.matmul %64, %65, %cst_49 {dimension_numbers = #tpu.dot_dimension_numbers<[1], [0], [0], [1], [0, 0, 1, 1], [], []>} : vector<19x32xbf16>, vector<32x32xbf16>, vector<19x32xf32> -> vector<19x32xf32>
    %67 = arith.addf %59, %66 : vector<19x32xf32>
    %c0_50 = arith.constant 0 : index
    %c8 = arith.constant 8 : index
    %c0_51 = arith.constant 0 : index
    %68 = vector.load %arg0[%c0_50, %c8, %c0_51] : memref<2x35x32xf32, #tpu.memory_space<vmem>>, vector<1x19x32xf32>
    %69 = vector.shape_cast %68 : vector<1x19x32xf32> to vector<19x32xf32>
    %c8_52 = arith.constant 8 : index
    %c0_53 = arith.constant 0 : index
    %c0_54 = arith.constant 0 : index
    %70 = vector.load %arg1[%c8_52, %c0_53, %c0_54] : memref<16x32x32xf32, #tpu.memory_space<vmem>>, vector<1x32x32xf32>
    %71 = vector.shape_cast %70 : vector<1x32x32xf32> to vector<32x32xf32>
    %72 = arith.truncf %69 : vector<19x32xf32> to vector<19x32xbf16>
    %73 = arith.truncf %71 : vector<32x32xf32> to vector<32x32xbf16>
    %cst_55 = arith.constant dense<0.000000e+00> : vector<19x32xf32>
    %74 = tpu.matmul %72, %73, %cst_55 {dimension_numbers = #tpu.dot_dimension_numbers<[1], [0], [0], [1], [0, 0, 1, 1], [], []>} : vector<19x32xbf16>, vector<32x32xbf16>, vector<19x32xf32> -> vector<19x32xf32>
    %75 = arith.addf %67, %74 : vector<19x32xf32>
    %c0_56 = arith.constant 0 : index
    %c9 = arith.constant 9 : index
    %c0_57 = arith.constant 0 : index
    %76 = vector.load %arg0[%c0_56, %c9, %c0_57] : memref<2x35x32xf32, #tpu.memory_space<vmem>>, vector<1x19x32xf32>
    %77 = vector.shape_cast %76 : vector<1x19x32xf32> to vector<19x32xf32>
    %c9_58 = arith.constant 9 : index
    %c0_59 = arith.constant 0 : index
    %c0_60 = arith.constant 0 : index
    %78 = vector.load %arg1[%c9_58, %c0_59, %c0_60] : memref<16x32x32xf32, #tpu.memory_space<vmem>>, vector<1x32x32xf32>
    %79 = vector.shape_cast %78 : vector<1x32x32xf32> to vector<32x32xf32>
    %80 = arith.truncf %77 : vector<19x32xf32> to vector<19x32xbf16>
    %81 = arith.truncf %79 : vector<32x32xf32> to vector<32x32xbf16>
    %cst_61 = arith.constant dense<0.000000e+00> : vector<19x32xf32>
    %82 = tpu.matmul %80, %81, %cst_61 {dimension_numbers = #tpu.dot_dimension_numbers<[1], [0], [0], [1], [0, 0, 1, 1], [], []>} : vector<19x32xbf16>, vector<32x32xbf16>, vector<19x32xf32> -> vector<19x32xf32>
    %83 = arith.addf %75, %82 : vector<19x32xf32>
    %c0_62 = arith.constant 0 : index
    %c10 = arith.constant 10 : index
    %c0_63 = arith.constant 0 : index
    %84 = vector.load %arg0[%c0_62, %c10, %c0_63] : memref<2x35x32xf32, #tpu.memory_space<vmem>>, vector<1x19x32xf32>
    %85 = vector.shape_cast %84 : vector<1x19x32xf32> to vector<19x32xf32>
    %c10_64 = arith.constant 10 : index
    %c0_65 = arith.constant 0 : index
    %c0_66 = arith.constant 0 : index
    %86 = vector.load %arg1[%c10_64, %c0_65, %c0_66] : memref<16x32x32xf32, #tpu.memory_space<vmem>>, vector<1x32x32xf32>
    %87 = vector.shape_cast %86 : vector<1x32x32xf32> to vector<32x32xf32>
    %88 = arith.truncf %85 : vector<19x32xf32> to vector<19x32xbf16>
    %89 = arith.truncf %87 : vector<32x32xf32> to vector<32x32xbf16>
    %cst_67 = arith.constant dense<0.000000e+00> : vector<19x32xf32>
    %90 = tpu.matmul %88, %89, %cst_67 {dimension_numbers = #tpu.dot_dimension_numbers<[1], [0], [0], [1], [0, 0, 1, 1], [], []>} : vector<19x32xbf16>, vector<32x32xbf16>, vector<19x32xf32> -> vector<19x32xf32>
    %91 = arith.addf %83, %90 : vector<19x32xf32>
    %c0_68 = arith.constant 0 : index
    %c11 = arith.constant 11 : index
    %c0_69 = arith.constant 0 : index
    %92 = vector.load %arg0[%c0_68, %c11, %c0_69] : memref<2x35x32xf32, #tpu.memory_space<vmem>>, vector<1x19x32xf32>
    %93 = vector.shape_cast %92 : vector<1x19x32xf32> to vector<19x32xf32>
    %c11_70 = arith.constant 11 : index
    %c0_71 = arith.constant 0 : index
    %c0_72 = arith.constant 0 : index
    %94 = vector.load %arg1[%c11_70, %c0_71, %c0_72] : memref<16x32x32xf32, #tpu.memory_space<vmem>>, vector<1x32x32xf32>
    %95 = vector.shape_cast %94 : vector<1x32x32xf32> to vector<32x32xf32>
    %96 = arith.truncf %93 : vector<19x32xf32> to vector<19x32xbf16>
    %97 = arith.truncf %95 : vector<32x32xf32> to vector<32x32xbf16>
    %cst_73 = arith.constant dense<0.000000e+00> : vector<19x32xf32>
    %98 = tpu.matmul %96, %97, %cst_73 {dimension_numbers = #tpu.dot_dimension_numbers<[1], [0], [0], [1], [0, 0, 1, 1], [], []>} : vector<19x32xbf16>, vector<32x32xbf16>, vector<19x32xf32> -> vector<19x32xf32>
    %99 = arith.addf %91, %98 : vector<19x32xf32>
    %c0_74 = arith.constant 0 : index
    %c12 = arith.constant 12 : index
    %c0_75 = arith.constant 0 : index
    %100 = vector.load %arg0[%c0_74, %c12, %c0_75] : memref<2x35x32xf32, #tpu.memory_space<vmem>>, vector<1x19x32xf32>
    %101 = vector.shape_cast %100 : vector<1x19x32xf32> to vector<19x32xf32>
    %c12_76 = arith.constant 12 : index
    %c0_77 = arith.constant 0 : index
    %c0_78 = arith.constant 0 : index
    %102 = vector.load %arg1[%c12_76, %c0_77, %c0_78] : memref<16x32x32xf32, #tpu.memory_space<vmem>>, vector<1x32x32xf32>
    %103 = vector.shape_cast %102 : vector<1x32x32xf32> to vector<32x32xf32>
    %104 = arith.truncf %101 : vector<19x32xf32> to vector<19x32xbf16>
    %105 = arith.truncf %103 : vector<32x32xf32> to vector<32x32xbf16>
    %cst_79 = arith.constant dense<0.000000e+00> : vector<19x32xf32>
    %106 = tpu.matmul %104, %105, %cst_79 {dimension_numbers = #tpu.dot_dimension_numbers<[1], [0], [0], [1], [0, 0, 1, 1], [], []>} : vector<19x32xbf16>, vector<32x32xbf16>, vector<19x32xf32> -> vector<19x32xf32>
    %107 = arith.addf %99, %106 : vector<19x32xf32>
    %c0_80 = arith.constant 0 : index
    %c13 = arith.constant 13 : index
    %c0_81 = arith.constant 0 : index
    %108 = vector.load %arg0[%c0_80, %c13, %c0_81] : memref<2x35x32xf32, #tpu.memory_space<vmem>>, vector<1x19x32xf32>
    %109 = vector.shape_cast %108 : vector<1x19x32xf32> to vector<19x32xf32>
    %c13_82 = arith.constant 13 : index
    %c0_83 = arith.constant 0 : index
    %c0_84 = arith.constant 0 : index
    %110 = vector.load %arg1[%c13_82, %c0_83, %c0_84] : memref<16x32x32xf32, #tpu.memory_space<vmem>>, vector<1x32x32xf32>
    %111 = vector.shape_cast %110 : vector<1x32x32xf32> to vector<32x32xf32>
    %112 = arith.truncf %109 : vector<19x32xf32> to vector<19x32xbf16>
    %113 = arith.truncf %111 : vector<32x32xf32> to vector<32x32xbf16>
    %cst_85 = arith.constant dense<0.000000e+00> : vector<19x32xf32>
    %114 = tpu.matmul %112, %113, %cst_85 {dimension_numbers = #tpu.dot_dimension_numbers<[1], [0], [0], [1], [0, 0, 1, 1], [], []>} : vector<19x32xbf16>, vector<32x32xbf16>, vector<19x32xf32> -> vector<19x32xf32>
    %115 = arith.addf %107, %114 : vector<19x32xf32>
    %c0_86 = arith.constant 0 : index
    %c14 = arith.constant 14 : index
    %c0_87 = arith.constant 0 : index
    %116 = vector.load %arg0[%c0_86, %c14, %c0_87] : memref<2x35x32xf32, #tpu.memory_space<vmem>>, vector<1x19x32xf32>
    %117 = vector.shape_cast %116 : vector<1x19x32xf32> to vector<19x32xf32>
    %c14_88 = arith.constant 14 : index
    %c0_89 = arith.constant 0 : index
    %c0_90 = arith.constant 0 : index
    %118 = vector.load %arg1[%c14_88, %c0_89, %c0_90] : memref<16x32x32xf32, #tpu.memory_space<vmem>>, vector<1x32x32xf32>
    %119 = vector.shape_cast %118 : vector<1x32x32xf32> to vector<32x32xf32>
    %120 = arith.truncf %117 : vector<19x32xf32> to vector<19x32xbf16>
    %121 = arith.truncf %119 : vector<32x32xf32> to vector<32x32xbf16>
    %cst_91 = arith.constant dense<0.000000e+00> : vector<19x32xf32>
    %122 = tpu.matmul %120, %121, %cst_91 {dimension_numbers = #tpu.dot_dimension_numbers<[1], [0], [0], [1], [0, 0, 1, 1], [], []>} : vector<19x32xbf16>, vector<32x32xbf16>, vector<19x32xf32> -> vector<19x32xf32>
    %123 = arith.addf %115, %122 : vector<19x32xf32>
    %c0_92 = arith.constant 0 : index
    %c15 = arith.constant 15 : index
    %c0_93 = arith.constant 0 : index
    %124 = vector.load %arg0[%c0_92, %c15, %c0_93] : memref<2x35x32xf32, #tpu.memory_space<vmem>>, vector<1x19x32xf32>
    %125 = vector.shape_cast %124 : vector<1x19x32xf32> to vector<19x32xf32>
    %c15_94 = arith.constant 15 : index
    %c0_95 = arith.constant 0 : index
    %c0_96 = arith.constant 0 : index
    %126 = vector.load %arg1[%c15_94, %c0_95, %c0_96] : memref<16x32x32xf32, #tpu.memory_space<vmem>>, vector<1x32x32xf32>
    %127 = vector.shape_cast %126 : vector<1x32x32xf32> to vector<32x32xf32>
    %128 = arith.truncf %125 : vector<19x32xf32> to vector<19x32xbf16>
    %129 = arith.truncf %127 : vector<32x32xf32> to vector<32x32xbf16>
    %cst_97 = arith.constant dense<0.000000e+00> : vector<19x32xf32>
    %130 = tpu.matmul %128, %129, %cst_97 {dimension_numbers = #tpu.dot_dimension_numbers<[1], [0], [0], [1], [0, 0, 1, 1], [], []>} : vector<19x32xbf16>, vector<32x32xbf16>, vector<19x32xf32> -> vector<19x32xf32>
    %131 = arith.addf %123, %130 : vector<19x32xf32>
    %132 = arith.mulf %131, %131 : vector<19x32xf32>
    %133 = arith.mulf %131, %132 : vector<19x32xf32>
    %cst_98 = arith.constant 4.471500e-02 : f32
    %134 = vector.broadcast %cst_98 : f32 to vector<19x32xf32>
    %135 = arith.mulf %134, %133 : vector<19x32xf32>
    %136 = arith.addf %131, %135 : vector<19x32xf32>
    %cst_99 = arith.constant 0.797884583 : f32
    %137 = vector.broadcast %cst_99 : f32 to vector<19x32xf32>
    %138 = arith.mulf %137, %136 : vector<19x32xf32>
    %139 = math.tanh %138 : vector<19x32xf32>
    %cst_100 = arith.constant 1.000000e+00 : f32
    %140 = vector.broadcast %cst_100 : f32 to vector<19x32xf32>
    %141 = arith.addf %140, %139 : vector<19x32xf32>
    %cst_101 = arith.constant 5.000000e-01 : f32
    %142 = vector.broadcast %cst_101 : f32 to vector<19x32xf32>
    %143 = arith.mulf %142, %141 : vector<19x32xf32>
    %144 = arith.mulf %131, %143 : vector<19x32xf32>
    %c0_102 = arith.constant 0 : index
    %c8_103 = arith.constant 8 : index
    %c0_104 = arith.constant 0 : index
    %145 = vector.load %arg0[%c0_102, %c8_103, %c0_104] : memref<2x35x32xf32, #tpu.memory_space<vmem>>, vector<1x19x32xf32>
    %146 = vector.shape_cast %145 : vector<1x19x32xf32> to vector<19x32xf32>
    %147 = arith.addf %146, %144 : vector<19x32xf32>
    %c0_105 = arith.constant 0 : index
    %c0_106 = arith.constant 0 : index
    %148 = vector.load %arg3[%c0_105, %c0_106] : memref<1x32xf32, #tpu.memory_space<vmem>>, vector<1x32xf32>
    %c0_107 = arith.constant 0 : index
    %c0_108 = arith.constant 0 : index
    %149 = vector.load %arg4[%c0_107, %c0_108] : memref<1x32xf32, #tpu.memory_space<vmem>>, vector<1x32xf32>
    %cst_109 = arith.constant dense<0.000000e+00> : vector<19xf32>
    %150 = vector.multi_reduction <add>, %147, %cst_109 [1] : vector<19x32xf32> to vector<19xf32>
    %151 = vector.shape_cast %150 : vector<19xf32> to vector<19x1xf32>
    %cst_110 = arith.constant 3.200000e+01 : f32
    %152 = vector.broadcast %cst_110 : f32 to vector<19x1xf32>
    %153 = arith.divf %151, %152 : vector<19x1xf32>
    %154 = vector.broadcast %153 : vector<19x1xf32> to vector<19x32xf32>
    %155 = arith.subf %147, %154 : vector<19x32xf32>
    %156 = arith.mulf %155, %155 : vector<19x32xf32>
    %cst_111 = arith.constant dense<0.000000e+00> : vector<19xf32>
    %157 = vector.multi_reduction <add>, %156, %cst_111 [1] : vector<19x32xf32> to vector<19xf32>
    %158 = vector.shape_cast %157 : vector<19xf32> to vector<19x1xf32>
    %cst_112 = arith.constant 3.200000e+01 : f32
    %159 = vector.broadcast %cst_112 : f32 to vector<19x1xf32>
    %160 = arith.divf %158, %159 : vector<19x1xf32>
    %161 = vector.broadcast %153 : vector<19x1xf32> to vector<19x32xf32>
    %162 = arith.subf %147, %161 : vector<19x32xf32>
    %cst_113 = arith.constant 9.99999974E-6 : f32
    %163 = vector.broadcast %cst_113 : f32 to vector<19x1xf32>
    %164 = arith.addf %160, %163 : vector<19x1xf32>
    %165 = math.rsqrt %164 : vector<19x1xf32>
    %166 = vector.broadcast %165 : vector<19x1xf32> to vector<19x32xf32>
    %167 = arith.mulf %162, %166 : vector<19x32xf32>
    %168 = vector.broadcast %148 : vector<1x32xf32> to vector<19x32xf32>
    %169 = arith.mulf %167, %168 : vector<19x32xf32>
    %170 = vector.broadcast %149 : vector<1x32xf32> to vector<19x32xf32>
    %171 = arith.addf %169, %170 : vector<19x32xf32>
    %c0_114 = arith.constant 0 : index
    %c0_115 = arith.constant 0 : index
    %c0_116 = arith.constant 0 : index
    %172 = vector.load %arg5[%c0_114, %c0_115, %c0_116] : memref<2x19x32xf32, #tpu.memory_space<vmem>>, vector<1x19x32xf32>
    %173 = vector.shape_cast %172 : vector<1x19x32xf32> to vector<19x32xf32>
    %174 = vector.shape_cast %171 : vector<19x32xf32> to vector<1x19x32xf32>
    tpu.vector_store %arg5[%c0_114, %c0_115, %c0_116], %174 {strides = array<i32>} : memref<2x19x32xf32, #tpu.memory_space<vmem>>, vector<1x19x32xf32>,
    %cst_117 = arith.constant 0.000000e+00 : f32
    %175 = vector.broadcast %cst_117 : f32 to vector<19x32xf32>
    %c0_118 = arith.constant 0 : index
    %c0_119 = arith.constant 0 : index
    %176 = vector.load %arg2[%c0_118, %c0_119] : memref<1x32xf32, #tpu.memory_space<vmem>>, vector<1x32xf32>
    %177 = vector.broadcast %176 : vector<1x32xf32> to vector<19x32xf32>
    %178 = arith.addf %175, %177 : vector<19x32xf32>
    %c1_120 = arith.constant 1 : index
    %c0_121 = arith.constant 0 : index
    %c0_122 = arith.constant 0 : index
    %179 = vector.load %arg0[%c1_120, %c0_121, %c0_122] : memref<2x35x32xf32, #tpu.memory_space<vmem>>, vector<1x19x32xf32>
    %180 = vector.shape_cast %179 : vector<1x19x32xf32> to vector<19x32xf32>
    %c0_123 = arith.constant 0 : index
    %c0_124 = arith.constant 0 : index
    %c0_125 = arith.constant 0 : index
    %181 = vector.load %arg1[%c0_123, %c0_124, %c0_125] : memref<16x32x32xf32, #tpu.memory_space<vmem>>, vector<1x32x32xf32>
    %182 = vector.shape_cast %181 : vector<1x32x32xf32> to vector<32x32xf32>
    %183 = arith.truncf %180 : vector<19x32xf32> to vector<19x32xbf16>
    %184 = arith.truncf %182 : vector<32x32xf32> to vector<32x32xbf16>
    %cst_126 = arith.constant dense<0.000000e+00> : vector<19x32xf32>
    %185 = tpu.matmul %183, %184, %cst_126 {dimension_numbers = #tpu.dot_dimension_numbers<[1], [0], [0], [1], [0, 0, 1, 1], [], []>} : vector<19x32xbf16>, vector<32x32xbf16>, vector<19x32xf32> -> vector<19x32xf32>
    %186 = arith.addf %178, %185 : vector<19x32xf32>
    %c1_127 = arith.constant 1 : index
    %c1_128 = arith.constant 1 : index
    %c0_129 = arith.constant 0 : index
    %187 = vector.load %arg0[%c1_127, %c1_128, %c0_129] : memref<2x35x32xf32, #tpu.memory_space<vmem>>, vector<1x19x32xf32>
    %188 = vector.shape_cast %187 : vector<1x19x32xf32> to vector<19x32xf32>
    %c1_130 = arith.constant 1 : index
    %c0_131 = arith.constant 0 : index
    %c0_132 = arith.constant 0 : index
    %189 = vector.load %arg1[%c1_130, %c0_131, %c0_132] : memref<16x32x32xf32, #tpu.memory_space<vmem>>, vector<1x32x32xf32>
    %190 = vector.shape_cast %189 : vector<1x32x32xf32> to vector<32x32xf32>
    %191 = arith.truncf %188 : vector<19x32xf32> to vector<19x32xbf16>
    %192 = arith.truncf %190 : vector<32x32xf32> to vector<32x32xbf16>
    %cst_133 = arith.constant dense<0.000000e+00> : vector<19x32xf32>
    %193 = tpu.matmul %191, %192, %cst_133 {dimension_numbers = #tpu.dot_dimension_numbers<[1], [0], [0], [1], [0, 0, 1, 1], [], []>} : vector<19x32xbf16>, vector<32x32xbf16>, vector<19x32xf32> -> vector<19x32xf32>
    %194 = arith.addf %186, %193 : vector<19x32xf32>
    %c1_134 = arith.constant 1 : index
    %c2_135 = arith.constant 2 : index
    %c0_136 = arith.constant 0 : index
    %195 = vector.load %arg0[%c1_134, %c2_135, %c0_136] : memref<2x35x32xf32, #tpu.memory_space<vmem>>, vector<1x19x32xf32>
    %196 = vector.shape_cast %195 : vector<1x19x32xf32> to vector<19x32xf32>
    %c2_137 = arith.constant 2 : index
    %c0_138 = arith.constant 0 : index
    %c0_139 = arith.constant 0 : index
    %197 = vector.load %arg1[%c2_137, %c0_138, %c0_139] : memref<16x32x32xf32, #tpu.memory_space<vmem>>, vector<1x32x32xf32>
    %198 = vector.shape_cast %197 : vector<1x32x32xf32> to vector<32x32xf32>
    %199 = arith.truncf %196 : vector<19x32xf32> to vector<19x32xbf16>
    %200 = arith.truncf %198 : vector<32x32xf32> to vector<32x32xbf16>
    %cst_140 = arith.constant dense<0.000000e+00> : vector<19x32xf32>
    %201 = tpu.matmul %199, %200, %cst_140 {dimension_numbers = #tpu.dot_dimension_numbers<[1], [0], [0], [1], [0, 0, 1, 1], [], []>} : vector<19x32xbf16>, vector<32x32xbf16>, vector<19x32xf32> -> vector<19x32xf32>
    %202 = arith.addf %194, %201 : vector<19x32xf32>
    %c1_141 = arith.constant 1 : index
    %c3_142 = arith.constant 3 : index
    %c0_143 = arith.constant 0 : index
    %203 = vector.load %arg0[%c1_141, %c3_142, %c0_143] : memref<2x35x32xf32, #tpu.memory_space<vmem>>, vector<1x19x32xf32>
    %204 = vector.shape_cast %203 : vector<1x19x32xf32> to vector<19x32xf32>
    %c3_144 = arith.constant 3 : index
    %c0_145 = arith.constant 0 : index
    %c0_146 = arith.constant 0 : index
    %205 = vector.load %arg1[%c3_144, %c0_145, %c0_146] : memref<16x32x32xf32, #tpu.memory_space<vmem>>, vector<1x32x32xf32>
    %206 = vector.shape_cast %205 : vector<1x32x32xf32> to vector<32x32xf32>
    %207 = arith.truncf %204 : vector<19x32xf32> to vector<19x32xbf16>
    %208 = arith.truncf %206 : vector<32x32xf32> to vector<32x32xbf16>
    %cst_147 = arith.constant dense<0.000000e+00> : vector<19x32xf32>
    %209 = tpu.matmul %207, %208, %cst_147 {dimension_numbers = #tpu.dot_dimension_numbers<[1], [0], [0], [1], [0, 0, 1, 1], [], []>} : vector<19x32xbf16>, vector<32x32xbf16>, vector<19x32xf32> -> vector<19x32xf32>
    %210 = arith.addf %202, %209 : vector<19x32xf32>
    %c1_148 = arith.constant 1 : index
    %c4_149 = arith.constant 4 : index
    %c0_150 = arith.constant 0 : index
    %211 = vector.load %arg0[%c1_148, %c4_149, %c0_150] : memref<2x35x32xf32, #tpu.memory_space<vmem>>, vector<1x19x32xf32>
    %212 = vector.shape_cast %211 : vector<1x19x32xf32> to vector<19x32xf32>
    %c4_151 = arith.constant 4 : index
    %c0_152 = arith.constant 0 : index
    %c0_153 = arith.constant 0 : index
    %213 = vector.load %arg1[%c4_151, %c0_152, %c0_153] : memref<16x32x32xf32, #tpu.memory_space<vmem>>, vector<1x32x32xf32>
    %214 = vector.shape_cast %213 : vector<1x32x32xf32> to vector<32x32xf32>
    %215 = arith.truncf %212 : vector<19x32xf32> to vector<19x32xbf16>
    %216 = arith.truncf %214 : vector<32x32xf32> to vector<32x32xbf16>
    %cst_154 = arith.constant dense<0.000000e+00> : vector<19x32xf32>
    %217 = tpu.matmul %215, %216, %cst_154 {dimension_numbers = #tpu.dot_dimension_numbers<[1], [0], [0], [1], [0, 0, 1, 1], [], []>} : vector<19x32xbf16>, vector<32x32xbf16>, vector<19x32xf32> -> vector<19x32xf32>
    %218 = arith.addf %210, %217 : vector<19x32xf32>
    %c1_155 = arith.constant 1 : index
    %c5_156 = arith.constant 5 : index
    %c0_157 = arith.constant 0 : index
    %219 = vector.load %arg0[%c1_155, %c5_156, %c0_157] : memref<2x35x32xf32, #tpu.memory_space<vmem>>, vector<1x19x32xf32>
    %220 = vector.shape_cast %219 : vector<1x19x32xf32> to vector<19x32xf32>
    %c5_158 = arith.constant 5 : index
    %c0_159 = arith.constant 0 : index
    %c0_160 = arith.constant 0 : index
    %221 = vector.load %arg1[%c5_158, %c0_159, %c0_160] : memref<16x32x32xf32, #tpu.memory_space<vmem>>, vector<1x32x32xf32>
    %222 = vector.shape_cast %221 : vector<1x32x32xf32> to vector<32x32xf32>
    %223 = arith.truncf %220 : vector<19x32xf32> to vector<19x32xbf16>
    %224 = arith.truncf %222 : vector<32x32xf32> to vector<32x32xbf16>
    %cst_161 = arith.constant dense<0.000000e+00> : vector<19x32xf32>
    %225 = tpu.matmul %223, %224, %cst_161 {dimension_numbers = #tpu.dot_dimension_numbers<[1], [0], [0], [1], [0, 0, 1, 1], [], []>} : vector<19x32xbf16>, vector<32x32xbf16>, vector<19x32xf32> -> vector<19x32xf32>
    %226 = arith.addf %218, %225 : vector<19x32xf32>
    %c1_162 = arith.constant 1 : index
    %c6_163 = arith.constant 6 : index
    %c0_164 = arith.constant 0 : index
    %227 = vector.load %arg0[%c1_162, %c6_163, %c0_164] : memref<2x35x32xf32, #tpu.memory_space<vmem>>, vector<1x19x32xf32>
    %228 = vector.shape_cast %227 : vector<1x19x32xf32> to vector<19x32xf32>
    %c6_165 = arith.constant 6 : index
    %c0_166 = arith.constant 0 : index
    %c0_167 = arith.constant 0 : index
    %229 = vector.load %arg1[%c6_165, %c0_166, %c0_167] : memref<16x32x32xf32, #tpu.memory_space<vmem>>, vector<1x32x32xf32>
    %230 = vector.shape_cast %229 : vector<1x32x32xf32> to vector<32x32xf32>
    %231 = arith.truncf %228 : vector<19x32xf32> to vector<19x32xbf16>
    %232 = arith.truncf %230 : vector<32x32xf32> to vector<32x32xbf16>
    %cst_168 = arith.constant dense<0.000000e+00> : vector<19x32xf32>
    %233 = tpu.matmul %231, %232, %cst_168 {dimension_numbers = #tpu.dot_dimension_numbers<[1], [0], [0], [1], [0, 0, 1, 1], [], []>} : vector<19x32xbf16>, vector<32x32xbf16>, vector<19x32xf32> -> vector<19x32xf32>
    %234 = arith.addf %226, %233 : vector<19x32xf32>
    %c1_169 = arith.constant 1 : index
    %c7_170 = arith.constant 7 : index
    %c0_171 = arith.constant 0 : index
    %235 = vector.load %arg0[%c1_169, %c7_170, %c0_171] : memref<2x35x32xf32, #tpu.memory_space<vmem>>, vector<1x19x32xf32>
    %236 = vector.shape_cast %235 : vector<1x19x32xf32> to vector<19x32xf32>
    %c7_172 = arith.constant 7 : index
    %c0_173 = arith.constant 0 : index
    %c0_174 = arith.constant 0 : index
    %237 = vector.load %arg1[%c7_172, %c0_173, %c0_174] : memref<16x32x32xf32, #tpu.memory_space<vmem>>, vector<1x32x32xf32>
    %238 = vector.shape_cast %237 : vector<1x32x32xf32> to vector<32x32xf32>
    %239 = arith.truncf %236 : vector<19x32xf32> to vector<19x32xbf16>
    %240 = arith.truncf %238 : vector<32x32xf32> to vector<32x32xbf16>
    %cst_175 = arith.constant dense<0.000000e+00> : vector<19x32xf32>
    %241 = tpu.matmul %239, %240, %cst_175 {dimension_numbers = #tpu.dot_dimension_numbers<[1], [0], [0], [1], [0, 0, 1, 1], [], []>} : vector<19x32xbf16>, vector<32x32xbf16>, vector<19x32xf32> -> vector<19x32xf32>
    %242 = arith.addf %234, %241 : vector<19x32xf32>
    %c1_176 = arith.constant 1 : index
    %c8_177 = arith.constant 8 : index
    %c0_178 = arith.constant 0 : index
    %243 = vector.load %arg0[%c1_176, %c8_177, %c0_178] : memref<2x35x32xf32, #tpu.memory_space<vmem>>, vector<1x19x32xf32>
    %244 = vector.shape_cast %243 : vector<1x19x32xf32> to vector<19x32xf32>
    %c8_179 = arith.constant 8 : index
    %c0_180 = arith.constant 0 : index
    %c0_181 = arith.constant 0 : index
    %245 = vector.load %arg1[%c8_179, %c0_180, %c0_181] : memref<16x32x32xf32, #tpu.memory_space<vmem>>, vector<1x32x32xf32>
    %246 = vector.shape_cast %245 : vector<1x32x32xf32> to vector<32x32xf32>
    %247 = arith.truncf %244 : vector<19x32xf32> to vector<19x32xbf16>
    %248 = arith.truncf %246 : vector<32x32xf32> to vector<32x32xbf16>
    %cst_182 = arith.constant dense<0.000000e+00> : vector<19x32xf32>
    %249 = tpu.matmul %247, %248, %cst_182 {dimension_numbers = #tpu.dot_dimension_numbers<[1], [0], [0], [1], [0, 0, 1, 1], [], []>} : vector<19x32xbf16>, vector<32x32xbf16>, vector<19x32xf32> -> vector<19x32xf32>
    %250 = arith.addf %242, %249 : vector<19x32xf32>
    %c1_183 = arith.constant 1 : index
    %c9_184 = arith.constant 9 : index
    %c0_185 = arith.constant 0 : index
    %251 = vector.load %arg0[%c1_183, %c9_184, %c0_185] : memref<2x35x32xf32, #tpu.memory_space<vmem>>, vector<1x19x32xf32>
    %252 = vector.shape_cast %251 : vector<1x19x32xf32> to vector<19x32xf32>
    %c9_186 = arith.constant 9 : index
    %c0_187 = arith.constant 0 : index
    %c0_188 = arith.constant 0 : index
    %253 = vector.load %arg1[%c9_186, %c0_187, %c0_188] : memref<16x32x32xf32, #tpu.memory_space<vmem>>, vector<1x32x32xf32>
    %254 = vector.shape_cast %253 : vector<1x32x32xf32> to vector<32x32xf32>
    %255 = arith.truncf %252 : vector<19x32xf32> to vector<19x32xbf16>
    %256 = arith.truncf %254 : vector<32x32xf32> to vector<32x32xbf16>
    %cst_189 = arith.constant dense<0.000000e+00> : vector<19x32xf32>
    %257 = tpu.matmul %255, %256, %cst_189 {dimension_numbers = #tpu.dot_dimension_numbers<[1], [0], [0], [1], [0, 0, 1, 1], [], []>} : vector<19x32xbf16>, vector<32x32xbf16>, vector<19x32xf32> -> vector<19x32xf32>
    %258 = arith.addf %250, %257 : vector<19x32xf32>
    %c1_190 = arith.constant 1 : index
    %c10_191 = arith.constant 10 : index
    %c0_192 = arith.constant 0 : index
    %259 = vector.load %arg0[%c1_190, %c10_191, %c0_192] : memref<2x35x32xf32, #tpu.memory_space<vmem>>, vector<1x19x32xf32>
    %260 = vector.shape_cast %259 : vector<1x19x32xf32> to vector<19x32xf32>
    %c10_193 = arith.constant 10 : index
    %c0_194 = arith.constant 0 : index
    %c0_195 = arith.constant 0 : index
    %261 = vector.load %arg1[%c10_193, %c0_194, %c0_195] : memref<16x32x32xf32, #tpu.memory_space<vmem>>, vector<1x32x32xf32>
    %262 = vector.shape_cast %261 : vector<1x32x32xf32> to vector<32x32xf32>
    %263 = arith.truncf %260 : vector<19x32xf32> to vector<19x32xbf16>
    %264 = arith.truncf %262 : vector<32x32xf32> to vector<32x32xbf16>
    %cst_196 = arith.constant dense<0.000000e+00> : vector<19x32xf32>
    %265 = tpu.matmul %263, %264, %cst_196 {dimension_numbers = #tpu.dot_dimension_numbers<[1], [0], [0], [1], [0, 0, 1, 1], [], []>} : vector<19x32xbf16>, vector<32x32xbf16>, vector<19x32xf32> -> vector<19x32xf32>
    %266 = arith.addf %258, %265 : vector<19x32xf32>
    %c1_197 = arith.constant 1 : index
    %c11_198 = arith.constant 11 : index
    %c0_199 = arith.constant 0 : index
    %267 = vector.load %arg0[%c1_197, %c11_198, %c0_199] : memref<2x35x32xf32, #tpu.memory_space<vmem>>, vector<1x19x32xf32>
    %268 = vector.shape_cast %267 : vector<1x19x32xf32> to vector<19x32xf32>
    %c11_200 = arith.constant 11 : index
    %c0_201 = arith.constant 0 : index
    %c0_202 = arith.constant 0 : index
    %269 = vector.load %arg1[%c11_200, %c0_201, %c0_202] : memref<16x32x32xf32, #tpu.memory_space<vmem>>, vector<1x32x32xf32>
    %270 = vector.shape_cast %269 : vector<1x32x32xf32> to vector<32x32xf32>
    %271 = arith.truncf %268 : vector<19x32xf32> to vector<19x32xbf16>
    %272 = arith.truncf %270 : vector<32x32xf32> to vector<32x32xbf16>
    %cst_203 = arith.constant dense<0.000000e+00> : vector<19x32xf32>
    %273 = tpu.matmul %271, %272, %cst_203 {dimension_numbers = #tpu.dot_dimension_numbers<[1], [0], [0], [1], [0, 0, 1, 1], [], []>} : vector<19x32xbf16>, vector<32x32xbf16>, vector<19x32xf32> -> vector<19x32xf32>
    %274 = arith.addf %266, %273 : vector<19x32xf32>
    %c1_204 = arith.constant 1 : index
    %c12_205 = arith.constant 12 : index
    %c0_206 = arith.constant 0 : index
    %275 = vector.load %arg0[%c1_204, %c12_205, %c0_206] : memref<2x35x32xf32, #tpu.memory_space<vmem>>, vector<1x19x32xf32>
    %276 = vector.shape_cast %275 : vector<1x19x32xf32> to vector<19x32xf32>
    %c12_207 = arith.constant 12 : index
    %c0_208 = arith.constant 0 : index
    %c0_209 = arith.constant 0 : index
    %277 = vector.load %arg1[%c12_207, %c0_208, %c0_209] : memref<16x32x32xf32, #tpu.memory_space<vmem>>, vector<1x32x32xf32>
    %278 = vector.shape_cast %277 : vector<1x32x32xf32> to vector<32x32xf32>
    %279 = arith.truncf %276 : vector<19x32xf32> to vector<19x32xbf16>
    %280 = arith.truncf %278 : vector<32x32xf32> to vector<32x32xbf16>
    %cst_210 = arith.constant dense<0.000000e+00> : vector<19x32xf32>
    %281 = tpu.matmul %279, %280, %cst_210 {dimension_numbers = #tpu.dot_dimension_numbers<[1], [0], [0], [1], [0, 0, 1, 1], [], []>} : vector<19x32xbf16>, vector<32x32xbf16>, vector<19x32xf32> -> vector<19x32xf32>
    %282 = arith.addf %274, %281 : vector<19x32xf32>
    %c1_211 = arith.constant 1 : index
    %c13_212 = arith.constant 13 : index
    %c0_213 = arith.constant 0 : index
    %283 = vector.load %arg0[%c1_211, %c13_212, %c0_213] : memref<2x35x32xf32, #tpu.memory_space<vmem>>, vector<1x19x32xf32>
    %284 = vector.shape_cast %283 : vector<1x19x32xf32> to vector<19x32xf32>
    %c13_214 = arith.constant 13 : index
    %c0_215 = arith.constant 0 : index
    %c0_216 = arith.constant 0 : index
    %285 = vector.load %arg1[%c13_214, %c0_215, %c0_216] : memref<16x32x32xf32, #tpu.memory_space<vmem>>, vector<1x32x32xf32>
    %286 = vector.shape_cast %285 : vector<1x32x32xf32> to vector<32x32xf32>
    %287 = arith.truncf %284 : vector<19x32xf32> to vector<19x32xbf16>
    %288 = arith.truncf %286 : vector<32x32xf32> to vector<32x32xbf16>
    %cst_217 = arith.constant dense<0.000000e+00> : vector<19x32xf32>
    %289 = tpu.matmul %287, %288, %cst_217 {dimension_numbers = #tpu.dot_dimension_numbers<[1], [0], [0], [1], [0, 0, 1, 1], [], []>} : vector<19x32xbf16>, vector<32x32xbf16>, vector<19x32xf32> -> vector<19x32xf32>
    %290 = arith.addf %282, %289 : vector<19x32xf32>
    %c1_218 = arith.constant 1 : index
    %c14_219 = arith.constant 14 : index
    %c0_220 = arith.constant 0 : index
    %291 = vector.load %arg0[%c1_218, %c14_219, %c0_220] : memref<2x35x32xf32, #tpu.memory_space<vmem>>, vector<1x19x32xf32>
    %292 = vector.shape_cast %291 : vector<1x19x32xf32> to vector<19x32xf32>
    %c14_221 = arith.constant 14 : index
    %c0_222 = arith.constant 0 : index
    %c0_223 = arith.constant 0 : index
    %293 = vector.load %arg1[%c14_221, %c0_222, %c0_223] : memref<16x32x32xf32, #tpu.memory_space<vmem>>, vector<1x32x32xf32>
    %294 = vector.shape_cast %293 : vector<1x32x32xf32> to vector<32x32xf32>
    %295 = arith.truncf %292 : vector<19x32xf32> to vector<19x32xbf16>
    %296 = arith.truncf %294 : vector<32x32xf32> to vector<32x32xbf16>
    %cst_224 = arith.constant dense<0.000000e+00> : vector<19x32xf32>
    %297 = tpu.matmul %295, %296, %cst_224 {dimension_numbers = #tpu.dot_dimension_numbers<[1], [0], [0], [1], [0, 0, 1, 1], [], []>} : vector<19x32xbf16>, vector<32x32xbf16>, vector<19x32xf32> -> vector<19x32xf32>
    %298 = arith.addf %290, %297 : vector<19x32xf32>
    %c1_225 = arith.constant 1 : index
    %c15_226 = arith.constant 15 : index
    %c0_227 = arith.constant 0 : index
    %299 = vector.load %arg0[%c1_225, %c15_226, %c0_227] : memref<2x35x32xf32, #tpu.memory_space<vmem>>, vector<1x19x32xf32>
    %300 = vector.shape_cast %299 : vector<1x19x32xf32> to vector<19x32xf32>
    %c15_228 = arith.constant 15 : index
    %c0_229 = arith.constant 0 : index
    %c0_230 = arith.constant 0 : index
    %301 = vector.load %arg1[%c15_228, %c0_229, %c0_230] : memref<16x32x32xf32, #tpu.memory_space<vmem>>, vector<1x32x32xf32>
    %302 = vector.shape_cast %301 : vector<1x32x32xf32> to vector<32x32xf32>
    %303 = arith.truncf %300 : vector<19x32xf32> to vector<19x32xbf16>
    %304 = arith.truncf %302 : vector<32x32xf32> to vector<32x32xbf16>
    %cst_231 = arith.constant dense<0.000000e+00> : vector<19x32xf32>
    %305 = tpu.matmul %303, %304, %cst_231 {dimension_numbers = #tpu.dot_dimension_numbers<[1], [0], [0], [1], [0, 0, 1, 1], [], []>} : vector<19x32xbf16>, vector<32x32xbf16>, vector<19x32xf32> -> vector<19x32xf32>
    %306 = arith.addf %298, %305 : vector<19x32xf32>
    %307 = arith.mulf %306, %306 : vector<19x32xf32>
    %308 = arith.mulf %306, %307 : vector<19x32xf32>
    %cst_232 = arith.constant 4.471500e-02 : f32
    %309 = vector.broadcast %cst_232 : f32 to vector<19x32xf32>
    %310 = arith.mulf %309, %308 : vector<19x32xf32>
    %311 = arith.addf %306, %310 : vector<19x32xf32>
    %cst_233 = arith.constant 0.797884583 : f32
    %312 = vector.broadcast %cst_233 : f32 to vector<19x32xf32>
    %313 = arith.mulf %312, %311 : vector<19x32xf32>
    %314 = math.tanh %313 : vector<19x32xf32>
    %cst_234 = arith.constant 1.000000e+00 : f32
    %315 = vector.broadcast %cst_234 : f32 to vector<19x32xf32>
    %316 = arith.addf %315, %314 : vector<19x32xf32>
    %cst_235 = arith.constant 5.000000e-01 : f32
    %317 = vector.broadcast %cst_235 : f32 to vector<19x32xf32>
    %318 = arith.mulf %317, %316 : vector<19x32xf32>
    %319 = arith.mulf %306, %318 : vector<19x32xf32>
    %c1_236 = arith.constant 1 : index
    %c8_237 = arith.constant 8 : index
    %c0_238 = arith.constant 0 : index
    %320 = vector.load %arg0[%c1_236, %c8_237, %c0_238] : memref<2x35x32xf32, #tpu.memory_space<vmem>>, vector<1x19x32xf32>
    %321 = vector.shape_cast %320 : vector<1x19x32xf32> to vector<19x32xf32>
    %322 = arith.addf %321, %319 : vector<19x32xf32>
    %c0_239 = arith.constant 0 : index
    %c0_240 = arith.constant 0 : index
    %323 = vector.load %arg3[%c0_239, %c0_240] : memref<1x32xf32, #tpu.memory_space<vmem>>, vector<1x32xf32>
    %c0_241 = arith.constant 0 : index
    %c0_242 = arith.constant 0 : index
    %324 = vector.load %arg4[%c0_241, %c0_242] : memref<1x32xf32, #tpu.memory_space<vmem>>, vector<1x32xf32>
    %cst_243 = arith.constant dense<0.000000e+00> : vector<19xf32>
    %325 = vector.multi_reduction <add>, %322, %cst_243 [1] : vector<19x32xf32> to vector<19xf32>
    %326 = vector.shape_cast %325 : vector<19xf32> to vector<19x1xf32>
    %cst_244 = arith.constant 3.200000e+01 : f32
    %327 = vector.broadcast %cst_244 : f32 to vector<19x1xf32>
    %328 = arith.divf %326, %327 : vector<19x1xf32>
    %329 = vector.broadcast %328 : vector<19x1xf32> to vector<19x32xf32>
    %330 = arith.subf %322, %329 : vector<19x32xf32>
    %331 = arith.mulf %330, %330 : vector<19x32xf32>
    %cst_245 = arith.constant dense<0.000000e+00> : vector<19xf32>
    %332 = vector.multi_reduction <add>, %331, %cst_245 [1] : vector<19x32xf32> to vector<19xf32>
    %333 = vector.shape_cast %332 : vector<19xf32> to vector<19x1xf32>
    %cst_246 = arith.constant 3.200000e+01 : f32
    %334 = vector.broadcast %cst_246 : f32 to vector<19x1xf32>
    %335 = arith.divf %333, %334 : vector<19x1xf32>
    %336 = vector.broadcast %328 : vector<19x1xf32> to vector<19x32xf32>
    %337 = arith.subf %322, %336 : vector<19x32xf32>
    %cst_247 = arith.constant 9.99999974E-6 : f32
    %338 = vector.broadcast %cst_247 : f32 to vector<19x1xf32>
    %339 = arith.addf %335, %338 : vector<19x1xf32>
    %340 = math.rsqrt %339 : vector<19x1xf32>
    %341 = vector.broadcast %340 : vector<19x1xf32> to vector<19x32xf32>
    %342 = arith.mulf %337, %341 : vector<19x32xf32>
    %343 = vector.broadcast %323 : vector<1x32xf32> to vector<19x32xf32>
    %344 = arith.mulf %342, %343 : vector<19x32xf32>
    %345 = vector.broadcast %324 : vector<1x32xf32> to vector<19x32xf32>
    %346 = arith.addf %344, %345 : vector<19x32xf32>
    %c1_248 = arith.constant 1 : index
    %c0_249 = arith.constant 0 : index
    %c0_250 = arith.constant 0 : index
    %347 = vector.load %arg5[%c1_248, %c0_249, %c0_250] : memref<2x19x32xf32, #tpu.memory_space<vmem>>, vector<1x19x32xf32>
    %348 = vector.shape_cast %347 : vector<1x19x32xf32> to vector<19x32xf32>
    %349 = vector.shape_cast %346 : vector<19x32xf32> to vector<1x19x32xf32>
    tpu.vector_store %arg5[%c1_248, %c0_249, %c0_250], %349 {strides = array<i32>} : memref<2x19x32xf32, #tpu.memory_space<vmem>>, vector<1x19x32xf32>,
    return
  }
}

</mosaic_0001>

<bundles_post_ra>
// kernel: hubert_forward.9
= control target key start
LH: loop header
LB: loop body
LE: loop exit
PB: predicated region body
PF: predicated region fallthrough
CT: control target
= control target key end

     0   :  { %s406_s27 = smov 112   ;;  %vm30_vm0 = vcmask 130048   ;;  %vm168_vm1 = vcmask 124928   ;;  %s484_s0 = inlined_call_operand.vmem [shape: f32[2,20,32], index: 0, kind: input, shape index: {}]   ;;  %s485_s1 = inlined_call_operand.vmem [shape: f32[2,16,16], index: 1, kind: input, shape index: {}]   ;;  %s486_s2 = inlined_call_operand.vmem [shape: f32[2,19,16], index: 2, kind: output, shape index: {}]  }
   0x1   :  { %v12_v0 = vld [vmem:[%s484_s0] sm:$0xff]  ;;  %v13_v1 = vld [vmem:[%s484_s0 + $0x8] sm:$0xff]  ;;  %v14_v2 = vld [vmem:[%s484_s0 + $0x10] sm:$0x7] }
   0x2   :  { %v17_v3 = vpack.c.bf16 %v13_v1, %v12_v0  ;;  %v18_v4 = vpack.c.bf16 %v14_v2, %v14_v2  ;;  %v337_v5 = vld [vmem:[%s484_s0 + $0x18] sm:$0xff]  ;;  %v338_v6 = vld [vmem:[%s484_s0 + $0x20] sm:$0xff]  ;;  %v339_v7 = vld [vmem:[%s484_s0 + $0x28] sm:$0x7] }
   0x3   :  { %v331_v8 = vld [vmem:[%s485_s1 + $0x10] sm:$0xff]  ;;  %v332_v9 = vld [vmem:[%s485_s1 + $0x18] sm:$0xff]  ;;  %v15_v10 = vld [vmem:[%s485_s1] sm:$0xff]  ;;  %v176_v11 = vpack.c.bf16 %v338_v6, %v337_v5  ;;  %v177_v12 = vpack.c.bf16 %v339_v7, %v339_v7 }
   0x4   :  { %26 = vrot.lane.b32.xlu0 %v17_v3, %s406_s27  ;;  %28 = vrot.lane.b32.xlu1 %v18_v4, %s406_s27  ;;  %v23_v13 = vpack.c.bf16 %v332_v9, %v331_v8  ;;  %v16_v14 = vld [vmem:[%s485_s1 + $0x8] sm:$0xff] }
   0x5   :  { %v19_v15 = vpack.c.bf16 %v16_v14, %v15_v10 }
   0x6   :  { %361 = vmatprep.subr.bf16.mxu0 %v23_v13  ;;  %373 = vmatprep.subr.bf16.mxu1 %v23_v13 }
   0x7   :  { %362 = vmatpush3.bf16.msra.mxu0 %v23_v13  ;;  %374 = vmatpush3.bf16.msra.mxu1 %v23_v13 }
   0x8   :  { %184 = vrot.lane.b32.xlu0 %v176_v11, %s406_s27  ;;  %186 = vrot.lane.b32.xlu1 %v177_v12, %s406_s27 }
   0x9   :  { %367 = vmatprep.subr.bf16.mxu0 %v19_v15  ;;  %379 = vmatprep.subr.bf16.mxu1 %v19_v15 }
  0x76   :  { %v27_v16 = vpop.permute.xlu0 %26  ;;  %v29_v17 = vpop.permute.xlu1 %28 }
  0x77   :  { %363 = vmatprep.mubr.msk.bf16.mxu0 %vm30_vm0, %v27_v16 }
  0x78   :  { %364 = vmatmul.mubr.msk.bf16.vlgmr.msra.gmra.mrb[0].mxu0 %vm30_vm0, %v29_v17 }
  0x79   :  { %368 = vmatpush3.bf16.msra.mxu0 %v19_v15  ;;  %369 = vmatprep.mubr.msk.bf16.mxu0 %vm30_vm0, %v17_v3 }
  0x7a   :  { %v185_v18 = vpop.permute.xlu0 %184  ;;  %v187_v19 = vpop.permute.xlu1 %186 }
  0x7b   :  { %375 = vmatprep.mubr.msk.bf16.mxu1 %vm30_vm0, %v185_v18 }
  0x7c   :  { %376 = vmatmul.mubr.msk.bf16.vlgmr.msra.gmra.mrb[0].mxu1 %vm30_vm0, %v187_v19 }
  0x7d   :  { %380 = vmatpush3.bf16.msra.mxu1 %v19_v15  ;;  %381 = vmatprep.mubr.msk.bf16.mxu1 %vm30_vm0, %v176_v11 }
  0x84   :  { %370 = vmatmul.mubr.msk.bf16.vlgmr.msra.gmra.mrb[0].mxu0 %vm30_vm0, %v18_v4 }
  0x88   :  { %382 = vmatmul.mubr.msk.bf16.vlgmr.msra.gmra.mrb[0].mxu1 %vm30_vm0, %v177_v12 }
 0x157   :  { %v371_v20 = vpop.f32.mrb[0].mxu0 }
 0x158   :  { %v141_v21 = vmul.f32 %v371_v20, %v371_v20  ;;  %v125_v22 = vpop.f32.mrb[1].mxu0 }
 0x159   :  { %v139_v23 = vmul.f32 %v125_v22, %v125_v22  ;;  %v372_v24 = vpop.f32.mrb[2].mxu0 }
 0x15a   :  { %v144_v25 = vmul.f32 %v371_v20, %v141_v21  ;;  %v128_v26 = vpop.f32.mrb[3].mxu0 }
 0x15b   :  { %v142_v27 = vmul.f32 %v139_v23, %v125_v22  ;;  %v140_v28 = vmul.f32 %v128_v26, %v128_v26  ;;  %v383_v29 = vpop.f32.mrb[0].mxu1 }
 0x15c   :  { %v147_v30 = vmul.f32 0.044715, %v144_v25  ;;  %v298_v31 = vmul.f32 %v383_v29, %v383_v29  ;;  %v282_v32 = vpop.f32.mrb[1].mxu1 }
 0x15d   :  { %v145_v33 = vmul.f32 0.044715, %v142_v27  ;;  %v143_v34 = vmul.f32 %v140_v28, %v128_v26  ;;  %v296_v35 = vmul.f32 %v282_v32, %v282_v32  ;;  %v384_v36 = vpop.f32.mrb[2].mxu1 }
 0x15e   :  { %v150_v37 = vadd.f32 %v371_v20, %v147_v30  ;;  %v301_v38 = vmul.f32 %v383_v29, %v298_v31  ;;  %v285_v39 = vpop.f32.mrb[3].mxu1 }
 0x15f   :  { %v148_v40 = vadd.f32 %v145_v33, %v125_v22  ;;  %v146_v41 = vmul.f32 0.044715, %v143_v34  ;;  %v299_v42 = vmul.f32 %v296_v35, %v282_v32  ;;  %v297_v43 = vmul.f32 %v285_v39, %v285_v39 }
 0x160   :  { %v153_v44 = vmul.f32 0.7978846, %v150_v37  ;;  %v304_v45 = vmul.f32 0.044715, %v301_v38 }
 0x161   :  { %v151_v46 = vmul.f32 0.7978846, %v148_v40  ;;  %v149_v47 = vadd.f32 %v146_v41, %v128_v26  ;;  %v302_v48 = vmul.f32 0.044715, %v299_v42  ;;  %v300_v49 = vmul.f32 %v297_v43, %v285_v39 }
 0x162   :  { %394 = vtanh.f32 %v153_v44  ;;  %v307_v50 = vadd.f32 %v383_v29, %v304_v45 }
 0x163   :  { %396 = vtanh.f32 %v151_v46  ;;  %v152_v51 = vmul.f32 0.7978846, %v149_v47  ;;  %v305_v52 = vadd.f32 %v302_v48, %v282_v32  ;;  %v303_v53 = vmul.f32 0.044715, %v300_v49 }
 0x164   :  { %v310_v54 = vmul.f32 0.7978846, %v307_v50 }
 0x165   :  { %398 = vtanh.f32 %v152_v51  ;;  %v308_v55 = vmul.f32 0.7978846, %v305_v52  ;;  %v306_v56 = vadd.f32 %v303_v53, %v285_v39 }
 0x166   :  { %400 = vtanh.f32 %v310_v54 }
 0x167   :  { %402 = vtanh.f32 %v308_v55  ;;  %v309_v57 = vmul.f32 0.7978846, %v306_v56 }
 0x169   :  { %404 = vtanh.f32 %v309_v57 }
 0x16c   :  { %v395_v58 = vpop.eup %394 }
 0x16d   :  { %v397_v59 = vpop.eup %396  ;;  %v159_v60 = vadd.f32 1.0, %v395_v58 }
 0x16e   :  { %v157_v61 = vadd.f32 1.0, %v397_v59 }
 0x16f   :  { %v399_v62 = vpop.eup %398  ;;  %v162_v63 = vmul.f32 0.5, %v159_v60 }
 0x170   :  { %v401_v0 = vpop.eup %400  ;;  %v160_v1 = vmul.f32 0.5, %v157_v61  ;;  %v158_v2 = vadd.f32 1.0, %v399_v62 }
 0x171   :  { %v403_v3 = vpop.eup %402  ;;  %v165_v4 = vmul.f32 %v371_v20, %v162_v63  ;;  %v316_v5 = vadd.f32 1.0, %v401_v0 }
 0x172   :  { %v163_v6 = vmul.f32 %v160_v1, %v125_v22  ;;  %v161_v7 = vmul.f32 0.5, %v158_v2  ;;  %v314_v8 = vadd.f32 1.0, %v403_v3 }
 0x173   :  { %v405_v9 = vpop.eup %404  ;;  %169 = vst.msk [vmem:[%s486_s2 + $0x10] sm:$0x7] %vm168_vm1, %v165_v4  ;;  %v319_v10 = vmul.f32 0.5, %v316_v5 }
 0x174   :  { %166 = vst.msk [vmem:[%s486_s2] sm:$0xff] %vm30_vm0, %v163_v6  ;;  %v164_v11 = vmul.f32 %v161_v7, %v128_v26  ;;  %v317_v12 = vmul.f32 0.5, %v314_v8  ;;  %v315_v13 = vadd.f32 1.0, %v405_v9 }
 0x175   :  { %v322_v14 = vmul.f32 %v383_v29, %v319_v10 }
 0x176   :  { %167 = vst.msk [vmem:[%s486_s2 + $0x8] sm:$0xff] %vm30_vm0, %v164_v11  ;;  %v320_v15 = vmul.f32 %v317_v12, %v282_v32  ;;  %v318_v16 = vmul.f32 0.5, %v315_v13 }
 0x177   :  { %348 = vst.msk [vmem:[%s486_s2 + $0x28] sm:$0x7] %vm168_vm1, %v322_v14 }
 0x178   :  { %346 = vst.msk [vmem:[%s486_s2 + $0x18] sm:$0xff] %vm30_vm0, %v320_v15  ;;  %v321_v17 = vmul.f32 %v318_v16, %v285_v39 }
 0x17a   :  { %347 = vst.msk [vmem:[%s486_s2 + $0x20] sm:$0xff] %vm30_vm0, %v321_v17 }

// kernel: hubert_forward.10
= control target key start
LH: loop header
LB: loop body
LE: loop exit
PB: predicated region body
PF: predicated region fallthrough
CT: control target
= control target key end

     0   :  { %vm28_vm0 = vcmask 130048   ;;  %vm41_vm1 = vcmask 128000   ;;  %v245_v38 = vmov 0.0   ;;  %vm246_vm2 = vmmov 0   ;;  %s347_s0 = inlined_call_operand.vmem [shape: f32[38,16], index: 0, kind: input, shape index: {}]   ;;  %s348_s3 = inlined_call_operand.vmem [shape: f32[16,32], index: 3, kind: input, shape index: {}]   ;;  %s349_s1 = inlined_call_operand.vmem [shape: f32[1,16], index: 1, kind: input, shape index: {}]   ;;  %s350_s2 = inlined_call_operand.vmem [shape: f32[1,16], index: 2, kind: input, shape index: {}]   ;;  %s351_s4 = inlined_call_operand.vmem [shape: f32[1,32], index: 4, kind: input, shape index: {}]   ;;  %s352_s5 = inlined_call_operand.vmem [shape: f32[38,32], index: 5, kind: output, shape index: {}]  }
   0x1   :  { %v23_v0 = vld [vmem:[%s347_s0 + $0x10] sm:$0xff]  ;;  %v24_v1 = vld [vmem:[%s347_s0 + $0x18] sm:$0xff]  ;;  %v21_v2 = vld [vmem:[%s347_s0] sm:$0xff]  ;;  %231 = vmatprep.subr.bf16.mxu1 %v245_v38  ;;  %217 = vmatprep.subr.bf16.mxu0 %v245_v38  ;;  %vm196_vm3 = vcmask 261120   ;;  %vm201_vm4 = vcmask 259072  }
   0x2   :  { %v35_v3 = vsel %vm28_vm0, %v23_v0, 0.0  ;;  %v29_v4 = vsel %vm28_vm0, %v21_v2, 0.0  ;;  %v22_v5 = vld [vmem:[%s347_s0 + $0x8] sm:$0xff]  ;;  %v38_v6 = vsel %vm28_vm0, %v24_v1, 0.0  ;;  %v25_v8 = vld [vmem:[%s347_s0 + $0x20] sm:$0x3f]  ;;  %223 = vmatprep.mubr.msk.bf16.mxu1 %vm246_vm2, %v245_v38  ;;  %219 = vmatprep.mubr.msk.bf16.mxu0 %vm246_vm2, %v245_v38 }
   0x3   :  { %36 = vadd.xlane.f32.xlu0 %v35_v3  ;;  %30 = vadd.xlane.f32.xlu1 %v29_v4  ;;  %v32_v7 = vsel %vm28_vm0, %v22_v5, 0.0  ;;  %v42_v9 = vsel %vm41_vm1, %v25_v8, 0.0  ;;  %v118_v35 = vld [vmem:[%s348_s3] sm:$0xff]  ;;  %v119_v36 = vld [vmem:[%s348_s3 + $0x8] sm:$0xff] }
   0x4   :  { %v123_v37 = vpack.c.bf16 %v119_v36, %v118_v35  ;;  %v207_v56 = vld [vmem:[%s349_s1] ss:$0 sm:$0xff] }
   0x5   :  { %v208_v62 = vld [vmem:[%s350_s2] ss:$0 sm:$0xff] }
   0x6   :  { %232 = vmatpush3.bf16.msra.mxu1 %v123_v37  ;;  %218 = vmatpush3.bf16.msra.mxu0 %v123_v37 }
   0x7   :  { %39 = vadd.xlane.f32.xlu0 %v38_v6  ;;  %33 = vadd.xlane.f32.xlu1 %v32_v7 }
   0xb   :  { %43 = vadd.xlane.f32.xlu0 %v42_v9 }
  0x90   :  { %v37_v10 = vpop.xlane.xlu0 %36  ;;  %v31_v11 = vpop.xlane.xlu1 %30 }
  0x91   :  { %v48_v12 = vmul.f32 0.0625, %v37_v10  ;;  %v46_v13 = vmul.f32 0.0625, %v31_v11 }
  0x93   :  { %v53_v14 = vsub.f32 %v23_v0, %v48_v12  ;;  %v297_v15 = vsub.f32 %v21_v2, %v46_v13 }
  0x94   :  { %v40_v16 = vpop.xlane.xlu0 %39  ;;  %v34_v17 = vpop.xlane.xlu1 %33 }
  0x95   :  { %v49_v18 = vmul.f32 0.0625, %v40_v16  ;;  %v58_v19 = vmul.f32 %v53_v14, %v53_v14  ;;  %v47_v20 = vmul.f32 0.0625, %v34_v17  ;;  %v56_v21 = vmul.f32 %v297_v15, %v297_v15 }
  0x97   :  { %v54_v22 = vsub.f32 %v24_v1, %v49_v18  ;;  %v67_v23 = vsel %vm28_vm0, %v58_v19, 0.0  ;;  %v52_v24 = vsub.f32 %v22_v5, %v47_v20  ;;  %v61_v28 = vsel %vm28_vm0, %v56_v21, 0.0 }
  0x98   :  { %v44_v25 = vpop.xlane.xlu0 %43  ;;  %68 = vadd.xlane.f32.xlu1 %v67_v23 }
  0x99   :  { %v50_v26 = vmul.f32 0.0625, %v44_v25  ;;  %v59_v27 = vmul.f32 %v54_v22, %v54_v22  ;;  %v57_v29 = vmul.f32 %v52_v24, %v52_v24 }
  0x9b   :  { %v55_v30 = vsub.f32 %v25_v8, %v50_v26  ;;  %v70_v31 = vsel %vm28_vm0, %v59_v27, 0.0  ;;  %v64_v33 = vsel %vm28_vm0, %v57_v29, 0.0 }
  0x9c   :  { %71 = vadd.xlane.f32.xlu0 %v70_v31  ;;  %62 = vadd.xlane.f32.xlu1 %v61_v28 }
  0x9d   :  { %v60_v32 = vmul.f32 %v55_v30, %v55_v30 }
  0x9f   :  { %v73_v34 = vsel %vm41_vm1, %v60_v32, 0.0 }
  0xa0   :  { %74 = vadd.xlane.f32.xlu1 %v73_v34  ;;  %65 = vadd.xlane.f32.xlu0 %v64_v33 }
 0x125   :  { %v69_v39 = vpop.xlane.xlu1 %68 }
 0x126   :  { %v78_v40 = vmul.f32 0.0625, %v69_v39 }
 0x128   :  { %v83_v41 = vadd.f32 1e-05, %v78_v40 }
 0x129   :  { %v72_v42 = vpop.xlane.xlu0 %71  ;;  %v63_v43 = vpop.xlane.xlu1 %62 }
 0x12a   :  { %235 = vrsqrt.f32 %v83_v41  ;;  %v79_v44 = vmul.f32 0.0625, %v72_v42  ;;  %v76_v45 = vmul.f32 0.0625, %v63_v43 }
 0x12c   :  { %v84_v46 = vadd.f32 1e-05, %v79_v44  ;;  %v81_v47 = vadd.f32 1e-05, %v76_v45 }
 0x12d   :  { %v66_v48 = vpop.xlane.xlu0 %65  ;;  %v75_v49 = vpop.xlane.xlu1 %74 }
 0x12e   :  { %237 = vrsqrt.f32 %v84_v46  ;;  %v77_v50 = vmul.f32 0.0625, %v66_v48  ;;  %v80_v51 = vmul.f32 0.0625, %v75_v49 }
 0x12f   :  { %239 = vrsqrt.f32 %v81_v47 }
 0x130   :  { %v82_v52 = vadd.f32 1e-05, %v77_v50  ;;  %v85_v53 = vadd.f32 1e-05, %v80_v51 }
 0x132   :  { %241 = vrsqrt.f32 %v82_v52 }
 0x133   :  { %243 = vrsqrt.f32 %v85_v53 }
 0x134   :  { %v236_v54 = vpop.eup %235 }
 0x135   :  { %v93_v55 = vmul.f32 %v236_v54, %v53_v14 }
 0x137   :  { %v104_v60 = vmul.f32 %v207_v56, %v93_v55 }
 0x138   :  { %v238_v57 = vpop.eup %237 }
 0x139   :  { %v240_v58 = vpop.eup %239  ;;  %v94_v59 = vmul.f32 %v238_v57, %v54_v22  ;;  %v115_v3 = vadd.f32 %v208_v62, %v104_v60 }
 0x13a   :  { %v91_v61 = vmul.f32 %v240_v58, %v297_v15  ;;  %v209_v15 = vld [vmem:[%s351_s4] ss:$0 sm:$0xff] }
 0x13b   :  { %v105_v63 = vmul.f32 %v207_v56, %v94_v59 }
 0x13c   :  { %v242_v0 = vpop.eup %241  ;;  %v102_v5 = vmul.f32 %v207_v56, %v91_v61 }
 0x13d   :  { %v244_v1 = vpop.eup %243  ;;  %v92_v2 = vmul.f32 %v242_v0, %v52_v24  ;;  %v116_v4 = vadd.f32 %v208_v62, %v105_v63 }
 0x13e   :  { %v95_v6 = vmul.f32 %v244_v1, %v55_v30  ;;  %v113_v10 = vadd.f32 %v208_v62, %v102_v5 }
 0x13f   :  { %v121_v7 = vpack.c.bf16 %v116_v4, %v115_v3  ;;  %v103_v8 = vmul.f32 %v207_v56, %v92_v2 }
 0x140   :  { %v106_v9 = vmul.f32 %v207_v56, %v95_v6 }
 0x141   :  { %224 = vmatmul.mubr.msk.bf16.vlgmr.msra.gmra.mrb[0].mxu1 %vm28_vm0, %v121_v7  ;;  %v114_v11 = vadd.f32 %v208_v62, %v103_v8 }
 0x142   :  { %227 = vmatprep.mubr.msk.bf16.mxu1 %vm246_vm2, %v245_v38  ;;  %v117_v13 = vadd.f32 %v208_v62, %v106_v9 }
 0x143   :  { %v120_v12 = vpack.c.bf16 %v114_v11, %v113_v10 }
 0x144   :  { %v122_v14 = vpack.c.bf16 %v117_v13, %v117_v13 }
 0x145   :  { %220 = vmatmul.mubr.msk.bf16.vlgmr.msra.gmra.mrb[0].mxu0 %vm28_vm0, %v120_v12 }
 0x149   :  { %228 = vmatmul.mubr.msk.bf16.gmra.mrb[4].mxu1 %vm28_vm0, %v122_v14 }
 0x214   :  { %v182_v16 = vpop.f32.mrb[0].mxu1 }
 0x215   :  { %v183_v17 = vadd.f32 %v209_v15, %v182_v16  ;;  %v225_v18 = vpop.f32.mrb[1].mxu1 }
 0x216   :  { %v185_v19 = vpop.f32.mrb[2].mxu1 }
 0x217   :  { %199 = vst.msk [vmem:[%s352_s5 + $0x10] sm:$0xff] %vm196_vm3, %v183_v17  ;;  %v186_v20 = vadd.f32 %v209_v15, %v185_v19  ;;  %v226_v21 = vpop.f32.mrb[3].mxu1 }
 0x218   :  { %v174_v22 = vpop.f32.mrb[0].mxu0 }
 0x219   :  { %200 = vst.msk [vmem:[%s352_s5 + $0x18] sm:$0xff] %vm196_vm3, %v186_v20  ;;  %v175_v23 = vadd.f32 %v209_v15, %v174_v22  ;;  %v221_v24 = vpop.f32.mrb[1].mxu0 }
 0x21a   :  { %v177_v25 = vpop.f32.mrb[2].mxu0 }
 0x21b   :  { %197 = vst.msk [vmem:[%s352_s5] sm:$0xff] %vm196_vm3, %v175_v23  ;;  %v178_v26 = vadd.f32 %v209_v15, %v177_v25  ;;  %v222_v27 = vpop.f32.mrb[3].mxu0 }
 0x21c   :  { %v190_v28 = vpop.f32.mrb[4].mxu1 }
 0x21d   :  { %198 = vst.msk [vmem:[%s352_s5 + $0x8] sm:$0xff] %vm196_vm3, %v178_v26  ;;  %v191_v29 = vadd.f32 %v209_v15, %v190_v28  ;;  %v229_v30 = vpop.f32.mrb[5].mxu1 }
 0x21e   :  { %v193_v31 = vpop.f32.mrb[6].mxu1 }
 0x21f   :  { %202 = vst.msk [vmem:[%s352_s5 + $0x20] sm:$0x3f] %vm201_vm4, %v191_v29  ;;  %v230_v32 = vpop.f32.mrb[7].mxu1 }

// kernel: hubert_forward.8
= control target key start
LH: loop header
LB: loop body
LE: loop exit
PB: predicated region body
PF: predicated region fallthrough
CT: control target
= control target key end

     0   :  { %v810_v3 = vmov 0.0   ;;  %vm811_vm0 = vmmov 0   ;;  %s812_s25 = smov 112   ;;  %vm36_vm1 = vcmask 130048   ;;  %vm298_vm2 = vcmask 129024   ;;  %s1074_s0 = inlined_call_operand.vmem [shape: f32[2,40,32], index: 0, kind: input, shape index: {}]   ;;  %s1075_s1 = inlined_call_operand.vmem [shape: f32[3,16,16], index: 1, kind: input, shape index: {}]   ;;  %s1076_s2 = inlined_call_operand.vmem [shape: f32[2,39,16], index: 2, kind: output, shape index: {}]  }
   0x1   :  { %v12_v0 = vld [vmem:[%s1074_s0] sm:$0xff]  ;;  %v13_v1 = vld [vmem:[%s1074_s0 + $0x8] sm:$0xff]  ;;  %655 = vmatprep.subr.bf16.mxu0 %v810_v3  ;;  %657 = vmatprep.mubr.msk.bf16.mxu0 %vm811_vm0, %v810_v3  ;;  %v604_v5 = vld [vmem:[%s1074_s0 + $0x30] sm:$0xff] }
   0x2   :  { %v603_v2 = vld [vmem:[%s1074_s0 + $0x28] sm:$0xff]  ;;  %v19_v4 = vpack.c.bf16 %v13_v1, %v12_v0  ;;  %v14_v6 = vld [vmem:[%s1074_s0 + $0x10] sm:$0xff]  ;;  %v15_v7 = vld [vmem:[%s1074_s0 + $0x18] sm:$0xff]  ;;  %697 = vmatprep.subr.bf16.mxu1 %v810_v3  ;;  %699 = vmatprep.mubr.msk.bf16.mxu1 %vm811_vm0, %v810_v3 }
   0x3   :  { %v20_v8 = vpack.c.bf16 %v15_v7, %v14_v6  ;;  %v605_v9 = vld [vmem:[%s1074_s0 + $0x38] sm:$0xff]  ;;  %v606_v10 = vld [vmem:[%s1074_s0 + $0x40] sm:$0xff]  ;;  %v308_v11 = vpack.c.bf16 %v604_v5, %v603_v2  ;;  %v590_v12 = vld [vmem:[%s1075_s1 + $0x10] sm:$0xff] }
   0x4   :  { %30 = vrot.lane.b32.xlu0 %v19_v4, %s812_s25  ;;  %v591_v13 = vld [vmem:[%s1075_s1 + $0x18] sm:$0xff]  ;;  %v309_v14 = vpack.c.bf16 %v606_v10, %v605_v9  ;;  %v16_v15 = vld [vmem:[%s1074_s0 + $0x20] sm:$0x7f]  ;;  %v607_v17 = vld [vmem:[%s1074_s0 + $0x48] sm:$0x7f] }
   0x5   :  { %32 = vrot.lane.b32.xlu1 %v20_v8, %s812_s25  ;;  %v26_v16 = vpack.c.bf16 %v591_v13, %v590_v12  ;;  %v21_v18 = vpack.c.bf16 %v16_v15, %v16_v15  ;;  %v310_v19 = vpack.c.bf16 %v607_v17, %v607_v17  ;;  %v17_v20 = vld [vmem:[%s1075_s1] sm:$0xff]  ;;  %v18_v21 = vld [vmem:[%s1075_s1 + $0x8] sm:$0xff]  ;;  %v617_v36 = vld [vmem:[%s1074_s0 + $0x31] sm:$0xff] }
   0x6   :  { %v22_v22 = vpack.c.bf16 %v18_v21, %v17_v20  ;;  %v598_v29 = vld [vmem:[%s1075_s1 + $0x20] sm:$0xff]  ;;  %v599_v30 = vld [vmem:[%s1075_s1 + $0x28] sm:$0xff]  ;;  %v169_v38 = vld [vmem:[%s1074_s0 + $0x11] sm:$0xff] }
   0x7   :  { %656 = vmatpush3.bf16.msra.mxu0 %v26_v16  ;;  %698 = vmatpush3.bf16.msra.mxu1 %v26_v16  ;;  %v178_v31 = vpack.c.bf16 %v599_v30, %v598_v29  ;;  %v167_v32 = vld [vmem:[%s1074_s0 + $0x1] sm:$0xff]  ;;  %v168_v33 = vld [vmem:[%s1074_s0 + $0x9] sm:$0xff]  ;;  %v170_v39 = vld [vmem:[%s1074_s0 + $0x19] sm:$0xff] }
   0x8   :  { %318 = vrot.lane.b32.xlu0 %v308_v11, %s812_s25  ;;  %669 = vmatprep.subr.bf16.mxu0 %v810_v3  ;;  %v175_v34 = vpack.c.bf16 %v168_v33, %v167_v32  ;;  %v616_v35 = vld [vmem:[%s1074_s0 + $0x29] sm:$0xff]  ;;  %v176_v40 = vpack.c.bf16 %v170_v39, %v169_v38  ;;  %v618_v41 = vld [vmem:[%s1074_s0 + $0x39] sm:$0xff]  ;;  %v619_v42 = vld [vmem:[%s1074_s0 + $0x41] sm:$0xff] }
   0x9   :  { %320 = vrot.lane.b32.xlu1 %v309_v14, %s812_s25  ;;  %711 = vmatprep.subr.bf16.mxu1 %v810_v3  ;;  %v461_v37 = vpack.c.bf16 %v617_v36, %v616_v35  ;;  %v462_v43 = vpack.c.bf16 %v619_v42, %v618_v41  ;;  %v171_v44 = vld [vmem:[%s1074_s0 + $0x21] sm:$0x7f]  ;;  %v620_v46 = vld [vmem:[%s1074_s0 + $0x49] sm:$0x7f] }
   0xa   :  { %v177_v45 = vpack.c.bf16 %v171_v44, %v171_v44  ;;  %v463_v47 = vpack.c.bf16 %v620_v46, %v620_v46 }
   0xc   :  { %34 = vrot.lane.b32.xlu0 %v21_v18, %s812_s25 }
   0xd   :  { %322 = vrot.lane.b32.xlu1 %v310_v19, %s812_s25 }
  0x76   :  { %v31_v23 = vpop.permute.xlu0 %30 }
  0x77   :  { %658 = vmatmul.mubr.msk.bf16.vlgmr.msra.gmra.mrb[0].mxu0 %vm36_vm1, %v31_v23  ;;  %v33_v25 = vpop.permute.xlu1 %32 }
  0x78   :  { %670 = vmatpush3.bf16.msra.mxu0 %v22_v22  ;;  %661 = vmatprep.mubr.msk.bf16.mxu0 %vm811_vm0, %v810_v3 }
  0x79   :  { %683 = vmatprep.subr.bf16.mxu0 %v810_v3 }
  0x7a   :  { %v319_v24 = vpop.permute.xlu0 %318 }
  0x7b   :  { %700 = vmatmul.mubr.msk.bf16.vlgmr.msra.gmra.mrb[0].mxu1 %vm36_vm1, %v319_v24  ;;  %v321_v26 = vpop.permute.xlu1 %320 }
  0x7c   :  { %712 = vmatpush3.bf16.msra.mxu1 %v22_v22  ;;  %703 = vmatprep.mubr.msk.bf16.mxu1 %vm811_vm0, %v810_v3 }
  0x7d   :  { %725 = vmatprep.subr.bf16.mxu1 %v810_v3 }
  0x7e   :  { %v35_v27 = vpop.permute.xlu0 %34 }
  0x7f   :  { %662 = vmatmul.mubr.msk.bf16.gmra.mrb[4].mxu0 %vm36_vm1, %v33_v25  ;;  %v323_v28 = vpop.permute.xlu1 %322 }
  0x80   :  { %665 = vmatprep.mubr.msk.bf16.mxu0 %vm811_vm0, %v810_v3 }
  0x83   :  { %704 = vmatmul.mubr.msk.bf16.gmra.mrb[4].mxu1 %vm36_vm1, %v321_v26 }
  0x84   :  { %707 = vmatprep.mubr.msk.bf16.mxu1 %vm811_vm0, %v810_v3 }
  0x87   :  { %666 = vmatmul.mubr.msk.bf16.gmra.mrb[8].mxu0 %vm36_vm1, %v35_v27 }
  0x88   :  { %671 = vmatprep.mubr.msk.bf16.mxu0 %vm811_vm0, %v810_v3 }
  0x8b   :  { %708 = vmatmul.mubr.msk.bf16.gmra.mrb[8].mxu1 %vm36_vm1, %v323_v28 }
  0x8c   :  { %713 = vmatprep.mubr.msk.bf16.mxu1 %vm811_vm0, %v810_v3 }
  0x8f   :  { %672 = vmatmul.mubr.msk.bf16.vlgmr.msra.gmra.mrb[0].mxu0 %vm36_vm1, %v19_v4 }
  0x90   :  { %684 = vmatpush3.bf16.msra.mxu0 %v178_v31  ;;  %675 = vmatprep.mubr.msk.bf16.mxu0 %vm811_vm0, %v810_v3 }
  0x93   :  { %714 = vmatmul.mubr.msk.bf16.vlgmr.msra.gmra.mrb[0].mxu1 %vm36_vm1, %v308_v11 }
  0x94   :  { %726 = vmatpush3.bf16.msra.mxu1 %v178_v31  ;;  %717 = vmatprep.mubr.msk.bf16.mxu1 %vm811_vm0, %v810_v3 }
  0x97   :  { %676 = vmatmul.mubr.msk.bf16.gmra.mrb[4].mxu0 %vm36_vm1, %v20_v8 }
  0x98   :  { %679 = vmatprep.mubr.msk.bf16.mxu0 %vm811_vm0, %v810_v3 }
  0x9b   :  { %718 = vmatmul.mubr.msk.bf16.gmra.mrb[4].mxu1 %vm36_vm1, %v309_v14 }
  0x9c   :  { %721 = vmatprep.mubr.msk.bf16.mxu1 %vm811_vm0, %v810_v3 }
  0x9f   :  { %680 = vmatmul.mubr.msk.bf16.gmra.mrb[8].mxu0 %vm36_vm1, %v21_v18 }
  0xa0   :  { %685 = vmatprep.mubr.msk.bf16.mxu0 %vm811_vm0, %v810_v3 }
  0xa3   :  { %722 = vmatmul.mubr.msk.bf16.gmra.mrb[8].mxu1 %vm36_vm1, %v310_v19 }
  0xa4   :  { %727 = vmatprep.mubr.msk.bf16.mxu1 %vm811_vm0, %v810_v3 }
  0xa7   :  { %686 = vmatmul.mubr.msk.bf16.vlgmr.msra.gmra.mrb[0].mxu0 %vm36_vm1, %v175_v34 }
  0xa8   :  { %689 = vmatprep.mubr.msk.bf16.mxu0 %vm811_vm0, %v810_v3 }
  0xab   :  { %728 = vmatmul.mubr.msk.bf16.vlgmr.msra.gmra.mrb[0].mxu1 %vm36_vm1, %v461_v37 }
  0xac   :  { %731 = vmatprep.mubr.msk.bf16.mxu1 %vm811_vm0, %v810_v3 }
  0xaf   :  { %690 = vmatmul.mubr.msk.bf16.gmra.mrb[4].mxu0 %vm36_vm1, %v176_v40 }
  0xb0   :  { %693 = vmatprep.mubr.msk.bf16.mxu0 %vm811_vm0, %v810_v3 }
  0xb3   :  { %732 = vmatmul.mubr.msk.bf16.gmra.mrb[4].mxu1 %vm36_vm1, %v462_v43 }
  0xb4   :  { %735 = vmatprep.mubr.msk.bf16.mxu1 %vm811_vm0, %v810_v3 }
  0xb7   :  { %694 = vmatmul.mubr.msk.bf16.gmra.mrb[8].mxu0 %vm36_vm1, %v177_v45 }
  0xbb   :  { %736 = vmatmul.mubr.msk.bf16.gmra.mrb[8].mxu1 %vm36_vm1, %v463_v47 }
 0x17a   :  { %v966_v48 = vpop.f32.mrb[0].mxu0 }
 0x17b   :  { %v249_v49 = vmul.f32 %v966_v48, %v966_v48  ;;  %v687_v50 = vpop.f32.mrb[1].mxu0 }
 0x17c   :  { %v970_v51 = vpop.f32.mrb[2].mxu0 }
 0x17d   :  { %v254_v52 = vmul.f32 %v249_v49, %v966_v48  ;;  %v250_v53 = vmul.f32 %v970_v51, %v970_v51  ;;  %v688_v54 = vpop.f32.mrb[3].mxu0 }
 0x17e   :  { %v975_v55 = vpop.f32.mrb[0].mxu1 }
 0x17f   :  { %v259_v56 = vmul.f32 0.044715, %v254_v52  ;;  %v255_v57 = vmul.f32 %v250_v53, %v970_v51  ;;  %v535_v58 = vmul.f32 %v975_v55, %v975_v55  ;;  %v729_v59 = vpop.f32.mrb[1].mxu1 }
 0x180   :  { %v980_v60 = vpop.f32.mrb[2].mxu1 }
 0x181   :  { %v264_v61 = vadd.f32 %v259_v56, %v966_v48  ;;  %v260_v62 = vmul.f32 0.044715, %v255_v57  ;;  %v540_v63 = vmul.f32 %v535_v58, %v975_v55  ;;  %v536_v0 = vmul.f32 %v980_v60, %v980_v60  ;;  %v730_v1 = vpop.f32.mrb[3].mxu1 }
 0x182   :  { %v986_v2 = vpop.f32.mrb[4].mxu0 }
 0x183   :  { %v269_v3 = vmul.f32 0.7978846, %v264_v61  ;;  %v265_v4 = vadd.f32 %v260_v62, %v970_v51  ;;  %v545_v5 = vmul.f32 0.044715, %v540_v63  ;;  %v541_v6 = vmul.f32 %v536_v0, %v980_v60  ;;  %v691_v7 = vpop.f32.mrb[5].mxu0 }
 0x184   :  { %v251_v8 = vmul.f32 %v986_v2, %v986_v2  ;;  %v992_v9 = vpop.f32.mrb[6].mxu0 }
 0x185   :  { %790 = vtanh.f32 %v269_v3  ;;  %v270_v10 = vmul.f32 0.7978846, %v265_v4  ;;  %v550_v11 = vadd.f32 %v545_v5, %v975_v55  ;;  %v546_v12 = vmul.f32 0.044715, %v541_v6  ;;  %v692_v13 = vpop.f32.mrb[7].mxu0 }
 0x186   :  { %v256_v14 = vmul.f32 %v251_v8, %v986_v2  ;;  %v252_v15 = vmul.f32 %v992_v9, %v992_v9  ;;  %v998_v16 = vpop.f32.mrb[4].mxu1 }
 0x187   :  { %792 = vtanh.f32 %v270_v10  ;;  %v555_v17 = vmul.f32 0.7978846, %v550_v11  ;;  %v551_v18 = vadd.f32 %v546_v12, %v980_v60  ;;  %v537_v19 = vmul.f32 %v998_v16, %v998_v16  ;;  %v733_v20 = vpop.f32.mrb[5].mxu1 }
 0x188   :  { %v261_v21 = vmul.f32 0.044715, %v256_v14  ;;  %v257_v22 = vmul.f32 %v252_v15, %v992_v9  ;;  %v1004_v23 = vpop.f32.mrb[6].mxu1 }
 0x189   :  { %794 = vtanh.f32 %v555_v17  ;;  %v556_v24 = vmul.f32 0.7978846, %v551_v18  ;;  %v542_v25 = vmul.f32 %v537_v19, %v998_v16  ;;  %v538_v26 = vmul.f32 %v1004_v23, %v1004_v23  ;;  %v734_v27 = vpop.f32.mrb[7].mxu1 }
 0x18a   :  { %v266_v28 = vadd.f32 %v261_v21, %v986_v2  ;;  %v262_v29 = vmul.f32 0.044715, %v257_v22  ;;  %v1010_v30 = vpop.f32.mrb[8].mxu0 }
 0x18b   :  { %796 = vtanh.f32 %v556_v24  ;;  %v547_v31 = vmul.f32 0.044715, %v542_v25  ;;  %v543_v32 = vmul.f32 %v538_v26, %v1004_v23  ;;  %v253_v33 = vmul.f32 %v1010_v30, %v1010_v30  ;;  %v695_v34 = vpop.f32.mrb[9].mxu0 }
 0x18c   :  { %v271_v35 = vmul.f32 0.7978846, %v266_v28  ;;  %v267_v36 = vadd.f32 %v262_v29, %v992_v9  ;;  %v241_v37 = vpop.f32.mrb[10].mxu0 }
 0x18d   :  { %v552_v38 = vadd.f32 %v547_v31, %v998_v16  ;;  %v548_v39 = vmul.f32 0.044715, %v543_v32  ;;  %v258_v40 = vmul.f32 %v253_v33, %v1010_v30  ;;  %v696_v41 = vpop.f32.mrb[11].mxu0 }
 0x18e   :  { %798 = vtanh.f32 %v271_v35  ;;  %v272_v42 = vmul.f32 0.7978846, %v267_v36  ;;  %v1018_v43 = vpop.f32.mrb[8].mxu1 }
 0x18f   :  { %v791_v44 = vpop.eup %790  ;;  %v557_v45 = vmul.f32 0.7978846, %v552_v38  ;;  %v553_v46 = vadd.f32 %v548_v39, %v1004_v23  ;;  %v263_v47 = vmul.f32 0.044715, %v258_v40  ;;  %v539_v49 = vmul.f32 %v1018_v43, %v1018_v43  ;;  %v737_v50 = vpop.f32.mrb[9].mxu1 }
 0x190   :  { %v279_v52 = vadd.f32 1.0, %v791_v44  ;;  %800 = vtanh.f32 %v272_v42  ;;  %v527_v53 = vpop.f32.mrb[10].mxu1 }
 0x191   :  { %v793_v54 = vpop.eup %792  ;;  %802 = vtanh.f32 %v557_v45  ;;  %v558_v56 = vmul.f32 0.7978846, %v553_v46  ;;  %v268_v57 = vadd.f32 %v263_v47, %v1010_v30  ;;  %v544_v58 = vmul.f32 %v539_v49, %v1018_v43  ;;  %v738_v59 = vpop.f32.mrb[11].mxu1 }
 0x192   :  { %v284_v61 = vmul.f32 0.5, %v279_v52  ;;  %v280_v62 = vadd.f32 1.0, %v793_v54 }
 0x193   :  { %v795_v63 = vpop.eup %794  ;;  %804 = vtanh.f32 %v558_v56  ;;  %v273_v0 = vmul.f32 0.7978846, %v268_v57  ;;  %v549_v1 = vmul.f32 0.044715, %v544_v58 }
 0x194   :  { %v289_v3 = vmul.f32 %v284_v61, %v966_v48  ;;  %v285_v4 = vmul.f32 0.5, %v280_v62  ;;  %v565_v5 = vadd.f32 1.0, %v795_v63 }
 0x195   :  { %v797_v6 = vpop.eup %796  ;;  %806 = vtanh.f32 %v273_v0  ;;  %v554_v7 = vadd.f32 %v549_v1, %v1018_v43 }
 0x196   :  { %294 = vst.msk [vmem:[%s1076_s2] sm:$0xff] %vm36_vm1, %v289_v3  ;;  %v290_v8 = vmul.f32 %v285_v4, %v970_v51  ;;  %v570_v10 = vmul.f32 0.5, %v565_v5  ;;  %v566_v11 = vadd.f32 1.0, %v797_v6 }
 0x197   :  { %v559_v12 = vmul.f32 0.7978846, %v554_v7 }
 0x198   :  { %v799_v13 = vpop.eup %798  ;;  %295 = vst.msk [vmem:[%s1076_s2 + $0x8] sm:$0xff] %vm36_vm1, %v290_v8  ;;  %v575_v48 = vmul.f32 %v570_v10, %v975_v55  ;;  %v571_v14 = vmul.f32 0.5, %v566_v11 }
 0x199   :  { %v281_v15 = vadd.f32 1.0, %v799_v13  ;;  %808 = vtanh.f32 %v559_v12 }
 0x19a   :  { %v801_v17 = vpop.eup %800  ;;  %626 = vst.msk [vmem:[%s1076_s2 + $0x28] sm:$0xff] %vm36_vm1, %v575_v48  ;;  %v576_v51 = vmul.f32 %v571_v14, %v980_v60 }
 0x19b   :  { %v803_v18 = vpop.eup %802  ;;  %v286_v19 = vmul.f32 0.5, %v281_v15  ;;  %v282_v20 = vadd.f32 1.0, %v801_v17 }
 0x19c   :  { %627 = vst.msk [vmem:[%s1076_s2 + $0x30] sm:$0xff] %vm36_vm1, %v576_v51  ;;  %v567_v55 = vadd.f32 1.0, %v803_v18 }
 0x19d   :  { %v805_v21 = vpop.eup %804  ;;  %v291_v22 = vmul.f32 %v286_v19, %v986_v2  ;;  %v287_v24 = vmul.f32 0.5, %v282_v20 }
 0x19e   :  { %v572_v25 = vmul.f32 0.5, %v567_v55  ;;  %v568_v26 = vadd.f32 1.0, %v805_v21 }
 0x19f   :  { %v807_v27 = vpop.eup %806  ;;  %296 = vst.msk [vmem:[%s1076_s2 + $0x10] sm:$0xff] %vm36_vm1, %v291_v22  ;;  %v292_v60 = vmul.f32 %v287_v24, %v992_v9 }
 0x1a0   :  { %v577_v28 = vmul.f32 %v572_v25, %v998_v16  ;;  %v573_v29 = vmul.f32 0.5, %v568_v26  ;;  %v283_v31 = vadd.f32 1.0, %v807_v27 }
 0x1a1   :  { %297 = vst.msk [vmem:[%s1076_s2 + $0x18] sm:$0xff] %vm36_vm1, %v292_v60 }
 0x1a2   :  { %628 = vst.msk [vmem:[%s1076_s2 + $0x38] sm:$0xff] %vm36_vm1, %v577_v28  ;;  %v578_v2 = vmul.f32 %v573_v29, %v1004_v23  ;;  %v288_v32 = vmul.f32 0.5, %v283_v31 }
 0x1a3   :  { %v809_v33 = vpop.eup %808 }
 0x1a4   :  { %629 = vst.msk [vmem:[%s1076_s2 + $0x40] sm:$0xff] %vm36_vm1, %v578_v2  ;;  %v293_v9 = vmul.f32 %v288_v32, %v1010_v30  ;;  %v569_v16 = vadd.f32 1.0, %v809_v33 }
 0x1a6   :  { %299 = vst.msk [vmem:[%s1076_s2 + $0x20] sm:$0x7f] %vm298_vm2, %v293_v9  ;;  %v574_v34 = vmul.f32 0.5, %v569_v16 }
 0x1a8   :  { %v579_v35 = vmul.f32 %v574_v34, %v1018_v43 }
 0x1aa   :  { %630 = vst.msk [vmem:[%s1076_s2 + $0x48] sm:$0x7f] %vm298_vm2, %v579_v35 }

// kernel: hubert_forward.7
= control target key start
LH: loop header
LB: loop body
LE: loop exit
PB: predicated region body
PF: predicated region fallthrough
CT: control target
= control target key end

     0   :  { %v3784_v0 = vmov 0   ;;  %v3788_v12 = vmov 1   ;;  %v3782_v18 = vmov 2   ;;  %v3790_v24 = vmov 3   ;;  %s3777_s0 = inlined_call_operand.vmem [shape: f32[2,80,5], index: 0, kind: input, shape index: {}]   ;;  %s3778_s1 = inlined_call_operand.vmem [shape: f32[10,1,16], index: 1, kind: input, shape index: {}]   ;;  %s3779_s2 = inlined_call_operand.vmem [shape: f32[1,16], index: 2, kind: input, shape index: {}]   ;;  %s3780_s3 = inlined_call_operand.vmem [shape: f32[1,16], index: 3, kind: input, shape index: {}]   ;;  %s3781_s4 = inlined_call_operand.vmem [shape: f32[2,79,16], index: 4, kind: output, shape index: {}]  }
   0x1   :  { %1969 = vset.pattern.permute.xlu1 %v3784_v0  ;;  %1968 = vset.pattern.permute.xlu0 %v3784_v0  ;;  %v2103_v1 = vld [vmem:[%s3777_s0 + $0x10] sm:$0xff]  ;;  %v2108_v2 = vld [vmem:[%s3777_s0] sm:$0xff]  ;;  %v2115_v3 = vld [vmem:[%s3777_s0 + $0x18] sm:$0xff]  ;;  %v3786_v27 = vmov 4   ;;  %vm736_vm0 = vcmask 130048   ;;  %vm754_vm1 = vcmask 129024  }
   0x2   :  { %40 = vperm.xlu1 %1969, %v2103_v1   ;;  %30 = vperm.xlu0 %1968, %v2108_v2   ;;  %v2120_v4 = vld [vmem:[%s3777_s0 + $0x8] sm:$0xff]  ;;  %v2132_v6 = vld [vmem:[%s3777_s0 + $0x20] sm:$0xff]  ;;  %v2139_v7 = vld [vmem:[%s3777_s0 + $0x38] sm:$0xff] }
   0x3   :  { %v2127_v5 = vld [vmem:[%s3777_s0 + $0x28] sm:$0xff]  ;;  %v2144_v8 = vld [vmem:[%s3777_s0 + $0x30] sm:$0xff]  ;;  %v2156_v10 = vld [vmem:[%s3777_s0 + $0x40] sm:$0xff] }
   0x4   :  { %v2151_v9 = vld [vmem:[%s3777_s0 + $0x48] sm:$0x7f]  ;;  %v2171_v13 = vld [vmem:[%s3777_s0 + $0x19] sm:$0xff]  ;;  %v2206_v19 = vld [vmem:[%s3777_s0 + $0x70] sm:$0xff] }
   0x5   :  { %v2163_v11 = vld [vmem:[%s3777_s0 + $0x1] sm:$0xff]  ;;  %v2178_v14 = vld [vmem:[%s3777_s0 + $0x29] sm:$0xff]  ;;  %v2185_v15 = vld [vmem:[%s3777_s0 + $0x39] sm:$0xff] }
   0x6   :  { %45 = vperm.xlu1 %1969, %v2115_v3   ;;  %35 = vperm.xlu0 %1968, %v2120_v4   ;;  %v2192_v16 = vld [vmem:[%s3777_s0 + $0x49] sm:$0x7f]  ;;  %v2199_v17 = vld [vmem:[%s3777_s0 + $0x58] sm:$0xff]  ;;  %v2213_v20 = vld [vmem:[%s3777_s0 + $0x80] sm:$0xff] }
   0x7   :  { %v2220_v21 = vld [vmem:[%s3777_s0 + $0x90] sm:$0xff]  ;;  %v2260_v26 = vld [vmem:[%s3777_s0 + $0x21] sm:$0xff]  ;;  %v2296_v32 = vld [vmem:[%s3777_s0 + $0x78] sm:$0xff] }
   0x8   :  { %v2227_v22 = vld [vmem:[%s3777_s0 + $0x51] sm:$0xff]  ;;  %v2234_v23 = vld [vmem:[%s3777_s0 + $0x89] sm:$0xff]  ;;  %v2275_v29 = vld [vmem:[%s3777_s0 + $0x41] sm:$0xff] }
   0x9   :  { %v2253_v25 = vld [vmem:[%s3777_s0 + $0x9] sm:$0xff]  ;;  %v2268_v28 = vld [vmem:[%s3777_s0 + $0x31] sm:$0xff]  ;;  %v2323_v36 = vld [vmem:[%s3777_s0 + $0x59] sm:$0xff] }
   0xa   :  { %55 = vperm.xlu1 %1969, %v2127_v5   ;;  %50 = vperm.xlu0 %1968, %v2132_v6   ;;  %v2282_v30 = vld [vmem:[%s3777_s0 + $0x50] sm:$0xff]  ;;  %v2289_v31 = vld [vmem:[%s3777_s0 + $0x68] sm:$0xff]  ;;  %v2316_v35 = vld [vmem:[%s3777_s0 + $0x98] sm:$0x7f] }
   0xb   :  { %v2303_v33 = vld [vmem:[%s3777_s0 + $0x88] sm:$0xff]  ;;  %v2311_v34 = vld [vmem:[%s3777_s0 + $0x11] sm:$0xff] }
   0xc   :  { %v2330_v37 = vld [vmem:[%s3777_s0 + $0x71] sm:$0xff] }
   0xe   :  { %65 = vperm.xlu1 %1969, %v2139_v7   ;;  %60 = vperm.xlu0 %1968, %v2144_v8  }
  0x12   :  { %75 = vperm.xlu1 %1969, %v2151_v9   ;;  %70 = vperm.xlu0 %1968, %v2156_v10  }
  0x16   :  { %1970 = vset.pattern.permute.xlu1 %v3788_v12  ;;  %390 = vperm.xlu0 %1968, %v2163_v11  }
  0x17   :  { %111 = vperm.xlu1 %1970, %v2120_v4  }
  0x1a   :  { %405 = vperm.xlu0 %1968, %v2171_v13  }
  0x1b   :  { %115 = vperm.xlu1 %1970, %v2103_v1  }
  0x1e   :  { %415 = vperm.xlu0 %1968, %v2178_v14  }
  0x1f   :  { %123 = vperm.xlu1 %1970, %v2132_v6  }
  0x22   :  { %425 = vperm.xlu0 %1968, %v2185_v15  }
  0x23   :  { %131 = vperm.xlu1 %1970, %v2144_v8  }
  0x26   :  { %435 = vperm.xlu0 %1968, %v2192_v16  }
  0x27   :  { %139 = vperm.xlu1 %1970, %v2156_v10  }
  0x2a   :  { %976 = vperm.xlu0 %1968, %v2199_v17  }
  0x2b   :  { %1971 = vset.pattern.permute.xlu1 %v3782_v18 }
  0x2c   :  { %175 = vperm.xlu1 %1971, %v2108_v2  }
  0x2e   :  { %991 = vperm.xlu0 %1968, %v2206_v19  }
  0x30   :  { %183 = vperm.xlu1 %1971, %v2103_v1  }
  0x32   :  { %1001 = vperm.xlu0 %1968, %v2213_v20  }
  0x34   :  { %187 = vperm.xlu1 %1971, %v2115_v3  }
  0x36   :  { %1011 = vperm.xlu0 %1968, %v2220_v21  }
  0x38   :  { %195 = vperm.xlu1 %1971, %v2127_v5  }
  0x3a   :  { %1326 = vperm.xlu0 %1968, %v2227_v22  }
  0x3c   :  { %203 = vperm.xlu1 %1971, %v2139_v7  }
  0x3e   :  { %1361 = vperm.xlu0 %1968, %v2234_v23  }
  0x40   :  { %211 = vperm.xlu1 %1971, %v2151_v9  }
  0x42   :  { %1999 = vset.pattern.permute.xlu0 %v3790_v24 }
  0x43   :  { %243 = vperm.xlu0 %1999, %v2108_v2  }
  0x44   :  { %1972 = vset.pattern.permute.xlu1 %v3790_v24 }
  0x45   :  { %247 = vperm.xlu1 %1972, %v2120_v4  }
  0x47   :  { %255 = vperm.xlu0 %1999, %v2115_v3  }
  0x49   :  { %251 = vperm.xlu1 %1972, %v2103_v1  }
  0x4b   :  { %263 = vperm.xlu0 %1999, %v2127_v5  }
  0x4d   :  { %259 = vperm.xlu1 %1972, %v2132_v6  }
  0x4f   :  { %271 = vperm.xlu0 %1999, %v2139_v7  }
  0x51   :  { %267 = vperm.xlu1 %1972, %v2144_v8  }
  0x53   :  { %279 = vperm.xlu0 %1999, %v2151_v9  }
  0x55   :  { %275 = vperm.xlu1 %1972, %v2156_v10  }
  0x57   :  { %607 = vperm.xlu0 %1999, %v2253_v25  }
  0x59   :  { %1973 = vset.pattern.permute.xlu1 %v3786_v27  ;;  %v2426_v27 = vld [vmem:[%s3777_s0 + $0x61] sm:$0xff] }
  0x5a   :  { %311 = vperm.xlu1 %1973, %v2108_v2   ;;  %3813 = vst [vmem:[#allocation16_spill] sm:$0xff] %v2426_v27 }
  0x5b   :  { %619 = vperm.xlu0 %1999, %v2260_v26  }
  0x5e   :  { %319 = vperm.xlu1 %1973, %v2103_v1  }
  0x5f   :  { %627 = vperm.xlu0 %1999, %v2268_v28  }
  0x62   :  { %323 = vperm.xlu1 %1973, %v2115_v3  }
  0x63   :  { %635 = vperm.xlu0 %1999, %v2275_v29  }
  0x66   :  { %331 = vperm.xlu1 %1973, %v2127_v5  }
  0x67   :  { %1181 = vperm.xlu0 %1999, %v2282_v30  }
  0x6a   :  { %339 = vperm.xlu1 %1973, %v2139_v7  }
  0x6b   :  { %1193 = vperm.xlu0 %1999, %v2289_v31  }
  0x6e   :  { %347 = vperm.xlu1 %1973, %v2151_v9  }
  0x6f   :  { %1201 = vperm.xlu0 %1999, %v2296_v32  }
  0x72   :  { %1974 = vset.pattern.permute.xlu1 %v3784_v0 }
  0x73   :  { %395 = vperm.xlu1 %1974, %v2253_v25   ;;  %1209 = vperm.xlu0 %1999, %v2303_v33  }
  0x77   :  { %400 = vperm.xlu1 %1974, %v2311_v34   ;;  %1217 = vperm.xlu0 %1999, %v2316_v35  }
  0x7b   :  { %410 = vperm.xlu1 %1974, %v2260_v26   ;;  %1540 = vperm.xlu0 %1999, %v2323_v36  }
  0x7f   :  { %420 = vperm.xlu1 %1974, %v2268_v28   ;;  %1552 = vperm.xlu0 %1999, %v2330_v37  }
  0x81   :  { %v2334_v38 = vpop.permute.xlu1 %40  ;;  %v2336_v39 = vpop.permute.xlu0 %30 }
  0x82   :  { %3799 = vst [vmem:[#allocation2_spill] sm:$0xff] %v2336_v39 }
  0x83   :  { %430 = vperm.xlu1 %1974, %v2275_v29   ;;  %2002 = vset.pattern.permute.xlu0 %v3782_v18 }
  0x84   :  { %179 = vperm.xlu0 %2002, %v2120_v4  }
  0x85   :  { %v2341_v40 = vpop.permute.xlu1 %45  ;;  %v2343_v41 = vpop.permute.xlu0 %35 }
  0x87   :  { %1975 = vset.pattern.permute.xlu1 %v3788_v12 }
  0x88   :  { %467 = vperm.xlu1 %1975, %v2163_v11   ;;  %191 = vperm.xlu0 %2002, %v2132_v6  }
  0x89   :  { %v2348_v42 = vpop.permute.xlu1 %55  ;;  %v2350_v43 = vpop.permute.xlu0 %50 }
  0x8c   :  { %475 = vperm.xlu1 %1975, %v2311_v34   ;;  %199 = vperm.xlu0 %2002, %v2144_v8  }
  0x8d   :  { %v2354_v44 = vpop.permute.xlu1 %65  ;;  %v2356_v45 = vpop.permute.xlu0 %60 }
  0x90   :  { %479 = vperm.xlu1 %1975, %v2171_v13   ;;  %207 = vperm.xlu0 %2002, %v2156_v10  }
  0x91   :  { %v2360_v46 = vpop.permute.xlu1 %75  ;;  %v2362_v47 = vpop.permute.xlu0 %70 }
  0x92   :  { %3800 = vst [vmem:[#allocation3_spill] sm:$0xff] %v2362_v47 }
  0x94   :  { %487 = vperm.xlu1 %1975, %v2178_v14   ;;  %535 = vperm.xlu0 %2002, %v2163_v11  }
  0x95   :  { %v2366_v48 = vpop.permute.xlu0 %390 }
  0x96   :  { %3801 = vst [vmem:[#allocation4_spill] sm:$0xff] %v2366_v48  ;;  %v2368_v49 = vpop.permute.xlu1 %111 }
  0x97   :  { %3802 = vst [vmem:[#allocation5_spill] sm:$0xff] %v2368_v49 }
  0x98   :  { %495 = vperm.xlu1 %1975, %v2185_v15   ;;  %547 = vperm.xlu0 %2002, %v2171_v13  }
  0x99   :  { %v2372_v50 = vpop.permute.xlu0 %405 }
  0x9a   :  { %v2374_v51 = vpop.permute.xlu1 %115 }
  0x9c   :  { %503 = vperm.xlu1 %1975, %v2192_v16   ;;  %555 = vperm.xlu0 %2002, %v2178_v14  }
  0x9d   :  { %v2378_v52 = vpop.permute.xlu0 %415 }
  0x9e   :  { %v2380_v53 = vpop.permute.xlu1 %123 }
  0x9f   :  { %3803 = vst [vmem:[#allocation6_spill] sm:$0xff] %v2380_v53 }
  0xa0   :  { %1976 = vset.pattern.permute.xlu1 %v3782_v18  ;;  %563 = vperm.xlu0 %2002, %v2185_v15  }
  0xa1   :  { %539 = vperm.xlu1 %1976, %v2253_v25   ;;  %v2385_v54 = vpop.permute.xlu0 %425 }
  0xa2   :  { %v2387_v55 = vpop.permute.xlu1 %131 }
  0xa3   :  { %3804 = vst [vmem:[#allocation7_spill] sm:$0xff] %v2387_v55 }
  0xa4   :  { %571 = vperm.xlu0 %2002, %v2192_v16  }
  0xa5   :  { %543 = vperm.xlu1 %1976, %v2311_v34   ;;  %v2391_v56 = vpop.permute.xlu0 %435 }
  0xa6   :  { %v2393_v57 = vpop.permute.xlu1 %139 }
  0xa7   :  { %3805 = vst [vmem:[#allocation8_spill] sm:$0xff] %v2393_v57  ;;  %v3819_v57 = vmov 1  }
  0xa8   :  { %1118 = vperm.xlu0 %2002, %v2199_v17  }
  0xa9   :  { %551 = vperm.xlu1 %1976, %v2260_v26   ;;  %v2397_v58 = vpop.permute.xlu0 %976 }
  0xaa   :  { %3806 = vst [vmem:[#allocation9_spill] sm:$0xff] %v2397_v58 }
  0xab   :  { %v2399_v59 = vpop.permute.xlu1 %175 }
  0xac   :  { %3807 = vst [vmem:[#allocation10_spill] sm:$0xff] %v2399_v59  ;;  %1130 = vperm.xlu0 %2002, %v2206_v19  }
  0xad   :  { %559 = vperm.xlu1 %1976, %v2268_v28   ;;  %v2403_v60 = vpop.permute.xlu0 %991 }
  0xae   :  { %3808 = vst [vmem:[#allocation11_spill] sm:$0xff] %v2403_v60 }
  0xaf   :  { %v2405_v61 = vpop.permute.xlu1 %183 }
  0xb0   :  { %3809 = vst [vmem:[#allocation12_spill] sm:$0xff] %v2405_v61  ;;  %1138 = vperm.xlu0 %2002, %v2213_v20  }
  0xb1   :  { %567 = vperm.xlu1 %1976, %v2275_v29   ;;  %v2409_v62 = vpop.permute.xlu0 %1001 }
  0xb2   :  { %3810 = vst [vmem:[#allocation13_spill] sm:$0xff] %v2409_v62 }
  0xb3   :  { %v2411_v63 = vpop.permute.xlu1 %187 }
  0xb4   :  { %1146 = vperm.xlu0 %2002, %v2220_v21  }
  0xb5   :  { %1977 = vset.pattern.permute.xlu1 %v3790_v24  ;;  %v2415_v1 = vpop.permute.xlu0 %1011 }
  0xb6   :  { %3811 = vst [vmem:[#allocation14_spill] sm:$0xff] %v2415_v1  ;;  %603 = vperm.xlu1 %1977, %v2163_v11   ;;  %v2437_v1 = vld [vmem:[%s3777_s0 + $0x69] sm:$0xff] }
  0xb7   :  { %v2418_v18 = vpop.permute.xlu1 %195 }
  0xb8   :  { %1473 = vperm.xlu0 %2002, %v2323_v36  }
  0xb9   :  { %v2421_v0 = vpop.permute.xlu0 %1326 }
  0xba   :  { %3812 = vst [vmem:[#allocation15_spill] sm:$0xff] %v2421_v0  ;;  %611 = vperm.xlu1 %1977, %v2311_v34  }
  0xbb   :  { %v2429_v12 = vpop.permute.xlu1 %203 }
  0xbc   :  { %1477 = vperm.xlu0 %2002, %v2426_v27  }
  0xbd   :  { %v2432_v24 = vpop.permute.xlu0 %1361 }
  0xbe   :  { %3814 = vst [vmem:[#allocation17_spill] sm:$0xff] %v2432_v24  ;;  %615 = vperm.xlu1 %1977, %v2171_v13  }
  0xbf   :  { %v2440_v0 = vpop.permute.xlu1 %211 }
  0xc0   :  { %1481 = vperm.xlu0 %2002, %v2437_v1  }
  0xc2   :  { %623 = vperm.xlu1 %1977, %v2178_v14   ;;  %v2444_v62 = vpop.permute.xlu0 %243 }
  0xc3   :  { %3815 = vst [vmem:[#allocation18_spill] sm:$0xff] %v2444_v62 }
  0xc4   :  { %v2446_v60 = vpop.permute.xlu1 %247  ;;  %1485 = vperm.xlu0 %2002, %v2330_v37  }
  0xc5   :  { %3816 = vst [vmem:[#allocation19_spill] sm:$0xff] %v2446_v60  ;;  %v3820_v60 = vmov 4  }
  0xc6   :  { %631 = vperm.xlu1 %1977, %v2185_v15   ;;  %v2450_v24 = vpop.permute.xlu0 %255 }
  0xc8   :  { %v2452_v58 = vpop.permute.xlu1 %251  ;;  %1497 = vperm.xlu0 %2002, %v2234_v23  }
  0xc9   :  { %3817 = vst [vmem:[#allocation20_spill] sm:$0xff] %v2452_v58 }
  0xca   :  { %639 = vperm.xlu1 %1977, %v2192_v16   ;;  %v2456_v59 = vpop.permute.xlu0 %263 }
  0xcc   :  { %v2458_v48 = vpop.permute.xlu1 %259  ;;  %2009 = vset.pattern.permute.xlu0 %v3819_v57 }
  0xcd   :  { %3818 = vst [vmem:[#allocation21_spill] sm:$0xff] %v2458_v48  ;;  %107 = vperm.xlu0 %2009, %v2108_v2  }
  0xce   :  { %1978 = vset.pattern.permute.xlu1 %v3820_v60  ;;  %v2463_v62 = vpop.permute.xlu0 %271 }
  0xcf   :  { %675 = vperm.xlu1 %1978, %v2253_v25  }
  0xd0   :  { %v2466_v47 = vpop.permute.xlu1 %267 }
  0xd1   :  { %3821 = vst [vmem:[#allocation22_spill] sm:$0xff] %v2466_v47  ;;  %119 = vperm.xlu0 %2009, %v2115_v3   ;;  %v3849_v47 = vmov 2  }
  0xd2   :  { %v2469_v58 = vpop.permute.xlu0 %279 }
  0xd3   :  { %679 = vperm.xlu1 %1978, %v2311_v34  }
  0xd4   :  { %v2472_v39 = vpop.permute.xlu1 %275 }
  0xd5   :  { %3822 = vst [vmem:[#allocation23_spill] sm:$0xff] %v2472_v39  ;;  %127 = vperm.xlu0 %2009, %v2127_v5  }
  0xd6   :  { %v2475_v48 = vpop.permute.xlu0 %607 }
  0xd7   :  { %3823 = vst [vmem:[#allocation24_spill] sm:$0xff] %v2475_v48  ;;  %687 = vperm.xlu1 %1978, %v2260_v26  }
  0xd9   :  { %v2478_v2 = vpop.permute.xlu1 %311  ;;  %135 = vperm.xlu0 %2009, %v2139_v7  }
  0xda   :  { %3824 = vst [vmem:[#allocation25_spill] sm:$0xff] %v2478_v2  ;;  %v2481_v61 = vpop.permute.xlu0 %619  ;;  %v3829_v2 = vmov 0  }
  0xdb   :  { %3825 = vst [vmem:[#allocation26_spill] sm:$0xff] %v2481_v61  ;;  %695 = vperm.xlu1 %1978, %v2268_v28  }
  0xdd   :  { %v2484_v3 = vpop.permute.xlu1 %319  ;;  %143 = vperm.xlu0 %2009, %v2151_v9   ;;  %v2503_v9 = vld [vmem:[%s3777_s0 + $0x60] sm:$0xff] }
  0xde   :  { %3826 = vst [vmem:[#allocation27_spill] sm:$0xff] %v2484_v3  ;;  %v2487_v34 = vpop.permute.xlu0 %627 }
  0xdf   :  { %3827 = vst [vmem:[#allocation28_spill] sm:$0xff] %v2487_v34  ;;  %703 = vperm.xlu1 %1978, %v2275_v29  }
  0xe1   :  { %v2490_v5 = vpop.permute.xlu1 %323  ;;  %471 = vperm.xlu0 %2009, %v2253_v25  }
  0xe2   :  { %v2493_v48 = vpop.permute.xlu0 %635 }
  0xe3   :  { %3828 = vst [vmem:[#allocation29_spill] sm:$0xff] %v2493_v48  ;;  %1979 = vset.pattern.permute.xlu1 %v3829_v2 }
  0xe4   :  { %971 = vperm.xlu1 %1979, %v2282_v30  }
  0xe5   :  { %v2497_v7 = vpop.permute.xlu1 %331  ;;  %483 = vperm.xlu0 %2009, %v2260_v26  }
  0xe6   :  { %v2505_v34 = vpop.permute.xlu0 %1181 }
  0xe7   :  { %3830 = vst [vmem:[#allocation30_spill] sm:$0xff] %v2505_v34 }
  0xe8   :  { %981 = vperm.xlu1 %1979, %v2503_v9  }
  0xe9   :  { %v2508_v25 = vpop.permute.xlu1 %339  ;;  %491 = vperm.xlu0 %2009, %v2268_v28  }
  0xea   :  { %v2511_v48 = vpop.permute.xlu0 %1193 }
  0xeb   :  { %3831 = vst [vmem:[#allocation31_spill] sm:$0xff] %v2511_v48 }
  0xec   :  { %986 = vperm.xlu1 %1979, %v2289_v31  }
  0xed   :  { %v2514_v61 = vpop.permute.xlu1 %347  ;;  %499 = vperm.xlu0 %2009, %v2275_v29  }
  0xee   :  { %v2517_v26 = vpop.permute.xlu0 %1201 }
  0xef   :  { %3832 = vst [vmem:[#allocation32_spill] sm:$0xff] %v2517_v26 }
  0xf0   :  { %996 = vperm.xlu1 %1979, %v2296_v32  }
  0xf1   :  { %1047 = vperm.xlu0 %2009, %v2282_v30  }
  0xf2   :  { %v2521_v34 = vpop.permute.xlu1 %395  ;;  %v2523_v39 = vpop.permute.xlu0 %1209 }
  0xf3   :  { %3833 = vst [vmem:[#allocation33_spill] sm:$0xff] %v2521_v34  ;;  %3834 = vst [vmem:[#allocation34_spill] sm:$0xff] %v2523_v39 }
  0xf4   :  { %1006 = vperm.xlu1 %1979, %v2303_v33  }
  0xf5   :  { %1059 = vperm.xlu0 %2009, %v2289_v31  }
  0xf6   :  { %v2527_v28 = vpop.permute.xlu1 %400  ;;  %v2529_v48 = vpop.permute.xlu0 %1217 }
  0xf7   :  { %3835 = vst [vmem:[#allocation35_spill] sm:$0xff] %v2527_v28  ;;  %3836 = vst [vmem:[#allocation36_spill] sm:$0xff] %v2529_v48 }
  0xf8   :  { %1016 = vperm.xlu1 %1979, %v2316_v35  }
  0xf9   :  { %1067 = vperm.xlu0 %2009, %v2296_v32  }
  0xfa   :  { %v2533_v29 = vpop.permute.xlu1 %410  ;;  %v2535_v26 = vpop.permute.xlu0 %1540 }
  0xfb   :  { %3837 = vst [vmem:[#allocation37_spill] sm:$0xff] %v2533_v29  ;;  %3838 = vst [vmem:[#allocation38_spill] sm:$0xff] %v2535_v26 }
  0xfc   :  { %1980 = vset.pattern.permute.xlu1 %v3819_v57 }
  0xfd   :  { %1051 = vperm.xlu1 %1980, %v2199_v17   ;;  %1075 = vperm.xlu0 %2009, %v2303_v33  }
  0xfe   :  { %v2540_v39 = vpop.permute.xlu1 %420  ;;  %v2542_v34 = vpop.permute.xlu0 %1552 }
  0xff   :  { %3839 = vst [vmem:[#allocation39_spill] sm:$0xff] %v2540_v39  ;;  %3840 = vst [vmem:[#allocation40_spill] sm:$0xff] %v2542_v34 }
 0x101   :  { %1055 = vperm.xlu1 %1980, %v2503_v9   ;;  %1083 = vperm.xlu0 %2009, %v2316_v35  }
 0x102   :  { %v2546_v48 = vpop.permute.xlu1 %430 }
 0x103   :  { %3841 = vst [vmem:[#allocation41_spill] sm:$0xff] %v2546_v48  ;;  %v2548_v28 = vpop.permute.xlu0 %179  ;;  %v2567_v48 = vld [vmem:[%s3777_s0 + $0x99] sm:$0x7f] }
 0x104   :  { %3842 = vst [vmem:[#allocation42_spill] sm:$0xff] %v2548_v28  ;;  %3847 = vst [vmem:[#allocation47_spill] sm:$0xff] %v2567_v48 }
 0x105   :  { %1063 = vperm.xlu1 %1980, %v2206_v19   ;;  %1402 = vperm.xlu0 %2009, %v2227_v22  }
 0x107   :  { %v2552_v26 = vpop.permute.xlu1 %467  ;;  %v2554_v29 = vpop.permute.xlu0 %191 }
 0x108   :  { %3843 = vst [vmem:[#allocation43_spill] sm:$0xff] %v2552_v26  ;;  %3844 = vst [vmem:[#allocation44_spill] sm:$0xff] %v2554_v29 }
 0x109   :  { %1071 = vperm.xlu1 %1980, %v2213_v20   ;;  %1410 = vperm.xlu0 %2009, %v2426_v27  }
 0x10b   :  { %v2558_v34 = vpop.permute.xlu1 %475  ;;  %v2560_v39 = vpop.permute.xlu0 %199 }
 0x10c   :  { %3845 = vst [vmem:[#allocation45_spill] sm:$0xff] %v2558_v34  ;;  %3846 = vst [vmem:[#allocation46_spill] sm:$0xff] %v2560_v39 }
 0x10d   :  { %1079 = vperm.xlu1 %1980, %v2220_v21   ;;  %1430 = vperm.xlu0 %2009, %v2234_v23  }
 0x10f   :  { %v2569_v26 = vpop.permute.xlu1 %479  ;;  %v2571_v29 = vpop.permute.xlu0 %207 }
 0x110   :  { %3848 = vst [vmem:[#allocation48_spill] sm:$0xff] %v2571_v29 }
 0x111   :  { %1981 = vset.pattern.permute.xlu1 %v3849_v47  ;;  %1438 = vperm.xlu0 %2009, %v2567_v48  }
 0x112   :  { %1114 = vperm.xlu1 %1981, %v2282_v30  }
 0x113   :  { %v2576_v34 = vpop.permute.xlu1 %487  ;;  %v2578_v39 = vpop.permute.xlu0 %535 }
 0x114   :  { %3850 = vst [vmem:[#allocation49_spill] sm:$0xff] %v2578_v39 }
 0x115   :  { %2012 = vset.pattern.permute.xlu0 %v3820_v60 }
 0x116   :  { %1122 = vperm.xlu1 %1981, %v2503_v9   ;;  %315 = vperm.xlu0 %2012, %v2120_v4  }
 0x117   :  { %v2583_v28 = vpop.permute.xlu1 %495  ;;  %v2585_v3 = vpop.permute.xlu0 %547 }
 0x11a   :  { %1126 = vperm.xlu1 %1981, %v2289_v31   ;;  %327 = vperm.xlu0 %2012, %v2132_v6  }
 0x11b   :  { %v2589_v48 = vpop.permute.xlu1 %503  ;;  %v2591_v29 = vpop.permute.xlu0 %555 }
 0x11e   :  { %1134 = vperm.xlu1 %1981, %v2296_v32   ;;  %335 = vperm.xlu0 %2012, %v2144_v8   ;;  %v3854_v8 = vmov 3  }
 0x11f   :  { %v2595_v39 = vpop.permute.xlu0 %563 }
 0x120   :  { %v2597_v55 = vpop.permute.xlu1 %539 }
 0x121   :  { %3851 = vst [vmem:[#allocation50_spill] sm:$0xff] %v2597_v55 }
 0x122   :  { %1142 = vperm.xlu1 %1981, %v2303_v33   ;;  %343 = vperm.xlu0 %2012, %v2156_v10  }
 0x123   :  { %v2601_v4 = vpop.permute.xlu0 %571 }
 0x124   :  { %v2603_v53 = vpop.permute.xlu1 %543 }
 0x125   :  { %3852 = vst [vmem:[#allocation51_spill] sm:$0xff] %v2603_v53 }
 0x126   :  { %1150 = vperm.xlu1 %1981, %v2316_v35   ;;  %671 = vperm.xlu0 %2012, %v2163_v11  }
 0x127   :  { %v2607_v6 = vpop.permute.xlu0 %1118 }
 0x128   :  { %3853 = vst [vmem:[#allocation52_spill] sm:$0xff] %v2607_v6  ;;  %v2609_v49 = vpop.permute.xlu1 %551 }
 0x12a   :  { %1982 = vset.pattern.permute.xlu1 %v3854_v8  ;;  %683 = vperm.xlu0 %2012, %v2171_v13  }
 0x12b   :  { %1185 = vperm.xlu1 %1982, %v2199_v17   ;;  %v2614_v55 = vpop.permute.xlu0 %1130 }
 0x12c   :  { %3855 = vst [vmem:[#allocation53_spill] sm:$0xff] %v2614_v55  ;;  %v2616_v10 = vpop.permute.xlu1 %559 }
 0x12e   :  { %691 = vperm.xlu0 %2012, %v2178_v14  }
 0x12f   :  { %1189 = vperm.xlu1 %1982, %v2503_v9   ;;  %v2620_v53 = vpop.permute.xlu0 %1138 }
 0x130   :  { %3856 = vst [vmem:[#allocation54_spill] sm:$0xff] %v2620_v53  ;;  %v2622_v11 = vpop.permute.xlu1 %567 }
 0x131   :  { %3857 = vst [vmem:[#allocation55_spill] sm:$0xff] %v2622_v11 }
 0x132   :  { %699 = vperm.xlu0 %2012, %v2185_v15  }
 0x133   :  { %1197 = vperm.xlu1 %1982, %v2206_v19   ;;  %v2626_v6 = vpop.permute.xlu0 %1146 }
 0x134   :  { %3858 = vst [vmem:[#allocation56_spill] sm:$0xff] %v2626_v6 }
 0x135   :  { %v2628_v13 = vpop.permute.xlu1 %603 }
 0x136   :  { %3859 = vst [vmem:[#allocation57_spill] sm:$0xff] %v2628_v13  ;;  %707 = vperm.xlu0 %2012, %v2192_v16  }
 0x137   :  { %1205 = vperm.xlu1 %1982, %v2213_v20   ;;  %v2632_v55 = vpop.permute.xlu0 %1473 }
 0x138   :  { %3860 = vst [vmem:[#allocation58_spill] sm:$0xff] %v2632_v55 }
 0x139   :  { %v2634_v14 = vpop.permute.xlu1 %611 }
 0x13a   :  { %3861 = vst [vmem:[#allocation59_spill] sm:$0xff] %v2634_v14  ;;  %1252 = vperm.xlu0 %2012, %v2199_v17  }
 0x13b   :  { %1213 = vperm.xlu1 %1982, %v2220_v21   ;;  %v2638_v53 = vpop.permute.xlu0 %1477 }
 0x13c   :  { %3862 = vst [vmem:[#allocation60_spill] sm:$0xff] %v2638_v53 }
 0x13d   :  { %v2640_v15 = vpop.permute.xlu1 %615 }
 0x13e   :  { %3863 = vst [vmem:[#allocation61_spill] sm:$0xff] %v2640_v15  ;;  %1264 = vperm.xlu0 %2012, %v2206_v19  }
 0x13f   :  { %1983 = vset.pattern.permute.xlu1 %v3820_v60  ;;  %v2644_v6 = vpop.permute.xlu0 %1481 }
 0x140   :  { %3864 = vst [vmem:[#allocation62_spill] sm:$0xff] %v2644_v6  ;;  %1248 = vperm.xlu1 %1983, %v2282_v30   ;;  %v2685_v6 = vld [vmem:[%s3777_s0 + $0x81] sm:$0xff] }
 0x141   :  { %v2647_v16 = vpop.permute.xlu1 %623 }
 0x142   :  { %3865 = vst [vmem:[#allocation63_spill] sm:$0xff] %v2647_v16  ;;  %1272 = vperm.xlu0 %2012, %v2213_v20  }
 0x143   :  { %v2650_v55 = vpop.permute.xlu0 %1485 }
 0x144   :  { %3866 = vst [vmem:[#allocation64_spill] sm:$0xff] %v2650_v55  ;;  %1256 = vperm.xlu1 %1983, %v2503_v9  }
 0x145   :  { %v2653_v17 = vpop.permute.xlu1 %631 }
 0x146   :  { %3867 = vst [vmem:[#allocation65_spill] sm:$0xff] %v2653_v17  ;;  %1280 = vperm.xlu0 %2012, %v2220_v21   ;;  %v2671_v21 = vld [vmem:[%s3778_s1] ss:$0 sm:$0xff] }
 0x147   :  { %v2656_v53 = vpop.permute.xlu0 %1497  ;;  %v89_v15 = vmul.f32 %v2671_v21, %v2348_v42 }
 0x148   :  { %3868 = vst [vmem:[#allocation66_spill] sm:$0xff] %v2656_v53  ;;  %1260 = vperm.xlu1 %1983, %v2289_v31   ;;  %v2676_v31 = vld [vmem:[%s3778_s1 + $0x1] ss:$0 sm:$0xff]  ;;  %v2690_v53 = vld [vmem:[%s3778_s1 + $0x2] ss:$0 sm:$0xff] }
 0x149   :  { %v2659_v19 = vpop.permute.xlu1 %639 }
 0x14a   :  { %3869 = vst [vmem:[#allocation67_spill] sm:$0xff] %v2659_v19  ;;  %1607 = vperm.xlu0 %2012, %v2323_v36  }
 0x14c   :  { %1268 = vperm.xlu1 %1983, %v2296_v32   ;;  %v2663_v30 = vpop.permute.xlu0 %107  ;;  %v87_v32 = vmul.f32 %v2671_v21, %v2341_v40  ;;  %v223_v40 = vmul.f32 %v2690_v53, %v2411_v63  ;;  %v2713_v63 = vld [vmem:[%s3778_s1 + $0x4] ss:$0 sm:$0xff] }
 0x14e   :  { %v2665_v20 = vpop.permute.xlu1 %675  ;;  %1619 = vperm.xlu0 %2012, %v2330_v37  }
 0x14f   :  { %3870 = vst [vmem:[#allocation68_spill] sm:$0xff] %v2665_v20 }
 0x150   :  { %1276 = vperm.xlu1 %1983, %v2303_v33   ;;  %v120_v9 = vpop.permute.xlu0 %119  ;;  %v2695_v33 = vld [vmem:[%s3778_s1 + $0x3] ss:$0 sm:$0xff] }
 0x151   :  { %v155_v55 = vmul.f32 %v2676_v31, %v120_v9  ;;  %3871 = vst [vmem:[#allocation69_spill] sm:$0xff] %v2695_v33  ;;  %v291_v9 = vmul.f32 %v2695_v33, %v2450_v24  ;;  %v293_v24 = vmul.f32 %v2695_v33, %v2456_v59 }
 0x152   :  { %v2697_v19 = vpop.permute.xlu1 %679  ;;  %1627 = vperm.xlu0 %2012, %v2685_v6  }
 0x153   :  { %3872 = vst [vmem:[#allocation70_spill] sm:$0xff] %v2697_v19  ;;  %v165_v17 = vadd.f32 %v155_v55, %v87_v32  ;;  %v225_v19 = vmul.f32 %v2690_v53, %v2418_v18  ;;  %v2725_v18 = vld [vmem:[%s3777_s0 + $0x91] sm:$0xff]  ;;  %v361_v32 = vmul.f32 %v2713_v63, %v2497_v7  ;;  %v93_v7 = vmul.f32 %v2671_v21, %v2360_v46 }
 0x154   :  { %1284 = vperm.xlu1 %1983, %v2316_v35   ;;  %v128_v16 = vpop.permute.xlu0 %127  ;;  %v359_v35 = vmul.f32 %v2713_v63, %v2490_v5  ;;  %3874 = vst [vmem:[#allocation72_spill] sm:$0xff] %v2725_v18  ;;  %v363_v46 = vmul.f32 %v2713_v63, %v2508_v25 }
 0x155   :  { %v233_v20 = vadd.f32 %v223_v40, %v165_v17  ;;  %v157_v13 = vmul.f32 %v2676_v31, %v128_v16  ;;  %v91_v16 = vmul.f32 %v2671_v21, %v2354_v44  ;;  %v2753_v40 = vld [vmem:[%s3778_s1 + $0x7] ss:$0 sm:$0xff] }
 0x156   :  { %v2715_v11 = vpop.permute.xlu1 %687  ;;  %1631 = vperm.xlu0 %2012, %v2234_v23   ;;  %v2732_v23 = vld [vmem:[%s3778_s1 + $0x5] ss:$0 sm:$0xff] }
 0x157   :  { %3873 = vst [vmem:[#allocation71_spill] sm:$0xff] %v2715_v11  ;;  %v301_v42 = vadd.f32 %v291_v9, %v233_v20  ;;  %v167_v55 = vadd.f32 %v157_v13, %v89_v15  ;;  %v447_v5 = vmul.f32 %v2732_v23, %v2372_v50  ;;  %v2740_v13 = vld [vmem:[%s3778_s1 + $0x6] ss:$0 sm:$0xff]  ;;  %v227_v20 = vmul.f32 %v2690_v53, %v2429_v12 }
 0x158   :  { %1984 = vset.pattern.permute.xlu1 %v3829_v2  ;;  %v136_v59 = vpop.permute.xlu0 %135  ;;  %v515_v50 = vmul.f32 %v2740_v13, %v2569_v26  ;;  %v295_v26 = vmul.f32 %v2695_v33, %v2463_v62 }
 0x159   :  { %v369_v15 = vadd.f32 %v359_v35, %v301_v42  ;;  %v235_v17 = vadd.f32 %v225_v19, %v167_v55  ;;  %v159_v44 = vmul.f32 %v2676_v31, %v136_v59  ;;  %1331 = vperm.xlu1 %1984, %v2323_v36   ;;  %v583_v19 = vmul.f32 %v2753_v40, %v2585_v3 }
 0x15a   :  { %v2755_v9 = vpop.permute.xlu1 %695  ;;  %1635 = vperm.xlu0 %2012, %v2725_v18   ;;  %v449_v3 = vmul.f32 %v2732_v23, %v2378_v52 }
 0x15b   :  { %3875 = vst [vmem:[#allocation73_spill] sm:$0xff] %v2755_v9  ;;  %v303_v35 = vadd.f32 %v293_v24, %v235_v17  ;;  %v169_v12 = vadd.f32 %v159_v44, %v91_v16  ;;  %v457_v42 = vadd.f32 %v447_v5, %v369_v15  ;;  %v229_v24 = vmul.f32 %v2690_v53, %v2440_v0 }
 0x15c   :  { %v144_v55 = vpop.permute.xlu0 %143  ;;  %v517_v17 = vmul.f32 %v2740_v13, %v2576_v34  ;;  %v585_v44 = vmul.f32 %v2753_v40, %v2591_v29  ;;  %v451_v0 = vmul.f32 %v2732_v23, %v2385_v54  ;;  %v519_v29 = vmul.f32 %v2740_v13, %v2583_v28 }
 0x15d   :  { %v371_v59 = vadd.f32 %v361_v32, %v303_v35  ;;  %v237_v11 = vadd.f32 %v227_v20, %v169_v12  ;;  %v161_v14 = vmul.f32 %v2676_v31, %v144_v55  ;;  %1336 = vperm.xlu1 %1984, %v2426_v27   ;;  %v525_v18 = vadd.f32 %v515_v50, %v457_v42 }
 0x15e   :  { %v2770_v16 = vpop.permute.xlu1 %703  ;;  %v297_v32 = vmul.f32 %v2695_v33, %v2469_v58  ;;  %v521_v28 = vmul.f32 %v2740_v13, %v2589_v48 }
 0x15f   :  { %3876 = vst [vmem:[#allocation74_spill] sm:$0xff] %v2770_v16  ;;  %v305_v62 = vadd.f32 %v295_v26, %v237_v11  ;;  %v171_v5 = vadd.f32 %v161_v14, %v93_v7  ;;  %v2774_v15 = vadd.f32 %v583_v19, %v525_v18  ;;  %v459_v52 = vadd.f32 %v449_v3, %v371_v59 }
 0x160   :  { %v2780_v20 = vpop.permute.xlu0 %471  ;;  %v365_v14 = vmul.f32 %v2713_v63, %v2514_v61  ;;  %v587_v18 = vmul.f32 %v2753_v40, %v2595_v39  ;;  %v453_v61 = vmul.f32 %v2732_v23, %v2391_v56  ;;  %v589_v39 = vmul.f32 %v2753_v40, %v2601_v4 }
 0x161   :  { %3877 = vst [vmem:[#allocation75_spill] sm:$0xff] %v2774_v15  ;;  %v373_v25 = vadd.f32 %v363_v46, %v305_v62  ;;  %v239_v11 = vadd.f32 %v229_v24, %v171_v5  ;;  %1985 = vset.pattern.permute.xlu1 %v3819_v57  ;;  %v527_v34 = vadd.f32 %v517_v17, %v459_v52 }
 0x162   :  { %1406 = vperm.xlu1 %1985, %v2323_v36  }
 0x163   :  { %v307_v54 = vadd.f32 %v297_v32, %v239_v11  ;;  %v2794_v50 = vpop.permute.xlu1 %971  ;;  %v461_v58 = vadd.f32 %v451_v0, %v373_v25  ;;  %v2798_v35 = vadd.f32 %v585_v44, %v527_v34  ;;  %v2847_v0 = vld [vmem:[%s3777_s0 + $0x79] sm:$0xff]  ;;  %v86_v11 = vmul.f32 %v2671_v21, %v2334_v38 }
 0x164   :  { %v2796_v19 = vpop.permute.xlu0 %483  ;;  %v152_v38 = vmul.f32 %v2676_v31, %v2663_v30 }
 0x165   :  { %3878 = vst [vmem:[#allocation76_spill] sm:$0xff] %v2798_v35  ;;  %v375_v12 = vadd.f32 %v365_v14, %v307_v54  ;;  %v529_v36 = vadd.f32 %v519_v29, %v461_v58  ;;  %v154_v14 = vmul.f32 %v2676_v31, %v2374_v51  ;;  %v88_v54 = vmul.f32 %v2671_v21, %v2350_v43  ;;  %v3888_v51 = vld [vmem:[#allocation5_spill] sm:$0xff] }
 0x166   :  { %1986 = vset.pattern.permute.xlu1 %v3829_v2  ;;  %v90_v58 = vmul.f32 %v2671_v21, %v2356_v45 }
 0x167   :  { %1341 = vperm.xlu1 %1986, %v2437_v1   ;;  %v2808_v42 = vpop.permute.xlu1 %981  ;;  %v2810_v7 = vadd.f32 %v587_v18, %v529_v36  ;;  %v463_v26 = vadd.f32 %v453_v61, %v375_v12  ;;  %v85_v18 = vmul.f32 %v2671_v21, %v2343_v41  ;;  %v153_v61 = vmul.f32 %v2676_v31, %v3888_v51  ;;  %v3889_v12 = vld [vmem:[#allocation6_spill] sm:$0xff]  ;;  %v3895_v51 = vld [vmem:[#allocation20_spill] sm:$0xff] }
 0x168   :  { %3879 = vst [vmem:[#allocation77_spill] sm:$0xff] %v2808_v42  ;;  %v2812_v55 = vpop.permute.xlu0 %491  ;;  %v156_v36 = vmul.f32 %v2676_v31, %v3889_v12 }
 0x169   :  { %3880 = vst [vmem:[#allocation78_spill] sm:$0xff] %v2810_v7  ;;  %v531_v56 = vadd.f32 %v521_v28, %v463_v26  ;;  %v3890_v28 = vld [vmem:[#allocation7_spill] sm:$0xff]  ;;  %v3892_v26 = vld [vmem:[#allocation2_spill] sm:$0xff]  ;;  %v290_v7 = vmul.f32 %v2695_v33, %v3895_v51  ;;  %v3900_v51 = vld [vmem:[#allocation9_spill] sm:$0xff] }
 0x16a   :  { %v158_v41 = vmul.f32 %v2676_v31, %v3890_v28  ;;  %v84_v45 = vmul.f32 %v2671_v21, %v3892_v26  ;;  %v3898_v28 = vld [vmem:[#allocation4_spill] sm:$0xff]  ;;  %v163_v26 = vadd.f32 %v153_v61, %v85_v18 }
 0x16b   :  { %1987 = vset.pattern.permute.xlu1 %v3849_v47  ;;  %v2815_v59 = vpop.permute.xlu1 %986  ;;  %v2817_v3 = vadd.f32 %v589_v39, %v531_v56  ;;  %v3891_v39 = vld [vmem:[#allocation12_spill] sm:$0xff]  ;;  %v3893_v56 = vld [vmem:[#allocation3_spill] sm:$0xff] }
 0x16c   :  { %1469 = vperm.xlu1 %1987, %v2227_v22   ;;  %v2820_v48 = vpop.permute.xlu0 %499  ;;  %v222_v43 = vmul.f32 %v2690_v53, %v3891_v39  ;;  %v92_v30 = vmul.f32 %v2671_v21, %v3893_v56  ;;  %v2895_v39 = vmul.f32 %v2732_v23, %v3898_v28  ;;  %v162_v35 = vadd.f32 %v152_v38, %v84_v45  ;;  %v3904_v38 = vld [vmem:[#allocation13_spill] sm:$0xff] }
 0x16d   :  { %3881 = vst [vmem:[#allocation79_spill] sm:$0xff] %v2817_v3  ;;  %3882 = vst [vmem:[#allocation80_spill] sm:$0xff] %v2820_v48  ;;  %v164_v3 = vadd.f32 %v154_v14, %v86_v11  ;;  %v166_v56 = vadd.f32 %v156_v36, %v88_v54  ;;  %v168_v9 = vadd.f32 %v158_v41, %v90_v58  ;;  %v3899_v14 = vld [vmem:[#allocation10_spill] sm:$0xff]  ;;  %v3907_v58 = vld [vmem:[#allocation19_spill] sm:$0xff] }
 0x16e   :  { %v2911_v18 = vmul.f32 %v2671_v21, %v3904_v38  ;;  %v3906_v54 = vld [vmem:[#allocation18_spill] sm:$0xff]  ;;  %v289_v61 = vmul.f32 %v2695_v33, %v3907_v58  ;;  %v3910_v45 = vld [vmem:[#allocation21_spill] sm:$0xff]  ;;  %v3915_v58 = vld [vmem:[#allocation44_spill] sm:$0xff] }
 0x16f   :  { %v2822_v4 = vpop.permute.xlu1 %996  ;;  %v232_v47 = vadd.f32 %v222_v43, %v164_v3  ;;  %v288_v3 = vmul.f32 %v2695_v33, %v3906_v54 }
 0x170   :  { %1988 = vset.pattern.permute.xlu1 %v3829_v2  ;;  %v2825_v24 = vpop.permute.xlu0 %1047  ;;  %3905 = vst [vmem:[#allocation2_spill] sm:$0xff] %v2911_v18  ;;  %v3913_v18 = vld [vmem:[#allocation22_spill] sm:$0xff] }
 0x171   :  { %1346 = vperm.xlu1 %1988, %v2330_v37   ;;  %v300_v36 = vadd.f32 %v290_v7, %v232_v47  ;;  %v294_v54 = vmul.f32 %v2695_v33, %v3913_v18  ;;  %v2934_v7 = vld [vmem:[%s3778_s1 + $0x8] ss:$0 sm:$0xff] }
 0x172   :  { %v3917_v18 = vld [vmem:[#allocation35_spill] sm:$0xff] }
 0x173   :  { %v2828_v46 = vpop.permute.xlu1 %1006 }
 0x174   :  { %v2830_v62 = vpop.permute.xlu0 %1059 }
 0x175   :  { %1989 = vset.pattern.permute.xlu1 %v3819_v57 }
 0x176   :  { %1414 = vperm.xlu1 %1989, %v2437_v1  }
 0x177   :  { %v2834_v5 = vpop.permute.xlu1 %1016 }
 0x178   :  { %3883 = vst [vmem:[#allocation81_spill] sm:$0xff] %v2834_v5  ;;  %v2836_v17 = vpop.permute.xlu0 %1067 }
 0x17a   :  { %1990 = vset.pattern.permute.xlu1 %v3854_v8 }
 0x17b   :  { %1536 = vperm.xlu1 %1990, %v2227_v22  }
 0x17c   :  { %v2840_v44 = vpop.permute.xlu1 %1051  ;;  %v2842_v52 = vpop.permute.xlu0 %1075 }
 0x17d   :  { %3884 = vst [vmem:[#allocation82_spill] sm:$0xff] %v2840_v44 }
 0x17f   :  { %1991 = vset.pattern.permute.xlu1 %v3829_v2 }
 0x180   :  { %1351 = vperm.xlu1 %1991, %v2847_v0   ;;  %v2851_v32 = vpop.permute.xlu1 %1055  ;;  %v2853_v25 = vpop.permute.xlu0 %1083 }
 0x181   :  { %3885 = vst [vmem:[#allocation83_spill] sm:$0xff] %v2851_v32 }
 0x184   :  { %1992 = vset.pattern.permute.xlu1 %v3819_v57  ;;  %v2860_v34 = vpop.permute.xlu1 %1063  ;;  %v2862_v29 = vpop.permute.xlu0 %1402 }
 0x185   :  { %3886 = vst [vmem:[#allocation84_spill] sm:$0xff] %v2860_v34  ;;  %3887 = vst [vmem:[#allocation85_spill] sm:$0xff] %v2862_v29  ;;  %1418 = vperm.xlu1 %1992, %v2330_v37   ;;  %v3894_v29 = vld [vmem:[#allocation8_spill] sm:$0xff]  ;;  %v3921_v34 = vld [vmem:[#allocation26_spill] sm:$0xff] }
 0x186   :  { %v160_v37 = vmul.f32 %v2676_v31, %v3894_v29  ;;  %v220_v29 = vmul.f32 %v2690_v53, %v3899_v14  ;;  %v3912_v14 = vld [vmem:[#allocation42_spill] sm:$0xff]  ;;  %v2956_v15 = vmul.f32 %v2934_v7, %v3921_v34  ;;  %v3927_v34 = vld [vmem:[#allocation45_spill] sm:$0xff] }
 0x188   :  { %v2889_v12 = vpop.permute.xlu1 %1071  ;;  %v2891_v16 = vpop.permute.xlu0 %1410  ;;  %v170_v11 = vadd.f32 %v160_v37, %v92_v30  ;;  %v292_v30 = vmul.f32 %v2695_v33, %v3910_v45  ;;  %v3911_v37 = vld [vmem:[#allocation27_spill] sm:$0xff]  ;;  %v230_v38 = vadd.f32 %v220_v29, %v162_v35  ;;  %v224_v45 = vmul.f32 %v2690_v53, %v3915_v58  ;;  %v3916_v35 = vld [vmem:[#allocation24_spill] sm:$0xff]  ;;  %v3920_v58 = vld [vmem:[#allocation25_spill] sm:$0xff]  ;;  %3922 = vst [vmem:[#allocation20_spill] sm:$0xff] %v2956_v15 }
 0x189   :  { %3896 = vst [vmem:[#allocation5_spill] sm:$0xff] %v2889_v12  ;;  %3897 = vst [vmem:[#allocation6_spill] sm:$0xff] %v2891_v16  ;;  %1993 = vset.pattern.permute.xlu1 %v3854_v8  ;;  %v2903_v16 = vmul.f32 %v2671_v21, %v3900_v51  ;;  %v3902_v12 = vld [vmem:[#allocation11_spill] sm:$0xff]  ;;  %v221_v51 = vmul.f32 %v2690_v53, %v3912_v14  ;;  %v2943_v29 = vmul.f32 %v2934_v7, %v3916_v35  ;;  %v3918_v14 = vld [vmem:[#allocation46_spill] sm:$0xff] }
 0x18a   :  { %1544 = vperm.xlu1 %1993, %v2426_v27   ;;  %v2907_v28 = vmul.f32 %v2671_v21, %v3902_v12  ;;  %v358_v12 = vmul.f32 %v2713_v63, %v3911_v37  ;;  %v1092_v37 = vmul.f32 %v2676_v31, %v2825_v24  ;;  %v356_v24 = vmul.f32 %v2713_v63, %v3920_v58  ;;  %v3923_v35 = vld [vmem:[#allocation28_spill] sm:$0xff] }
 0x18b   :  { %3901 = vst [vmem:[#allocation7_spill] sm:$0xff] %v2903_v16  ;;  %v2960_v32 = vmul.f32 %v2934_v7, %v3923_v35  ;;  %v231_v16 = vadd.f32 %v221_v51, %v163_v26  ;;  %v298_v58 = vadd.f32 %v288_v3, %v230_v38  ;;  %v234_v27 = vadd.f32 %v224_v45, %v166_v56  ;;  %v3930_v3 = vld [vmem:[#allocation39_spill] sm:$0xff] }
 0x18c   :  { %3903 = vst [vmem:[#allocation12_spill] sm:$0xff] %v2907_v28  ;;  %v2917_v41 = vpop.permute.xlu1 %1079  ;;  %v2919_v43 = vpop.permute.xlu0 %1430  ;;  %v3914_v28 = vld [vmem:[#allocation23_spill] sm:$0xff]  ;;  %v368_v42 = vadd.f32 %v358_v12, %v300_v36  ;;  %v514_v15 = vmul.f32 %v2740_v13, %v3927_v34  ;;  %v3929_v12 = vld [vmem:[#allocation37_spill] sm:$0xff]  ;;  %v2980_v56 = vmul.f32 %v2732_v23, %v3930_v3 }
 0x18d   :  { %3908 = vst [vmem:[#allocation3_spill] sm:$0xff] %v2917_v41  ;;  %3909 = vst [vmem:[#allocation8_spill] sm:$0xff] %v2919_v43  ;;  %v296_v47 = vmul.f32 %v2695_v33, %v3914_v28  ;;  %v446_v28 = vmul.f32 %v2732_v23, %v3917_v18  ;;  %v226_v43 = vmul.f32 %v2690_v53, %v3918_v14  ;;  %v3919_v41 = vld [vmem:[#allocation48_spill] sm:$0xff]  ;;  %v3931_v51 = vld [vmem:[#allocation51_spill] sm:$0xff] }
 0x18e   :  { %1994 = vset.pattern.permute.xlu1 %v3820_v60  ;;  %v228_v33 = vmul.f32 %v2690_v53, %v3919_v41  ;;  %3924 = vst [vmem:[#allocation4_spill] sm:$0xff] %v2960_v32  ;;  %v1025_v18 = vmul.f32 %v2671_v21, %v2794_v50  ;;  %v3926_v41 = vld [vmem:[#allocation29_spill] sm:$0xff]  ;;  %v448_v26 = vmul.f32 %v2732_v23, %v3929_v12  ;;  %v3935_v12 = vld [vmem:[#allocation50_spill] sm:$0xff] }
 0x18f   :  { %1603 = vperm.xlu1 %1994, %v2227_v22   ;;  %v2968_v22 = vmul.f32 %v2934_v7, %v3926_v41  ;;  %v3928_v32 = vld [vmem:[#allocation33_spill] sm:$0xff]  ;;  %v456_v5 = vadd.f32 %v446_v28, %v368_v42  ;;  %v582_v38 = vmul.f32 %v2753_v40, %v3931_v51  ;;  %v302_v41 = vadd.f32 %v292_v30, %v234_v27 }
 0x190   :  { %v2964_v14 = vpop.permute.xlu0 %1438  ;;  %v1102_v44 = vadd.f32 %v1092_v37, %v1025_v18  ;;  %v445_v50 = vmul.f32 %v2732_v23, %v3928_v32  ;;  %v238_v36 = vadd.f32 %v228_v33, %v170_v11  ;;  %v3933_v33 = vld [vmem:[#allocation43_spill] sm:$0xff]  ;;  %v366_v32 = vadd.f32 %v356_v24, %v298_v58  ;;  %v3934_v34 = vld [vmem:[#allocation49_spill] sm:$0xff] }
 0x191   :  { %3925 = vst [vmem:[#allocation10_spill] sm:$0xff] %v2964_v14  ;;  %v1115_v48 = vpop.permute.xlu1 %1114  ;;  %v236_v14 = vadd.f32 %v226_v43, %v168_v9  ;;  %v512_v42 = vmul.f32 %v2740_v13, %v3933_v33  ;;  %v299_v43 = vadd.f32 %v289_v61, %v231_v16  ;;  %v524_v28 = vadd.f32 %v514_v15, %v456_v5  ;;  %v3936_v5 = vld [vmem:[#allocation52_spill] sm:$0xff] }
 0x192   :  { %v1159_v35 = vmul.f32 %v2690_v53, %v1115_v48  ;;  %v3932_v48 = vld [vmem:[#allocation41_spill] sm:$0xff]  ;;  %v1095_v18 = vmul.f32 %v2676_v31, %v2830_v62  ;;  %v581_v3 = vmul.f32 %v2753_v40, %v3935_v12  ;;  %v513_v16 = vmul.f32 %v2740_v13, %v2780_v20 }
 0x193   :  { %1995 = vset.pattern.permute.xlu1 %v3829_v2  ;;  %v2989_v9 = vmul.f32 %v2732_v23, %v3932_v48  ;;  %v304_v51 = vadd.f32 %v294_v54, %v236_v14  ;;  %v3002_v48 = vadd.f32 %v296_v47, %v238_v36  ;;  %v592_v24 = vadd.f32 %v582_v38, %v524_v28  ;;  %v3937_v38 = vld [vmem:[#allocation53_spill] sm:$0xff] }
 0x194   :  { %v2984_v45 = vadd.f32 %v1159_v35, %v1102_v44  ;;  %1356 = vperm.xlu1 %1995, %v2685_v6   ;;  %v580_v35 = vmul.f32 %v2753_v40, %v3934_v34  ;;  %v1028_v15 = vmul.f32 %v2671_v21, %v2815_v59  ;;  %v584_v27 = vmul.f32 %v2753_v40, %v2609_v49 }
 0x195   :  { %v2993_v11 = vpop.permute.xlu1 %1122  ;;  %v316_v37 = vpop.permute.xlu0 %315  ;;  %v3013_v61 = vmul.f32 %v2690_v53, %v3936_v5  ;;  %v1097_v30 = vmul.f32 %v2676_v31, %v2836_v17  ;;  %v454_v47 = vadd.f32 %v2895_v39, %v366_v32  ;;  %v3023_v49 = vmul.f32 %v2753_v40, %v2616_v10  ;;  %v3938_v17 = vld [vmem:[#allocation59_spill] sm:$0xff] }
 0x196   :  { %v357_v44 = vmul.f32 %v2713_v63, %v316_v37  ;;  %v1105_v59 = vadd.f32 %v1095_v18, %v1028_v15  ;;  %v3027_v33 = vmul.f32 %v2690_v53, %v3937_v38  ;;  %v1030_v39 = vmul.f32 %v2671_v21, %v2822_v4  ;;  %v3939_v10 = vld [vmem:[#allocation55_spill] sm:$0xff] }
 0x197   :  { %v3039_v18 = vmul.f32 %v2753_v40, %v3939_v10  ;;  %v1099_v34 = vmul.f32 %v2676_v31, %v2842_v52  ;;  %v522_v15 = vadd.f32 %v512_v42, %v454_v47  ;;  %v1032_v47 = vmul.f32 %v2671_v21, %v2828_v46 }
 0x198   :  { %v367_v62 = vadd.f32 %v357_v44, %v299_v43  ;;  %1996 = vset.pattern.permute.xlu1 %v3819_v57  ;;  %v650_v43 = vmul.f32 %v2934_v7, %v3938_v17  ;;  %v1107_v44 = vadd.f32 %v1097_v30, %v1030_v39  ;;  %v3940_v30 = vld [vmem:[#allocation57_spill] sm:$0xff] }
 0x199   :  { %1422 = vperm.xlu1 %1996, %v2847_v0   ;;  %v1127_v54 = vpop.permute.xlu1 %1126  ;;  %v328_v20 = vpop.permute.xlu0 %327  ;;  %v648_v52 = vmul.f32 %v2934_v7, %v3940_v30  ;;  %v1109_v38 = vadd.f32 %v1099_v34, %v1032_v47  ;;  %v590_v39 = vadd.f32 %v580_v35, %v522_v15  ;;  %v3945_v35 = vld [vmem:[#allocation16_spill] sm:$0xff] }
 0x19a   :  { %v455_v14 = vadd.f32 %v445_v50, %v367_v62  ;;  %v1162_v58 = vmul.f32 %v2690_v53, %v1127_v54  ;;  %v360_v36 = vmul.f32 %v2713_v63, %v328_v20  ;;  %v516_v50 = vmul.f32 %v2740_v13, %v2796_v19  ;;  %v3047_v19 = vld [vmem:[%s3778_s1 + $0x9] ss:$0 sm:$0xff]  ;;  %v3941_v20 = vld [vmem:[#allocation70_spill] sm:$0xff] }
 0x19b   :  { %v660_v54 = vadd.f32 %v650_v43, %v592_v24  ;;  %v718_v42 = vmul.f32 %v3047_v19, %v3941_v20  ;;  %v1101_v24 = vmul.f32 %v2676_v31, %v2853_v25 }
 0x19c   :  { %v523_v32 = vadd.f32 %v513_v16, %v455_v14  ;;  %v3035_v37 = vadd.f32 %v1162_v58, %v1105_v59  ;;  %v370_v28 = vadd.f32 %v360_v36, %v302_v41  ;;  %v3942_v58 = vld [vmem:[#allocation68_spill] sm:$0xff] }
 0x19d   :  { %1997 = vset.pattern.permute.xlu1 %v3854_v8  ;;  %v1135_v12 = vpop.permute.xlu1 %1134  ;;  %v336_v4 = vpop.permute.xlu0 %335  ;;  %v717_v36 = vmul.f32 %v3047_v19, %v3942_v58  ;;  %v3950_v58 = vld [vmem:[#allocation7_spill] sm:$0xff] }
 0x19e   :  { %v591_v16 = vadd.f32 %v581_v3, %v523_v32  ;;  %v458_v41 = vadd.f32 %v448_v26, %v370_v28  ;;  %v1164_v62 = vmul.f32 %v2690_v53, %v1135_v12  ;;  %v362_v5 = vmul.f32 %v2713_v63, %v336_v4  ;;  %1548 = vperm.xlu1 %1997, %v2437_v1   ;;  %v3943_v28 = vld [vmem:[#allocation81_spill] sm:$0xff] }
 0x19f   :  { %v518_v3 = vmul.f32 %v2740_v13, %v2812_v55  ;;  %v1034_v10 = vmul.f32 %v2671_v21, %v3943_v28 }
 0x1a0   :  { %v526_v26 = vadd.f32 %v516_v50, %v458_v41  ;;  %v3060_v59 = vadd.f32 %v1164_v62, %v1107_v44  ;;  %v372_v14 = vadd.f32 %v362_v5, %v304_v51  ;;  %v659_v51 = vadd.f32 %v2943_v29, %v591_v16  ;;  %v3944_v44 = vld [vmem:[#allocation82_spill] sm:$0xff]  ;;  %v3947_v29 = vld [vmem:[#allocation61_spill] sm:$0xff]  ;;  %v3948_v41 = vld [vmem:[#allocation63_spill] sm:$0xff] }
 0x1a1   :  { %v1143_v17 = vpop.permute.xlu1 %1142  ;;  %v344_v43 = vpop.permute.xlu0 %343  ;;  %v3071_v50 = vadd.f32 %v718_v42, %v660_v54  ;;  %v1093_v25 = vmul.f32 %v2676_v31, %v3944_v44  ;;  %v651_v16 = vmul.f32 %v2934_v7, %v3947_v29  ;;  %v653_v62 = vmul.f32 %v2934_v7, %v3948_v41 }
 0x1a2   :  { %v460_v32 = vadd.f32 %v2980_v56, %v372_v14  ;;  %v1166_v46 = vmul.f32 %v2690_v53, %v1143_v17  ;;  %v364_v55 = vmul.f32 %v2713_v63, %v344_v43  ;;  %1998 = vset.pattern.permute.xlu1 %v3820_v60  ;;  %v594_v34 = vadd.f32 %v584_v27, %v526_v26  ;;  %v3946_v56 = vld [vmem:[#allocation80_spill] sm:$0xff]  ;;  %v3949_v26 = vld [vmem:[#allocation65_spill] sm:$0xff] }
 0x1a3   :  { %1611 = vperm.xlu1 %1998, %v3945_v35   ;;  %v520_v12 = vmul.f32 %v2740_v13, %v3946_v56  ;;  %v1111_v5 = vadd.f32 %v1101_v24, %v1034_v10  ;;  %v658_v54 = vadd.f32 %v648_v52, %v590_v39  ;;  %v3089_v47 = vadd.f32 %v717_v36, %v659_v51  ;;  %v3951_v24 = vld [vmem:[#allocation20_spill] sm:$0xff]  ;;  %v3952_v39 = vld [vmem:[#allocation71_spill] sm:$0xff] }
 0x1a4   :  { %v528_v4 = vadd.f32 %v518_v3, %v460_v32  ;;  %v3080_v63 = vadd.f32 %v1166_v46, %v1109_v38  ;;  %v374_v15 = vadd.f32 %v364_v55, %v3002_v48  ;;  %v655_v48 = vmul.f32 %v2934_v7, %v3949_v26  ;;  %v3953_v46 = vld [vmem:[#allocation77_spill] sm:$0xff]  ;;  %v3954_v51 = vld [vmem:[#allocation83_spill] sm:$0xff] }
 0x1a5   :  { %v1151_v30 = vpop.permute.xlu1 %1150  ;;  %v672_v27 = vpop.permute.xlu0 %671  ;;  %v740_v14 = vsel %vm736_vm0, %v3071_v50, 0.0  ;;  %v1103_v38 = vadd.f32 %v1093_v25, %v3950_v58  ;;  %v662_v17 = vadd.f32 %v3951_v24, %v594_v34  ;;  %v720_v32 = vmul.f32 %v3047_v19, %v3952_v39  ;;  %v3955_v10 = vld [vmem:[#allocation75_spill] sm:$0xff]  ;;  %v3960_v26 = vld [vmem:[#allocation73_spill] sm:$0xff] }
 0x1a6   :  { %v462_v20 = vadd.f32 %v2989_v9, %v374_v15  ;;  %v1168_v42 = vmul.f32 %v2690_v53, %v1151_v30  ;;  %v716_v3 = vmul.f32 %v3047_v19, %v672_v27  ;;  %v596_v9 = vadd.f32 %v3023_v49, %v528_v4  ;;  %v3956_v49 = vld [vmem:[#allocation84_spill] sm:$0xff] }
 0x1a7   :  { %2000 = vset.pattern.permute.xlu1 %v3819_v57  ;;  %v1027_v55 = vmul.f32 %v2671_v21, %v3953_v46  ;;  %v1094_v28 = vmul.f32 %v2676_v31, %v3954_v51  ;;  %v661_v44 = vadd.f32 %v651_v16, %v3955_v10  ;;  %v1096_v34 = vmul.f32 %v2676_v31, %v3956_v49  ;;  %v3957_v16 = vld [vmem:[#allocation69_spill] sm:$0xff]  ;;  %v3958_v30 = vld [vmem:[#allocation4_spill] sm:$0xff] }
 0x1a8   :  { %v530_v52 = vadd.f32 %v520_v12, %v462_v20  ;;  %v3100_v43 = vadd.f32 %v1168_v42, %v1111_v5  ;;  %v3102_v36 = vadd.f32 %v716_v3, %v658_v54  ;;  %1426 = vperm.xlu1 %2000, %v2685_v6   ;;  %v738_v35 = vsel %vm736_vm0, %v3089_v47, 0.0  ;;  %v3963_v51 = vld [vmem:[#allocation5_spill] sm:$0xff] }
 0x1a9   :  { %v684_v25 = vpop.permute.xlu0 %683  ;;  %v1161_v15 = vmul.f32 %v2690_v53, %v2993_v11  ;;  %v1170_v41 = vadd.f32 %v3013_v61, %v1103_v38  ;;  %v664_v54 = vadd.f32 %v3958_v30, %v596_v9  ;;  %v3959_v42 = vmov 2   ;;  %v3961_v38 = vld [vmem:[#allocation12_spill] sm:$0xff] }
 0x1aa   :  { %v737_v56 = vsel %vm736_vm0, %v3102_v36, 0.0  ;;  %v719_v12 = vmul.f32 %v3047_v19, %v684_v25  ;;  %v1186_v4 = vpop.permute.xlu1 %1185  ;;  %v598_v27 = vadd.f32 %v3039_v18, %v530_v52  ;;  %v3128_v3 = vadd.f32 %v720_v32, %v662_v17  ;;  %v3962_v52 = vld [vmem:[#allocation76_spill] sm:$0xff] }
 0x1ab   :  { %v739_v29 = vadd.f32 %v738_v35, %v737_v56  ;;  %v1227_v5 = vmul.f32 %v3957_v16, %v1186_v4  ;;  %v722_v58 = vmul.f32 %v3047_v19, %v3960_v26  ;;  %v1104_v24 = vadd.f32 %v1094_v28, %v1027_v55  ;;  %v3965_v56 = vld [vmem:[#allocation74_spill] sm:$0xff] }
 0x1ac   :  { %v3125_v20 = vadd.f32 %v719_v12, %v661_v44  ;;  %2001 = vset.pattern.permute.xlu1 %v3959_v42  ;;  %v1106_v9 = vadd.f32 %v1096_v34, %v3961_v38  ;;  %v663_v46 = vadd.f32 %v653_v62, %v3962_v52  ;;  %v1098_v10 = vmul.f32 %v2676_v31, %v3963_v51  ;;  %v3964_v62 = vld [vmem:[#allocation54_spill] sm:$0xff] }
 0x1ad   :  { %v741_v11 = vadd.f32 %v740_v14, %v739_v29  ;;  %v3132_v39 = vadd.f32 %v1227_v5, %v1170_v41  ;;  %1489 = vperm.xlu1 %2001, %v2847_v0   ;;  %v692_v61 = vpop.permute.xlu0 %691  ;;  %v1171_v55 = vadd.f32 %v1161_v15, %v1104_v24  ;;  %v666_v44 = vadd.f32 %v2968_v22, %v598_v27  ;;  %v3966_v41 = vld [vmem:[#allocation78_spill] sm:$0xff]  ;;  %v3968_v24 = vld [vmem:[#allocation3_spill] sm:$0xff] }
 0x1ae   :  { %v742_v18 = vsel %vm736_vm0, %v3125_v20, 0.0  ;;  %v721_v17 = vmul.f32 %v3047_v19, %v692_v61  ;;  %v1190_v32 = vpop.permute.xlu1 %1189  ;;  %v744_v25 = vsel %vm736_vm0, %v3128_v3, 0.0  ;;  %v3148_v34 = vadd.f32 %v722_v58, %v664_v54  ;;  %v3967_v26 = vld [vmem:[#allocation2_spill] sm:$0xff] }
 0x1af   :  { %v743_v14 = vadd.f32 %v742_v18, %v741_v11  ;;  %v1228_v28 = vmul.f32 %v3957_v16, %v1190_v32  ;;  %v1165_v35 = vmul.f32 %v2690_v53, %v3964_v62  ;;  %v724_v12 = vmul.f32 %v3047_v19, %v3965_v56  ;;  %v3969_v18 = vld [vmem:[#allocation67_spill] sm:$0xff] }
 0x1b0   :  { %v3146_v49 = vadd.f32 %v721_v17, %v663_v46  ;;  %v665_v5 = vadd.f32 %v655_v48, %v3966_v41  ;;  %v1173_v27 = vadd.f32 %v3027_v33, %v1106_v9  ;;  %v1108_v58 = vadd.f32 %v1098_v10, %v3967_v26  ;;  %v3970_v17 = vld [vmem:[#allocation14_spill] sm:$0xff]  ;;  %v3971_v9 = vld [vmem:[#allocation56_spill] sm:$0xff] }
 0x1b1   :  { %v745_v4 = vadd.f32 %v744_v25, %v743_v14  ;;  %v3154_v15 = vadd.f32 %v1228_v28, %v1171_v55  ;;  %2003 = vset.pattern.permute.xlu1 %v3820_v60  ;;  %v700_v29 = vpop.permute.xlu0 %699  ;;  %v1100_v11 = vmul.f32 %v2676_v31, %v3968_v24  ;;  %v657_v52 = vmul.f32 %v2934_v7, %v3969_v18  ;;  %v3972_v14 = vld [vmem:[#allocation79_spill] sm:$0xff] }
 0x1b2   :  { %v746_v22 = vsel %vm736_vm0, %v3146_v49, 0.0  ;;  %v723_v30 = vmul.f32 %v3047_v19, %v700_v29  ;;  %1615 = vperm.xlu1 %2003, %v2437_v1   ;;  %v1198_v54 = vpop.permute.xlu1 %1197  ;;  %v748_v48 = vsel %vm736_vm0, %v3148_v34, 0.0  ;;  %v3173_v1 = vadd.f32 %v724_v12, %v666_v44  ;;  %v3973_v12 = vld [vmem:[#allocation72_spill] sm:$0xff] }
 0x1b3   :  { %v747_v61 = vadd.f32 %v746_v22, %v745_v4  ;;  %v1230_v38 = vmul.f32 %v3957_v16, %v1198_v54  ;;  %v1033_v33 = vmul.f32 %v2671_v21, %v3970_v17  ;;  %v1167_v32 = vmul.f32 %v2690_v53, %v3971_v9  ;;  %v3975_v17 = vld [vmem:[#allocation15_spill] sm:$0xff]  ;;  %v3976_v9 = vld [vmem:[#allocation85_spill] sm:$0xff] }
 0x1b4   :  { %v3171_v46 = vadd.f32 %v723_v30, %v665_v5  ;;  %v667_v28 = vadd.f32 %v657_v52, %v3972_v14  ;;  %v1175_v56 = vadd.f32 %v1165_v35, %v1108_v58  ;;  %v752_v4 = vsel %vm736_vm0, %v3173_v1, 0.0  ;;  %v3974_v58 = vld [vmem:[#allocation30_spill] sm:$0xff] }
 0x1b5   :  { %v749_v31 = vadd.f32 %v748_v48, %v747_v61  ;;  %v3179_v51 = vadd.f32 %v1230_v38, %v1173_v27  ;;  %v708_v10 = vpop.permute.xlu0 %707  ;;  %v1110_v62 = vadd.f32 %v1100_v11, %v1033_v33  ;;  %v1226_v24 = vmul.f32 %v3957_v16, %v3974_v58  ;;  %v3203_v61 = vld [vmem:[%s3778_s1 + $0x4] ss:$0 sm:$0xff] }
 0x1b6   :  { %v750_v55 = vsel %vm736_vm0, %v3171_v46, 0.0  ;;  %v725_v25 = vmul.f32 %v3047_v19, %v708_v10  ;;  %2004 = vset.pattern.permute.xlu1 %v3829_v2  ;;  %v1206_v44 = vpop.permute.xlu1 %1205  ;;  %v1380_v33 = vmul.f32 %v2732_v23, %v3975_v17  ;;  %v3982_v17 = vld [vmem:[#allocation36_spill] sm:$0xff] }
 0x1b7   :  { %v751_v21 = vadd.f32 %v750_v55, %v749_v31  ;;  %v1232_v53 = vmul.f32 %v3957_v16, %v1206_v44  ;;  %1366 = vperm.xlu1 %2004, %v3973_v12   ;;  %v1177_v54 = vadd.f32 %v1167_v32, %v1110_v62  ;;  %v1236_v18 = vadd.f32 %v1226_v24, %v2984_v45  ;;  %v3979_v24 = vld [vmem:[#allocation32_spill] sm:$0xff] }
 0x1b8   :  { %v735_v29 = vadd.f32 %v725_v25, %v667_v28  ;;  %v1447_v32 = vmul.f32 %v2740_v13, %v3976_v9  ;;  %v3977_v25 = vld [vmem:[#allocation31_spill] sm:$0xff] }
 0x1b9   :  { %v753_v22 = vadd.f32 %v752_v4, %v751_v21  ;;  %v3190_v41 = vadd.f32 %v1232_v53, %v1175_v56  ;;  %v1229_v44 = vmul.f32 %v3957_v16, %v3977_v25  ;;  %v3978_v21 = vld [vmem:[#allocation47_spill] sm:$0xff] }
 0x1ba   :  { %v755_v5 = vsel %vm754_vm1, %v735_v29, 0.0  ;;  %v1214_v19 = vpop.permute.xlu1 %1213 }
 0x1bb   :  { %v756_v30 = vadd.f32 %v755_v5, %v753_v22  ;;  %v1234_v27 = vmul.f32 %v3957_v16, %v1214_v19  ;;  %2005 = vset.pattern.permute.xlu1 %v3959_v42  ;;  %v1239_v22 = vadd.f32 %v1229_v44, %v3035_v37 }
 0x1bc   :  { %1493 = vperm.xlu1 %2005, %v2685_v6  }
 0x1bd   :  { %v757_v35 = vrot.slane %v756_v30, 4  ;;  %v3196_v26 = vadd.f32 %v1234_v27, %v1177_v54 }
 0x1bf   :  { %v758_v11 = vadd.f32 %v757_v35, %v756_v30  ;;  %v1249_v38 = vpop.permute.xlu1 %1248 }
 0x1c0   :  { %v1293_v52 = vmul.f32 %v3203_v61, %v1249_v38  ;;  %2006 = vset.pattern.permute.xlu1 %v3854_v8  ;;  %v3980_v38 = vld [vmem:[#allocation17_spill] sm:$0xff] }
 0x1c1   :  { %v759_v48 = vrot.slane %v758_v11, 2  ;;  %1556 = vperm.xlu1 %2006, %v2847_v0  }
 0x1c2   :  { %v1303_v31 = vadd.f32 %v1293_v52, %v1236_v18  ;;  %v1387_v18 = vmul.f32 %v2732_v23, %v3980_v38  ;;  %v3981_v52 = vld [vmem:[#allocation34_spill] sm:$0xff] }
 0x1c3   :  { %v760_v10 = vadd.f32 %v759_v48, %v758_v11  ;;  %v1257_v55 = vpop.permute.xlu1 %1256  ;;  %v1233_v48 = vmul.f32 %v3957_v16, %v3981_v52 }
 0x1c4   :  { %v1390_v14 = vadd.f32 %v1380_v33, %v1303_v31  ;;  %v1295_v28 = vmul.f32 %v3203_v61, %v1257_v55  ;;  %v1235_v33 = vmul.f32 %v3957_v16, %v3982_v17 }
 0x1c5   :  { %v761_v45 = vrot.slane %v760_v10, 1  ;;  %2007 = vset.pattern.permute.xlu1 %v3829_v2 }
 0x1c6   :  { %v3218_v62 = vadd.f32 %v1295_v28, %v3154_v15  ;;  %1371 = vperm.xlu1 %2007, %v3978_v21   ;;  %v3221_v56 = vadd.f32 %v1447_v32, %v1390_v14  ;;  %v1243_v28 = vadd.f32 %v1233_v48, %v3080_v63  ;;  %v1245_v44 = vadd.f32 %v1235_v33, %v3100_v43 }
 0x1c7   :  { %v762_v53 = vadd.f32 %v761_v45, %v760_v10  ;;  %v1261_v4 = vpop.permute.xlu1 %1260  ;;  %v1253_v10 = vpop.permute.xlu0 %1252 }
 0x1c8   :  { %v1296_v5 = vmul.f32 %v3203_v61, %v1261_v4 }
 0x1c9   :  { %v764_v19 = vmul.f32 0.012658228, %v762_v53 }
 0x1ca   :  { %v3225_v30 = vadd.f32 %v1296_v5, %v1239_v22  ;;  %2008 = vset.pattern.permute.xlu1 %v3819_v57  ;;  %v1294_v5 = vmul.f32 %v3203_v61, %v1253_v10  ;;  %v3985_v10 = vld [vmem:[#allocation6_spill] sm:$0xff] }
 0x1cb   :  { %v3229_v2 = vsub.f32 %v3102_v36, %v764_v19  ;;  %v3232_v15 = vsub.f32 %v3089_v47, %v764_v19  ;;  %v3235_v54 = vsub.f32 %v3071_v50, %v764_v19  ;;  %v3238_v27 = vsub.f32 %v3125_v20, %v764_v19  ;;  %1434 = vperm.xlu1 %2008, %v3973_v12   ;;  %v1269_v37 = vpop.permute.xlu1 %1268 }
 0x1cc   :  { %v3242_v35 = vsub.f32 %v3128_v3, %v764_v19  ;;  %v3245_v57 = vsub.f32 %v3146_v49, %v764_v19  ;;  %v3248_v36 = vsub.f32 %v3148_v34, %v764_v19  ;;  %v3251_v47 = vsub.f32 %v3171_v46, %v764_v19 }
 0x1cd   :  { %v3254_v50 = vsub.f32 %v3173_v1, %v764_v19  ;;  %v3256_v20 = vsub.f32 %v735_v29, %v764_v19  ;;  %v775_v58 = vmul.f32 %v3229_v2, %v3229_v2  ;;  %v776_v3 = vmul.f32 %v3232_v15, %v3232_v15 }
 0x1ce   :  { %v777_v49 = vmul.f32 %v3235_v54, %v3235_v54  ;;  %v1231_v46 = vmul.f32 %v3957_v16, %v3979_v24  ;;  %v778_v1 = vmul.f32 %v3238_v27, %v3238_v27  ;;  %v779_v32 = vmul.f32 %v3242_v35, %v3242_v35 }
 0x1cf   :  { %2010 = vset.pattern.permute.xlu1 %v3854_v8  ;;  %v1277_v34 = vpop.permute.xlu1 %1276  ;;  %v785_v29 = vsel %vm736_vm0, %v775_v58, 0.0  ;;  %v786_v11 = vsel %vm736_vm0, %v776_v3, 0.0  ;;  %v780_v16 = vmul.f32 %v3245_v57, %v3245_v57  ;;  %v781_v43 = vmul.f32 %v3248_v36, %v3248_v36 }
 0x1d0   :  { %1560 = vperm.xlu1 %2010, %v2685_v6   ;;  %v787_v9 = vadd.f32 %v786_v11, %v785_v29  ;;  %v788_v31 = vsel %vm736_vm0, %v777_v49, 0.0  ;;  %v1241_v55 = vadd.f32 %v1231_v46, %v3060_v59  ;;  %v1298_v6 = vmul.f32 %v3203_v61, %v1269_v37  ;;  %v3983_v59 = vld [vmem:[#allocation8_spill] sm:$0xff] }
 0x1d1   :  { %v1300_v45 = vmul.f32 %v3203_v61, %v1277_v34  ;;  %v790_v21 = vsel %vm736_vm0, %v778_v1, 0.0  ;;  %v1454_v22 = vmul.f32 %v2740_v13, %v3983_v59  ;;  %v792_v37 = vsel %vm736_vm0, %v779_v32, 0.0  ;;  %v3984_v34 = vld [vmem:[#allocation66_spill] sm:$0xff] }
 0x1d2   :  { %v789_v14 = vadd.f32 %v788_v31, %v787_v9  ;;  %v3289_v53 = vadd.f32 %v1298_v6, %v1241_v55  ;;  %v1521_v24 = vmul.f32 %v2753_v40, %v3984_v34  ;;  %v782_v46 = vmul.f32 %v3251_v47, %v3251_v47 }
 0x1d3   :  { %v1285_v25 = vpop.permute.xlu1 %1284  ;;  %v1310_v19 = vadd.f32 %v1300_v45, %v1243_v28  ;;  %v794_v1 = vsel %vm736_vm0, %v780_v16, 0.0  ;;  %v796_v48 = vsel %vm736_vm0, %v781_v43, 0.0  ;;  %v784_v32 = vmul.f32 %v3256_v20, %v3256_v20 }
 0x1d4   :  { %v1302_v4 = vmul.f32 %v3203_v61, %v1285_v25  ;;  %2011 = vset.pattern.permute.xlu1 %v3820_v60  ;;  %v791_v63 = vadd.f32 %v790_v21, %v789_v14  ;;  %v1449_v55 = vmul.f32 %v2740_v13, %v3985_v10  ;;  %v3986_v21 = vld [vmem:[#allocation60_spill] sm:$0xff] }
 0x1d5   :  { %1623 = vperm.xlu1 %2011, %v2847_v0   ;;  %v1397_v49 = vadd.f32 %v1387_v18, %v1310_v19  ;;  %v1304_v0 = vadd.f32 %v1294_v5, %v3132_v39  ;;  %v783_v18 = vmul.f32 %v3254_v50, %v3254_v50  ;;  %v798_v39 = vsel %vm736_vm0, %v782_v46, 0.0 }
 0x1d6   :  { %v3300_v58 = vadd.f32 %v1302_v4, %v1245_v44  ;;  %v793_v3 = vadd.f32 %v792_v37, %v791_v63  ;;  %v2062_v44 = vld [vmem:[%s3777_s0 + $0x89] sm:$0xff]  ;;  %v802_v16 = vsel %vm754_vm1, %v784_v32, 0.0  ;;  %v1516_v4 = vmul.f32 %v2753_v40, %v3986_v21 }
 0x1d7   :  { %v1464_v52 = vadd.f32 %v1454_v22, %v1397_v49  ;;  %v800_v28 = vsel %vm736_vm0, %v783_v18, 0.0  ;;  %v2063_v49 = vld [vmem:[%s3777_s0 + $0x99] sm:$0x7f] }
 0x1d8   :  { %v1332_v29 = vpop.permute.xlu1 %1331  ;;  %v795_v11 = vadd.f32 %v794_v1, %v793_v3 }
 0x1d9   :  { %v1381_v38 = vmul.f32 %v2732_v23, %v1332_v29  ;;  %2013 = vset.pattern.permute.xlu1 %v3959_v42  ;;  %v3314_v9 = vadd.f32 %v1521_v24, %v1464_v52 }
 0x1da   :  { %1501 = vperm.xlu1 %2013, %v3973_v12   ;;  %v797_v17 = vadd.f32 %v796_v48, %v795_v11 }
 0x1db   :  { %v1391_v33 = vadd.f32 %v1381_v38, %v1304_v0  ;;  %v1265_v0 = vpop.permute.xlu0 %1264 }
 0x1dc   :  { %v1337_v31 = vpop.permute.xlu1 %1336  ;;  %v799_v6 = vadd.f32 %v798_v39, %v797_v17  ;;  %v1297_v17 = vmul.f32 %v3203_v61, %v1265_v0 }
 0x1dd   :  { %v1382_v14 = vmul.f32 %v2732_v23, %v1337_v31 }
 0x1de   :  { %2014 = vset.pattern.permute.xlu1 %v3854_v8  ;;  %v801_v45 = vadd.f32 %v800_v28, %v799_v6 }
 0x1df   :  { %v1392_v25 = vadd.f32 %v1382_v14, %v3218_v62  ;;  %1564 = vperm.xlu1 %2014, %v2062_v44   ;;  %v3987_v62 = vld [vmem:[#allocation58_spill] sm:$0xff]  ;;  %v3347_v39 = vpop.permute.xlu0 %1272 }
 0x1e0   :  { %v803_v59 = vadd.f32 %v802_v16, %v801_v45  ;;  %v1515_v37 = vmul.f32 %v2753_v40, %v3987_v62  ;;  %v3988_v14 = vld [vmem:[#allocation62_spill] sm:$0xff] }
 0x1e1   :  { %v1459_v22 = vadd.f32 %v1449_v55, %v1392_v25  ;;  %v1407_v63 = vpop.permute.xlu1 %1406  ;;  %v1517_v28 = vmul.f32 %v2753_v40, %v3988_v14  ;;  %v3989_v44 = vld [vmem:[#allocation38_spill] sm:$0xff] }
 0x1e2   :  { %v1448_v5 = vmul.f32 %v2740_v13, %v1407_v63  ;;  %v804_v19 = vrot.slane %v803_v59, 4  ;;  %v1582_v16 = vmul.f32 %v2934_v7, %v3989_v44 }
 0x1e3   :  { %2015 = vset.pattern.permute.xlu1 %v3959_v42  ;;  %v3333_v43 = vadd.f32 %v1516_v4, %v1459_v22  ;;  %v3354_v6 = vpop.permute.xlu0 %1280 }
 0x1e4   :  { %v1458_v3 = vadd.f32 %v1448_v5, %v1391_v33  ;;  %1505 = vperm.xlu1 %2015, %v2063_v49   ;;  %v805_v34 = vadd.f32 %v804_v19, %v803_v59 }
 0x1e6   :  { %v1525_v24 = vadd.f32 %v1515_v37, %v1458_v3  ;;  %v1342_v46 = vpop.permute.xlu1 %1341  ;;  %v806_v1 = vrot.slane %v805_v34, 2 }
 0x1e7   :  { %v1383_v29 = vmul.f32 %v2732_v23, %v1342_v46  ;;  %v3392_v46 = vld [vmem:[%s3780_s3] ss:$0 sm:$0xff] }
 0x1e8   :  { %2016 = vset.pattern.permute.xlu1 %v3854_v8  ;;  %v807_v42 = vadd.f32 %v806_v1, %v805_v34 }
 0x1e9   :  { %v1393_v11 = vadd.f32 %v1383_v29, %v3225_v30  ;;  %1568 = vperm.xlu1 %2016, %v3973_v12   ;;  %v1307_v30 = vadd.f32 %v1297_v17, %v3179_v51  ;;  %v3362_v51 = vld [vmem:[%s3778_s1 + $0x9] ss:$0 sm:$0xff] }
 0x1ea   :  { %v808_v38 = vrot.slane %v807_v42, 1 }
 0x1eb   :  { %v1470_v52 = vpop.permute.xlu1 %1469 }
 0x1ec   :  { %v1514_v18 = vmul.f32 %v2753_v40, %v1470_v52  ;;  %v809_v48 = vadd.f32 %v808_v38, %v807_v42  ;;  %v3374_v40 = vadd.f32 %v1582_v16, %v1525_v24 }
 0x1ed   :  { %1572 = vperm.xlu1 %2016, %v2063_v49  }
 0x1ee   :  { %v1524_v33 = vadd.f32 %v1514_v18, %v3221_v56  ;;  %v810_v32 = vmul.f32 0.012658228, %v809_v48 }
 0x1f0   :  { %v1347_v8 = vpop.permute.xlu1 %1346  ;;  %v811_v31 = vadd.f32 1e-05, %v810_v32 }
 0x1f1   :  { %v1384_v12 = vmul.f32 %v2732_v23, %v1347_v8  ;;  %2017 = vset.pattern.permute.xlu1 %v3820_v60  ;;  %v1608_v23 = vpop.permute.xlu0 %1607 }
 0x1f2   :  { %1639 = vperm.xlu1 %2017, %v2063_v49   ;;  %2018 = vrsqrt.f32 %v811_v31  ;;  %v3377_v59 = vmul.f32 %v3362_v51, %v1608_v23 }
 0x1f3   :  { %v3352_v10 = vadd.f32 %v1384_v12, %v1307_v30 }
 0x1f5   :  { %v1415_v55 = vpop.permute.xlu1 %1414 }
 0x1f6   :  { %v1450_v56 = vmul.f32 %v2740_v13, %v1415_v55  ;;  %v3372_v13 = vld [vmem:[%s3779_s2] ss:$0 sm:$0xff] }
 0x1f8   :  { %v1460_v45 = vadd.f32 %v1450_v56, %v1393_v11 }
 0x1fa   :  { %v1537_v60 = vpop.permute.xlu1 %1536  ;;  %v3364_v25 = vadd.f32 %v1517_v28, %v1460_v45 }
 0x1fb   :  { %v1581_v21 = vmul.f32 %v2934_v7, %v1537_v60 }
 0x1fc   :  { %v2019_v4 = vpop.eup %2018 }
 0x1fd   :  { %v3379_v22 = vadd.f32 %v1581_v21, %v1524_v33  ;;  %v813_v63 = vmul.f32 %v2019_v4, %v3229_v2  ;;  %v814_v5 = vmul.f32 %v2019_v4, %v3232_v15  ;;  %v815_v19 = vmul.f32 %v2019_v4, %v3235_v54 }
 0x1fe   :  { %v816_v62 = vmul.f32 %v2019_v4, %v3238_v27  ;;  %v817_v37 = vmul.f32 %v2019_v4, %v3242_v35  ;;  %v818_v3 = vmul.f32 %v2019_v4, %v3245_v57  ;;  %v819_v49 = vmul.f32 %v2019_v4, %v3248_v36 }
 0x1ff   :  { %v820_v34 = vmul.f32 %v2019_v4, %v3251_v47  ;;  %v1352_v24 = vpop.permute.xlu1 %1351  ;;  %v821_v2 = vmul.f32 %v2019_v4, %v3254_v50  ;;  %v822_v15 = vmul.f32 %v2019_v4, %v3256_v20  ;;  %v830_v54 = vmul.f32 %v3372_v13, %v813_v63 }
 0x200   :  { %v831_v27 = vmul.f32 %v3372_v13, %v814_v5  ;;  %v832_v35 = vmul.f32 %v3372_v13, %v815_v19  ;;  %v833_v57 = vmul.f32 %v3372_v13, %v816_v62  ;;  %v834_v36 = vmul.f32 %v3372_v13, %v817_v37 }
 0x201   :  { %v835_v47 = vmul.f32 %v3372_v13, %v818_v3  ;;  %v836_v1 = vmul.f32 %v3372_v13, %v819_v49  ;;  %v837_v29 = vmul.f32 %v3372_v13, %v820_v34  ;;  %v838_v50 = vmul.f32 %v3372_v13, %v821_v2 }
 0x202   :  { %v839_v20 = vmul.f32 %v3372_v13, %v822_v15  ;;  %v3407_v42 = vadd.f32 %v3392_v46, %v830_v54  ;;  %v3410_v11 = vadd.f32 %v3392_v46, %v831_v27  ;;  %v3413_v0 = vadd.f32 %v3392_v46, %v832_v35  ;;  %v3469_v35 = vld [vmem:[%s3778_s1 + $0x5] ss:$0 sm:$0xff] }
 0x203   :  { %v3416_v38 = vadd.f32 %v3392_v46, %v833_v57  ;;  %v3419_v52 = vadd.f32 %v3392_v46, %v834_v36  ;;  %v3422_v18 = vadd.f32 %v3392_v46, %v835_v47  ;;  %v3425_v48 = vadd.f32 %v3392_v46, %v836_v1 }
 0x204   :  { %v3428_v17 = vadd.f32 %v3392_v46, %v837_v29  ;;  %v1419_v33 = vpop.permute.xlu1 %1418  ;;  %v3431_v32 = vadd.f32 %v3392_v46, %v838_v50  ;;  %v3434_v8 = vadd.f32 %v3392_v46, %v839_v20  ;;  %v857_v31 = vmul.f32 %v3407_v42, %v3407_v42 }
 0x205   :  { %v858_v30 = vmul.f32 %v3410_v11, %v3410_v11  ;;  %v859_v12 = vmul.f32 %v3413_v0, %v3413_v0  ;;  %v860_v55 = vmul.f32 %v3416_v38, %v3416_v38  ;;  %v861_v56 = vmul.f32 %v3419_v52, %v3419_v52 }
 0x206   :  { %v862_v14 = vmul.f32 %v3422_v18, %v3422_v18  ;;  %v863_v28 = vmul.f32 %v3425_v48, %v3425_v48  ;;  %v864_v45 = vmul.f32 %v3428_v17, %v3428_v17  ;;  %v865_v23 = vmul.f32 %v3431_v32, %v3431_v32 }
 0x207   :  { %v866_v60 = vmul.f32 %v3434_v8, %v3434_v8  ;;  %v867_v44 = vmul.f32 %v857_v31, %v3407_v42  ;;  %v868_v16 = vmul.f32 %v858_v30, %v3410_v11  ;;  %v869_v21 = vmul.f32 %v859_v12, %v3413_v0 }
 0x208   :  { %v870_v4 = vmul.f32 %v860_v55, %v3416_v38  ;;  %v871_v63 = vmul.f32 %v861_v56, %v3419_v52  ;;  %v872_v5 = vmul.f32 %v862_v14, %v3422_v18  ;;  %v873_v19 = vmul.f32 %v863_v28, %v3425_v48 }
 0x209   :  { %v874_v62 = vmul.f32 %v864_v45, %v3428_v17  ;;  %v1545_v37 = vpop.permute.xlu1 %1544  ;;  %v875_v3 = vmul.f32 %v865_v23, %v3431_v32  ;;  %v876_v49 = vmul.f32 %v866_v60, %v3434_v8  ;;  %v877_v34 = vmul.f32 0.044715, %v867_v44 }
 0x20a   :  { %v878_v2 = vmul.f32 0.044715, %v868_v16  ;;  %v879_v15 = vmul.f32 0.044715, %v869_v21  ;;  %v880_v54 = vmul.f32 0.044715, %v870_v4  ;;  %v1385_v57 = vmul.f32 %v3469_v35, %v1352_v24 }
 0x20b   :  { %v881_v27 = vmul.f32 0.044715, %v871_v63  ;;  %v882_v36 = vmul.f32 0.044715, %v872_v5  ;;  %v883_v47 = vmul.f32 0.044715, %v873_v19  ;;  %v887_v29 = vadd.f32 %v877_v34, %v3407_v42 }
 0x20c   :  { %v884_v1 = vmul.f32 0.044715, %v874_v62  ;;  %v885_v50 = vmul.f32 0.044715, %v875_v3  ;;  %v886_v20 = vmul.f32 0.044715, %v876_v49  ;;  %v888_v31 = vadd.f32 %v878_v2, %v3410_v11 }
 0x20d   :  { %v889_v30 = vadd.f32 %v879_v15, %v3413_v0  ;;  %v890_v12 = vadd.f32 %v880_v54, %v3416_v38  ;;  %v891_v55 = vadd.f32 %v881_v27, %v3419_v52  ;;  %v892_v56 = vadd.f32 %v882_v36, %v3422_v18  ;;  %v3492_v3 = vld [vmem:[%s3778_s1 + $0x6] ss:$0 sm:$0xff] }
 0x20e   :  { %v893_v14 = vadd.f32 %v883_v47, %v3425_v48  ;;  %v1604_v24 = vpop.permute.xlu1 %1603  ;;  %v894_v28 = vadd.f32 %v884_v1, %v3428_v17  ;;  %v895_v45 = vadd.f32 %v885_v50, %v3431_v32  ;;  %v897_v23 = vmul.f32 0.7978846, %v887_v29 }
 0x20f   :  { %v898_v60 = vmul.f32 0.7978846, %v888_v31  ;;  %v899_v44 = vmul.f32 0.7978846, %v889_v30  ;;  %v900_v16 = vmul.f32 0.7978846, %v890_v12  ;;  %v3482_v21 = vadd.f32 %v1385_v57, %v3289_v53 }
 0x210   :  { %v901_v4 = vmul.f32 0.7978846, %v891_v55  ;;  %2020 = vtanh.f32 %v897_v23  ;;  %v3486_v63 = vadd.f32 %v3377_v59, %v3374_v40  ;;  %v896_v5 = vadd.f32 %v886_v20, %v3434_v8  ;;  %v3502_v40 = vld [vmem:[%s3778_s1 + $0x7] ss:$0 sm:$0xff]  ;;  %v3990_v59 = vld [vmem:[#allocation64_spill] sm:$0xff] }
 0x211   :  { %v902_v19 = vmul.f32 0.7978846, %v892_v56  ;;  %v903_v62 = vmul.f32 0.7978846, %v893_v14  ;;  %2022 = vtanh.f32 %v898_v60  ;;  %v1451_v53 = vmul.f32 %v3492_v3, %v1419_v33 }
 0x212   :  { %2024 = vtanh.f32 %v899_v44  ;;  %v1583_v49 = vmul.f32 %v2934_v7, %v1545_v37  ;;  %v1648_v34 = vmul.f32 %v3362_v51, %v1604_v24  ;;  %v1518_v15 = vmul.f32 %v3502_v40, %v3990_v59 }
 0x213   :  { %v3497_v2 = vpop.permute.xlu1 %1356  ;;  %v904_v54 = vmul.f32 0.7978846, %v894_v28  ;;  %v905_v27 = vmul.f32 0.7978846, %v895_v45  ;;  %2026 = vtanh.f32 %v900_v16  ;;  %v1461_v33 = vadd.f32 %v1451_v53, %v3352_v10 }
 0x214   :  { %2028 = vtanh.f32 %v901_v4  ;;  %v1593_v7 = vadd.f32 %v1583_v49, %v3333_v43  ;;  %v3509_v37 = vadd.f32 %v1648_v34, %v3379_v22  ;;  %v906_v57 = vmul.f32 0.7978846, %v896_v5 }
 0x215   :  { %2030 = vtanh.f32 %v902_v19  ;;  %v1669_v36 = vsel %vm736_vm0, %v3486_v63, 0.0  ;;  %v3513_v47 = vadd.f32 %v1518_v15, %v1461_v33 }
 0x216   :  { %2032 = vtanh.f32 %v903_v62  ;;  %v1668_v1 = vsel %vm736_vm0, %v3509_v37, 0.0 }
 0x217   :  { %2034 = vtanh.f32 %v904_v54  ;;  %v1670_v29 = vadd.f32 %v1669_v36, %v1668_v1 }
 0x218   :  { %v3517_v50 = vpop.permute.xlu1 %1422  ;;  %2036 = vtanh.f32 %v905_v27 }
 0x219   :  { %2038 = vtanh.f32 %v906_v57 }
 0x21a   :  { %v2021_v43 = vpop.eup %2020 }
 0x21b   :  { %v2023_v10 = vpop.eup %2022  ;;  %v917_v22 = vadd.f32 1.0, %v2021_v43 }
 0x21c   :  { %v2025_v20 = vpop.eup %2024  ;;  %v918_v31 = vadd.f32 1.0, %v2023_v10 }
 0x21d   :  { %v1549_v30 = vpop.permute.xlu1 %1548  ;;  %v2027_v12 = vpop.eup %2026  ;;  %v919_v55 = vadd.f32 1.0, %v2025_v20  ;;  %v927_v56 = vmul.f32 0.5, %v917_v22 }
 0x21e   :  { %v2029_v14 = vpop.eup %2028  ;;  %v920_v24 = vadd.f32 1.0, %v2027_v12  ;;  %v928_v28 = vmul.f32 0.5, %v918_v31 }
 0x21f   :  { %v2031_v45 = vpop.eup %2030  ;;  %v921_v23 = vadd.f32 1.0, %v2029_v14  ;;  %v929_v60 = vmul.f32 0.5, %v919_v55  ;;  %v937_v44 = vmul.f32 %v927_v56, %v3407_v42 }
 0x220   :  { %v2033_v16 = vpop.eup %2032  ;;  %v922_v4 = vadd.f32 1.0, %v2031_v45  ;;  %v930_v5 = vmul.f32 0.5, %v920_v24  ;;  %v938_v19 = vmul.f32 %v928_v28, %v3410_v11 }
 0x221   :  { %v2035_v62 = vpop.eup %2034  ;;  %v923_v53 = vadd.f32 1.0, %v2033_v16  ;;  %v931_v49 = vmul.f32 0.5, %v921_v23  ;;  %v939_v34 = vmul.f32 %v929_v60, %v3413_v0  ;;  %947 = vst.msk [vmem:[%s3781_s4] sm:$0xff] %vm736_vm0, %v937_v44 }
 0x222   :  { %v1612_v59 = vpop.permute.xlu1 %1611  ;;  %v2037_v15 = vpop.eup %2036  ;;  %v924_v54 = vadd.f32 1.0, %v2035_v62  ;;  %v932_v27 = vmul.f32 0.5, %v922_v4  ;;  %v940_v42 = vmul.f32 %v930_v5, %v3416_v38  ;;  %948 = vst.msk [vmem:[%s3781_s4 + $0x8] sm:$0xff] %vm736_vm0, %v938_v19 }
 0x223   :  { %v1650_v11 = vmul.f32 %v3362_v51, %v1612_v59  ;;  %v2039_v33 = vpop.eup %2038  ;;  %v925_v0 = vadd.f32 1.0, %v2037_v15  ;;  %v933_v57 = vmul.f32 0.5, %v923_v53  ;;  %v941_v36 = vmul.f32 %v931_v49, %v3419_v52  ;;  %949 = vst.msk [vmem:[%s3781_s4 + $0x10] sm:$0xff] %vm736_vm0, %v939_v34  ;;  %v3992_v59 = vld [vmem:[#allocation10_spill] sm:$0xff] }
 0x224   :  { %v926_v1 = vadd.f32 1.0, %v2039_v33  ;;  %v934_v43 = vmul.f32 0.5, %v924_v54  ;;  %v942_v38 = vmul.f32 %v932_v27, %v3422_v18  ;;  %950 = vst.msk [vmem:[%s3781_s4 + $0x18] sm:$0xff] %vm736_vm0, %v940_v42  ;;  %v1299_v34 = vmul.f32 %v3203_v61, %v3347_v39 }
 0x225   :  { %v3542_v10 = vadd.f32 %v1650_v11, %v1593_v7  ;;  %v935_v22 = vmul.f32 0.5, %v925_v0  ;;  %v943_v20 = vmul.f32 %v933_v57, %v3425_v48  ;;  %951 = vst.msk [vmem:[%s3781_s4 + $0x20] sm:$0xff] %vm736_vm0, %v941_v36  ;;  %v1456_v15 = vmul.f32 %v3492_v3, %v3992_v59 }
 0x226   :  { %v936_v52 = vmul.f32 0.5, %v926_v1  ;;  %v944_v31 = vmul.f32 %v934_v43, %v3428_v17  ;;  %952 = vst.msk [vmem:[%s3781_s4 + $0x28] sm:$0xff] %vm736_vm0, %v942_v38  ;;  %v1386_v27 = vmul.f32 %v3469_v35, %v3497_v2  ;;  %v1309_v33 = vadd.f32 %v1299_v34, %v3190_v41 }
 0x227   :  { %v1671_v18 = vsel %vm736_vm0, %v3542_v10, 0.0  ;;  %v1427_v7 = vpop.permute.xlu1 %1426  ;;  %v945_v12 = vmul.f32 %v935_v22, %v3431_v32  ;;  %953 = vst.msk [vmem:[%s3781_s4 + $0x30] sm:$0xff] %vm736_vm0, %v943_v20  ;;  %v1620_v32 = vpop.permute.xlu0 %1619  ;;  %v1452_v36 = vmul.f32 %v3492_v3, %v3517_v50 }
 0x228   :  { %v1672_v48 = vadd.f32 %v1671_v18, %v1670_v29  ;;  %v946_v55 = vmul.f32 %v936_v52, %v3434_v8  ;;  %954 = vst.msk [vmem:[%s3781_s4 + $0x38] sm:$0xff] %vm736_vm0, %v944_v31  ;;  %v3577_v8 = vld [vmem:[%s3778_s1 + $0x8] ss:$0 sm:$0xff]  ;;  %v3991_v29 = vld [vmem:[#allocation40_spill] sm:$0xff]  ;;  %v1652_v28 = vmul.f32 %v3362_v51, %v1620_v32  ;;  %v1453_v0 = vmul.f32 %v3492_v3, %v1427_v7 }
 0x229   :  { %955 = vst.msk [vmem:[%s3781_s4 + $0x40] sm:$0xff] %vm736_vm0, %v945_v12  ;;  %v1585_v56 = vmul.f32 %v3577_v8, %v3991_v29  ;;  %v1584_v14 = vmul.f32 %v3577_v8, %v1549_v30  ;;  %v1396_v57 = vadd.f32 %v1386_v27, %v1309_v33  ;;  %v1462_v2 = vadd.f32 %v1452_v36, %v3482_v21 }
 0x22a   :  { %956 = vst.msk [vmem:[%s3781_s4 + $0x48] sm:$0x7f] %vm754_vm1, %v946_v55 }
 0x22b   :  { %v1595_v24 = vadd.f32 %v1585_v56, %v3513_v47  ;;  %v1594_v23 = vadd.f32 %v1584_v14, %v3364_v25  ;;  %v1463_v1 = vadd.f32 %v1453_v0, %v1396_v57  ;;  %v1628_v31 = vpop.permute.xlu0 %1627 }
 0x22c   :  { %v1490_v17 = vpop.permute.xlu1 %1489  ;;  %v1654_v7 = vmul.f32 %v3362_v51, %v1628_v31 }
 0x22d   :  { %v3586_v44 = vadd.f32 %v1652_v28, %v1595_v24  ;;  %v1519_v43 = vmul.f32 %v3502_v40, %v1490_v17  ;;  %v1301_v24 = vmul.f32 %v3203_v61, %v3354_v6 }
 0x22f   :  { %v1675_v30 = vsel %vm736_vm0, %v3586_v44, 0.0  ;;  %v1529_v41 = vadd.f32 %v1519_v43, %v1462_v2 }
 0x231   :  { %v1616_v45 = vpop.permute.xlu1 %1615 }
 0x232   :  { %v1651_v60 = vmul.f32 %v3362_v51, %v1616_v45  ;;  %v1632_v45 = vpop.permute.xlu0 %1631 }
 0x234   :  { %v3588_v16 = vadd.f32 %v1651_v60, %v1594_v23  ;;  %v1655_v23 = vmul.f32 %v3362_v51, %v1632_v45 }
 0x236   :  { %v1673_v4 = vsel %vm736_vm0, %v3588_v16, 0.0  ;;  %v1367_v5 = vpop.permute.xlu1 %1366  ;;  %v1636_v34 = vpop.permute.xlu0 %1635 }
 0x237   :  { %v1674_v19 = vadd.f32 %v1673_v4, %v1672_v48  ;;  %v1388_v60 = vmul.f32 %v3469_v35, %v1367_v5 }
 0x239   :  { %v1676_v47 = vadd.f32 %v1675_v30, %v1674_v19  ;;  %v1311_v19 = vadd.f32 %v1301_v24, %v3196_v26 }
 0x23b   :  { %v1494_v62 = vpop.permute.xlu1 %1493 }
 0x23c   :  { %v1520_v39 = vmul.f32 %v3502_v40, %v1494_v62 }
 0x23e   :  { %v1530_v22 = vadd.f32 %v1520_v39, %v1463_v1 }
 0x240   :  { %v1557_v53 = vpop.permute.xlu1 %1556 }
 0x241   :  { %v1586_v20 = vmul.f32 %v3577_v8, %v1557_v53  ;;  %v1398_v53 = vadd.f32 %v1388_v60, %v1311_v19 }
 0x243   :  { %v1596_v50 = vadd.f32 %v1586_v20, %v1529_v41 }
 0x245   :  { %v1372_v49 = vpop.permute.xlu1 %1371 }
 0x246   :  { %v1389_v25 = vmul.f32 %v3469_v35, %v1372_v49 }
 0x248   :  { %v1399_v54 = vadd.f32 %v1389_v25, %v3300_v58 }
 0x24a   :  { %v1435_v42 = vpop.permute.xlu1 %1434  ;;  %v1466_v11 = vadd.f32 %v1456_v15, %v1399_v54 }
 0x24b   :  { %v1455_v30 = vmul.f32 %v3492_v3, %v1435_v42 }
 0x24d   :  { %v1465_v25 = vadd.f32 %v1455_v30, %v1398_v53 }
 0x24f   :  { %v1561_v38 = vpop.permute.xlu1 %1560 }
 0x250   :  { %v1587_v58 = vmul.f32 %v3577_v8, %v1561_v38 }
 0x252   :  { %v1597_v52 = vadd.f32 %v1587_v58, %v1530_v22 }
 0x254   :  { %v1624_v18 = vpop.permute.xlu1 %1623  ;;  %v1664_v48 = vadd.f32 %v1654_v7, %v1597_v52 }
 0x255   :  { %v1653_v12 = vmul.f32 %v3362_v51, %v1624_v18 }
 0x256   :  { %v1679_v21 = vsel %vm736_vm0, %v1664_v48, 0.0 }
 0x257   :  { %v1663_v55 = vadd.f32 %v1653_v12, %v1596_v50 }
 0x259   :  { %v1677_v17 = vsel %vm736_vm0, %v1663_v55, 0.0  ;;  %v1502_v32 = vpop.permute.xlu1 %1501 }
 0x25a   :  { %v1678_v29 = vadd.f32 %v1677_v17, %v1676_v47  ;;  %v1522_v49 = vmul.f32 %v3502_v40, %v1502_v32 }
 0x25c   :  { %v1680_v56 = vadd.f32 %v1679_v21, %v1678_v29  ;;  %v1532_v15 = vadd.f32 %v1522_v49, %v1465_v25 }
 0x25e   :  { %v1565_v14 = vpop.permute.xlu1 %1564 }
 0x25f   :  { %v1588_v28 = vmul.f32 %v3577_v8, %v1565_v14 }
 0x261   :  { %v1598_v4 = vadd.f32 %v1588_v28, %v3314_v9  ;;  %v1656_v9 = vmul.f32 %v3362_v51, %v1636_v34 }
 0x263   :  { %v1665_v47 = vadd.f32 %v1655_v23, %v1598_v4  ;;  %v1506_v62 = vpop.permute.xlu1 %1505 }
 0x264   :  { %v1523_v26 = vmul.f32 %v3502_v40, %v1506_v62 }
 0x265   :  { %v1681_v61 = vsel %vm736_vm0, %v1665_v47, 0.0 }
 0x266   :  { %v1682_v6 = vadd.f32 %v1681_v61, %v1680_v56  ;;  %v1533_v33 = vadd.f32 %v1523_v26, %v1466_v11 }
 0x268   :  { %v1569_v59 = vpop.permute.xlu1 %1568 }
 0x269   :  { %v1589_v35 = vmul.f32 %v3577_v8, %v1569_v59 }
 0x26b   :  { %v1599_v5 = vadd.f32 %v1589_v35, %v1532_v15 }
 0x26c   :  { %v1573_v3 = vpop.permute.xlu1 %1572 }
 0x26d   :  { %v1666_v54 = vadd.f32 %v1656_v9, %v1599_v5  ;;  %v1590_v27 = vmul.f32 %v3577_v8, %v1573_v3 }
 0x26f   :  { %v1683_v42 = vsel %vm736_vm0, %v1666_v54, 0.0  ;;  %v1600_v36 = vadd.f32 %v1590_v27, %v1533_v33 }
 0x270   :  { %v1684_v0 = vadd.f32 %v1683_v42, %v1682_v6 }
 0x271   :  { %v1640_v57 = vpop.permute.xlu1 %1639 }
 0x272   :  { %v1657_v39 = vmul.f32 %v3362_v51, %v1640_v57 }
 0x274   :  { %v1667_v1 = vadd.f32 %v1657_v39, %v1600_v36 }
 0x276   :  { %v1685_v43 = vsel %vm754_vm1, %v1667_v1, 0.0 }
 0x277   :  { %v1686_v38 = vadd.f32 %v1685_v43, %v1684_v0 }
 0x279   :  { %v1687_v58 = vrot.slane %v1686_v38, 4 }
 0x27b   :  { %v1688_v2 = vadd.f32 %v1687_v58, %v1686_v38 }
 0x27d   :  { %v1689_v22 = vrot.slane %v1688_v2, 2 }
 0x27f   :  { %v1690_v40 = vadd.f32 %v1689_v22, %v1688_v2 }
 0x281   :  { %v1691_v20 = vrot.slane %v1690_v40, 1 }
 0x283   :  { %v1692_v41 = vadd.f32 %v1691_v20, %v1690_v40 }
 0x285   :  { %v1693_v52 = vmul.f32 0.012658228, %v1692_v41 }
 0x287   :  { %v1694_v8 = vsub.f32 %v3509_v37, %v1693_v52  ;;  %v1695_v11 = vsub.f32 %v3486_v63, %v1693_v52  ;;  %v1696_v31 = vsub.f32 %v3542_v10, %v1693_v52  ;;  %v1697_v18 = vsub.f32 %v3588_v16, %v1693_v52 }
 0x288   :  { %v1698_v51 = vsub.f32 %v3586_v44, %v1693_v52  ;;  %v1699_v7 = vsub.f32 %v1663_v55, %v1693_v52  ;;  %v1700_v50 = vsub.f32 %v1664_v48, %v1693_v52  ;;  %v1701_v12 = vsub.f32 %v1665_v47, %v1693_v52 }
 0x289   :  { %v1702_v17 = vsub.f32 %v1666_v54, %v1693_v52  ;;  %v1703_v32 = vsub.f32 %v1667_v1, %v1693_v52  ;;  %v1704_v29 = vmul.f32 %v1694_v8, %v1694_v8  ;;  %v1705_v21 = vmul.f32 %v1695_v11, %v1695_v11 }
 0x28a   :  { %v1706_v56 = vmul.f32 %v1696_v31, %v1696_v31  ;;  %v1707_v14 = vmul.f32 %v1697_v18, %v1697_v18  ;;  %v1708_v28 = vmul.f32 %v1698_v51, %v1698_v51  ;;  %v1709_v45 = vmul.f32 %v1699_v7, %v1699_v7 }
 0x28b   :  { %v1714_v24 = vsel %vm736_vm0, %v1704_v29, 0.0  ;;  %v1715_v37 = vsel %vm736_vm0, %v1705_v21, 0.0  ;;  %v1710_v55 = vmul.f32 %v1700_v50, %v1700_v50  ;;  %v1711_v4 = vmul.f32 %v1701_v12, %v1701_v12 }
 0x28c   :  { %v1716_v63 = vadd.f32 %v1715_v37, %v1714_v24  ;;  %v1717_v10 = vsel %vm736_vm0, %v1706_v56, 0.0  ;;  %v1719_v44 = vsel %vm736_vm0, %v1707_v14, 0.0  ;;  %v1721_v23 = vsel %vm736_vm0, %v1708_v28, 0.0 }
 0x28d   :  { %v1723_v19 = vsel %vm736_vm0, %v1709_v45, 0.0  ;;  %v1712_v47 = vmul.f32 %v1702_v17, %v1702_v17  ;;  %v1725_v62 = vsel %vm736_vm0, %v1710_v55, 0.0  ;;  %v1713_v49 = vmul.f32 %v1703_v32, %v1703_v32 }
 0x28e   :  { %v1718_v16 = vadd.f32 %v1717_v10, %v1716_v63  ;;  %v1727_v61 = vsel %vm736_vm0, %v1711_v4, 0.0 }
 0x28f   :  { %v1729_v25 = vsel %vm736_vm0, %v1712_v47, 0.0  ;;  %v1731_v59 = vsel %vm754_vm1, %v1713_v49, 0.0 }
 0x290   :  { %v1720_v48 = vadd.f32 %v1719_v44, %v1718_v16 }
 0x292   :  { %v1722_v60 = vadd.f32 %v1721_v23, %v1720_v48 }
 0x294   :  { %v1724_v30 = vadd.f32 %v1723_v19, %v1722_v60 }
 0x296   :  { %v1726_v53 = vadd.f32 %v1725_v62, %v1724_v30 }
 0x298   :  { %v1728_v6 = vadd.f32 %v1727_v61, %v1726_v53 }
 0x29a   :  { %v1730_v34 = vadd.f32 %v1729_v25, %v1728_v6 }
 0x29c   :  { %v1732_v15 = vadd.f32 %v1731_v59, %v1730_v34 }
 0x29e   :  { %v1733_v35 = vrot.slane %v1732_v15, 4 }
 0x2a0   :  { %v1734_v9 = vadd.f32 %v1733_v35, %v1732_v15 }
 0x2a2   :  { %v1735_v5 = vrot.slane %v1734_v9, 2 }
 0x2a4   :  { %v1736_v26 = vadd.f32 %v1735_v5, %v1734_v9 }
 0x2a6   :  { %v1737_v3 = vrot.slane %v1736_v26, 1 }
 0x2a8   :  { %v1738_v54 = vadd.f32 %v1737_v3, %v1736_v26 }
 0x2aa   :  { %v1739_v27 = vmul.f32 0.012658228, %v1738_v54 }
 0x2ac   :  { %v1740_v42 = vadd.f32 1e-05, %v1739_v27 }
 0x2ae   :  { %2040 = vrsqrt.f32 %v1740_v42 }
 0x2b8   :  { %v2041_v33 = vpop.eup %2040 }
 0x2b9   :  { %v1742_v0 = vmul.f32 %v2041_v33, %v1694_v8  ;;  %v1743_v57 = vmul.f32 %v2041_v33, %v1695_v11  ;;  %v1744_v36 = vmul.f32 %v2041_v33, %v1696_v31  ;;  %v1745_v39 = vmul.f32 %v2041_v33, %v1697_v18 }
 0x2ba   :  { %v1746_v1 = vmul.f32 %v2041_v33, %v1698_v51  ;;  %v1747_v43 = vmul.f32 %v2041_v33, %v1699_v7  ;;  %v1748_v38 = vmul.f32 %v2041_v33, %v1700_v50  ;;  %v1749_v58 = vmul.f32 %v2041_v33, %v1701_v12 }
 0x2bb   :  { %v1750_v2 = vmul.f32 %v2041_v33, %v1702_v17  ;;  %v1751_v22 = vmul.f32 %v2041_v33, %v1703_v32  ;;  %v1759_v40 = vmul.f32 %v3372_v13, %v1742_v0  ;;  %v1760_v20 = vmul.f32 %v3372_v13, %v1743_v57 }
 0x2bc   :  { %v1761_v41 = vmul.f32 %v3372_v13, %v1744_v36  ;;  %v1762_v52 = vmul.f32 %v3372_v13, %v1745_v39  ;;  %v1763_v29 = vmul.f32 %v3372_v13, %v1746_v1  ;;  %v1764_v8 = vmul.f32 %v3372_v13, %v1747_v43 }
 0x2bd   :  { %v1765_v11 = vmul.f32 %v3372_v13, %v1748_v38  ;;  %v1766_v31 = vmul.f32 %v3372_v13, %v1749_v58  ;;  %v1767_v18 = vmul.f32 %v3372_v13, %v1750_v2  ;;  %v1768_v51 = vmul.f32 %v3372_v13, %v1751_v22 }
 0x2be   :  { %v3658_v7 = vadd.f32 %v3392_v46, %v1759_v40  ;;  %v3661_v50 = vadd.f32 %v3392_v46, %v1760_v20  ;;  %v3664_v12 = vadd.f32 %v3392_v46, %v1761_v41  ;;  %v3667_v17 = vadd.f32 %v3392_v46, %v1762_v52 }
 0x2bf   :  { %v3670_v32 = vadd.f32 %v3392_v46, %v1763_v29  ;;  %v3673_v21 = vadd.f32 %v3392_v46, %v1764_v8  ;;  %v3676_v13 = vadd.f32 %v3392_v46, %v1765_v11  ;;  %v3679_v56 = vadd.f32 %v3392_v46, %v1766_v31 }
 0x2c0   :  { %v3682_v14 = vadd.f32 %v3392_v46, %v1767_v18  ;;  %v3685_v24 = vadd.f32 %v3392_v46, %v1768_v51  ;;  %v1786_v37 = vmul.f32 %v3658_v7, %v3658_v7  ;;  %v1787_v63 = vmul.f32 %v3661_v50, %v3661_v50 }
 0x2c1   :  { %v1788_v28 = vmul.f32 %v3664_v12, %v3664_v12  ;;  %v1789_v10 = vmul.f32 %v3667_v17, %v3667_v17  ;;  %v1790_v16 = vmul.f32 %v3670_v32, %v3670_v32  ;;  %v1791_v45 = vmul.f32 %v3673_v21, %v3673_v21 }
 0x2c2   :  { %v1792_v46 = vmul.f32 %v3676_v13, %v3676_v13  ;;  %v1793_v44 = vmul.f32 %v3679_v56, %v3679_v56  ;;  %v1794_v48 = vmul.f32 %v3682_v14, %v3682_v14  ;;  %v1795_v55 = vmul.f32 %v3685_v24, %v3685_v24 }
 0x2c3   :  { %v1796_v23 = vmul.f32 %v1786_v37, %v3658_v7  ;;  %v1797_v60 = vmul.f32 %v1787_v63, %v3661_v50  ;;  %v1798_v4 = vmul.f32 %v1788_v28, %v3664_v12  ;;  %v1799_v19 = vmul.f32 %v1789_v10, %v3667_v17 }
 0x2c4   :  { %v1800_v30 = vmul.f32 %v1790_v16, %v3670_v32  ;;  %v1801_v47 = vmul.f32 %v1791_v45, %v3673_v21  ;;  %v1802_v62 = vmul.f32 %v1792_v46, %v3676_v13  ;;  %v1803_v53 = vmul.f32 %v1793_v44, %v3679_v56 }
 0x2c5   :  { %v1804_v49 = vmul.f32 %v1794_v48, %v3682_v14  ;;  %v1805_v61 = vmul.f32 %v1795_v55, %v3685_v24  ;;  %v1806_v6 = vmul.f32 0.044715, %v1796_v23  ;;  %v1807_v25 = vmul.f32 0.044715, %v1797_v60 }
 0x2c6   :  { %v1808_v34 = vmul.f32 0.044715, %v1798_v4  ;;  %v1809_v59 = vmul.f32 0.044715, %v1799_v19  ;;  %v1810_v15 = vmul.f32 0.044715, %v1800_v30 }
 0x2c7   :  { %v1811_v35 = vmul.f32 0.044715, %v1801_v47  ;;  %v1812_v9 = vmul.f32 0.044715, %v1802_v62  ;;  %v1813_v5 = vmul.f32 0.044715, %v1803_v53  ;;  %v1816_v26 = vadd.f32 %v1806_v6, %v3658_v7 }
 0x2c8   :  { %v1814_v3 = vmul.f32 0.044715, %v1804_v49  ;;  %v1817_v54 = vadd.f32 %v1807_v25, %v3661_v50  ;;  %v1818_v27 = vadd.f32 %v1808_v34, %v3664_v12  ;;  %v1815_v42 = vmul.f32 0.044715, %v1805_v61 }
 0x2c9   :  { %v1819_v33 = vadd.f32 %v1809_v59, %v3667_v17  ;;  %v1820_v0 = vadd.f32 %v1810_v15, %v3670_v32  ;;  %v1821_v57 = vadd.f32 %v1811_v35, %v3673_v21  ;;  %v1822_v36 = vadd.f32 %v1812_v9, %v3676_v13 }
 0x2ca   :  { %v1826_v39 = vmul.f32 0.7978846, %v1816_v26  ;;  %v1823_v1 = vadd.f32 %v1813_v5, %v3679_v56  ;;  %v1827_v43 = vmul.f32 0.7978846, %v1817_v54  ;;  %v1828_v38 = vmul.f32 0.7978846, %v1818_v27 }
 0x2cb   :  { %v1829_v58 = vmul.f32 0.7978846, %v1819_v33  ;;  %v1824_v2 = vadd.f32 %v1814_v3, %v3682_v14  ;;  %v1830_v22 = vmul.f32 0.7978846, %v1820_v0  ;;  %v1825_v40 = vadd.f32 %v1815_v42, %v3685_v24 }
 0x2cc   :  { %2042 = vtanh.f32 %v1826_v39  ;;  %v1831_v20 = vmul.f32 0.7978846, %v1821_v57  ;;  %v1832_v41 = vmul.f32 0.7978846, %v1822_v36  ;;  %v1833_v52 = vmul.f32 0.7978846, %v1823_v1 }
 0x2cd   :  { %2044 = vtanh.f32 %v1827_v43  ;;  %v1834_v29 = vmul.f32 0.7978846, %v1824_v2  ;;  %v1835_v8 = vmul.f32 0.7978846, %v1825_v40 }
 0x2ce   :  { %2046 = vtanh.f32 %v1828_v38 }
 0x2cf   :  { %2048 = vtanh.f32 %v1829_v58 }
 0x2d0   :  { %2050 = vtanh.f32 %v1830_v22 }
 0x2d1   :  { %2052 = vtanh.f32 %v1831_v20 }
 0x2d2   :  { %2054 = vtanh.f32 %v1832_v41 }
 0x2d3   :  { %2056 = vtanh.f32 %v1833_v52 }
 0x2d4   :  { %2058 = vtanh.f32 %v1834_v29 }
 0x2d5   :  { %2060 = vtanh.f32 %v1835_v8 }
 0x2d6   :  { %v2043_v11 = vpop.eup %2042 }
 0x2d7   :  { %v2045_v31 = vpop.eup %2044  ;;  %v1846_v18 = vadd.f32 1.0, %v2043_v11 }
 0x2d8   :  { %v2047_v51 = vpop.eup %2046  ;;  %v1847_v37 = vadd.f32 1.0, %v2045_v31 }
 0x2d9   :  { %v2049_v63 = vpop.eup %2048  ;;  %v1848_v28 = vadd.f32 1.0, %v2047_v51  ;;  %v1856_v10 = vmul.f32 0.5, %v1846_v18 }
 0x2da   :  { %v2051_v16 = vpop.eup %2050  ;;  %v1849_v45 = vadd.f32 1.0, %v2049_v63  ;;  %v1857_v46 = vmul.f32 0.5, %v1847_v37 }
 0x2db   :  { %v2053_v44 = vpop.eup %2052  ;;  %v1850_v48 = vadd.f32 1.0, %v2051_v16  ;;  %v1858_v55 = vmul.f32 0.5, %v1848_v28  ;;  %v1866_v23 = vmul.f32 %v1856_v10, %v3658_v7 }
 0x2dc   :  { %v2055_v60 = vpop.eup %2054  ;;  %v1851_v4 = vadd.f32 1.0, %v2053_v44  ;;  %v1859_v19 = vmul.f32 0.5, %v1849_v45  ;;  %v1867_v30 = vmul.f32 %v1857_v46, %v3661_v50 }
 0x2dd   :  { %v2057_v47 = vpop.eup %2056  ;;  %v1852_v62 = vadd.f32 1.0, %v2055_v60  ;;  %v1860_v53 = vmul.f32 0.5, %v1850_v48  ;;  %v1868_v49 = vmul.f32 %v1858_v55, %v3664_v12  ;;  %1953 = vst.msk [vmem:[%s3781_s4 + $0x50] sm:$0xff] %vm736_vm0, %v1866_v23 }
 0x2de   :  { %v2059_v61 = vpop.eup %2058  ;;  %v1853_v6 = vadd.f32 1.0, %v2057_v47  ;;  %v1861_v25 = vmul.f32 0.5, %v1851_v4  ;;  %v1869_v7 = vmul.f32 %v1859_v19, %v3667_v17  ;;  %1954 = vst.msk [vmem:[%s3781_s4 + $0x58] sm:$0xff] %vm736_vm0, %v1867_v30 }
 0x2df   :  { %v2061_v50 = vpop.eup %2060  ;;  %v1854_v34 = vadd.f32 1.0, %v2059_v61  ;;  %v1862_v59 = vmul.f32 0.5, %v1852_v62  ;;  %v1870_v12 = vmul.f32 %v1860_v53, %v3670_v32  ;;  %1955 = vst.msk [vmem:[%s3781_s4 + $0x60] sm:$0xff] %vm736_vm0, %v1868_v49 }
 0x2e0   :  { %v1855_v15 = vadd.f32 1.0, %v2061_v50  ;;  %v1863_v35 = vmul.f32 0.5, %v1853_v6  ;;  %v1871_v9 = vmul.f32 %v1861_v25, %v3673_v21  ;;  %1956 = vst.msk [vmem:[%s3781_s4 + $0x68] sm:$0xff] %vm736_vm0, %v1869_v7 }
 0x2e1   :  { %v1864_v17 = vmul.f32 0.5, %v1854_v34  ;;  %v1872_v5 = vmul.f32 %v1862_v59, %v3676_v13  ;;  %1957 = vst.msk [vmem:[%s3781_s4 + $0x70] sm:$0xff] %vm736_vm0, %v1870_v12 }
 0x2e2   :  { %v1865_v32 = vmul.f32 0.5, %v1855_v15  ;;  %v1873_v26 = vmul.f32 %v1863_v35, %v3679_v56  ;;  %1958 = vst.msk [vmem:[%s3781_s4 + $0x78] sm:$0xff] %vm736_vm0, %v1871_v9 }
 0x2e3   :  { %v1874_v21 = vmul.f32 %v1864_v17, %v3682_v14  ;;  %1959 = vst.msk [vmem:[%s3781_s4 + $0x80] sm:$0xff] %vm736_vm0, %v1872_v5 }
 0x2e4   :  { %v1875_v13 = vmul.f32 %v1865_v32, %v3685_v24  ;;  %1960 = vst.msk [vmem:[%s3781_s4 + $0x88] sm:$0xff] %vm736_vm0, %v1873_v26 }
 0x2e5   :  { %1961 = vst.msk [vmem:[%s3781_s4 + $0x90] sm:$0xff] %vm736_vm0, %v1874_v21 }
 0x2e6   :  { %1962 = vst.msk [vmem:[%s3781_s4 + $0x98] sm:$0x7f] %vm754_vm1, %v1875_v13 }

// kernel: hubert_forward.12
= control target key start
LH: loop header
LB: loop body
LE: loop exit
PB: predicated region body
PF: predicated region fallthrough
CT: control target
= control target key end

     0   :  { %v2630_v0 = vmov 0.0   ;;  %vm2631_vm0 = vmmov 0   ;;  %vm66_vm1 = vcmask 261120   ;;  %vm145_vm2 = vcmask 64512   ;;  %s2632_s27 = smov 96   ;;  %s2634_s28 = smov 120   ;;  %s3337_s1 = inlined_call_operand.vmem [shape: f32[32,96], index: 1, kind: input, shape index: {}]   ;;  %s3338_s0 = inlined_call_operand.vmem [shape: f32[38,32], index: 0, kind: input, shape index: {}]   ;;  %s3339_s2 = inlined_call_operand.vmem [shape: f32[1,96], index: 2, kind: input, shape index: {}]   ;;  %s3340_s3 = inlined_call_operand.vmem [shape: f32[32,32], index: 3, kind: input, shape index: {}]   ;;  %s3341_s4 = inlined_call_operand.vmem [shape: f32[1,32], index: 4, kind: input, shape index: {}]   ;;  %s3342_s7 = inlined_call_operand.vmem [shape: f32[32,64], index: 7, kind: input, shape index: {}]   ;;  %s3343_s5 = inlined_call_operand.vmem [shape: f32[1,32], index: 5, kind: input, shape index: {}]   ;;  %s3344_s6 = inlined_call_operand.vmem [shape: f32[1,32], index: 6, kind: input, shape index: {}]   ;;  %s3345_s9 = inlined_call_operand.vmem [shape: f32[64,32], index: 9, kind: input, shape index: {}]   ;;  %s3346_s8 = inlined_call_operand.vmem [shape: f32[1,64], index: 8, kind: input, shape index: {}]   ;;  %s3347_s10 = inlined_call_operand.vmem [shape: f32[1,32], index: 10, kind: input, shape index: {}]   ;;  %s3348_s11 = inlined_call_operand.vmem [shape: f32[1,32], index: 11, kind: input, shape index: {}]   ;;  %s3349_s12 = inlined_call_operand.vmem [shape: f32[1,32], index: 12, kind: input, shape index: {}]   ;;  %s3350_s13 = inlined_call_operand.vmem [shape: f32[38,32], index: 13, kind: output, shape index: {}]  }
   0x1   :  { %2240 = vmatprep.subr.bf16.mxu1 %v2630_v0  ;;  %v50_v1 = vld [vmem:[%s3337_s1] sm:$0xff]  ;;  %v51_v2 = vld [vmem:[%s3337_s1 + $0x8] sm:$0xff]  ;;  %v52_v3 = vld [vmem:[%s3337_s1 + $0x10] sm:$0xff]  ;;  %2244 = vmatprep.mubr.msk.bf16.mxu1 %vm2631_vm0, %v2630_v0  ;;  %s2635_s29 = smov 80   ;;  %s2636_s30 = smov 112   ;;  %vm206_vm4 = vcmask 154624  }
   0x2   :  { %v57_v4 = vpack.c.bf16 %v51_v2, %v50_v1  ;;  %v53_v5 = vld [vmem:[%s3337_s1 + $0x18] sm:$0xff]  ;;  %v45_v7 = vld [vmem:[%s3338_s0] sm:$0xff]  ;;  %v46_v8 = vld [vmem:[%s3338_s0 + $0x8] sm:$0xff]  ;;  %vm859_vm3 = vsmask.f32 6400  ;;  %vm213_vm5 = vcmask 149504  }
   0x3   :  { %v58_v6 = vpack.c.bf16 %v53_v5, %v52_v3  ;;  %v54_v9 = vpack.c.bf16 %v46_v8, %v45_v7  ;;  %v47_v10 = vld [vmem:[%s3338_s0 + $0x10] sm:$0xff]  ;;  %v48_v11 = vld [vmem:[%s3338_s0 + $0x18] sm:$0xff]  ;;  %v49_v13 = vld [vmem:[%s3338_s0 + $0x20] sm:$0x3f]  ;;  %s2637_s14 = smov 64   ;;  %s2638_s15 = smov 56  }
   0x4   :  { %2241 = vmatpush3.bf16.msra.mxu1 %v57_v4  ;;  %v55_v12 = vpack.c.bf16 %v48_v11, %v47_v10  ;;  %v56_v14 = vpack.c.bf16 %v49_v13, %v49_v13  ;;  %v2102_v15 = vld [vmem:[%s3339_s2] ss:$0 sm:$0xff]  ;;  %s2633_s2 = smov 88   ;;  %vm254_vm6 = vcmask 1040384   ;;  %vm255_vm7 = vcmask 1041408   ;;  %s2640_s16 = smov 48  }
   0x5   :  { %2242 = vmatprep.subr.bf16.mxu1 %v2630_v0  ;;  %s2641_s17 = smov 72   ;;  %s2642_s18 = smov 104   ;;  %vm845_vm8 = vcmask 130048   ;;  %vm849_vm9 = vcmask 195584   ;;  %vm1598_vm10 = vcmask 1042432   ;;  %vm1708_vm11 = vcmask 259072  }
   0x6   :  { %s2643_s19 = smov 40   ;;  %s2644_s1 = smov 8   ;;  %vm1933_vm12 = vcmask 523264  }
   0x7   :  { %s2645_s20 = smov 16   ;;  %s2646_s21 = smov 24  }
   0x8   :  { %2243 = vmatpush3.bf16.msra.mxu1 %v58_v6 }
   0xb   :  { %2245 = vmatmul.mubr.msk.bf16.vlgmr.msra.gmra.mrb[0].mxu1 %vm66_vm1, %v54_v9 }
   0xc   :  { %2248 = vmatprep.mubr.msk.bf16.mxu1 %vm2631_vm0, %v2630_v0 }
  0x13   :  { %2249 = vmatmul.mubr.msk.bf16.gmra.mrb[4].mxu1 %vm66_vm1, %v55_v12 }
  0x14   :  { %2252 = vmatprep.mubr.msk.bf16.mxu1 %vm2631_vm0, %v2630_v0 }
  0x1b   :  { %2253 = vmatmul.mubr.msk.bf16.gmra.mrb[8].mxu1 %vm66_vm1, %v56_v14 }
  0xde   :  { %v110_v16 = vpop.f32.mrb[0].mxu1 }
  0xdf   :  { %v111_v17 = vadd.f32 %v2102_v15, %v110_v16  ;;  %v2246_v18 = vpop.f32.mrb[1].mxu1 }
  0xe0   :  { %v113_v19 = vpop.f32.mrb[2].mxu1 }
  0xe1   :  { %v114_v20 = vadd.f32 %v2102_v15, %v113_v19  ;;  %v2247_v21 = vpop.f32.mrb[3].mxu1  ;;  %v132_v22 = vmul.f32 0.35355338, %v111_v17 }
  0xe3   :  { %v133_v23 = vmul.f32 0.35355338, %v114_v20  ;;  %v2758_v24 = vpack.c.bf16 %v114_v20, %v111_v17 }
  0xe5   :  { %v2760_v25 = vpack.c.bf16 %v133_v23, %v132_v22  ;;  %141 = vrot.lane.b32.xlu0 %v2758_v24, %s2632_s27 }
  0xe6   :  { %v118_v26 = vpop.f32.mrb[4].mxu1 }
  0xe7   :  { %v119_v27 = vadd.f32 %v2102_v15, %v118_v26  ;;  %2260 = vmatprep.mubr.msk.bf16.mxu1 %vm145_vm2, %v2760_v25  ;;  %v2250_v28 = vpop.f32.mrb[5].mxu1 }
  0xe8   :  { %v121_v29 = vpop.f32.mrb[6].mxu1 }
  0xe9   :  { %v134_v30 = vmul.f32 0.35355338, %v119_v27  ;;  %v2766_v31 = vpack.c.bf16 %v119_v27, %v119_v27  ;;  %315 = vrot.lane.b32.xlu0 %v2758_v24, %s2633_s2  ;;  %v122_v32 = vadd.f32 %v2102_v15, %v121_v29  ;;  %v2251_v33 = vpop.f32.mrb[7].mxu1 }
  0xeb   :  { %143 = vrot.lane.b32.xlu1 %v2766_v31, %s2632_s27  ;;  %v853_v34 = vmul.f32 0.35355338, %v122_v32  ;;  %v2772_v35 = vpack.c.bf16 %v122_v32, %v119_v27  ;;  %v2776_v38 = vpack.c.bf16 %v134_v30, %v134_v30 }
  0xed   :  { %v855_v36 = vpack.c.bf16 %v853_v34, %v134_v30  ;;  %311 = vrot.lane.b32.xlu0 %v2760_v25, %s2634_s28 }
  0xee   :  { %v126_v37 = vpop.f32.mrb[8].mxu1 }
  0xef   :  { %317 = vrot.lane.b32.xlu1 %v2766_v31, %s2633_s2  ;;  %v2254_v39 = vpop.f32.mrb[9].mxu1  ;;  %v2780_v40 = vadd.f32 %v2102_v15, %v126_v37  ;;  %v861_v43 = vshrl.u32 %v855_v36, 16  ;;  %v864_v44 = vshll.u32 %v855_v36, 16 }
  0xf0   :  { %v129_v41 = vpop.f32.mrb[10].mxu1 }
  0xf1   :  { %313 = vrot.lane.b32.xlu0 %v2776_v38, %s2634_s28  ;;  %v2255_v42 = vpop.f32.mrb[11].mxu1  ;;  %v854_v45 = vmul.f32 0.35355338, %v2780_v40  ;;  %v863_v47 = vrot.slane %v861_v43, 1  ;;  %v866_v48 = vrot.slane %v864_v44, 2 }
  0xf3   :  { %480 = vrot.lane.b32.xlu1 %v2758_v24, %s2635_s29  ;;  %v856_v46 = vpack.c.bf16 %v854_v45, %v854_v45  ;;  %v867_v54 = vor.u32 %v866_v48, %v863_v47 }
  0xf5   :  { %476 = vrot.lane.b32.xlu0 %v2760_v25, %s2636_s30  ;;  %v869_v49 = vshrl.u32 %v856_v46, 16  ;;  %v872_v50 = vshll.u32 %v856_v46, 16 }
  0xf7   :  { %482 = vrot.lane.b32.xlu1 %v2766_v31, %s2635_s29  ;;  %v871_v51 = vrot.slane %v869_v49, 1  ;;  %v874_v52 = vrot.slane %v872_v50, 2 }
  0xf9   :  { %v2791_v53 = vor.u32 %v874_v52, %v871_v51 }
  0xfb   :  { %478 = vrot.lane.b32.xlu1 %v2776_v38, %s2636_s30  ;;  %v2797_v55 = vsel %vm859_vm3, %v867_v54, %v2791_v53 }
 0x157   :  { %v142_v56 = vpop.permute.xlu0 %141 }
 0x158   :  { %2436 = vmatprep.subr.msk.bf16.mxu1 %vm145_vm2, %v142_v56  ;;  %v153_v57 = vsel %vm145_vm2, %v142_v56, 0 }
 0x159   :  { %2257 = vmatpush3.bf16.xpose.msra.mxu1 %v153_v57 }
 0x15b   :  { %v316_v58 = vpop.permute.xlu0 %315 }
 0x15c   :  { %2438 = vmatprep.subr.msk.bf16.mxu0 %vm145_vm2, %v316_v58  ;;  %v326_v59 = vsel %vm145_vm2, %v316_v58, 0 }
 0x15d   :  { %2273 = vmatpush3.bf16.xpose.msra.mxu0 %v326_v59  ;;  %v144_v60 = vpop.permute.xlu1 %143 }
 0x15e   :  { %2437 = vmatprep.subr.msk.bf16.mxu1 %vm145_vm2, %v144_v60  ;;  %v156_v61 = vsel %vm145_vm2, %v144_v60, 0  ;;  %v2639_v60 = vmov 65535  }
 0x15f   :  { %v312_v62 = vpop.permute.xlu0 %311 }
 0x160   :  { %2276 = vmatprep.mubr.msk.bf16.mxu0 %vm145_vm2, %v312_v62 }
 0x161   :  { %2259 = vmatpush3.bf16.xpose.msra.mxu1 %v156_v61  ;;  %v318_v63 = vpop.permute.xlu1 %317  ;;  %v256_v61 = vsel %vm254_vm6, 4294967295, %v2639_v60 }
 0x162   :  { %2439 = vmatprep.subr.msk.bf16.mxu0 %vm145_vm2, %v318_v63  ;;  %v329_v1 = vsel %vm145_vm2, %v318_v63, 0 }
 0x163   :  { %v314_v3 = vpop.permute.xlu0 %313 }
 0x165   :  { %2275 = vmatpush3.bf16.xpose.msra.mxu0 %v329_v1  ;;  %v481_v2 = vpop.permute.xlu1 %480 }
 0x166   :  { %2440 = vmatprep.subr.msk.bf16.mxu0 %vm145_vm2, %v481_v2  ;;  %v491_v5 = vsel %vm145_vm2, %v481_v2, 0 }
 0x167   :  { %v477_v4 = vpop.permute.xlu0 %476 }
 0x168   :  { %2261 = vmatmul.mubr.msk.bf16.vlgmr.msra.gmra.mrb[12].mxu1 %vm145_vm2, %v2776_v38 }
 0x169   :  { %v483_v6 = vpop.permute.xlu1 %482 }
 0x16a   :  { %v494_v7 = vsel %vm145_vm2, %v483_v6, 0 }
 0x16c   :  { %2277 = vmatmul.mubr.msk.bf16.vlgmr.msra.gmra.mrb[0].mxu0 %vm145_vm2, %v314_v3  ;;  %v2846_v3 = vsel %vm255_vm7, %v256_v61, 0 }
 0x16d   :  { %2289 = vmatpush3.bf16.xpose.msra.mxu0 %v491_v5  ;;  %2292 = vmatprep.mubr.msk.bf16.mxu0 %vm145_vm2, %v477_v4  ;;  %v479_v8 = vpop.permute.xlu1 %478 }
 0x16e   :  { %2441 = vmatprep.subr.msk.bf16.mxu0 %vm145_vm2, %v483_v6 }
 0x175   :  { %2291 = vmatpush3.bf16.xpose.msra.mxu0 %v494_v7 }
 0x17c   :  { %2293 = vmatmul.mubr.msk.bf16.vlgmr.msra.gmra.mrb[4].mxu0 %vm145_vm2, %v479_v8 }
 0x23b   :  { %v2262_v9 = vpop.f32.mrb[12].mxu1 }
 0x23c   :  { %v192_v10 = vpop.f32.mrb[13].mxu1  ;;  %v214_v18 = vsel %vm213_vm5, %v2262_v9, -inf }
 0x23d   :  { %v2263_v11 = vpop.f32.mrb[14].mxu1  ;;  %v207_v12 = vsel %vm206_vm4, %v192_v10, -inf }
 0x23e   :  { %208 = vmax.xlane.f32.xlu0 %v207_v12  ;;  %v195_v13 = vpop.f32.mrb[15].mxu1 }
 0x23f   :  { %v2278_v14 = vpop.f32.mrb[0].mxu0  ;;  %v210_v15 = vsel %vm206_vm4, %v195_v13, -inf }
 0x240   :  { %v365_v16 = vpop.f32.mrb[1].mxu0  ;;  %211 = vmax.xlane.f32.xlu1 %v210_v15  ;;  %v385_v22 = vsel %vm213_vm5, %v2278_v14, -inf }
 0x241   :  { %v2279_v17 = vpop.f32.mrb[2].mxu0  ;;  %v379_v21 = vsel %vm206_vm4, %v365_v16, -inf }
 0x242   :  { %v2820_v19 = vpop.f32.mrb[3].mxu0  ;;  %215 = vmax.xlane.f32.xlu0 %v214_v18 }
 0x243   :  { %v382_v20 = vsel %vm206_vm4, %v2820_v19, -inf }
 0x244   :  { %383 = vmax.xlane.f32.xlu1 %v382_v20 }
 0x246   :  { %380 = vmax.xlane.f32.xlu0 %v379_v21 }
 0x24a   :  { %386 = vmax.xlane.f32.xlu0 %v385_v22 }
 0x24f   :  { %v2294_v23 = vpop.f32.mrb[4].mxu0 }
 0x250   :  { %v530_v26 = vpop.f32.mrb[5].mxu0  ;;  %v550_v27 = vsel %vm213_vm5, %v2294_v23, -inf }
 0x251   :  { %v2295_v28 = vpop.f32.mrb[6].mxu0  ;;  %551 = vmax.xlane.f32.xlu1 %v550_v27  ;;  %v544_v30 = vsel %vm206_vm4, %v530_v26, -inf }
 0x252   :  { %v2827_v29 = vpop.f32.mrb[7].mxu0 }
 0x253   :  { %v547_v32 = vsel %vm206_vm4, %v2827_v29, -inf }
 0x255   :  { %545 = vmax.xlane.f32.xlu1 %v544_v30 }
 0x260   :  { %243 = vrot.lane.b32.xlu0 %v2758_v24, %s2637_s14 }
 0x266   :  { %245 = vrot.lane.b32.xlu1 %v2766_v31, %s2637_s14 }
 0x27f   :  { %548 = vmax.xlane.f32.xlu0 %v547_v32 }
 0x295   :  { %414 = vrot.lane.b32.xlu0 %v2758_v24, %s2638_s15 }
 0x2cb   :  { %v209_v33 = vpop.xlane.xlu0 %208 }
 0x2cc   :  { %v217_v34 = vsub.f32 %v192_v10, %v209_v33 }
 0x2cd   :  { %v212_v43 = vpop.xlane.xlu1 %211 }
 0x2ce   :  { %v220_v39 = vmul.f32 1.442695, %v217_v34  ;;  %v218_v47 = vsub.f32 %v195_v13, %v212_v43 }
 0x2cf   :  { %v216_v36 = vpop.xlane.xlu0 %215 }
 0x2d0   :  { %v219_v37 = vsub.f32 %v2262_v9, %v216_v36  ;;  %v222_v54 = vmul.f32 1.442695, %v218_v47 }
 0x2d1   :  { %v384_v48 = vpop.xlane.xlu1 %383 }
 0x2d2   :  { %v224_v41 = vmul.f32 1.442695, %v219_v37  ;;  %v389_v17 = vsub.f32 %v2820_v19, %v384_v48 }
 0x2d3   :  { %v381_v42 = vpop.xlane.xlu0 %380 }
 0x2d4   :  { %2499 = vpow2.f32 %v224_v41  ;;  %v388_v44 = vsub.f32 %v365_v16, %v381_v42  ;;  %v393_v18 = vmul.f32 1.442695, %v389_v17 }
 0x2d5   :  { %2501 = vpow2.f32 %v220_v39 }
 0x2d6   :  { %v391_v49 = vmul.f32 1.442695, %v388_v44 }
 0x2d7   :  { %v387_v45 = vpop.xlane.xlu0 %386 }
 0x2d8   :  { %v390_v46 = vsub.f32 %v2278_v14, %v387_v45 }
 0x2da   :  { %v395_v50 = vmul.f32 1.442695, %v390_v46 }
 0x2db   :  { %v244_v51 = vpop.permute.xlu0 %243 }
 0x2dc   :  { %2503 = vpow2.f32 %v395_v50  ;;  %2264 = vmatprep.subr.bf16.mxu1 %v244_v51 }
 0x2dd   :  { %2265 = vmatpush3.bf16.msra.mxu1 %v244_v51  ;;  %2505 = vpow2.f32 %v391_v49 }
 0x2de   :  { %v2838_v52 = vpop.eup %2499  ;;  %v552_v56 = vpop.xlane.xlu1 %551  ;;  %2507 = vpow2.f32 %v222_v54 }
 0x2df   :  { %v555_v57 = vsub.f32 %v2294_v23, %v552_v56  ;;  %v232_v58 = vsel %vm213_vm5, %v2838_v52, 0.0  ;;  %v2842_v59 = vpop.eup %2501 }
 0x2e0   :  { %233 = vadd.xlane.f32.xlu0 %v232_v58  ;;  %v226_v2 = vsel %vm206_vm4, %v2842_v59, 0.0 }
 0x2e1   :  { %v560_v62 = vmul.f32 1.442695, %v555_v57 }
 0x2e2   :  { %v546_v63 = vpop.xlane.xlu1 %545 }
 0x2e3   :  { %v553_v1 = vsub.f32 %v530_v26, %v546_v63  ;;  %2509 = vpow2.f32 %v560_v62 }
 0x2e4   :  { %227 = vadd.xlane.f32.xlu0 %v226_v2 }
 0x2e5   :  { %v556_v5 = vmul.f32 1.442695, %v553_v1 }
 0x2e6   :  { %v2848_v4 = vpop.eup %2503  ;;  %v246_v6 = vpop.permute.xlu1 %245 }
 0x2e7   :  { %v259_v7 = vand.u32 %v2846_v3, %v246_v6  ;;  %v403_v8 = vsel %vm213_vm5, %v2848_v4, 0.0  ;;  %v2853_v9 = vpop.eup %2505  ;;  %2511 = vpow2.f32 %v556_v5 }
 0x2e8   :  { %404 = vadd.xlane.f32.xlu1 %v403_v8  ;;  %v397_v10 = vsel %vm206_vm4, %v2853_v9, 0.0  ;;  %v2508_v11 = vpop.eup %2507  ;;  %2513 = vpow2.f32 %v393_v18 }
 0x2e9   :  { %2266 = vmatprep.subr.bf16.mxu1 %v259_v7  ;;  %v229_v12 = vsel %vm206_vm4, %v2508_v11, 0.0 }
 0x2ea   :  { %2267 = vmatpush3.bf16.msra.mxu1 %v259_v7 }
 0x2ec   :  { %398 = vadd.xlane.f32.xlu1 %v397_v10 }
 0x2ed   :  { %v2858_v13 = vpop.eup %2509 }
 0x2ee   :  { %v568_v14 = vsel %vm213_vm5, %v2858_v13, 0.0 }
 0x2f0   :  { %230 = vadd.xlane.f32.xlu1 %v229_v12 }
 0x2f1   :  { %v2862_v15 = vpop.eup %2511 }
 0x2f2   :  { %v562_v16 = vsel %vm206_vm4, %v2862_v15, 0.0  ;;  %v2514_v26 = vpop.eup %2513 }
 0x2f3   :  { %v400_v27 = vsel %vm206_vm4, %v2514_v26, 0.0 }
 0x2f4   :  { %569 = vadd.xlane.f32.xlu1 %v568_v14 }
 0x2f8   :  { %563 = vadd.xlane.f32.xlu1 %v562_v16 }
 0x2fa   :  { %416 = vrot.lane.b32.xlu0 %v2766_v31, %s2638_s15 }
 0x30c   :  { %v549_v20 = vpop.xlane.xlu0 %548 }
 0x30d   :  { %v554_v21 = vsub.f32 %v2827_v29, %v549_v20 }
 0x30f   :  { %v558_v22 = vmul.f32 1.442695, %v554_v21 }
 0x310   :  { %v415_v23 = vpop.permute.xlu0 %414 }
 0x311   :  { %2515 = vpow2.f32 %v558_v22  ;;  %2280 = vmatprep.subr.bf16.mxu1 %v415_v23 }
 0x319   :  { %401 = vadd.xlane.f32.xlu0 %v400_v27 }
 0x31b   :  { %v2516_v28 = vpop.eup %2515 }
 0x31c   :  { %v565_v30 = vsel %vm206_vm4, %v2516_v28, 0.0 }
 0x31d   :  { %566 = vadd.xlane.f32.xlu1 %v565_v30 }
 0x32e   :  { %581 = vrot.lane.b32.xlu1 %v2766_v31, %s2640_s16 }
 0x32f   :  { %579 = vrot.lane.b32.xlu0 %v2758_v24, %s2640_s16 }
 0x332   :  { %647 = vrot.lane.b32.xlu1 %v2766_v31, %s2641_s17 }
 0x333   :  { %645 = vrot.lane.b32.xlu0 %v2758_v24, %s2641_s17 }
 0x336   :  { %643 = vrot.lane.b32.xlu1 %v2776_v38, %s2642_s18 }
 0x337   :  { %641 = vrot.lane.b32.xlu0 %v2760_v25, %s2642_s18 }
 0x36d   :  { %v234_v19 = vpop.xlane.xlu0 %233 }
 0x36e   :  { %2517 = vrcp.f32 %v234_v19 }
 0x371   :  { %v228_v32 = vpop.xlane.xlu0 %227 }
 0x372   :  { %2519 = vrcp.f32 %v228_v32 }
 0x375   :  { %v405_v29 = vpop.xlane.xlu1 %404  ;;  %v417_v38 = vpop.permute.xlu0 %416 }
 0x376   :  { %v426_v25 = vand.u32 %v417_v38, %v2846_v3 }
 0x378   :  { %v2518_v36 = vpop.eup %2517 }
 0x379   :  { %v399_v33 = vpop.xlane.xlu1 %398  ;;  %v240_v41 = vmul.f32 %v2518_v36, %v2838_v52 }
 0x37b   :  { %v242_v45 = vpack.c.bf16 %v240_v41, %v240_v41 }
 0x37c   :  { %v2520_v37 = vpop.eup %2519 }
 0x37d   :  { %v231_v34 = vpop.xlane.xlu1 %230  ;;  %v238_v42 = vmul.f32 %v2520_v37, %v2842_v59 }
 0x37e   :  { %2521 = vrcp.f32 %v231_v34 }
 0x37f   :  { %2523 = vrcp.f32 %v405_v29 }
 0x380   :  { %2525 = vrcp.f32 %v399_v33 }
 0x381   :  { %v570_v46 = vpop.xlane.xlu1 %569 }
 0x385   :  { %v564_v47 = vpop.xlane.xlu1 %563 }
 0x388   :  { %v2522_v39 = vpop.eup %2521 }
 0x389   :  { %v239_v43 = vmul.f32 %v2522_v39, %v2508_v11  ;;  %v2524_v51 = vpop.eup %2523 }
 0x38a   :  { %v2526_v52 = vpop.eup %2525  ;;  %v411_v56 = vmul.f32 %v2524_v51, %v2848_v4 }
 0x38b   :  { %v241_v44 = vpack.c.bf16 %v239_v43, %v238_v42  ;;  %v409_v57 = vmul.f32 %v2526_v52, %v2853_v9 }
 0x38c   :  { %v413_v63 = vpack.c.bf16 %v411_v56, %v411_v56 }
 0x38d   :  { %2268 = vmatprep.mubr.msk.bf16.mxu1 %vm206_vm4, %v241_v44 }
 0x38e   :  { %2269 = vmatmul.mubr.msk.bf16.vlgmr.msra.gmra.mrb[16].mxu1 %vm206_vm4, %v242_v45 }
 0x38f   :  { %2281 = vmatpush3.bf16.msra.mxu1 %v415_v23 }
 0x390   :  { %2282 = vmatprep.subr.bf16.mxu1 %v426_v25 }
 0x393   :  { %2283 = vmatpush3.bf16.msra.mxu1 %v426_v25 }
 0x3a6   :  { %v402_v48 = vpop.xlane.xlu0 %401 }
 0x3a7   :  { %2527 = vrcp.f32 %v402_v48 }
 0x3a8   :  { %2529 = vrcp.f32 %v564_v47 }
 0x3aa   :  { %v580_v49 = vpop.permute.xlu0 %579  ;;  %v567_v50 = vpop.xlane.xlu1 %566 }
 0x3ab   :  { %2531 = vrcp.f32 %v567_v50  ;;  %2296 = vmatprep.subr.bf16.mxu1 %v580_v49 }
 0x3ac   :  { %2533 = vrcp.f32 %v570_v46 }
 0x3ae   :  { %v582_v60 = vpop.permute.xlu1 %581  ;;  %v646_v8 = vpop.permute.xlu0 %645 }
 0x3af   :  { %v591_v6 = vand.u32 %v582_v60, %v2846_v3  ;;  %v656_v11 = vsel %vm145_vm2, %v646_v8, 0  ;;  %v878_v60 = vshrl.u32 %v2772_v35, 16 }
 0x3b1   :  { %v2528_v54 = vpop.eup %2527 }
 0x3b2   :  { %v410_v58 = vmul.f32 %v2528_v54, %v2514_v26  ;;  %v2530_v59 = vpop.eup %2529  ;;  %v642_v10 = vpop.permute.xlu0 %641 }
 0x3b3   :  { %v574_v2 = vmul.f32 %v2530_v59, %v2862_v15  ;;  %v648_v12 = vpop.permute.xlu1 %647 }
 0x3b4   :  { %v412_v61 = vpack.c.bf16 %v410_v58, %v409_v57 }
 0x3b5   :  { %v2532_v62 = vpop.eup %2531 }
 0x3b6   :  { %v2534_v1 = vpop.eup %2533  ;;  %2284 = vmatprep.mubr.msk.bf16.mxu1 %vm206_vm4, %v412_v61  ;;  %v575_v5 = vmul.f32 %v2532_v62, %v2516_v28  ;;  %v881_v61 = vshll.u32 %v2772_v35, 16 }
 0x3b7   :  { %2285 = vmatmul.mubr.msk.bf16.vlgmr.msra.gmra.mrb[20].mxu1 %vm206_vm4, %v413_v63  ;;  %v576_v7 = vmul.f32 %v2534_v1, %v2858_v13  ;;  %v659_v13 = vsel %vm145_vm2, %v648_v12, 0  ;;  %v644_v14 = vpop.permute.xlu1 %643  ;;  %v880_v1 = vrot.slane %v878_v60, 1 }
 0x3b8   :  { %2297 = vmatpush3.bf16.msra.mxu1 %v580_v49  ;;  %v577_v4 = vpack.c.bf16 %v575_v5, %v574_v2  ;;  %v883_v2 = vrot.slane %v881_v61, 2 }
 0x3b9   :  { %2298 = vmatprep.subr.bf16.mxu1 %v591_v6  ;;  %v578_v9 = vpack.c.bf16 %v576_v7, %v576_v7 }
 0x3ba   :  { %2300 = vmatprep.mubr.msk.bf16.mxu1 %vm206_vm4, %v577_v4 }
 0x3bc   :  { %2299 = vmatpush3.bf16.msra.mxu1 %v591_v6 }
 0x3bd   :  { %2442 = vmatprep.subr.msk.bf16.mxu1 %vm145_vm2, %v646_v8 }
 0x3bf   :  { %2301 = vmatmul.mubr.msk.bf16.vlgmr.msra.gmra.mrb[24].mxu1 %vm206_vm4, %v578_v9 }
 0x3c0   :  { %2308 = vmatprep.mubr.msk.bf16.mxu1 %vm145_vm2, %v642_v10 }
 0x3c5   :  { %2305 = vmatpush3.bf16.xpose.msra.mxu1 %v656_v11 }
 0x3c6   :  { %2443 = vmatprep.subr.msk.bf16.mxu1 %vm145_vm2, %v648_v12 }
 0x3cd   :  { %2307 = vmatpush3.bf16.xpose.msra.mxu1 %v659_v13 }
 0x3d4   :  { %2309 = vmatmul.mubr.msk.bf16.vlgmr.msra.gmra.mrb[28].mxu1 %vm145_vm2, %v644_v14 }
 0x461   :  { %v2904_v15 = vpop.f32.mrb[16].mxu1 }
 0x462   :  { %v2906_v16 = vpop.f32.mrb[17].mxu1 }
 0x463   :  { %v2271_v17 = vpop.f32.mrb[18].mxu1 }
 0x464   :  { %v2908_v18 = vpop.f32.mrb[19].mxu1 }
 0x48a   :  { %v2910_v20 = vpop.f32.mrb[20].mxu1 }
 0x48b   :  { %v2912_v21 = vpop.f32.mrb[21].mxu1 }
 0x48c   :  { %v2287_v22 = vpop.f32.mrb[22].mxu1 }
 0x48d   :  { %v2914_v23 = vpop.f32.mrb[23].mxu1 }
 0x48e   :  { %v2469_v26 = vpack.i.bf16 %v2914_v23, %v2912_v21 }
 0x492   :  { %v2918_v27 = vpop.f32.mrb[24].mxu1 }
 0x493   :  { %v2920_v28 = vpop.f32.mrb[25].mxu1 }
 0x494   :  { %v2303_v30 = vpop.f32.mrb[26].mxu1 }
 0x495   :  { %v2922_v19 = vpop.f32.mrb[27].mxu1 }
 0x496   :  { %v2474_v29 = vpack.i.bf16 %v2922_v19, %v2920_v28 }
 0x4a7   :  { %v2310_v32 = vpop.f32.mrb[28].mxu1 }
 0x4a8   :  { %v695_v33 = vpop.f32.mrb[29].mxu1  ;;  %v715_v41 = vsel %vm213_vm5, %v2310_v32, -inf }
 0x4a9   :  { %v2311_v34 = vpop.f32.mrb[30].mxu1  ;;  %v709_v36 = vsel %vm206_vm4, %v695_v33, -inf }
 0x4aa   :  { %710 = vmax.xlane.f32.xlu0 %v709_v36  ;;  %v698_v37 = vpop.f32.mrb[31].mxu1 }
 0x4ab   :  { %v712_v39 = vsel %vm206_vm4, %v698_v37, -inf }
 0x4ac   :  { %713 = vmax.xlane.f32.xlu1 %v712_v39 }
 0x4ae   :  { %716 = vmax.xlane.f32.xlu0 %v715_v41 }
 0x4bd   :  { %744 = vrot.lane.b32.xlu1 %v2758_v24, %s2643_s19  ;;  %v858_v24 = vpack.c.bf16 %v2780_v40, %v2780_v40  ;;  %v884_v40 = vor.u32 %v883_v2, %v880_v1 }
 0x4bf   :  { %v886_v57 = vshrl.u32 %v858_v24, 16  ;;  %v889_v58 = vshll.u32 %v858_v24, 16 }
 0x4c1   :  { %v888_v62 = vrot.slane %v886_v57, 1  ;;  %v891_v63 = vrot.slane %v889_v58, 2 }
 0x4c3   :  { %v2938_v5 = vor.u32 %v891_v63, %v888_v62 }
 0x4c5   :  { %v2942_v6 = vsel %vm859_vm3, %v884_v40, %v2938_v5 }
 0x537   :  { %v711_v42 = vpop.xlane.xlu0 %710 }
 0x538   :  { %v718_v38 = vsub.f32 %v695_v33, %v711_v42 }
 0x539   :  { %v714_v43 = vpop.xlane.xlu1 %713 }
 0x53a   :  { %v719_v44 = vsub.f32 %v698_v37, %v714_v43  ;;  %v721_v48 = vmul.f32 1.442695, %v718_v38 }
 0x53b   :  { %v717_v45 = vpop.xlane.xlu0 %716 }
 0x53c   :  { %v723_v25 = vmul.f32 1.442695, %v719_v44  ;;  %v720_v46 = vsub.f32 %v2310_v32, %v717_v45 }
 0x53d   :  { %v745_v47 = vpop.permute.xlu1 %744 }
 0x53e   :  { %2535 = vpow2.f32 %v723_v25  ;;  %v725_v49 = vmul.f32 1.442695, %v720_v46  ;;  %2312 = vmatprep.subr.bf16.mxu0 %v745_v47 }
 0x53f   :  { %2313 = vmatpush3.bf16.msra.mxu0 %v745_v47 }
 0x540   :  { %2537 = vpow2.f32 %v725_v49 }
 0x541   :  { %2539 = vpow2.f32 %v721_v48 }
 0x548   :  { %v2536_v50 = vpop.eup %2535 }
 0x549   :  { %v730_v51 = vsel %vm206_vm4, %v2536_v50, 0.0 }
 0x54a   :  { %v2538_v52 = vpop.eup %2537  ;;  %731 = vadd.xlane.f32.xlu1 %v730_v51 }
 0x54b   :  { %v733_v54 = vsel %vm213_vm5, %v2538_v52, 0.0  ;;  %v2540_v56 = vpop.eup %2539 }
 0x54c   :  { %734 = vadd.xlane.f32.xlu0 %v733_v54  ;;  %v727_v59 = vsel %vm206_vm4, %v2540_v56, 0.0 }
 0x550   :  { %728 = vadd.xlane.f32.xlu0 %v727_v59 }
 0x55b   :  { %894 = vrot.lane.b32.xlu1 %v2942_v6, %s2632_s27 }
 0x55f   :  { %896 = vrot.lane.b32.xlu1 %v2938_v5, %s2632_s27 }
 0x566   :  { %746 = vrot.lane.b32.xlu0 %v2766_v31, %s2643_s19 }
 0x5d7   :  { %v732_v35 = vpop.xlane.xlu1 %731 }
 0x5d9   :  { %v735_v4 = vpop.xlane.xlu0 %734 }
 0x5da   :  { %2541 = vrcp.f32 %v735_v4 }
 0x5db   :  { %2543 = vrcp.f32 %v732_v35  ;;  %v895_v11 = vpop.permute.xlu1 %894 }
 0x5dc   :  { %v905_v32 = vsel %vm145_vm2, %v895_v11, 0 }
 0x5dd   :  { %v729_v7 = vpop.xlane.xlu0 %728 }
 0x5de   :  { %2545 = vrcp.f32 %v729_v7 }
 0x5df   :  { %v897_v33 = vpop.permute.xlu1 %896 }
 0x5e0   :  { %v908_v34 = vsel %vm145_vm2, %v897_v33, 0 }
 0x5e1   :  { %v747_v8 = vpop.permute.xlu0 %746 }
 0x5e2   :  { %v756_v9 = vand.u32 %v747_v8, %v2846_v3 }
 0x5e4   :  { %2314 = vmatprep.subr.bf16.mxu0 %v756_v9  ;;  %v2542_v10 = vpop.eup %2541 }
 0x5e5   :  { %2315 = vmatpush3.bf16.msra.mxu0 %v756_v9  ;;  %v2544_v12 = vpop.eup %2543  ;;  %v741_v14 = vmul.f32 %v2542_v10, %v2538_v52 }
 0x5e6   :  { %2444 = vmatprep.subr.msk.bf16.mxu0 %vm145_vm2, %v895_v11  ;;  %v740_v31 = vmul.f32 %v2544_v12, %v2536_v50 }
 0x5e7   :  { %v743_v30 = vpack.c.bf16 %v741_v14, %v741_v14 }
 0x5e8   :  { %v2546_v13 = vpop.eup %2545 }
 0x5e9   :  { %v739_v17 = vmul.f32 %v2546_v13, %v2540_v56 }
 0x5eb   :  { %v742_v22 = vpack.c.bf16 %v740_v31, %v739_v17 }
 0x5ed   :  { %2316 = vmatprep.mubr.msk.bf16.mxu0 %vm206_vm4, %v742_v22 }
 0x5ee   :  { %2317 = vmatmul.mubr.msk.bf16.vlgmr.msra.gmra.mrb[8].mxu0 %vm206_vm4, %v743_v30 }
 0x5ef   :  { %2321 = vmatpush3.bf16.xpose.msra.mxu0 %v905_v32  ;;  %2324 = vmatprep.mubr.msk.bf16.mxu0 %vm145_vm2, %v2797_v55 }
 0x5f0   :  { %2445 = vmatprep.subr.msk.bf16.mxu0 %vm145_vm2, %v897_v33 }
 0x5f7   :  { %2323 = vmatpush3.bf16.xpose.msra.mxu0 %v908_v34 }
 0x5fe   :  { %2325 = vmatmul.mubr.msk.bf16.vlgmr.msra.gmra.mrb[12].mxu0 %vm145_vm2, %v2791_v53 }
 0x6c1   :  { %v2961_v36 = vpop.f32.mrb[8].mxu0 }
 0x6c2   :  { %v2963_v37 = vpop.f32.mrb[9].mxu0 }
 0x6c3   :  { %v2319_v39 = vpop.f32.mrb[10].mxu0 }
 0x6c4   :  { %v2965_v41 = vpop.f32.mrb[11].mxu0 }
 0x6c5   :  { %v2479_v42 = vpack.i.bf16 %v2965_v41, %v2963_v37 }
 0x6d1   :  { %v2326_v43 = vpop.f32.mrb[12].mxu0 }
 0x6d2   :  { %v944_v38 = vpop.f32.mrb[13].mxu0  ;;  %v964_v47 = vsel %vm213_vm5, %v2326_v43, -inf }
 0x6d3   :  { %v2327_v44 = vpop.f32.mrb[14].mxu0  ;;  %v958_v45 = vsel %vm206_vm4, %v944_v38, -inf }
 0x6d4   :  { %959 = vmax.xlane.f32.xlu0 %v958_v45  ;;  %v947_v25 = vpop.f32.mrb[15].mxu0 }
 0x6d5   :  { %v961_v46 = vsel %vm206_vm4, %v947_v25, -inf }
 0x6d6   :  { %962 = vmax.xlane.f32.xlu1 %v961_v46 }
 0x6d8   :  { %965 = vmax.xlane.f32.xlu0 %v964_v47 }
 0x6e7   :  { %993 = vrot.lane.b32.xlu1 %v2942_v6, %s2637_s14 }
 0x761   :  { %v960_v48 = vpop.xlane.xlu0 %959 }
 0x762   :  { %v967_v50 = vsub.f32 %v944_v38, %v960_v48 }
 0x763   :  { %v963_v49 = vpop.xlane.xlu1 %962 }
 0x764   :  { %v968_v51 = vsub.f32 %v947_v25, %v963_v49  ;;  %v970_v57 = vmul.f32 1.442695, %v967_v50 }
 0x765   :  { %v966_v52 = vpop.xlane.xlu0 %965 }
 0x766   :  { %v972_v24 = vmul.f32 1.442695, %v968_v51  ;;  %v969_v54 = vsub.f32 %v2326_v43, %v966_v52 }
 0x767   :  { %v994_v56 = vpop.permute.xlu1 %993 }
 0x768   :  { %2547 = vpow2.f32 %v972_v24  ;;  %v974_v58 = vmul.f32 1.442695, %v969_v54  ;;  %2328 = vmatprep.subr.bf16.mxu1 %v994_v56 }
 0x769   :  { %2329 = vmatpush3.bf16.msra.mxu1 %v994_v56 }
 0x76a   :  { %2549 = vpow2.f32 %v974_v58 }
 0x76b   :  { %2551 = vpow2.f32 %v970_v57 }
 0x772   :  { %v2548_v59 = vpop.eup %2547 }
 0x773   :  { %v979_v60 = vsel %vm206_vm4, %v2548_v59, 0.0 }
 0x774   :  { %v2550_v61 = vpop.eup %2549  ;;  %980 = vadd.xlane.f32.xlu1 %v979_v60 }
 0x775   :  { %v982_v62 = vsel %vm213_vm5, %v2550_v61, 0.0  ;;  %v2552_v63 = vpop.eup %2551 }
 0x776   :  { %983 = vadd.xlane.f32.xlu0 %v982_v62  ;;  %v976_v1 = vsel %vm206_vm4, %v2552_v63, 0.0 }
 0x77a   :  { %977 = vadd.xlane.f32.xlu0 %v976_v1 }
 0x785   :  { %1059 = vrot.lane.b32.xlu1 %v2942_v6, %s2633_s2 }
 0x789   :  { %1061 = vrot.lane.b32.xlu1 %v2938_v5, %s2633_s2 }
 0x78d   :  { %1057 = vrot.lane.b32.xlu1 %v2791_v53, %s2634_s28 }
 0x790   :  { %995 = vrot.lane.b32.xlu0 %v2938_v5, %s2637_s14 }
 0x794   :  { %1055 = vrot.lane.b32.xlu0 %v2797_v55, %s2634_s28 }
 0x801   :  { %v981_v2 = vpop.xlane.xlu1 %980 }
 0x803   :  { %v984_v40 = vpop.xlane.xlu0 %983 }
 0x804   :  { %2553 = vrcp.f32 %v984_v40 }
 0x805   :  { %2555 = vrcp.f32 %v981_v2  ;;  %v1060_v9 = vpop.permute.xlu1 %1059 }
 0x806   :  { %v1070_v22 = vsel %vm145_vm2, %v1060_v9, 0 }
 0x807   :  { %v978_v35 = vpop.xlane.xlu0 %977 }
 0x808   :  { %2557 = vrcp.f32 %v978_v35 }
 0x809   :  { %v1062_v32 = vpop.permute.xlu1 %1061 }
 0x80a   :  { %v1073_v33 = vsel %vm145_vm2, %v1062_v32, 0 }
 0x80b   :  { %v996_v4 = vpop.permute.xlu0 %995 }
 0x80c   :  { %v1005_v7 = vand.u32 %v996_v4, %v2846_v3 }
 0x80d   :  { %v1058_v34 = vpop.permute.xlu1 %1057 }
 0x80e   :  { %2330 = vmatprep.subr.bf16.mxu1 %v1005_v7  ;;  %v2554_v8 = vpop.eup %2553 }
 0x80f   :  { %2331 = vmatpush3.bf16.msra.mxu1 %v1005_v7  ;;  %v2556_v10 = vpop.eup %2555  ;;  %v990_v12 = vmul.f32 %v2554_v8, %v2550_v61  ;;  %v1056_v30 = vpop.permute.xlu0 %1055 }
 0x810   :  { %2446 = vmatprep.subr.msk.bf16.mxu1 %vm145_vm2, %v1060_v9  ;;  %v989_v14 = vmul.f32 %v2556_v10, %v2548_v59 }
 0x811   :  { %v992_v31 = vpack.c.bf16 %v990_v12, %v990_v12 }
 0x812   :  { %v2558_v11 = vpop.eup %2557 }
 0x813   :  { %v988_v13 = vmul.f32 %v2558_v11, %v2552_v63 }
 0x815   :  { %v991_v17 = vpack.c.bf16 %v989_v14, %v988_v13 }
 0x817   :  { %2332 = vmatprep.mubr.msk.bf16.mxu1 %vm206_vm4, %v991_v17 }
 0x818   :  { %2333 = vmatmul.mubr.msk.bf16.vlgmr.msra.gmra.mrb[32].mxu1 %vm206_vm4, %v992_v31 }
 0x819   :  { %2337 = vmatpush3.bf16.xpose.msra.mxu1 %v1070_v22  ;;  %2340 = vmatprep.mubr.msk.bf16.mxu1 %vm145_vm2, %v1056_v30 }
 0x81a   :  { %2447 = vmatprep.subr.msk.bf16.mxu1 %vm145_vm2, %v1062_v32 }
 0x821   :  { %2339 = vmatpush3.bf16.xpose.msra.mxu1 %v1073_v33 }
 0x828   :  { %2341 = vmatmul.mubr.msk.bf16.vlgmr.msra.gmra.mrb[36].mxu1 %vm145_vm2, %v1058_v34 }
 0x8eb   :  { %v2996_v39 = vpop.f32.mrb[32].mxu1 }
 0x8ec   :  { %v2998_v43 = vpop.f32.mrb[33].mxu1 }
 0x8ed   :  { %v2335_v38 = vpop.f32.mrb[34].mxu1 }
 0x8ee   :  { %v3000_v44 = vpop.f32.mrb[35].mxu1 }
 0x8fb   :  { %v2342_v45 = vpop.f32.mrb[36].mxu1 }
 0x8fc   :  { %v1109_v25 = vpop.f32.mrb[37].mxu1  ;;  %v1129_v50 = vsel %vm213_vm5, %v2342_v45, -inf }
 0x8fd   :  { %v2343_v46 = vpop.f32.mrb[38].mxu1  ;;  %v1123_v47 = vsel %vm206_vm4, %v1109_v25, -inf }
 0x8fe   :  { %1124 = vmax.xlane.f32.xlu0 %v1123_v47  ;;  %v1112_v48 = vpop.f32.mrb[39].mxu1 }
 0x8ff   :  { %v1126_v49 = vsel %vm206_vm4, %v1112_v48, -inf }
 0x900   :  { %1127 = vmax.xlane.f32.xlu1 %v1126_v49 }
 0x902   :  { %1130 = vmax.xlane.f32.xlu0 %v1129_v50 }
 0x911   :  { %1158 = vrot.lane.b32.xlu1 %v2942_v6, %s2638_s15 }
 0x98b   :  { %v1125_v51 = vpop.xlane.xlu0 %1124 }
 0x98c   :  { %v1132_v24 = vsub.f32 %v1109_v25, %v1125_v51 }
 0x98d   :  { %v1128_v52 = vpop.xlane.xlu1 %1127 }
 0x98e   :  { %v1133_v54 = vsub.f32 %v1112_v48, %v1128_v52  ;;  %v1135_v60 = vmul.f32 1.442695, %v1132_v24 }
 0x98f   :  { %v1131_v56 = vpop.xlane.xlu0 %1130 }
 0x990   :  { %v1137_v57 = vmul.f32 1.442695, %v1133_v54  ;;  %v1134_v58 = vsub.f32 %v2342_v45, %v1131_v56 }
 0x991   :  { %v1159_v59 = vpop.permute.xlu1 %1158 }
 0x992   :  { %2559 = vpow2.f32 %v1137_v57  ;;  %v1139_v61 = vmul.f32 1.442695, %v1134_v58  ;;  %2344 = vmatprep.subr.bf16.mxu0 %v1159_v59 }
 0x993   :  { %2345 = vmatpush3.bf16.msra.mxu0 %v1159_v59 }
 0x994   :  { %2561 = vpow2.f32 %v1139_v61 }
 0x995   :  { %2563 = vpow2.f32 %v1135_v60 }
 0x99c   :  { %v2560_v62 = vpop.eup %2559 }
 0x99d   :  { %v1144_v63 = vsel %vm206_vm4, %v2560_v62, 0.0 }
 0x99e   :  { %v2562_v1 = vpop.eup %2561  ;;  %1145 = vadd.xlane.f32.xlu1 %v1144_v63 }
 0x99f   :  { %v1147_v2 = vsel %vm213_vm5, %v2562_v1, 0.0  ;;  %v2564_v40 = vpop.eup %2563 }
 0x9a0   :  { %1148 = vadd.xlane.f32.xlu0 %v1147_v2  ;;  %v1141_v35 = vsel %vm206_vm4, %v2564_v40, 0.0 }
 0x9a4   :  { %1142 = vadd.xlane.f32.xlu0 %v1141_v35 }
 0x9af   :  { %1224 = vrot.lane.b32.xlu1 %v2942_v6, %s2635_s29 }
 0x9b3   :  { %1226 = vrot.lane.b32.xlu1 %v2938_v5, %s2635_s29 }
 0x9b7   :  { %1222 = vrot.lane.b32.xlu1 %v2791_v53, %s2636_s30 }
 0x9ba   :  { %1160 = vrot.lane.b32.xlu0 %v2938_v5, %s2638_s15 }
 0x9be   :  { %1220 = vrot.lane.b32.xlu0 %v2797_v55, %s2636_s30 }
 0xa2b   :  { %v1146_v4 = vpop.xlane.xlu1 %1145 }
 0xa2d   :  { %v1149_v7 = vpop.xlane.xlu0 %1148 }
 0xa2e   :  { %2565 = vrcp.f32 %v1149_v7 }
 0xa2f   :  { %2567 = vrcp.f32 %v1146_v4  ;;  %v1225_v12 = vpop.permute.xlu1 %1224 }
 0xa30   :  { %v1235_v33 = vsel %vm145_vm2, %v1225_v12, 0 }
 0xa31   :  { %v1143_v8 = vpop.xlane.xlu0 %1142 }
 0xa32   :  { %2569 = vrcp.f32 %v1143_v8 }
 0xa33   :  { %v1227_v38 = vpop.permute.xlu1 %1226 }
 0xa34   :  { %v1238_v45 = vsel %vm145_vm2, %v1227_v38, 0 }
 0xa35   :  { %v1161_v9 = vpop.permute.xlu0 %1160 }
 0xa36   :  { %v1170_v10 = vand.u32 %v1161_v9, %v2846_v3 }
 0xa37   :  { %v1223_v25 = vpop.permute.xlu1 %1222 }
 0xa38   :  { %2346 = vmatprep.subr.bf16.mxu0 %v1170_v10  ;;  %v2566_v11 = vpop.eup %2565 }
 0xa39   :  { %2347 = vmatpush3.bf16.msra.mxu0 %v1170_v10  ;;  %v2568_v13 = vpop.eup %2567  ;;  %v1155_v17 = vmul.f32 %v2566_v11, %v2562_v1  ;;  %v1221_v34 = vpop.permute.xlu0 %1220 }
 0xa3a   :  { %2448 = vmatprep.subr.msk.bf16.mxu0 %vm145_vm2, %v1225_v12  ;;  %v1154_v22 = vmul.f32 %v2568_v13, %v2560_v62 }
 0xa3b   :  { %v1157_v32 = vpack.c.bf16 %v1155_v17, %v1155_v17 }
 0xa3c   :  { %v2570_v14 = vpop.eup %2569 }
 0xa3d   :  { %v1153_v31 = vmul.f32 %v2570_v14, %v2564_v40 }
 0xa3f   :  { %v1156_v30 = vpack.c.bf16 %v1154_v22, %v1153_v31 }
 0xa41   :  { %2348 = vmatprep.mubr.msk.bf16.mxu0 %vm206_vm4, %v1156_v30 }
 0xa42   :  { %2349 = vmatmul.mubr.msk.bf16.vlgmr.msra.gmra.mrb[16].mxu0 %vm206_vm4, %v1157_v32 }
 0xa43   :  { %2353 = vmatpush3.bf16.xpose.msra.mxu0 %v1235_v33  ;;  %2356 = vmatprep.mubr.msk.bf16.mxu0 %vm145_vm2, %v1221_v34 }
 0xa44   :  { %2449 = vmatprep.subr.msk.bf16.mxu0 %vm145_vm2, %v1227_v38 }
 0xa4b   :  { %2355 = vmatpush3.bf16.xpose.msra.mxu0 %v1238_v45 }
 0xa52   :  { %2357 = vmatmul.mubr.msk.bf16.vlgmr.msra.gmra.mrb[20].mxu0 %vm145_vm2, %v1223_v25 }
 0xb15   :  { %v3029_v46 = vpop.f32.mrb[16].mxu0 }
 0xb16   :  { %v3031_v47 = vpop.f32.mrb[17].mxu0 }
 0xb17   :  { %v2351_v48 = vpop.f32.mrb[18].mxu0 }
 0xb18   :  { %v3033_v49 = vpop.f32.mrb[19].mxu0 }
 0xb19   :  { %v2484_v50 = vpack.i.bf16 %v3033_v49, %v3031_v47 }
 0xb25   :  { %v2358_v51 = vpop.f32.mrb[20].mxu0 }
 0xb26   :  { %v1274_v52 = vpop.f32.mrb[21].mxu0  ;;  %v1294_v58 = vsel %vm213_vm5, %v2358_v51, -inf }
 0xb27   :  { %v2359_v24 = vpop.f32.mrb[22].mxu0  ;;  %v1288_v54 = vsel %vm206_vm4, %v1274_v52, -inf }
 0xb28   :  { %1289 = vmax.xlane.f32.xlu0 %v1288_v54  ;;  %v1277_v56 = vpop.f32.mrb[23].mxu0 }
 0xb29   :  { %v1291_v57 = vsel %vm206_vm4, %v1277_v56, -inf }
 0xb2a   :  { %1292 = vmax.xlane.f32.xlu1 %v1291_v57 }
 0xb2c   :  { %1295 = vmax.xlane.f32.xlu0 %v1294_v58 }
 0xb3b   :  { %1323 = vrot.lane.b32.xlu1 %v2942_v6, %s2640_s16 }
 0xbb5   :  { %v1290_v59 = vpop.xlane.xlu0 %1289 }
 0xbb6   :  { %v1297_v61 = vsub.f32 %v1274_v52, %v1290_v59 }
 0xbb7   :  { %v1293_v60 = vpop.xlane.xlu1 %1292 }
 0xbb8   :  { %v1298_v62 = vsub.f32 %v1277_v56, %v1293_v60  ;;  %v1300_v35 = vmul.f32 1.442695, %v1297_v61 }
 0xbb9   :  { %v1296_v63 = vpop.xlane.xlu0 %1295 }
 0xbba   :  { %v1302_v1 = vmul.f32 1.442695, %v1298_v62  ;;  %v1299_v2 = vsub.f32 %v2358_v51, %v1296_v63 }
 0xbbb   :  { %v1324_v40 = vpop.permute.xlu1 %1323 }
 0xbbc   :  { %2571 = vpow2.f32 %v1302_v1  ;;  %v1304_v4 = vmul.f32 1.442695, %v1299_v2  ;;  %2360 = vmatprep.subr.bf16.mxu1 %v1324_v40 }
 0xbbd   :  { %2361 = vmatpush3.bf16.msra.mxu1 %v1324_v40 }
 0xbbe   :  { %2573 = vpow2.f32 %v1304_v4 }
 0xbbf   :  { %2575 = vpow2.f32 %v1300_v35 }
 0xbc6   :  { %v2572_v7 = vpop.eup %2571 }
 0xbc7   :  { %v1309_v8 = vsel %vm206_vm4, %v2572_v7, 0.0 }
 0xbc8   :  { %v2574_v9 = vpop.eup %2573  ;;  %1310 = vadd.xlane.f32.xlu1 %v1309_v8 }
 0xbc9   :  { %v1312_v10 = vsel %vm213_vm5, %v2574_v9, 0.0  ;;  %v2576_v11 = vpop.eup %2575 }
 0xbca   :  { %1313 = vadd.xlane.f32.xlu0 %v1312_v10  ;;  %v1306_v12 = vsel %vm206_vm4, %v2576_v11, 0.0 }
 0xbce   :  { %1307 = vadd.xlane.f32.xlu0 %v1306_v12 }
 0xbd9   :  { %1389 = vrot.lane.b32.xlu1 %v2942_v6, %s2641_s17 }
 0xbdd   :  { %1391 = vrot.lane.b32.xlu1 %v2938_v5, %s2641_s17 }
 0xbe1   :  { %1387 = vrot.lane.b32.xlu1 %v2791_v53, %s2642_s18 }
 0xbe4   :  { %1325 = vrot.lane.b32.xlu0 %v2938_v5, %s2640_s16 }
 0xbe8   :  { %1385 = vrot.lane.b32.xlu0 %v2797_v55, %s2642_s18 }
 0xc55   :  { %v1311_v13 = vpop.xlane.xlu1 %1310 }
 0xc57   :  { %v1314_v14 = vpop.xlane.xlu0 %1313 }
 0xc58   :  { %2577 = vrcp.f32 %v1314_v14 }
 0xc59   :  { %2579 = vrcp.f32 %v1311_v13  ;;  %v1390_v32 = vpop.permute.xlu1 %1389 }
 0xc5a   :  { %v1400_v48 = vsel %vm145_vm2, %v1390_v32, 0 }
 0xc5b   :  { %v1308_v17 = vpop.xlane.xlu0 %1307 }
 0xc5c   :  { %2581 = vrcp.f32 %v1308_v17 }
 0xc5d   :  { %v1392_v52 = vpop.permute.xlu1 %1391 }
 0xc5e   :  { %v1403_v24 = vsel %vm145_vm2, %v1392_v52, 0 }
 0xc5f   :  { %v1326_v31 = vpop.permute.xlu0 %1325 }
 0xc60   :  { %v1335_v22 = vand.u32 %v1326_v31, %v2846_v3 }
 0xc61   :  { %v1388_v54 = vpop.permute.xlu1 %1387 }
 0xc62   :  { %2362 = vmatprep.subr.bf16.mxu1 %v1335_v22  ;;  %v2578_v30 = vpop.eup %2577 }
 0xc63   :  { %2363 = vmatpush3.bf16.msra.mxu1 %v1335_v22  ;;  %v2580_v53 = vpop.eup %2579  ;;  %v1320_v34 = vmul.f32 %v2578_v30, %v2574_v9  ;;  %v1386_v51 = vpop.permute.xlu0 %1385 }
 0xc64   :  { %2450 = vmatprep.subr.msk.bf16.mxu1 %vm145_vm2, %v1390_v32  ;;  %v1319_v55 = vmul.f32 %v2580_v53, %v2572_v7 }
 0xc65   :  { %v1322_v25 = vpack.c.bf16 %v1320_v34, %v1320_v34 }
 0xc66   :  { %v2582_v33 = vpop.eup %2581 }
 0xc67   :  { %v1318_v38 = vmul.f32 %v2582_v33, %v2576_v11 }
 0xc69   :  { %v1321_v45 = vpack.c.bf16 %v1319_v55, %v1318_v38 }
 0xc6b   :  { %2364 = vmatprep.mubr.msk.bf16.mxu1 %vm206_vm4, %v1321_v45 }
 0xc6c   :  { %2365 = vmatmul.mubr.msk.bf16.vlgmr.msra.gmra.mrb[40].mxu1 %vm206_vm4, %v1322_v25 }
 0xc6d   :  { %2369 = vmatpush3.bf16.xpose.msra.mxu1 %v1400_v48  ;;  %2372 = vmatprep.mubr.msk.bf16.mxu1 %vm145_vm2, %v1386_v51  ;;  %v1609_v48 = vld [vmem:[%s3340_s3 + $0x8] sm:$0xff] }
 0xc6e   :  { %2451 = vmatprep.subr.msk.bf16.mxu1 %vm145_vm2, %v1392_v52 }
 0xc75   :  { %2371 = vmatpush3.bf16.xpose.msra.mxu1 %v1403_v24 }
 0xc76   :  { %2400 = vmatprep.subr.bf16.mxu1 %v2630_v0 }
 0xc7c   :  { %2373 = vmatmul.mubr.msk.bf16.vlgmr.msra.gmra.mrb[44].mxu1 %vm145_vm2, %v1388_v54 }
 0xc7d   :  { %2404 = vmatprep.mubr.msk.bf16.mxu1 %vm2631_vm0, %v2630_v0 }
 0xd3f   :  { %v3067_v56 = vpop.f32.mrb[40].mxu1 }
 0xd40   :  { %v1371_v57 = vpop.f32.mrb[41].mxu1 }
 0xd41   :  { %v2367_v58 = vpop.f32.mrb[42].mxu1 }
 0xd42   :  { %v1374_v59 = vpop.f32.mrb[43].mxu1 }
 0xd43   :  { %v2489_v60 = vpack.i.bf16 %v1374_v59, %v1371_v57  ;;  %v1610_v59 = vld [vmem:[%s3340_s3 + $0x10] sm:$0xff] }
 0xd4f   :  { %v2374_v61 = vpop.f32.mrb[44].mxu1 }
 0xd50   :  { %v1439_v62 = vpop.f32.mrb[45].mxu1  ;;  %v1459_v35 = vsel %vm213_vm5, %v2374_v61, -inf }
 0xd51   :  { %v2375_v63 = vpop.f32.mrb[46].mxu1  ;;  %v1453_v1 = vsel %vm206_vm4, %v1439_v62, -inf }
 0xd52   :  { %1454 = vmax.xlane.f32.xlu0 %v1453_v1  ;;  %v1442_v2 = vpop.f32.mrb[47].mxu1 }
 0xd53   :  { %v1456_v40 = vsel %vm206_vm4, %v1442_v2, -inf }
 0xd54   :  { %1457 = vmax.xlane.f32.xlu1 %v1456_v40 }
 0xd56   :  { %1460 = vmax.xlane.f32.xlu0 %v1459_v35 }
 0xddf   :  { %v1455_v4 = vpop.xlane.xlu0 %1454 }
 0xde0   :  { %v1462_v8 = vsub.f32 %v1439_v62, %v1455_v4 }
 0xde1   :  { %v1458_v7 = vpop.xlane.xlu1 %1457 }
 0xde2   :  { %v1463_v9 = vsub.f32 %v1442_v2, %v1458_v7  ;;  %v1465_v13 = vmul.f32 1.442695, %v1462_v8 }
 0xde3   :  { %v1461_v10 = vpop.xlane.xlu0 %1460 }
 0xde4   :  { %v1467_v11 = vmul.f32 1.442695, %v1463_v9  ;;  %v1464_v12 = vsub.f32 %v2374_v61, %v1461_v10  ;;  %v3138_v9 = vld [vmem:[%s3341_s4] ss:$0 sm:$0xff] }
 0xde6   :  { %2583 = vpow2.f32 %v1467_v11  ;;  %v1469_v14 = vmul.f32 1.442695, %v1464_v12  ;;  %v2625_v11 = vld [vmem:[%s3338_s0 + $0x8] sm:$0xff] }
 0xde8   :  { %2585 = vpow2.f32 %v1469_v14 }
 0xde9   :  { %2587 = vpow2.f32 %v1465_v13 }
 0xdf0   :  { %v2584_v17 = vpop.eup %2583 }
 0xdf1   :  { %v1474_v31 = vsel %vm206_vm4, %v2584_v17, 0.0 }
 0xdf2   :  { %v2586_v22 = vpop.eup %2585  ;;  %1475 = vadd.xlane.f32.xlu1 %v1474_v31 }
 0xdf3   :  { %v1477_v30 = vsel %vm213_vm5, %v2586_v22, 0.0  ;;  %v2588_v32 = vpop.eup %2587 }
 0xdf4   :  { %1478 = vadd.xlane.f32.xlu0 %v1477_v30  ;;  %v1471_v53 = vsel %vm206_vm4, %v2588_v32, 0.0 }
 0xdf8   :  { %1472 = vadd.xlane.f32.xlu0 %v1471_v53 }
 0xe03   :  { %1488 = vrot.lane.b32.xlu1 %v2942_v6, %s2643_s19 }
 0xe07   :  { %2470 = vrot.lane.b32.xlu1 %v2469_v26, %s2644_s1 }
 0xe0b   :  { %2475 = vrot.lane.b32.xlu1 %v2474_v29, %s2645_s20 }
 0xe0e   :  { %1490 = vrot.lane.b32.xlu0 %v2938_v5, %s2643_s19 }
 0xe0f   :  { %2485 = vrot.lane.b32.xlu1 %v2484_v50, %s2644_s1 }
 0xe12   :  { %2480 = vrot.lane.b32.xlu0 %v2479_v42, %s2646_s21 }
 0xe13   :  { %813 = vrot.lane.b32.xlu1 %v2910_v20, %s2644_s1 }
 0xe16   :  { %2490 = vrot.lane.b32.xlu0 %v2489_v60, %s2645_s20  ;;  %v1611_v60 = vld [vmem:[%s3340_s3 + $0x18] sm:$0xff] }
 0xe17   :  { %825 = vrot.lane.b32.xlu1 %v2918_v27, %s2645_s20  ;;  %v1616_v61 = vpack.c.bf16 %v1611_v60, %v1610_v59  ;;  %v2627_v59 = vld [vmem:[%s3338_s0 + $0x10] sm:$0xff] }
 0xe1b   :  { %1557 = vrot.lane.b32.xlu1 %v3029_v46, %s2644_s1 }
 0xe7f   :  { %v1476_v21 = vpop.xlane.xlu1 %1475 }
 0xe81   :  { %v1479_v23 = vpop.xlane.xlu0 %1478 }
 0xe82   :  { %2589 = vrcp.f32 %v1479_v23 }
 0xe83   :  { %v1489_v26 = vpop.permute.xlu1 %1488  ;;  %2591 = vrcp.f32 %v1476_v21 }
 0xe84   :  { %2376 = vmatprep.subr.bf16.mxu0 %v1489_v26 }
 0xe85   :  { %v1473_v28 = vpop.xlane.xlu0 %1472  ;;  %2377 = vmatpush3.bf16.msra.mxu0 %v1489_v26 }
 0xe86   :  { %2593 = vrcp.f32 %v1473_v28 }
 0xe87   :  { %v2471_v19 = vpop.permute.xlu1 %2470 }
 0xe88   :  { %v2473_v29 = vunpack.i.h.bf16 %v2471_v19  ;;  %v2472_v5 = vunpack.i.l.bf16 %v2471_v19 }
 0xe89   :  { %v1491_v20 = vpop.permute.xlu0 %1490 }
 0xe8a   :  { %v1500_v6 = vand.u32 %v1491_v20, %v2846_v3  ;;  %v843_v46 = vsel %vm145_vm2, %v2908_v18, %v2473_v29  ;;  %v842_v47 = vsel %vm145_vm2, %v2906_v16, %v2472_v5  ;;  %v1608_v16 = vld [vmem:[%s3340_s3] sm:$0xff] }
 0xe8b   :  { %v2476_v37 = vpop.permute.xlu1 %2475  ;;  %v1615_v57 = vpack.c.bf16 %v1609_v48, %v1608_v16 }
 0xe8c   :  { %v2478_v27 = vunpack.i.h.bf16 %v2476_v37  ;;  %v2477_v41 = vunpack.i.l.bf16 %v2476_v37  ;;  %2378 = vmatprep.subr.bf16.mxu0 %v1500_v6  ;;  %v2590_v42 = vpop.eup %2589 }
 0xe8d   :  { %v2481_v49 = vpop.permute.xlu0 %2480  ;;  %2379 = vmatpush3.bf16.msra.mxu0 %v1500_v6  ;;  %v2592_v50 = vpop.eup %2591  ;;  %v1485_v45 = vmul.f32 %v2590_v42, %v2586_v22 }
 0xe8e   :  { %v846_v33 = vsel %vm845_vm8, %v842_v47, %v2477_v41  ;;  %v847_v3 = vsel %vm845_vm8, %v843_v46, %v2478_v27  ;;  %v2483_v34 = vunpack.i.h.bf16 %v2481_v49  ;;  %v2482_v38 = vunpack.i.l.bf16 %v2481_v49  ;;  %2384 = vmatprep.subr.bf16.mxu0 %v2630_v0 }
 0xe8f   :  { %v1484_v24 = vmul.f32 %v2592_v50, %v2584_v17  ;;  %v1487_v58 = vpack.c.bf16 %v1485_v45, %v1485_v45  ;;  %v2486_v31 = vpop.permute.xlu1 %2485 }
 0xe90   :  { %v2594_v55 = vpop.eup %2593  ;;  %v850_v25 = vsel %vm849_vm9, %v846_v33, %v2482_v38  ;;  %v851_v18 = vsel %vm849_vm9, %v847_v3, %v2483_v34  ;;  %v2488_v30 = vunpack.i.h.bf16 %v2486_v31 }
 0xe91   :  { %v1612_v51 = vpack.c.bf16 %v851_v18, %v850_v25  ;;  %v1483_v52 = vmul.f32 %v2594_v55, %v2588_v32  ;;  %v2487_v32 = vunpack.i.l.bf16 %v2486_v31  ;;  %v2491_v53 = vpop.permute.xlu0 %2490 }
 0xe92   :  { %v2493_v21 = vunpack.i.h.bf16 %v2491_v53  ;;  %v2492_v23 = vunpack.i.l.bf16 %v2491_v53  ;;  %v1587_v26 = vsel %vm145_vm2, %v3000_v44, %v2488_v30  ;;  %v1785_v30 = vld [vmem:[%s3342_s7] sm:$0xff] }
 0xe93   :  { %v1486_v54 = vpack.c.bf16 %v1484_v24, %v1483_v52  ;;  %v814_v22 = vpop.permute.xlu1 %813  ;;  %v1586_v28 = vsel %vm145_vm2, %v2998_v43, %v2487_v32  ;;  %v1786_v32 = vld [vmem:[%s3342_s7 + $0x8] sm:$0xff] }
 0xe94   :  { %v1589_v6 = vsel %vm845_vm8, %v1586_v28, %v2492_v23  ;;  %v1590_v37 = vsel %vm845_vm8, %v1587_v26, %v2493_v21  ;;  %v844_v27 = vsel %vm145_vm2, %v2904_v15, %v814_v22  ;;  %v1792_v53 = vpack.c.bf16 %v1786_v32, %v1785_v30  ;;  %v1787_v21 = vld [vmem:[%s3342_s7 + $0x10] sm:$0xff]  ;;  %v1788_v23 = vld [vmem:[%s3342_s7 + $0x18] sm:$0xff] }
 0xe95   :  { %2380 = vmatprep.mubr.msk.bf16.mxu0 %vm206_vm4, %v1486_v54  ;;  %v1793_v26 = vpack.c.bf16 %v1788_v23, %v1787_v21 }
 0xe96   :  { %2381 = vmatmul.mubr.msk.bf16.vlgmr.msra.gmra.mrb[24].mxu0 %vm206_vm4, %v1487_v58  ;;  %2401 = vmatpush3.bf16.msra.mxu1 %v1792_v53 }
 0xe97   :  { %2385 = vmatpush3.bf16.msra.mxu0 %v1615_v57  ;;  %2388 = vmatprep.mubr.msk.bf16.mxu0 %vm2631_vm0, %v2630_v0  ;;  %v826_v19 = vpop.permute.xlu1 %825 }
 0xe98   :  { %2386 = vmatprep.subr.bf16.mxu0 %v2630_v0  ;;  %v848_v44 = vsel %vm845_vm8, %v844_v27, %v826_v19  ;;  %2402 = vmatprep.subr.bf16.mxu1 %v2630_v0 }
 0xe9a   :  { %2403 = vmatpush3.bf16.msra.mxu1 %v1793_v26 }
 0xe9b   :  { %2387 = vmatpush3.bf16.msra.mxu0 %v1616_v61  ;;  %v1558_v49 = vpop.permute.xlu1 %1557 }
 0xe9c   :  { %2416 = vmatprep.subr.bf16.mxu0 %v2630_v0  ;;  %v1588_v15 = vsel %vm145_vm2, %v2996_v39, %v1558_v49 }
 0xe9e   :  { %2389 = vmatmul.mubr.msk.bf16.vlgmr.msra.gmra.mrb[28].mxu0 %vm66_vm1, %v1612_v51 }
 0xe9f   :  { %2392 = vmatprep.mubr.msk.bf16.mxu0 %vm2631_vm0, %v2630_v0 }
 0xf69   :  { %v2382_v62 = vpop.f32.mrb[24].mxu0 }
 0xf6a   :  { %1581 = vrot.lane.b32.xlu1 %v2382_v62, %s2646_s21  ;;  %v1536_v63 = vpop.f32.mrb[25].mxu0 }
 0xf6b   :  { %v2383_v1 = vpop.f32.mrb[26].mxu0 }
 0xf6c   :  { %v1539_v2 = vpop.f32.mrb[27].mxu0 }
 0xf6d   :  { %v2494_v40 = vpack.i.bf16 %v1539_v2, %v1536_v63  ;;  %v2628_v2 = vld [vmem:[%s3338_s0 + $0x18] sm:$0xff] }
 0xf6f   :  { %2495 = vrot.lane.b32.xlu0 %v2494_v40, %s2646_s21 }
 0xf71   :  { %v1667_v35 = vpop.f32.mrb[28].mxu0 }
 0xf72   :  { %v2390_v4 = vpop.f32.mrb[29].mxu0 }
 0xf73   :  { %837 = vrot.lane.b32.xlu0 %v2961_v36, %s2646_s21  ;;  %v1670_v7 = vpop.f32.mrb[30].mxu0  ;;  %v1668_v36 = vadd.f32 %v3138_v9, %v1667_v35 }
 0xf74   :  { %v2391_v8 = vpop.f32.mrb[31].mxu0  ;;  %v1671_v10 = vadd.f32 %v3138_v9, %v1670_v7 }
 0xf76   :  { %v3144_v12 = vadd.f32 %v2625_v11, %v1671_v10 }
 0xf77   :  { %1569 = vrot.lane.b32.xlu0 %v3067_v56, %s2645_s20  ;;  %v2626_v56 = vld [vmem:[%s3338_s0] sm:$0xff] }
 0xf78   :  { %v1699_v13 = vsel %vm66_vm1, %v3144_v12, 0.0  ;;  %v1689_v14 = vadd.f32 %v2626_v56, %v1668_v36  ;;  %v2629_v56 = vld [vmem:[%s3338_s0 + $0x20] sm:$0x3f] }
 0xf7a   :  { %v1696_v17 = vsel %vm66_vm1, %v1689_v14, 0.0 }
 0xf8e   :  { %1700 = vadd.xlane.f32.xlu1 %v1699_v13 }
 0xf96   :  { %1697 = vadd.xlane.f32.xlu0 %v1696_v17 }
 0xfdc   :  { %v1582_v55 = vpop.permute.xlu1 %1581 }
 0xfe1   :  { %v2496_v29 = vpop.permute.xlu0 %2495 }
 0xfe2   :  { %v2498_v5 = vunpack.i.h.bf16 %v2496_v29  ;;  %v2497_v20 = vunpack.i.l.bf16 %v2496_v29 }
 0xfe4   :  { %v1592_v41 = vsel %vm849_vm9, %v1589_v6, %v2497_v20  ;;  %v1593_v42 = vsel %vm849_vm9, %v1590_v37, %v2498_v5 }
 0xfe5   :  { %v1599_v46 = vrot.slane %v1592_v41, 5  ;;  %v1600_v43 = vrot.slane %v1593_v42, 5  ;;  %v838_v47 = vpop.permute.xlu0 %837 }
 0xfe6   :  { %v852_v50 = vsel %vm849_vm9, %v848_v44, %v838_v47 }
 0xfe7   :  { %v1601_v33 = vsel %vm1598_vm10, %v1599_v46, %v1600_v43  ;;  %v1607_v3 = vsel %vm1598_vm10, %v852_v50, %v1599_v46 }
 0xfe8   :  { %v1613_v34 = vpack.c.bf16 %v1601_v33, %v1607_v3 }
 0xfe9   :  { %v1570_v38 = vpop.permute.xlu0 %1569 }
 0xfea   :  { %v1591_v45 = vsel %vm845_vm8, %v1588_v15, %v1570_v38  ;;  %2393 = vmatmul.mubr.msk.bf16.gmra.mrb[32].mxu0 %vm66_vm1, %v1613_v34 }
 0xfeb   :  { %v1594_v25 = vsel %vm849_vm9, %v1591_v45, %v1582_v55  ;;  %2396 = vmatprep.mubr.msk.bf16.mxu0 %vm2631_vm0, %v2630_v0 }
 0xfec   :  { %v1602_v18 = vrot.slane %v1594_v25, 5  ;;  %v2142_v25 = vld [vmem:[%s3343_s5] ss:$0 sm:$0xff] }
 0xfee   :  { %v1603_v16 = vsel %vm1598_vm10, %v1600_v43, %v1602_v18 }
 0xfef   :  { %v1614_v48 = vpack.c.bf16 %v1603_v16, %v1603_v16 }
 0xff2   :  { %2397 = vmatmul.mubr.msk.bf16.gmra.mrb[36].mxu0 %vm66_vm1, %v1614_v48 }
 0xff3   :  { %2424 = vmatprep.mubr.msk.bf16.mxu0 %vm2631_vm0, %v2630_v0 }
0x101b   :  { %v1701_v57 = vpop.xlane.xlu1 %1700 }
0x101c   :  { %v1714_v63 = vmul.f32 0.03125, %v1701_v57  ;;  %v1911_v57 = vld [vmem:[%s3345_s9] sm:$0xff] }
0x101e   :  { %v1719_v7 = vsub.f32 %v3144_v12, %v1714_v63  ;;  %v1915_v63 = vld [vmem:[%s3345_s9 + $0x20] sm:$0xff] }
0x1020   :  { %v1724_v12 = vmul.f32 %v1719_v7, %v1719_v7 }
0x1023   :  { %v1698_v39 = vpop.xlane.xlu0 %1697 }
0x1024   :  { %v1713_v52 = vmul.f32 0.03125, %v1698_v39  ;;  %v2143_v39 = vld [vmem:[%s3344_s6] ss:$0 sm:$0xff] }
0x1026   :  { %v1718_v1 = vsub.f32 %v1689_v14, %v1713_v52 }
0x1028   :  { %v1723_v36 = vmul.f32 %v1718_v1, %v1718_v1 }
0x102a   :  { %v1728_v31 = vsel %vm66_vm1, %v1723_v36, 0.0 }
0x10bd   :  { %v1675_v51 = vpop.f32.mrb[32].mxu0 }
0x10be   :  { %v1676_v24 = vadd.f32 %v3138_v9, %v1675_v51  ;;  %v2394_v54 = vpop.f32.mrb[33].mxu0 }
0x10bf   :  { %v1678_v58 = vpop.f32.mrb[34].mxu0 }
0x10c0   :  { %v1691_v60 = vadd.f32 %v2627_v59, %v1676_v24  ;;  %v1679_v61 = vadd.f32 %v3138_v9, %v1678_v58  ;;  %v2395_v62 = vpop.f32.mrb[35].mxu0  ;;  %v1912_v58 = vld [vmem:[%s3345_s9 + $0x8] sm:$0xff] }
0x10c1   :  { %v1922_v59 = vpack.c.bf16 %v1912_v58, %v1911_v57 }
0x10c2   :  { %v1692_v40 = vadd.f32 %v2628_v2, %v1679_v61  ;;  %v1702_v35 = vsel %vm66_vm1, %v1691_v60, 0.0  ;;  %v1914_v61 = vld [vmem:[%s3345_s9 + $0x18] sm:$0xff] }
0x10c3   :  { %1703 = vadd.xlane.f32.xlu0 %v1702_v35  ;;  %2417 = vmatpush3.bf16.msra.mxu0 %v1922_v59  ;;  %v1918_v35 = vld [vmem:[%s3345_s9 + $0x38] sm:$0xff] }
0x10c4   :  { %v1705_v11 = vsel %vm66_vm1, %v1692_v40, 0.0  ;;  %2418 = vmatprep.subr.bf16.mxu0 %v2630_v0 }
0x10c5   :  { %v1683_v4 = vpop.f32.mrb[36].mxu0 }
0x10c6   :  { %v1684_v8 = vadd.f32 %v3138_v9, %v1683_v4  ;;  %v2398_v10 = vpop.f32.mrb[37].mxu0  ;;  %v1731_v9 = vsel %vm66_vm1, %v1724_v12, 0.0 }
0x10c7   :  { %1706 = vadd.xlane.f32.xlu0 %v1705_v11  ;;  %v1686_v13 = vpop.f32.mrb[38].mxu0 }
0x10c8   :  { %v1693_v14 = vadd.f32 %v2629_v56, %v1684_v8  ;;  %v2399_v17 = vpop.f32.mrb[39].mxu0 }
0x10ca   :  { %v1709_v22 = vsel %vm1708_vm11, %v1693_v14, 0.0 }
0x10cb   :  { %1729 = vadd.xlane.f32.xlu0 %v1728_v31  ;;  %1710 = vadd.xlane.f32.xlu1 %v1709_v22 }
0x10cf   :  { %1732 = vadd.xlane.f32.xlu1 %v1731_v9 }
0x1150   :  { %v1704_v28 = vpop.xlane.xlu0 %1703 }
0x1151   :  { %v1715_v19 = vmul.f32 0.03125, %v1704_v28 }
0x1153   :  { %v3209_v29 = vsub.f32 %v1691_v60, %v1715_v19  ;;  %v1913_v60 = vld [vmem:[%s3345_s9 + $0x10] sm:$0xff] }
0x1154   :  { %v1707_v5 = vpop.xlane.xlu0 %1706  ;;  %v1923_v62 = vpack.c.bf16 %v1914_v61, %v1913_v60 }
0x1155   :  { %v1716_v20 = vmul.f32 0.03125, %v1707_v5  ;;  %v1725_v6 = vmul.f32 %v3209_v29, %v3209_v29 }
0x1156   :  { %2419 = vmatpush3.bf16.msra.mxu0 %v1923_v62 }
0x1157   :  { %v3213_v37 = vsub.f32 %v1692_v40, %v1716_v20  ;;  %v1734_v27 = vsel %vm66_vm1, %v1725_v6, 0.0  ;;  %2420 = vmatprep.subr.bf16.mxu0 %v2630_v0  ;;  %v1917_v40 = vld [vmem:[%s3345_s9 + $0x30] sm:$0xff]  ;;  %v2144_v20 = vld [vmem:[%s3346_s8] ss:$0 sm:$0xff] }
0x1158   :  { %1735 = vadd.xlane.f32.xlu0 %v1734_v27  ;;  %v1730_v41 = vpop.xlane.xlu0 %1729  ;;  %v1711_v42 = vpop.xlane.xlu1 %1710  ;;  %v1925_v4 = vpack.c.bf16 %v1918_v35, %v1917_v40 }
0x1159   :  { %v1743_v44 = vmul.f32 0.03125, %v1730_v41  ;;  %v1717_v46 = vmul.f32 0.03125, %v1711_v42  ;;  %v1726_v43 = vmul.f32 %v3213_v37, %v3213_v37 }
0x115b   :  { %v1748_v47 = vadd.f32 1e-05, %v1743_v44  ;;  %v3218_v49 = vsub.f32 %v1693_v14, %v1717_v46  ;;  %v1737_v50 = vsel %vm66_vm1, %v1726_v43, 0.0 }
0x115c   :  { %1738 = vadd.xlane.f32.xlu1 %v1737_v50  ;;  %v1733_v33 = vpop.xlane.xlu1 %1732 }
0x115d   :  { %2595 = vrsqrt.f32 %v1748_v47  ;;  %v1744_v3 = vmul.f32 0.03125, %v1733_v33  ;;  %v1727_v34 = vmul.f32 %v3218_v49, %v3218_v49 }
0x115f   :  { %v1749_v15 = vadd.f32 1e-05, %v1744_v3  ;;  %v1740_v38 = vsel %vm1708_vm11, %v1727_v34, 0.0 }
0x1160   :  { %1741 = vadd.xlane.f32.xlu0 %v1740_v38 }
0x1161   :  { %2597 = vrsqrt.f32 %v1749_v15 }
0x1167   :  { %v2596_v55 = vpop.eup %2595 }
0x1168   :  { %v1758_v45 = vmul.f32 %v2596_v55, %v1718_v1  ;;  %v1916_v1 = vld [vmem:[%s3345_s9 + $0x28] sm:$0xff] }
0x1169   :  { %v1924_v2 = vpack.c.bf16 %v1916_v1, %v1915_v63 }
0x116a   :  { %v1769_v16 = vmul.f32 %v2142_v25, %v1758_v45 }
0x116b   :  { %v2598_v18 = vpop.eup %2597  ;;  %2421 = vmatpush3.bf16.msra.mxu0 %v1924_v2 }
0x116c   :  { %v1759_v48 = vmul.f32 %v2598_v18, %v1719_v7  ;;  %v3230_v52 = vadd.f32 %v2143_v39, %v1769_v16  ;;  %2422 = vmatprep.subr.bf16.mxu0 %v2630_v0 }
0x116e   :  { %v1770_v51 = vmul.f32 %v2142_v25, %v1759_v48 }
0x116f   :  { %2423 = vmatpush3.bf16.msra.mxu0 %v1925_v4 }
0x1170   :  { %v3232_v24 = vadd.f32 %v2143_v39, %v1770_v51 }
0x1172   :  { %v1789_v54 = vpack.c.bf16 %v3232_v24, %v3230_v52 }
0x1174   :  { %2405 = vmatmul.mubr.msk.bf16.vlgmr.msra.gmra.mrb[48].mxu1 %vm66_vm1, %v1789_v54 }
0x1175   :  { %2408 = vmatprep.mubr.msk.bf16.mxu1 %vm2631_vm0, %v2630_v0 }
0x11e5   :  { %v1736_v7 = vpop.xlane.xlu0 %1735 }
0x11e6   :  { %v1745_v8 = vmul.f32 0.03125, %v1736_v7 }
0x11e8   :  { %v1750_v10 = vadd.f32 1e-05, %v1745_v8 }
0x11e9   :  { %v1739_v11 = vpop.xlane.xlu1 %1738 }
0x11ea   :  { %2599 = vrsqrt.f32 %v1750_v10  ;;  %v1746_v36 = vmul.f32 0.03125, %v1739_v11 }
0x11ec   :  { %v1751_v13 = vadd.f32 1e-05, %v1746_v36 }
0x11ed   :  { %v1742_v56 = vpop.xlane.xlu0 %1741 }
0x11ee   :  { %2601 = vrsqrt.f32 %v1751_v13  ;;  %v1747_v14 = vmul.f32 0.03125, %v1742_v56 }
0x11f0   :  { %v1752_v17 = vadd.f32 1e-05, %v1747_v14 }
0x11f2   :  { %2603 = vrsqrt.f32 %v1752_v17 }
0x11f4   :  { %v2600_v31 = vpop.eup %2599 }
0x11f5   :  { %v1760_v22 = vmul.f32 %v2600_v31, %v3209_v29 }
0x11f7   :  { %v1771_v30 = vmul.f32 %v2142_v25, %v1760_v22 }
0x11f8   :  { %v2602_v12 = vpop.eup %2601 }
0x11f9   :  { %v1761_v9 = vmul.f32 %v2602_v12, %v3213_v37  ;;  %v3269_v23 = vadd.f32 %v2143_v39, %v1771_v30 }
0x11fb   :  { %v1772_v32 = vmul.f32 %v2142_v25, %v1761_v9 }
0x11fc   :  { %v2604_v53 = vpop.eup %2603 }
0x11fd   :  { %v1762_v21 = vmul.f32 %v2604_v53, %v3218_v49  ;;  %v3271_v26 = vadd.f32 %v2143_v39, %v1772_v32 }
0x11ff   :  { %v1790_v28 = vpack.c.bf16 %v3271_v26, %v3269_v23  ;;  %v1773_v19 = vmul.f32 %v2142_v25, %v1762_v21 }
0x1201   :  { %2409 = vmatmul.mubr.msk.bf16.gmra.mrb[52].mxu1 %vm66_vm1, %v1790_v28  ;;  %v3278_v29 = vadd.f32 %v2143_v39, %v1773_v19 }
0x1202   :  { %2412 = vmatprep.mubr.msk.bf16.mxu1 %vm2631_vm0, %v2630_v0 }
0x1203   :  { %v1791_v5 = vpack.c.bf16 %v3278_v29, %v3278_v29 }
0x1209   :  { %2413 = vmatmul.mubr.msk.bf16.gmra.mrb[56].mxu1 %vm66_vm1, %v1791_v5 }
0x1247   :  { %v1844_v6 = vpop.f32.mrb[48].mxu1 }
0x1248   :  { %v1845_v37 = vadd.f32 %v2144_v20, %v1844_v6  ;;  %v2406_v27 = vpop.f32.mrb[49].mxu1 }
0x1249   :  { %v1847_v41 = vpop.f32.mrb[50].mxu1 }
0x124a   :  { %v1866_v42 = vmul.f32 %v1845_v37, %v1845_v37  ;;  %v1848_v44 = vadd.f32 %v2144_v20, %v1847_v41  ;;  %v2407_v46 = vpop.f32.mrb[51].mxu1 }
0x124c   :  { %v1871_v43 = vmul.f32 %v1866_v42, %v1845_v37  ;;  %v1867_v47 = vmul.f32 %v1848_v44, %v1848_v44 }
0x124e   :  { %v1876_v49 = vmul.f32 0.044715, %v1871_v43  ;;  %v1872_v50 = vmul.f32 %v1867_v47, %v1848_v44  ;;  %v2148_v43 = vld [vmem:[%s3347_s10] ss:$0 sm:$0xff] }
0x1250   :  { %v1881_v33 = vadd.f32 %v1876_v49, %v1845_v37  ;;  %v1877_v3 = vmul.f32 0.044715, %v1872_v50 }
0x1252   :  { %v1886_v34 = vmul.f32 0.7978846, %v1881_v33  ;;  %v1882_v15 = vadd.f32 %v1877_v3, %v1848_v44 }
0x1254   :  { %2605 = vtanh.f32 %v1886_v34  ;;  %v1887_v38 = vmul.f32 0.7978846, %v1882_v15 }
0x1256   :  { %2607 = vtanh.f32 %v1887_v38 }
0x125e   :  { %v2606_v55 = vpop.eup %2605 }
0x125f   :  { %v1896_v45 = vadd.f32 1.0, %v2606_v55 }
0x1260   :  { %v2608_v25 = vpop.eup %2607 }
0x1261   :  { %v1901_v18 = vmul.f32 0.5, %v1896_v45  ;;  %v1897_v16 = vadd.f32 1.0, %v2608_v25 }
0x1263   :  { %v1902_v48 = vmul.f32 0.5, %v1897_v16  ;;  %v1906_v39 = vmul.f32 %v1901_v18, %v1845_v37 }
0x1265   :  { %v1907_v51 = vmul.f32 %v1902_v48, %v1848_v44 }
0x1267   :  { %v1919_v54 = vpack.c.bf16 %v1907_v51, %v1906_v39 }
0x1269   :  { %2425 = vmatmul.mubr.msk.bf16.vlgmr.msra.gmra.mrb[40].mxu0 %vm1933_vm12, %v1919_v54 }
0x126a   :  { %2428 = vmatprep.mubr.msk.bf16.mxu0 %vm2631_vm0, %v2630_v0 }
0x12d4   :  { %v1852_v57 = vpop.f32.mrb[52].mxu1 }
0x12d5   :  { %v1853_v58 = vadd.f32 %v2144_v20, %v1852_v57  ;;  %v2410_v59 = vpop.f32.mrb[53].mxu1 }
0x12d6   :  { %v1855_v60 = vpop.f32.mrb[54].mxu1 }
0x12d7   :  { %v1868_v61 = vmul.f32 %v1853_v58, %v1853_v58  ;;  %v1856_v62 = vadd.f32 %v2144_v20, %v1855_v60  ;;  %v2411_v63 = vpop.f32.mrb[55].mxu1 }
0x12d9   :  { %v1873_v1 = vmul.f32 %v1868_v61, %v1853_v58  ;;  %v1869_v2 = vmul.f32 %v1856_v62, %v1856_v62 }
0x12db   :  { %v1878_v40 = vmul.f32 0.044715, %v1873_v1  ;;  %v1874_v35 = vmul.f32 %v1869_v2, %v1856_v62 }
0x12dc   :  { %v1860_v4 = vpop.f32.mrb[56].mxu1 }
0x12dd   :  { %v1883_v7 = vadd.f32 %v1878_v40, %v1853_v58  ;;  %v1879_v8 = vmul.f32 0.044715, %v1874_v35  ;;  %v1861_v10 = vadd.f32 %v2144_v20, %v1860_v4  ;;  %v2414_v11 = vpop.f32.mrb[57].mxu1 }
0x12de   :  { %v1863_v36 = vpop.f32.mrb[58].mxu1 }
0x12df   :  { %v1888_v13 = vmul.f32 0.7978846, %v1883_v7  ;;  %v1884_v56 = vadd.f32 %v1879_v8, %v1856_v62  ;;  %v1870_v14 = vmul.f32 %v1861_v10, %v1861_v10  ;;  %v2415_v17 = vpop.f32.mrb[59].mxu1 }
0x12e1   :  { %2609 = vtanh.f32 %v1888_v13  ;;  %v1889_v31 = vmul.f32 0.7978846, %v1884_v56  ;;  %v1875_v22 = vmul.f32 %v1870_v14, %v1861_v10 }
0x12e3   :  { %2611 = vtanh.f32 %v1889_v31  ;;  %v1880_v12 = vmul.f32 0.044715, %v1875_v22 }
0x12e5   :  { %v1885_v9 = vadd.f32 %v1880_v12, %v1861_v10 }
0x12e7   :  { %v1890_v30 = vmul.f32 0.7978846, %v1885_v9 }
0x12e9   :  { %2613 = vtanh.f32 %v1890_v30 }
0x12eb   :  { %v2610_v32 = vpop.eup %2609 }
0x12ec   :  { %v1898_v53 = vadd.f32 1.0, %v2610_v32 }
0x12ed   :  { %v2612_v21 = vpop.eup %2611 }
0x12ee   :  { %v1903_v28 = vmul.f32 0.5, %v1898_v53  ;;  %v1899_v19 = vadd.f32 1.0, %v2612_v21 }
0x12f0   :  { %v1904_v5 = vmul.f32 0.5, %v1899_v19  ;;  %v1908_v20 = vmul.f32 %v1903_v28, %v1853_v58 }
0x12f2   :  { %v1909_v6 = vmul.f32 %v1904_v5, %v1856_v62 }
0x12f3   :  { %v2614_v37 = vpop.eup %2613 }
0x12f4   :  { %v1920_v27 = vpack.c.bf16 %v1909_v6, %v1908_v20  ;;  %v1900_v41 = vadd.f32 1.0, %v2614_v37 }
0x12f6   :  { %2429 = vmatmul.mubr.msk.bf16.gmra.mrb[44].mxu0 %vm1933_vm12, %v1920_v27  ;;  %v1905_v42 = vmul.f32 0.5, %v1900_v41  ;;  %v2152_v41 = vld [vmem:[%s3348_s11] ss:$0 sm:$0xff] }
0x12f7   :  { %2432 = vmatprep.mubr.msk.bf16.mxu0 %vm2631_vm0, %v2630_v0 }
0x12f8   :  { %v1910_v44 = vmul.f32 %v1905_v42, %v1861_v10 }
0x12fa   :  { %v1921_v46 = vpack.c.bf16 %v1910_v44, %v1910_v44  ;;  %v2153_v44 = vld [vmem:[%s3349_s12] ss:$0 sm:$0xff] }
0x12fe   :  { %2433 = vmatmul.mubr.msk.bf16.gmra.mrb[48].mxu0 %vm1933_vm12, %v1921_v46 }
0x133c   :  { %v1977_v47 = vpop.f32.mrb[40].mxu0 }
0x133d   :  { %v1978_v49 = vadd.f32 %v2148_v43, %v1977_v47  ;;  %v2426_v50 = vpop.f32.mrb[41].mxu0 }
0x133e   :  { %v1980_v33 = vpop.f32.mrb[42].mxu0 }
0x133f   :  { %v1999_v3 = vadd.f32 %v1978_v49, %v3230_v52  ;;  %v1981_v34 = vadd.f32 %v2148_v43, %v1980_v33  ;;  %v2427_v15 = vpop.f32.mrb[43].mxu0 }
0x1341   :  { %v2000_v38 = vadd.f32 %v1981_v34, %v3232_v24  ;;  %v2006_v0 = vsel %vm66_vm1, %v1999_v3, 0.0 }
0x1342   :  { %2007 = vadd.xlane.f32.xlu1 %v2006_v0 }
0x1343   :  { %v2009_v55 = vsel %vm66_vm1, %v2000_v38, 0.0 }
0x1344   :  { %2010 = vadd.xlane.f32.xlu0 %v2009_v55 }
0x13c9   :  { %v1985_v45 = vpop.f32.mrb[44].mxu0 }
0x13ca   :  { %v1986_v25 = vadd.f32 %v2148_v43, %v1985_v45  ;;  %v2430_v18 = vpop.f32.mrb[45].mxu0 }
0x13cb   :  { %v1988_v16 = vpop.f32.mrb[46].mxu0 }
0x13cc   :  { %v2001_v48 = vadd.f32 %v1986_v25, %v3269_v23  ;;  %v1989_v39 = vadd.f32 %v2148_v43, %v1988_v16  ;;  %v2431_v51 = vpop.f32.mrb[47].mxu0 }
0x13ce   :  { %v2002_v52 = vadd.f32 %v1989_v39, %v3271_v26  ;;  %v2012_v54 = vsel %vm66_vm1, %v2001_v48, 0.0 }
0x13cf   :  { %v2008_v57 = vpop.xlane.xlu1 %2007  ;;  %2013 = vadd.xlane.f32.xlu1 %v2012_v54 }
0x13d0   :  { %v2021_v24 = vmul.f32 0.03125, %v2008_v57  ;;  %v2015_v58 = vsel %vm66_vm1, %v2002_v52, 0.0 }
0x13d1   :  { %v2011_v59 = vpop.xlane.xlu0 %2010  ;;  %2016 = vadd.xlane.f32.xlu0 %v2015_v58  ;;  %v1993_v60 = vpop.f32.mrb[48].mxu0 }
0x13d2   :  { %v2026_v61 = vsub.f32 %v1999_v3, %v2021_v24  ;;  %v2022_v62 = vmul.f32 0.03125, %v2011_v59  ;;  %v1994_v63 = vadd.f32 %v2148_v43, %v1993_v60  ;;  %v2434_v1 = vpop.f32.mrb[49].mxu0 }
0x13d3   :  { %v1996_v2 = vpop.f32.mrb[50].mxu0 }
0x13d4   :  { %v2027_v23 = vsub.f32 %v2000_v38, %v2022_v62  ;;  %v2003_v40 = vadd.f32 %v1994_v63, %v3278_v29  ;;  %v2435_v35 = vpop.f32.mrb[51].mxu0  ;;  %v2031_v26 = vmul.f32 %v2026_v61, %v2026_v61 }
0x13d6   :  { %v2036_v4 = vsel %vm66_vm1, %v2031_v26, 0.0  ;;  %v2018_v7 = vsel %vm1708_vm11, %v2003_v40, 0.0  ;;  %v2032_v8 = vmul.f32 %v2027_v23, %v2027_v23 }
0x13d7   :  { %2037 = vadd.xlane.f32.xlu0 %v2036_v4  ;;  %2019 = vadd.xlane.f32.xlu1 %v2018_v7 }
0x13d8   :  { %v2039_v10 = vsel %vm66_vm1, %v2032_v8, 0.0 }
0x13db   :  { %2040 = vadd.xlane.f32.xlu1 %v2039_v10 }
0x145c   :  { %v2014_v11 = vpop.xlane.xlu1 %2013 }
0x145d   :  { %v2023_v36 = vmul.f32 0.03125, %v2014_v11 }
0x145e   :  { %v2017_v13 = vpop.xlane.xlu0 %2016 }
0x145f   :  { %v2028_v56 = vsub.f32 %v2001_v48, %v2023_v36  ;;  %v2024_v14 = vmul.f32 0.03125, %v2017_v13 }
0x1461   :  { %v2029_v17 = vsub.f32 %v2002_v52, %v2024_v14  ;;  %v2033_v31 = vmul.f32 %v2028_v56, %v2028_v56 }
0x1463   :  { %v2042_v29 = vsel %vm66_vm1, %v2033_v31, 0.0  ;;  %v2034_v22 = vmul.f32 %v2029_v17, %v2029_v17 }
0x1464   :  { %2043 = vadd.xlane.f32.xlu0 %v2042_v29  ;;  %v2038_v12 = vpop.xlane.xlu0 %2037  ;;  %v2020_v9 = vpop.xlane.xlu1 %2019 }
0x1465   :  { %v2051_v30 = vmul.f32 0.03125, %v2038_v12  ;;  %v2025_v32 = vmul.f32 0.03125, %v2020_v9  ;;  %v2045_v53 = vsel %vm66_vm1, %v2034_v22, 0.0 }
0x1466   :  { %2046 = vadd.xlane.f32.xlu1 %v2045_v53 }
0x1467   :  { %v2056_v21 = vadd.f32 1e-05, %v2051_v30  ;;  %v2030_v28 = vsub.f32 %v2003_v40, %v2025_v32 }
0x1468   :  { %v2041_v19 = vpop.xlane.xlu1 %2040 }
0x1469   :  { %2615 = vrsqrt.f32 %v2056_v21  ;;  %v2052_v5 = vmul.f32 0.03125, %v2041_v19  ;;  %v2035_v20 = vmul.f32 %v2030_v28, %v2030_v28 }
0x146b   :  { %v2057_v6 = vadd.f32 1e-05, %v2052_v5  ;;  %v2048_v37 = vsel %vm1708_vm11, %v2035_v20, 0.0 }
0x146c   :  { %2049 = vadd.xlane.f32.xlu0 %v2048_v37 }
0x146d   :  { %2617 = vrsqrt.f32 %v2057_v6 }
0x1473   :  { %v2616_v27 = vpop.eup %2615 }
0x1474   :  { %v2066_v42 = vmul.f32 %v2616_v27, %v2026_v61 }
0x1476   :  { %v2077_v46 = vmul.f32 %v2152_v41, %v2066_v42 }
0x1477   :  { %v2618_v43 = vpop.eup %2617 }
0x1478   :  { %v2088_v47 = vadd.f32 %v2153_v44, %v2077_v46  ;;  %v2067_v49 = vmul.f32 %v2618_v43, %v2027_v23 }
0x147a   :  { %2093 = vst.msk [vmem:[%s3350_s13] sm:$0xff] %vm66_vm1, %v2088_v47  ;;  %v2078_v50 = vmul.f32 %v2152_v41, %v2067_v49 }
0x147c   :  { %v2089_v33 = vadd.f32 %v2153_v44, %v2078_v50 }
0x147e   :  { %2094 = vst.msk [vmem:[%s3350_s13 + $0x8] sm:$0xff] %vm66_vm1, %v2089_v33 }
0x14f1   :  { %v2044_v3 = vpop.xlane.xlu0 %2043 }
0x14f2   :  { %v2053_v34 = vmul.f32 0.03125, %v2044_v3 }
0x14f3   :  { %v2047_v15 = vpop.xlane.xlu1 %2046 }
0x14f4   :  { %v2058_v38 = vadd.f32 1e-05, %v2053_v34  ;;  %v2054_v0 = vmul.f32 0.03125, %v2047_v15 }
0x14f6   :  { %2619 = vrsqrt.f32 %v2058_v38  ;;  %v2059_v55 = vadd.f32 1e-05, %v2054_v0 }
0x14f8   :  { %2621 = vrsqrt.f32 %v2059_v55 }
0x14f9   :  { %v2050_v45 = vpop.xlane.xlu0 %2049 }
0x14fa   :  { %v2055_v25 = vmul.f32 0.03125, %v2050_v45 }
0x14fc   :  { %v2060_v18 = vadd.f32 1e-05, %v2055_v25 }
0x14fe   :  { %2623 = vrsqrt.f32 %v2060_v18 }
0x1500   :  { %v2620_v16 = vpop.eup %2619 }
0x1501   :  { %v2068_v48 = vmul.f32 %v2620_v16, %v2028_v56 }
0x1502   :  { %v2622_v39 = vpop.eup %2621 }
0x1503   :  { %v2079_v51 = vmul.f32 %v2152_v41, %v2068_v48  ;;  %v2069_v52 = vmul.f32 %v2622_v39, %v2029_v17 }
0x1505   :  { %v2090_v54 = vadd.f32 %v2153_v44, %v2079_v51  ;;  %v2080_v57 = vmul.f32 %v2152_v41, %v2069_v52 }
0x1507   :  { %2095 = vst.msk [vmem:[%s3350_s13 + $0x10] sm:$0xff] %vm66_vm1, %v2090_v54  ;;  %v2091_v24 = vadd.f32 %v2153_v44, %v2080_v57 }
0x1508   :  { %v2624_v58 = vpop.eup %2623 }
0x1509   :  { %2096 = vst.msk [vmem:[%s3350_s13 + $0x18] sm:$0xff] %vm66_vm1, %v2091_v24  ;;  %v2070_v59 = vmul.f32 %v2624_v58, %v2030_v28 }
0x150b   :  { %v2081_v60 = vmul.f32 %v2152_v41, %v2070_v59 }
0x150d   :  { %v2092_v61 = vadd.f32 %v2153_v44, %v2081_v60 }
0x150f   :  { %2097 = vst.msk [vmem:[%s3350_s13 + $0x20] sm:$0x3f] %vm1708_vm11, %v2092_v61 }

// kernel: hubert_forward.11
= control target key start
LH: loop header
LB: loop body
LE: loop exit
PB: predicated region body
PF: predicated region fallthrough
CT: control target
= control target key end

     0   :  { %vm40_vm0 = vcmask 261120   ;;  %vm1171_vm1 = vcmask 256000   ;;  %s3973_s1 = inlined_call_operand.vmem [shape: f32[16,32,32], index: 1, kind: input, shape index: {}]   ;;  %s3974_s0 = inlined_call_operand.vmem [shape: f32[2,35,32], index: 0, kind: input, shape index: {}]   ;;  %s3975_s2 = inlined_call_operand.vmem [shape: f32[1,32], index: 2, kind: input, shape index: {}]   ;;  %s3976_s3 = inlined_call_operand.vmem [shape: f32[1,32], index: 3, kind: input, shape index: {}]   ;;  %s3977_s4 = inlined_call_operand.vmem [shape: f32[1,32], index: 4, kind: input, shape index: {}]   ;;  %s3978_s5 = inlined_call_operand.vmem [shape: f32[2,19,32], index: 5, kind: output, shape index: {}]  }
   0x1   :  { %v32_v0 = vld [vmem:[%s3973_s1] sm:$0xff]  ;;  %v33_v1 = vld [vmem:[%s3973_s1 + $0x8] sm:$0xff]  ;;  %v34_v2 = vld [vmem:[%s3973_s1 + $0x10] sm:$0xff] }
   0x2   :  { %v38_v3 = vpack.c.bf16 %v33_v1, %v32_v0  ;;  %v35_v4 = vld [vmem:[%s3973_s1 + $0x18] sm:$0xff]  ;;  %v29_v5 = vld [vmem:[%s3974_s0] sm:$0xff]  ;;  %v3244_v6 = vld [vmem:[%s3974_s0 + $0x8] sm:$0xff] }
   0x3   :  { %v39_v7 = vpack.c.bf16 %v35_v4, %v34_v2  ;;  %v36_v8 = vpack.c.bf16 %v3244_v6, %v29_v5  ;;  %v2517_v9 = vld [vmem:[%s3974_s0 + $0x28] sm:$0xff]  ;;  %v3253_v10 = vld [vmem:[%s3974_s0 + $0x30] sm:$0xff]  ;;  %v2424_v12 = vld [vmem:[%s3973_s1 + $0x20] sm:$0xff] }
   0x4   :  { %2790 = vmatprep.subr.bf16.mxu0 %v38_v3  ;;  %2918 = vmatprep.subr.bf16.mxu1 %v38_v3  ;;  %v1243_v11 = vpack.c.bf16 %v3253_v10, %v2517_v9  ;;  %v2425_v13 = vld [vmem:[%s3973_s1 + $0x28] sm:$0xff]  ;;  %v31_v14 = vld [vmem:[%s3974_s0 + $0x10] sm:$0x7]  ;;  %v2519_v15 = vld [vmem:[%s3974_s0 + $0x38] sm:$0x7] }
   0x5   :  { %2791 = vmatpush3.bf16.msra.mxu0 %v38_v3  ;;  %2919 = vmatpush3.bf16.msra.mxu1 %v38_v3  ;;  %v108_v16 = vpack.c.bf16 %v2425_v13, %v2424_v12  ;;  %v2426_v17 = vld [vmem:[%s3973_s1 + $0x30] sm:$0xff]  ;;  %v2427_v18 = vld [vmem:[%s3973_s1 + $0x38] sm:$0xff]  ;;  %v98_v19 = vld [vmem:[%s3974_s0 + $0x1] sm:$0xff]  ;;  %v37_v20 = vpack.c.bf16 %v31_v14, %v31_v14  ;;  %v1244_v21 = vpack.c.bf16 %v2519_v15, %v2519_v15 }
   0x6   :  { %2792 = vmatprep.subr.bf16.mxu0 %v39_v7  ;;  %2920 = vmatprep.subr.bf16.mxu1 %v39_v7  ;;  %v3282_v22 = vld [vmem:[%s3974_s0 + $0x9] sm:$0xff]  ;;  %v3290_v24 = vld [vmem:[%s3974_s0 + $0x31] sm:$0xff]  ;;  %v109_v25 = vpack.c.bf16 %v2427_v18, %v2426_v17  ;;  %v2430_v28 = vld [vmem:[%s3973_s1 + $0x40] sm:$0xff] }
   0x7   :  { %2794 = vmatprep.mubr.msk.bf16.mxu0 %vm40_vm0, %v36_v8  ;;  %2922 = vmatprep.mubr.msk.bf16.mxu1 %vm40_vm0, %v1243_v11  ;;  %v2522_v23 = vld [vmem:[%s3974_s0 + $0x29] sm:$0xff]  ;;  %v106_v26 = vpack.c.bf16 %v3282_v22, %v98_v19  ;;  %v100_v31 = vld [vmem:[%s3974_s0 + $0x11] sm:$0x7]  ;;  %v2524_v32 = vld [vmem:[%s3974_s0 + $0x39] sm:$0x7] }
   0x8   :  { %v1311_v27 = vpack.c.bf16 %v3290_v24, %v2522_v23  ;;  %v2431_v29 = vld [vmem:[%s3973_s1 + $0x48] sm:$0xff]  ;;  %v2432_v33 = vld [vmem:[%s3973_s1 + $0x50] sm:$0xff]  ;;  %v2433_v34 = vld [vmem:[%s3973_s1 + $0x58] sm:$0xff]  ;;  %v107_v36 = vpack.c.bf16 %v100_v31, %v100_v31  ;;  %v1312_v37 = vpack.c.bf16 %v2524_v32, %v2524_v32 }
   0x9   :  { %2793 = vmatpush3.bf16.msra.mxu0 %v39_v7  ;;  %2921 = vmatpush3.bf16.msra.mxu1 %v39_v7  ;;  %v177_v30 = vpack.c.bf16 %v2431_v29, %v2430_v28  ;;  %v167_v35 = vld [vmem:[%s3974_s0 + $0x2] sm:$0xff]  ;;  %v3322_v38 = vld [vmem:[%s3974_s0 + $0xa] sm:$0xff]  ;;  %v3330_v40 = vld [vmem:[%s3974_s0 + $0x32] sm:$0xff]  ;;  %v178_v41 = vpack.c.bf16 %v2433_v34, %v2432_v33 }
   0xa   :  { %2798 = vmatprep.subr.bf16.mxu0 %v108_v16  ;;  %2926 = vmatprep.subr.bf16.mxu1 %v108_v16  ;;  %v2531_v39 = vld [vmem:[%s3974_s0 + $0x2a] sm:$0xff]  ;;  %v175_v42 = vpack.c.bf16 %v3322_v38, %v167_v35  ;;  %v2436_v44 = vld [vmem:[%s3973_s1 + $0x60] sm:$0xff]  ;;  %v169_v47 = vld [vmem:[%s3974_s0 + $0x12] sm:$0x7] }
   0xb   :  { %v1379_v43 = vpack.c.bf16 %v3330_v40, %v2531_v39  ;;  %v2437_v45 = vld [vmem:[%s3973_s1 + $0x68] sm:$0xff]  ;;  %v2533_v48 = vld [vmem:[%s3974_s0 + $0x3a] sm:$0x7]  ;;  %v2438_v49 = vld [vmem:[%s3973_s1 + $0x70] sm:$0xff]  ;;  %v176_v54 = vpack.c.bf16 %v169_v47, %v169_v47 }
   0xc   :  { %2795 = vmatmul.mubr.msk.bf16.vlgmr.msra.gmra.mrb[0].mxu0 %vm40_vm0, %v37_v20  ;;  %2923 = vmatmul.mubr.msk.bf16.vlgmr.msra.gmra.mrb[0].mxu1 %vm40_vm0, %v1244_v21  ;;  %v246_v46 = vpack.c.bf16 %v2437_v45, %v2436_v44  ;;  %v2439_v50 = vld [vmem:[%s3973_s1 + $0x78] sm:$0xff]  ;;  %v236_v51 = vld [vmem:[%s3974_s0 + $0x3] sm:$0xff]  ;;  %v3362_v52 = vld [vmem:[%s3974_s0 + $0xb] sm:$0xff]  ;;  %v1380_v55 = vpack.c.bf16 %v2533_v48, %v2533_v48 }
   0xd   :  { %2799 = vmatpush3.bf16.msra.mxu0 %v108_v16  ;;  %2927 = vmatpush3.bf16.msra.mxu1 %v108_v16  ;;  %v3367_v53 = vld [vmem:[%s3974_s0 + $0x11] sm:$0xff]  ;;  %v3382_v59 = vld [vmem:[%s3974_s0 + $0x39] sm:$0xff]  ;;  %v247_v61 = vpack.c.bf16 %v2439_v50, %v2438_v49  ;;  %v244_v0 = vpack.c.bf16 %v3362_v52, %v236_v51  ;;  %v2443_v3 = vld [vmem:[%s3973_s1 + $0x88] sm:$0xff] }
   0xe   :  { %2800 = vmatprep.subr.bf16.mxu0 %v109_v25  ;;  %2928 = vmatprep.subr.bf16.mxu1 %v109_v25  ;;  %v2540_v56 = vld [vmem:[%s3974_s0 + $0x2b] sm:$0xff]  ;;  %v3375_v57 = vld [vmem:[%s3974_s0 + $0x33] sm:$0xff]  ;;  %v658_v58 = vpack.c.bf16 %v3367_v53, %v3282_v22  ;;  %v1855_v60 = vpack.c.bf16 %v3382_v59, %v3290_v24  ;;  %v2442_v2 = vld [vmem:[%s3973_s1 + $0x80] sm:$0xff] }
   0xf   :  { %2802 = vmatprep.mubr.msk.bf16.mxu0 %vm40_vm0, %v106_v26  ;;  %2930 = vmatprep.mubr.msk.bf16.mxu1 %vm40_vm0, %v1311_v27  ;;  %v3389_v62 = vld [vmem:[%s3974_s0 + $0x12] sm:$0xff]  ;;  %v3394_v63 = vld [vmem:[%s3974_s0 + $0x3a] sm:$0xff]  ;;  %v1447_v1 = vpack.c.bf16 %v3375_v57, %v2540_v56  ;;  %v315_v9 = vpack.c.bf16 %v2443_v3, %v2442_v2  ;;  %v305_v33 = vld [vmem:[%s3974_s0 + $0x4] sm:$0xff] }
  0x10   :  { %v727_v4 = vpack.c.bf16 %v3389_v62, %v3322_v38  ;;  %v1923_v5 = vpack.c.bf16 %v3394_v63, %v3330_v40  ;;  %v3413_v7 = vld [vmem:[%s3974_s0 + $0x13] sm:$0xff]  ;;  %v3418_v8 = vld [vmem:[%s3974_s0 + $0x3b] sm:$0xff]  ;;  %v2449_v47 = vld [vmem:[%s3973_s1 + $0xa8] sm:$0xff] }
  0x11   :  { %2801 = vmatpush3.bf16.msra.mxu0 %v109_v25  ;;  %2929 = vmatpush3.bf16.msra.mxu1 %v109_v25  ;;  %v796_v11 = vpack.c.bf16 %v3413_v7, %v3362_v52  ;;  %v1991_v12 = vpack.c.bf16 %v3418_v8, %v3375_v57  ;;  %v3429_v13 = vld [vmem:[%s3974_s0 + $0xc] sm:$0xff]  ;;  %v3434_v14 = vld [vmem:[%s3974_s0 + $0x14] sm:$0xff]  ;;  %v3446_v17 = vld [vmem:[%s3974_s0 + $0x3c] sm:$0xff] }
  0x12   :  { %2806 = vmatprep.subr.bf16.mxu0 %v177_v30  ;;  %2934 = vmatprep.subr.bf16.mxu1 %v177_v30  ;;  %v3439_v15 = vld [vmem:[%s3974_s0 + $0x34] sm:$0xff]  ;;  %v865_v16 = vpack.c.bf16 %v3434_v14, %v3429_v13  ;;  %v3474_v26 = vld [vmem:[%s3974_s0 + $0x3d] sm:$0xff]  ;;  %v2549_v34 = vld [vmem:[%s3974_s0 + $0x2c] sm:$0xff]  ;;  %v313_v44 = vpack.c.bf16 %v3429_v13, %v305_v33 }
  0x13   :  { %v238_v18 = vld [vmem:[%s3974_s0 + $0x13] sm:$0x7]  ;;  %v2542_v19 = vld [vmem:[%s3974_s0 + $0x3b] sm:$0x7]  ;;  %v2059_v21 = vpack.c.bf16 %v3446_v17, %v3439_v15  ;;  %v3510_v39 = vld [vmem:[%s3974_s0 + $0x3e] sm:$0xff]  ;;  %v1515_v45 = vpack.c.bf16 %v3439_v15, %v2549_v34 }
  0x14   :  { %v3457_v20 = vld [vmem:[%s3974_s0 + $0xd] sm:$0xff]  ;;  %v3464_v23 = vld [vmem:[%s3974_s0 + $0x35] sm:$0xff]  ;;  %v245_v31 = vpack.c.bf16 %v238_v18, %v238_v18  ;;  %v1448_v32 = vpack.c.bf16 %v2542_v19, %v2542_v19 }
  0x15   :  { %v3469_v25 = vld [vmem:[%s3974_s0 + $0x15] sm:$0xff]  ;;  %v2455_v33 = vld [vmem:[%s3973_s1 + $0xc8] sm:$0xff] }
  0x16   :  { %v2444_v27 = vld [vmem:[%s3973_s1 + $0x90] sm:$0xff]  ;;  %v2445_v28 = vld [vmem:[%s3973_s1 + $0x98] sm:$0xff]  ;;  %v934_v29 = vpack.c.bf16 %v3469_v25, %v3457_v20 }
  0x17   :  { %v3495_v35 = vld [vmem:[%s3974_s0 + $0xe] sm:$0xff]  ;;  %v2551_v50 = vld [vmem:[%s3974_s0 + $0x3c] sm:$0x7] }
  0x18   :  { %2803 = vmatmul.mubr.msk.bf16.vlgmr.msra.gmra.mrb[0].mxu0 %vm40_vm0, %v107_v36  ;;  %2931 = vmatmul.mubr.msk.bf16.vlgmr.msra.gmra.mrb[0].mxu1 %vm40_vm0, %v1312_v37  ;;  %v3500_v36 = vld [vmem:[%s3974_s0 + $0x36] sm:$0xff]  ;;  %v1516_v56 = vpack.c.bf16 %v2551_v50, %v2551_v50  ;;  %v2567_v50 = vld [vmem:[%s3974_s0 + $0x2e] sm:$0xff] }
  0x19   :  { %2807 = vmatpush3.bf16.msra.mxu0 %v177_v30  ;;  %2935 = vmatpush3.bf16.msra.mxu1 %v177_v30  ;;  %v2127_v30 = vpack.c.bf16 %v3474_v26, %v3464_v23  ;;  %v3505_v37 = vld [vmem:[%s3974_s0 + $0x16] sm:$0xff] }
  0x1a   :  { %2808 = vmatprep.subr.bf16.mxu0 %v178_v41  ;;  %2936 = vmatprep.subr.bf16.mxu1 %v178_v41  ;;  %v307_v49 = vld [vmem:[%s3974_s0 + $0x14] sm:$0x7]  ;;  %v3554_v2 = vld [vmem:[%s3974_s0 + $0x37] sm:$0xff] }
  0x1b   :  { %2810 = vmatprep.mubr.msk.bf16.mxu0 %vm40_vm0, %v175_v42  ;;  %2938 = vmatprep.mubr.msk.bf16.mxu1 %vm40_vm0, %v1379_v43  ;;  %v1003_v42 = vpack.c.bf16 %v3505_v37, %v3495_v35  ;;  %v2195_v43 = vpack.c.bf16 %v3510_v39, %v3500_v36  ;;  %v2450_v51 = vld [vmem:[%s3973_s1 + $0xb0] sm:$0xff]  ;;  %v2481_v24 = vld [vmem:[%s3973_s1 + $0x158] sm:$0xff] }
  0x1c   :  { %v3559_v3 = vld [vmem:[%s3974_s0 + $0x17] sm:$0xff] }
  0x1d   :  { %2809 = vmatpush3.bf16.msra.mxu0 %v178_v41  ;;  %2937 = vmatpush3.bf16.msra.mxu1 %v178_v41  ;;  %v316_v41 = vpack.c.bf16 %v2445_v28, %v2444_v27  ;;  %v2480_v22 = vld [vmem:[%s3973_s1 + $0x150] sm:$0xff]  ;;  %v2487_v40 = vld [vmem:[%s3973_s1 + $0x178] sm:$0xff] }
  0x1e   :  { %2814 = vmatprep.subr.bf16.mxu0 %v246_v46  ;;  %2942 = vmatprep.subr.bf16.mxu1 %v246_v46  ;;  %v730_v59 = vpack.c.bf16 %v2481_v24, %v2480_v22  ;;  %v2486_v38 = vld [vmem:[%s3973_s1 + $0x170] sm:$0xff]  ;;  %v2493_v57 = vld [vmem:[%s3973_s1 + $0x198] sm:$0xff]  ;;  %v2509_v22 = vld [vmem:[%s3973_s1 + $0x1e8] sm:$0xff] }
  0x1f   :  { %v2492_v52 = vld [vmem:[%s3973_s1 + $0x190] sm:$0xff]  ;;  %v2499_v14 = vld [vmem:[%s3973_s1 + $0x1b8] sm:$0xff] }
  0x20   :  { %v2498_v13 = vld [vmem:[%s3973_s1 + $0x1b0] sm:$0xff] }
  0x21   :  { %v937_v17 = vpack.c.bf16 %v2499_v14, %v2498_v13 }
  0x24   :  { %2811 = vmatmul.mubr.msk.bf16.vlgmr.msra.gmra.mrb[0].mxu0 %vm40_vm0, %v176_v54  ;;  %2939 = vmatmul.mubr.msk.bf16.vlgmr.msra.gmra.mrb[0].mxu1 %vm40_vm0, %v1380_v55  ;;  %v2451_v54 = vld [vmem:[%s3973_s1 + $0xb8] sm:$0xff]  ;;  %v314_v55 = vpack.c.bf16 %v307_v49, %v307_v49  ;;  %v443_v49 = vld [vmem:[%s3974_s0 + $0x6] sm:$0xff] }
  0x25   :  { %2815 = vmatpush3.bf16.msra.mxu0 %v246_v46  ;;  %2943 = vmatpush3.bf16.msra.mxu1 %v246_v46  ;;  %v2448_v46 = vld [vmem:[%s3973_s1 + $0xa0] sm:$0xff]  ;;  %v385_v18 = vpack.c.bf16 %v2451_v54, %v2450_v51  ;;  %v451_v54 = vpack.c.bf16 %v3495_v35, %v443_v49  ;;  %v2467_v49 = vld [vmem:[%s3973_s1 + $0x108] sm:$0xff]  ;;  %v2510_v35 = vld [vmem:[%s3973_s1 + $0x1f0] sm:$0xff] }
  0x26   :  { %2816 = vmatprep.subr.bf16.mxu0 %v247_v61  ;;  %2944 = vmatprep.subr.bf16.mxu1 %v247_v61  ;;  %v384_v48 = vpack.c.bf16 %v2449_v47, %v2448_v46  ;;  %v2457_v46 = vld [vmem:[%s3973_s1 + $0xd8] sm:$0xff] }
  0x27   :  { %2818 = vmatprep.mubr.msk.bf16.mxu0 %vm40_vm0, %v244_v0  ;;  %2946 = vmatprep.mubr.msk.bf16.mxu1 %vm40_vm0, %v1447_v1  ;;  %v2558_v0 = vld [vmem:[%s3974_s0 + $0x2d] sm:$0xff] }
  0x28   :  { %v3549_v1 = vld [vmem:[%s3974_s0 + $0xf] sm:$0xff] }
  0x29   :  { %2817 = vmatpush3.bf16.msra.mxu0 %v247_v61  ;;  %2945 = vmatpush3.bf16.msra.mxu1 %v247_v61  ;;  %v374_v61 = vld [vmem:[%s3974_s0 + $0x5] sm:$0xff]  ;;  %v1072_v19 = vpack.c.bf16 %v3559_v3, %v3549_v1 }
  0x2a   :  { %2822 = vmatprep.subr.bf16.mxu0 %v315_v9  ;;  %2950 = vmatprep.subr.bf16.mxu1 %v315_v9  ;;  %v382_v28 = vpack.c.bf16 %v3457_v20, %v374_v61  ;;  %v2461_v61 = vld [vmem:[%s3973_s1 + $0xe8] sm:$0xff]  ;;  %v2504_v20 = vld [vmem:[%s3973_s1 + $0x1d0] sm:$0xff] }
  0x30   :  { %2819 = vmatmul.mubr.msk.bf16.vlgmr.msra.gmra.mrb[0].mxu0 %vm40_vm0, %v245_v31  ;;  %2947 = vmatmul.mubr.msk.bf16.vlgmr.msra.gmra.mrb[0].mxu1 %vm40_vm0, %v1448_v32  ;;  %v1583_v31 = vpack.c.bf16 %v3464_v23, %v2558_v0  ;;  %v2454_v32 = vld [vmem:[%s3973_s1 + $0xc0] sm:$0xff]  ;;  %v2505_v23 = vld [vmem:[%s3973_s1 + $0x1d8] sm:$0xff] }
  0x31   :  { %2823 = vmatpush3.bf16.msra.mxu0 %v315_v9  ;;  %2951 = vmatpush3.bf16.msra.mxu1 %v315_v9  ;;  %v3564_v9 = vld [vmem:[%s3974_s0 + $0x3f] sm:$0xff]  ;;  %v453_v34 = vpack.c.bf16 %v2455_v33, %v2454_v32 }
  0x32   :  { %2824 = vmatprep.subr.bf16.mxu0 %v316_v41  ;;  %2952 = vmatprep.subr.bf16.mxu1 %v316_v41  ;;  %v2263_v27 = vpack.c.bf16 %v3564_v9, %v3554_v2  ;;  %v2463_v32 = vld [vmem:[%s3973_s1 + $0xf8] sm:$0xff] }
  0x33   :  { %2826 = vmatprep.mubr.msk.bf16.mxu0 %vm40_vm0, %v313_v44  ;;  %2954 = vmatprep.mubr.msk.bf16.mxu1 %vm40_vm0, %v1515_v45  ;;  %v2560_v44 = vld [vmem:[%s3974_s0 + $0x3d] sm:$0x7]  ;;  %v2456_v45 = vld [vmem:[%s3973_s1 + $0xd0] sm:$0xff] }
  0x34   :  { %v454_v51 = vpack.c.bf16 %v2457_v46, %v2456_v45 }
  0x35   :  { %2825 = vmatpush3.bf16.msra.mxu0 %v316_v41  ;;  %2953 = vmatpush3.bf16.msra.mxu1 %v316_v41  ;;  %v376_v41 = vld [vmem:[%s3974_s0 + $0x15] sm:$0x7] }
  0x36   :  { %2830 = vmatprep.subr.bf16.mxu0 %v384_v48  ;;  %2958 = vmatprep.subr.bf16.mxu1 %v384_v48  ;;  %v383_v47 = vpack.c.bf16 %v376_v41, %v376_v41  ;;  %v512_v41 = vld [vmem:[%s3974_s0 + $0x7] sm:$0xff] }
  0x37   :  { %v520_v46 = vpack.c.bf16 %v3549_v1, %v512_v41  ;;  %v2473_v41 = vld [vmem:[%s3973_s1 + $0x128] sm:$0xff]  ;;  %v2421_v1 = vld [vmem:[%s3975_s2] ss:$0 sm:$0xff] }
  0x3c   :  { %2827 = vmatmul.mubr.msk.bf16.vlgmr.msra.gmra.mrb[0].mxu0 %vm40_vm0, %v314_v55  ;;  %2955 = vmatmul.mubr.msk.bf16.vlgmr.msra.gmra.mrb[0].mxu1 %vm40_vm0, %v1516_v56  ;;  %v1651_v55 = vpack.c.bf16 %v3500_v36, %v2567_v50  ;;  %v2460_v56 = vld [vmem:[%s3973_s1 + $0xe0] sm:$0xff]  ;;  %v2511_v36 = vld [vmem:[%s3973_s1 + $0x1f8] sm:$0xff] }
  0x3d   :  { %2831 = vmatpush3.bf16.msra.mxu0 %v384_v48  ;;  %2959 = vmatpush3.bf16.msra.mxu1 %v384_v48  ;;  %v1584_v48 = vpack.c.bf16 %v2560_v44, %v2560_v44  ;;  %v522_v0 = vpack.c.bf16 %v2461_v61, %v2460_v56  ;;  %v2576_v44 = vld [vmem:[%s3974_s0 + $0x2f] sm:$0xff]  ;;  %v2469_v56 = vld [vmem:[%s3973_s1 + $0x118] sm:$0xff] }
  0x3e   :  { %2832 = vmatprep.subr.bf16.mxu0 %v385_v18  ;;  %2960 = vmatprep.subr.bf16.mxu1 %v385_v18 }
  0x3f   :  { %2834 = vmatprep.mubr.msk.bf16.mxu0 %vm40_vm0, %v382_v28  ;;  %2962 = vmatprep.mubr.msk.bf16.mxu1 %vm40_vm0, %v1583_v31  ;;  %v2569_v28 = vld [vmem:[%s3974_s0 + $0x3e] sm:$0x7]  ;;  %v2462_v31 = vld [vmem:[%s3973_s1 + $0xf0] sm:$0xff] }
  0x40   :  { %v523_v45 = vpack.c.bf16 %v2463_v32, %v2462_v31 }
  0x41   :  { %2833 = vmatpush3.bf16.msra.mxu0 %v385_v18  ;;  %2961 = vmatpush3.bf16.msra.mxu1 %v385_v18  ;;  %v445_v18 = vld [vmem:[%s3974_s0 + $0x16] sm:$0x7] }
  0x42   :  { %2838 = vmatprep.subr.bf16.mxu0 %v453_v34  ;;  %2966 = vmatprep.subr.bf16.mxu1 %v453_v34  ;;  %v452_v33 = vpack.c.bf16 %v445_v18, %v445_v18  ;;  %v3657_v18 = vld [vmem:[%s3974_s0 + $0x10] sm:$0xff] }
  0x43   :  { %v589_v32 = vpack.c.bf16 %v3657_v18, %v3244_v6 }
  0x48   :  { %2835 = vmatmul.mubr.msk.bf16.vlgmr.msra.gmra.mrb[0].mxu0 %vm40_vm0, %v383_v47  ;;  %2963 = vmatmul.mubr.msk.bf16.vlgmr.msra.gmra.mrb[0].mxu1 %vm40_vm0, %v1584_v48  ;;  %v1719_v47 = vpack.c.bf16 %v3554_v2, %v2576_v44  ;;  %v2466_v48 = vld [vmem:[%s3973_s1 + $0x100] sm:$0xff] }
  0x49   :  { %2839 = vmatpush3.bf16.msra.mxu0 %v453_v34  ;;  %2967 = vmatpush3.bf16.msra.mxu1 %v453_v34  ;;  %v1652_v34 = vpack.c.bf16 %v2569_v28, %v2569_v28  ;;  %v591_v50 = vpack.c.bf16 %v2467_v49, %v2466_v48  ;;  %v3662_v28 = vld [vmem:[%s3974_s0 + $0x38] sm:$0xff] }
  0x4a   :  { %2840 = vmatprep.subr.bf16.mxu0 %v454_v51  ;;  %2968 = vmatprep.subr.bf16.mxu1 %v454_v51  ;;  %v2475_v48 = vld [vmem:[%s3973_s1 + $0x138] sm:$0xff] }
  0x4b   :  { %2842 = vmatprep.mubr.msk.bf16.mxu0 %vm40_vm0, %v451_v54  ;;  %2970 = vmatprep.mubr.msk.bf16.mxu1 %vm40_vm0, %v1651_v55  ;;  %v2578_v54 = vld [vmem:[%s3974_s0 + $0x3f] sm:$0x7]  ;;  %v2468_v55 = vld [vmem:[%s3973_s1 + $0x110] sm:$0xff] }
  0x4c   :  { %v592_v31 = vpack.c.bf16 %v2469_v56, %v2468_v55  ;;  %v2479_v55 = vld [vmem:[%s3973_s1 + $0x148] sm:$0xff] }
  0x4d   :  { %2841 = vmatpush3.bf16.msra.mxu0 %v454_v51  ;;  %2969 = vmatpush3.bf16.msra.mxu1 %v454_v51  ;;  %v514_v51 = vld [vmem:[%s3974_s0 + $0x17] sm:$0x7] }
  0x4e   :  { %2846 = vmatprep.subr.bf16.mxu0 %v522_v0  ;;  %2974 = vmatprep.subr.bf16.mxu1 %v522_v0  ;;  %v521_v61 = vpack.c.bf16 %v514_v51, %v514_v51 }
  0x54   :  { %2843 = vmatmul.mubr.msk.bf16.vlgmr.msra.gmra.mrb[0].mxu0 %vm40_vm0, %v452_v33  ;;  %2971 = vmatmul.mubr.msk.bf16.vlgmr.msra.gmra.mrb[0].mxu1 %vm40_vm0, %v1652_v34  ;;  %v1787_v33 = vpack.c.bf16 %v3662_v28, %v3253_v10  ;;  %v2472_v34 = vld [vmem:[%s3973_s1 + $0x120] sm:$0xff] }
  0x55   :  { %2847 = vmatpush3.bf16.msra.mxu0 %v522_v0  ;;  %2975 = vmatpush3.bf16.msra.mxu1 %v522_v0  ;;  %v1720_v0 = vpack.c.bf16 %v2578_v54, %v2578_v54  ;;  %v660_v44 = vpack.c.bf16 %v2473_v41, %v2472_v34  ;;  %v2478_v54 = vld [vmem:[%s3973_s1 + $0x140] sm:$0xff]  ;;  %v2491_v41 = vld [vmem:[%s3973_s1 + $0x188] sm:$0xff] }
  0x56   :  { %2848 = vmatprep.subr.bf16.mxu0 %v523_v45  ;;  %2976 = vmatprep.subr.bf16.mxu1 %v523_v45  ;;  %v729_v56 = vpack.c.bf16 %v2479_v55, %v2478_v54  ;;  %v2605_v34 = vld [vmem:[%s3974_s0 + $0x42] sm:$0x7]  ;;  %v2503_v55 = vld [vmem:[%s3973_s1 + $0x1c8] sm:$0xff] }
  0x57   :  { %2850 = vmatprep.mubr.msk.bf16.mxu0 %vm40_vm0, %v520_v46  ;;  %2978 = vmatprep.mubr.msk.bf16.mxu1 %vm40_vm0, %v1719_v47  ;;  %v3686_v46 = vld [vmem:[%s3974_s0 + $0x40] sm:$0x7]  ;;  %v2474_v47 = vld [vmem:[%s3973_s1 + $0x130] sm:$0xff]  ;;  %v1924_v63 = vpack.c.bf16 %v2605_v34, %v2605_v34  ;;  %v2623_v54 = vld [vmem:[%s3974_s0 + $0x44] sm:$0x7] }
  0x58   :  { %v661_v51 = vpack.c.bf16 %v2475_v48, %v2474_v47  ;;  %v790_v47 = vld [vmem:[%s3974_s0 + $0x1b] sm:$0x7]  ;;  %v2614_v48 = vld [vmem:[%s3974_s0 + $0x43] sm:$0x7] }
  0x59   :  { %2849 = vmatpush3.bf16.msra.mxu0 %v523_v45  ;;  %2977 = vmatpush3.bf16.msra.mxu1 %v523_v45  ;;  %v3681_v45 = vld [vmem:[%s3974_s0 + $0x18] sm:$0x7]  ;;  %v797_v7 = vpack.c.bf16 %v790_v47, %v790_v47  ;;  %v1992_v8 = vpack.c.bf16 %v2614_v48, %v2614_v48 }
  0x5a   :  { %2854 = vmatprep.subr.bf16.mxu0 %v591_v50  ;;  %2982 = vmatprep.subr.bf16.mxu1 %v591_v50  ;;  %v590_v49 = vpack.c.bf16 %v3681_v45, %v3681_v45 }
  0x60   :  { %2851 = vmatmul.mubr.msk.bf16.vlgmr.msra.gmra.mrb[0].mxu0 %vm40_vm0, %v521_v61  ;;  %2979 = vmatmul.mubr.msk.bf16.vlgmr.msra.gmra.mrb[0].mxu1 %vm40_vm0, %v1720_v0  ;;  %v652_v61 = vld [vmem:[%s3974_s0 + $0x19] sm:$0x7]  ;;  %v2596_v0 = vld [vmem:[%s3974_s0 + $0x41] sm:$0x7] }
  0x61   :  { %2855 = vmatpush3.bf16.msra.mxu0 %v591_v50  ;;  %2983 = vmatpush3.bf16.msra.mxu1 %v591_v50  ;;  %v1788_v50 = vpack.c.bf16 %v3686_v46, %v3686_v46  ;;  %v659_v53 = vpack.c.bf16 %v652_v61, %v652_v61  ;;  %v928_v61 = vld [vmem:[%s3974_s0 + $0x1d] sm:$0x7] }
  0x62   :  { %2856 = vmatprep.subr.bf16.mxu0 %v592_v31  ;;  %2984 = vmatprep.subr.bf16.mxu1 %v592_v31  ;;  %v935_v25 = vpack.c.bf16 %v928_v61, %v928_v61 }
  0x63   :  { %2858 = vmatprep.mubr.msk.bf16.mxu0 %vm40_vm0, %v589_v32  ;;  %2986 = vmatprep.mubr.msk.bf16.mxu1 %vm40_vm0, %v1787_v33  ;;  %v721_v33 = vld [vmem:[%s3974_s0 + $0x1a] sm:$0x7] }
  0x64   :  { %v728_v62 = vpack.c.bf16 %v721_v33, %v721_v33 }
  0x65   :  { %2857 = vmatpush3.bf16.msra.mxu0 %v592_v31  ;;  %2985 = vmatpush3.bf16.msra.mxu1 %v592_v31  ;;  %v2485_v31 = vld [vmem:[%s3973_s1 + $0x168] sm:$0xff] }
  0x66   :  { %2862 = vmatprep.subr.bf16.mxu0 %v660_v44  ;;  %2990 = vmatprep.subr.bf16.mxu1 %v660_v44 }
  0x6c   :  { %2859 = vmatmul.mubr.msk.bf16.vlgmr.msra.gmra.mrb[0].mxu0 %vm40_vm0, %v590_v49  ;;  %2987 = vmatmul.mubr.msk.bf16.vlgmr.msra.gmra.mrb[0].mxu1 %vm40_vm0, %v1788_v50  ;;  %v2497_v49 = vld [vmem:[%s3973_s1 + $0x1a8] sm:$0xff] }
  0x6d   :  { %2863 = vmatpush3.bf16.msra.mxu0 %v660_v44  ;;  %2991 = vmatpush3.bf16.msra.mxu1 %v660_v44 }
  0x6e   :  { %2864 = vmatprep.subr.bf16.mxu0 %v661_v51  ;;  %2992 = vmatprep.subr.bf16.mxu1 %v661_v51 }
  0x6f   :  { %2866 = vmatprep.mubr.msk.bf16.mxu0 %vm40_vm0, %v658_v58  ;;  %2994 = vmatprep.mubr.msk.bf16.mxu1 %vm40_vm0, %v1855_v60  ;;  %v1856_v58 = vpack.c.bf16 %v2596_v0, %v2596_v0  ;;  %v2484_v60 = vld [vmem:[%s3973_s1 + $0x160] sm:$0xff] }
  0x70   :  { %v798_v32 = vpack.c.bf16 %v2485_v31, %v2484_v60  ;;  %v2632_v0 = vld [vmem:[%s3974_s0 + $0x45] sm:$0x7] }
  0x71   :  { %2865 = vmatpush3.bf16.msra.mxu0 %v661_v51  ;;  %2993 = vmatpush3.bf16.msra.mxu1 %v661_v51  ;;  %v859_v51 = vld [vmem:[%s3974_s0 + $0x1c] sm:$0x7]  ;;  %v2128_v26 = vpack.c.bf16 %v2632_v0, %v2632_v0 }
  0x72   :  { %2870 = vmatprep.subr.bf16.mxu0 %v729_v56  ;;  %2998 = vmatprep.subr.bf16.mxu1 %v729_v56  ;;  %v866_v15 = vpack.c.bf16 %v859_v51, %v859_v51 }
  0x78   :  { %2867 = vmatmul.mubr.msk.bf16.vlgmr.msra.gmra.mrb[0].mxu0 %vm40_vm0, %v659_v53  ;;  %2995 = vmatmul.mubr.msk.bf16.vlgmr.msra.gmra.mrb[0].mxu1 %vm40_vm0, %v1856_v58  ;;  %v997_v53 = vld [vmem:[%s3974_s0 + $0x1e] sm:$0x7]  ;;  %v2641_v58 = vld [vmem:[%s3974_s0 + $0x46] sm:$0x7] }
  0x79   :  { %2871 = vmatpush3.bf16.msra.mxu0 %v729_v56  ;;  %2999 = vmatpush3.bf16.msra.mxu1 %v729_v56  ;;  %v1004_v37 = vpack.c.bf16 %v997_v53, %v997_v53  ;;  %v2196_v39 = vpack.c.bf16 %v2641_v58, %v2641_v58 }
  0x7a   :  { %2872 = vmatprep.subr.bf16.mxu0 %v730_v59  ;;  %3000 = vmatprep.subr.bf16.mxu1 %v730_v59 }
  0x7b   :  { %2874 = vmatprep.mubr.msk.bf16.mxu0 %vm40_vm0, %v727_v4  ;;  %3002 = vmatprep.mubr.msk.bf16.mxu1 %vm40_vm0, %v1923_v5  ;;  %v799_v4 = vpack.c.bf16 %v2487_v40, %v2486_v38  ;;  %v2490_v5 = vld [vmem:[%s3973_s1 + $0x180] sm:$0xff] }
  0x7c   :  { %v867_v44 = vpack.c.bf16 %v2491_v41, %v2490_v5 }
  0x7d   :  { %2873 = vmatpush3.bf16.msra.mxu0 %v730_v59  ;;  %3001 = vmatpush3.bf16.msra.mxu1 %v730_v59  ;;  %v2650_v59 = vld [vmem:[%s3974_s0 + $0x47] sm:$0x7] }
  0x7e   :  { %2878 = vmatprep.subr.bf16.mxu0 %v798_v32  ;;  %3006 = vmatprep.subr.bf16.mxu1 %v798_v32  ;;  %v2264_v31 = vpack.c.bf16 %v2650_v59, %v2650_v59 }
  0x84   :  { %2875 = vmatmul.mubr.msk.bf16.vlgmr.msra.gmra.mrb[0].mxu0 %vm40_vm0, %v728_v62  ;;  %3003 = vmatmul.mubr.msk.bf16.vlgmr.msra.gmra.mrb[0].mxu1 %vm40_vm0, %v1924_v63 }
  0x85   :  { %2879 = vmatpush3.bf16.msra.mxu0 %v798_v32  ;;  %3007 = vmatpush3.bf16.msra.mxu1 %v798_v32 }
  0x86   :  { %2880 = vmatprep.subr.bf16.mxu0 %v799_v4  ;;  %3008 = vmatprep.subr.bf16.mxu1 %v799_v4 }
  0x87   :  { %2882 = vmatprep.mubr.msk.bf16.mxu0 %vm40_vm0, %v796_v11  ;;  %3010 = vmatprep.mubr.msk.bf16.mxu1 %vm40_vm0, %v1991_v12  ;;  %v868_v11 = vpack.c.bf16 %v2493_v57, %v2492_v52  ;;  %v2496_v12 = vld [vmem:[%s3973_s1 + $0x1a0] sm:$0xff] }
  0x88   :  { %v936_v50 = vpack.c.bf16 %v2497_v49, %v2496_v12 }
  0x89   :  { %2881 = vmatpush3.bf16.msra.mxu0 %v799_v4  ;;  %3009 = vmatpush3.bf16.msra.mxu1 %v799_v4 }
  0x8a   :  { %2886 = vmatprep.subr.bf16.mxu0 %v867_v44  ;;  %3014 = vmatprep.subr.bf16.mxu1 %v867_v44 }
  0x90   :  { %2883 = vmatmul.mubr.msk.bf16.vlgmr.msra.gmra.mrb[0].mxu0 %vm40_vm0, %v797_v7  ;;  %3011 = vmatmul.mubr.msk.bf16.vlgmr.msra.gmra.mrb[0].mxu1 %vm40_vm0, %v1992_v8 }
  0x91   :  { %2887 = vmatpush3.bf16.msra.mxu0 %v867_v44  ;;  %3015 = vmatpush3.bf16.msra.mxu1 %v867_v44 }
  0x92   :  { %2888 = vmatprep.subr.bf16.mxu0 %v868_v11  ;;  %3016 = vmatprep.subr.bf16.mxu1 %v868_v11 }
  0x93   :  { %2890 = vmatprep.mubr.msk.bf16.mxu0 %vm40_vm0, %v865_v16  ;;  %3018 = vmatprep.mubr.msk.bf16.mxu1 %vm40_vm0, %v2059_v21  ;;  %v2060_v16 = vpack.c.bf16 %v2623_v54, %v2623_v54  ;;  %v2502_v21 = vld [vmem:[%s3973_s1 + $0x1c0] sm:$0xff] }
  0x94   :  { %v1005_v56 = vpack.c.bf16 %v2503_v55, %v2502_v21 }
  0x95   :  { %2889 = vmatpush3.bf16.msra.mxu0 %v868_v11  ;;  %3017 = vmatpush3.bf16.msra.mxu1 %v868_v11 }
  0x96   :  { %2894 = vmatprep.subr.bf16.mxu0 %v936_v50  ;;  %3022 = vmatprep.subr.bf16.mxu1 %v936_v50 }
  0x9c   :  { %2891 = vmatmul.mubr.msk.bf16.vlgmr.msra.gmra.mrb[0].mxu0 %vm40_vm0, %v866_v15  ;;  %3019 = vmatmul.mubr.msk.bf16.vlgmr.msra.gmra.mrb[0].mxu1 %vm40_vm0, %v2060_v16 }
  0x9d   :  { %2895 = vmatpush3.bf16.msra.mxu0 %v936_v50  ;;  %3023 = vmatpush3.bf16.msra.mxu1 %v936_v50 }
  0x9e   :  { %2896 = vmatprep.subr.bf16.mxu0 %v937_v17  ;;  %3024 = vmatprep.subr.bf16.mxu1 %v937_v17 }
  0x9f   :  { %2898 = vmatprep.mubr.msk.bf16.mxu0 %vm40_vm0, %v934_v29  ;;  %3026 = vmatprep.mubr.msk.bf16.mxu1 %vm40_vm0, %v2127_v30  ;;  %v1006_v29 = vpack.c.bf16 %v2505_v23, %v2504_v20  ;;  %v2508_v30 = vld [vmem:[%s3973_s1 + $0x1e0] sm:$0xff] }
  0xa0   :  { %v1074_v24 = vpack.c.bf16 %v2509_v22, %v2508_v30 }
  0xa1   :  { %2897 = vmatpush3.bf16.msra.mxu0 %v937_v17  ;;  %3025 = vmatpush3.bf16.msra.mxu1 %v937_v17 }
  0xa2   :  { %2902 = vmatprep.subr.bf16.mxu0 %v1005_v56  ;;  %3030 = vmatprep.subr.bf16.mxu1 %v1005_v56 }
  0xa8   :  { %2899 = vmatmul.mubr.msk.bf16.vlgmr.msra.gmra.mrb[0].mxu0 %vm40_vm0, %v935_v25  ;;  %3027 = vmatmul.mubr.msk.bf16.vlgmr.msra.gmra.mrb[0].mxu1 %vm40_vm0, %v2128_v26 }
  0xa9   :  { %2903 = vmatpush3.bf16.msra.mxu0 %v1005_v56  ;;  %3031 = vmatpush3.bf16.msra.mxu1 %v1005_v56 }
  0xaa   :  { %2904 = vmatprep.subr.bf16.mxu0 %v1006_v29  ;;  %3032 = vmatprep.subr.bf16.mxu1 %v1006_v29 }
  0xab   :  { %2906 = vmatprep.mubr.msk.bf16.mxu0 %vm40_vm0, %v1003_v42  ;;  %3034 = vmatprep.mubr.msk.bf16.mxu1 %vm40_vm0, %v2195_v43  ;;  %v1075_v42 = vpack.c.bf16 %v2511_v36, %v2510_v35  ;;  %v1066_v43 = vld [vmem:[%s3974_s0 + $0x1f] sm:$0x7] }
  0xac   :  { %v1073_v60 = vpack.c.bf16 %v1066_v43, %v1066_v43 }
  0xad   :  { %2905 = vmatpush3.bf16.msra.mxu0 %v1006_v29  ;;  %3033 = vmatpush3.bf16.msra.mxu1 %v1006_v29 }
  0xae   :  { %2910 = vmatprep.subr.bf16.mxu0 %v1074_v24  ;;  %3038 = vmatprep.subr.bf16.mxu1 %v1074_v24 }
  0xb4   :  { %2907 = vmatmul.mubr.msk.bf16.vlgmr.msra.gmra.mrb[0].mxu0 %vm40_vm0, %v1004_v37  ;;  %3035 = vmatmul.mubr.msk.bf16.vlgmr.msra.gmra.mrb[0].mxu1 %vm40_vm0, %v2196_v39 }
  0xb5   :  { %2911 = vmatpush3.bf16.msra.mxu0 %v1074_v24  ;;  %3039 = vmatpush3.bf16.msra.mxu1 %v1074_v24 }
  0xb6   :  { %2912 = vmatprep.subr.bf16.mxu0 %v1075_v42  ;;  %3040 = vmatprep.subr.bf16.mxu1 %v1075_v42 }
  0xb7   :  { %2914 = vmatprep.mubr.msk.bf16.mxu0 %vm40_vm0, %v1072_v19  ;;  %3042 = vmatprep.mubr.msk.bf16.mxu1 %vm40_vm0, %v2263_v27 }
  0xb9   :  { %2913 = vmatpush3.bf16.msra.mxu0 %v1075_v42  ;;  %3041 = vmatpush3.bf16.msra.mxu1 %v1075_v42 }
  0xc0   :  { %2915 = vmatmul.mubr.msk.bf16.vlgmr.msra.gmra.mrb[0].mxu0 %vm40_vm0, %v1073_v60  ;;  %3043 = vmatmul.mubr.msk.bf16.vlgmr.msra.gmra.mrb[0].mxu1 %vm40_vm0, %v2264_v31 }
 0x193   :  { %v2916_v2 = vpop.f32.mrb[0].mxu0  ;;  %v3044_v3 = vpop.f32.mrb[0].mxu1 }
 0x194   :  { %v3887_v9 = vadd.f32 %v2916_v2, %v2421_v1  ;;  %v3889_v19 = vadd.f32 %v3044_v3, %v2421_v1  ;;  %v1116_v27 = vpop.f32.mrb[1].mxu0  ;;  %v2307_v32 = vpop.f32.mrb[1].mxu1 }
 0x195   :  { %v3891_v33 = vadd.f32 %v2421_v1, %v1116_v27  ;;  %v3050_v34 = vadd.f32 %v2421_v1, %v2307_v32  ;;  %v2917_v38 = vpop.f32.mrb[2].mxu0  ;;  %v3045_v40 = vpop.f32.mrb[2].mxu1 }
 0x196   :  { %v1135_v62 = vmul.f32 %v3887_v9, %v3887_v9  ;;  %v2326_v63 = vmul.f32 %v3889_v19, %v3889_v19  ;;  %v1119_v4 = vpop.f32.mrb[3].mxu0  ;;  %v2310_v5 = vpop.f32.mrb[3].mxu1 }
 0x197   :  { %v1133_v41 = vmul.f32 %v3891_v33, %v3891_v33  ;;  %v2324_v44 = vmul.f32 %v3050_v34, %v3050_v34  ;;  %v3048_v47 = vadd.f32 %v2421_v1, %v1119_v4  ;;  %v3899_v48 = vadd.f32 %v2421_v1, %v2310_v5 }
 0x198   :  { %v1138_v52 = vmul.f32 %v3887_v9, %v1135_v62  ;;  %v2329_v57 = vmul.f32 %v3889_v19, %v2326_v63 }
 0x199   :  { %v1136_v7 = vmul.f32 %v3891_v33, %v1133_v41  ;;  %v2327_v8 = vmul.f32 %v3050_v34, %v2324_v44  ;;  %v1134_v11 = vmul.f32 %v3048_v47, %v3048_v47  ;;  %v2325_v12 = vmul.f32 %v3899_v48, %v3899_v48 }
 0x19a   :  { %v1141_v49 = vmul.f32 0.044715, %v1138_v52  ;;  %v2332_v50 = vmul.f32 0.044715, %v2329_v57 }
 0x19b   :  { %v1139_v51 = vmul.f32 0.044715, %v1136_v7  ;;  %v2330_v54 = vmul.f32 0.044715, %v2327_v8  ;;  %v1137_v13 = vmul.f32 %v3048_v47, %v1134_v11  ;;  %v2328_v14 = vmul.f32 %v3899_v48, %v2325_v12 }
 0x19c   :  { %v1144_v15 = vadd.f32 %v3887_v9, %v1141_v49  ;;  %v2335_v16 = vadd.f32 %v3889_v19, %v2332_v50 }
 0x19d   :  { %v1142_v17 = vadd.f32 %v3891_v33, %v1139_v51  ;;  %v2333_v21 = vadd.f32 %v3050_v34, %v2330_v54  ;;  %v1140_v55 = vmul.f32 0.044715, %v1137_v13  ;;  %v2331_v56 = vmul.f32 0.044715, %v2328_v14 }
 0x19e   :  { %v1147_v61 = vmul.f32 0.7978846, %v1144_v15  ;;  %v2338_v0 = vmul.f32 0.7978846, %v2335_v16 }
 0x19f   :  { %v2336_v20 = vmul.f32 0.7978846, %v2333_v21  ;;  %v1143_v23 = vadd.f32 %v3048_v47, %v1140_v55  ;;  %v2334_v25 = vadd.f32 %v3899_v48, %v2331_v56  ;;  %v1145_v26 = vmul.f32 0.7978846, %v1142_v17 }
 0x1a0   :  { %3172 = vtanh.f32 %v2338_v0 }
 0x1a1   :  { %3174 = vtanh.f32 %v2336_v20  ;;  %v1146_v29 = vmul.f32 0.7978846, %v1143_v23  ;;  %v2337_v30 = vmul.f32 0.7978846, %v2334_v25 }
 0x1a2   :  { %3176 = vtanh.f32 %v1147_v61 }
 0x1a3   :  { %3178 = vtanh.f32 %v1146_v29 }
 0x1a4   :  { %3180 = vtanh.f32 %v2337_v30 }
 0x1a5   :  { %3182 = vtanh.f32 %v1145_v26 }
 0x1aa   :  { %v3173_v22 = vpop.eup %3172 }
 0x1ab   :  { %v3175_v24 = vpop.eup %3174  ;;  %v2344_v37 = vadd.f32 1.0, %v3173_v22 }
 0x1ac   :  { %v3177_v53 = vpop.eup %3176  ;;  %v2342_v58 = vadd.f32 1.0, %v3175_v24 }
 0x1ad   :  { %v3179_v35 = vpop.eup %3178  ;;  %v1153_v36 = vadd.f32 1.0, %v3177_v53  ;;  %v2347_v32 = vmul.f32 0.5, %v2344_v37 }
 0x1ae   :  { %v3181_v39 = vpop.eup %3180  ;;  %v2345_v42 = vmul.f32 0.5, %v2342_v58  ;;  %v1152_v43 = vadd.f32 1.0, %v3179_v35 }
 0x1af   :  { %v3183_v59 = vpop.eup %3182  ;;  %v1156_v60 = vmul.f32 0.5, %v1153_v36  ;;  %v2343_v2 = vadd.f32 1.0, %v3181_v39  ;;  %v2350_v44 = vmul.f32 %v3889_v19, %v2347_v32 }
 0x1b0   :  { %v1151_v31 = vadd.f32 1.0, %v3183_v59  ;;  %v1155_v1 = vmul.f32 0.5, %v1152_v43  ;;  %v2348_v27 = vmul.f32 %v3050_v34, %v2345_v42 }
 0x1b1   :  { %v1159_v3 = vmul.f32 %v3887_v9, %v1156_v60  ;;  %v2346_v4 = vmul.f32 0.5, %v2343_v2 }
 0x1b2   :  { %v1154_v38 = vmul.f32 0.5, %v1151_v31  ;;  %v1158_v63 = vmul.f32 %v3048_v47, %v1155_v1  ;;  %v2351_v41 = vadd.f32 %v3253_v10, %v2348_v27 }
 0x1b3   :  { %v1162_v40 = vadd.f32 %v1159_v3, %v3681_v45  ;;  %v2349_v57 = vmul.f32 %v3899_v48, %v2346_v4 }
 0x1b4   :  { %v1157_v62 = vmul.f32 %v3891_v33, %v1154_v38  ;;  %v1161_v34 = vadd.f32 %v1158_v63, %v3657_v18  ;;  %v2356_v45 = vsel %vm40_vm0, %v2351_v41, 0.0  ;;  %v2353_v33 = vadd.f32 %v3686_v46, %v2350_v44 }
 0x1b5   :  { %v1172_v5 = vsel %vm1171_vm1, %v1162_v40, 0.0  ;;  %v2352_v10 = vadd.f32 %v3662_v28, %v2349_v57 }
 0x1b6   :  { %1173 = vadd.xlane.f32.xlu1 %v1172_v5  ;;  %v1160_v52 = vadd.f32 %v1157_v62, %v3244_v6  ;;  %v1168_v47 = vsel %vm40_vm0, %v1161_v34, 0.0  ;;  %v2362_v19 = vsel %vm1171_vm1, %v2353_v33, 0.0  ;;  %v2514_v62 = vld [vmem:[%s3976_s3] ss:$0 sm:$0xff] }
 0x1b7   :  { %v2359_v6 = vsel %vm40_vm0, %v2352_v10, 0.0  ;;  %v2515_v5 = vld [vmem:[%s3977_s4] ss:$0 sm:$0xff] }
 0x1b8   :  { %v1165_v9 = vsel %vm40_vm0, %v1160_v52, 0.0 }
 0x1b9   :  { %1166 = vadd.xlane.f32.xlu0 %v1165_v9 }
 0x1ba   :  { %2357 = vadd.xlane.f32.xlu1 %v2356_v45 }
 0x1bd   :  { %1169 = vadd.xlane.f32.xlu0 %v1168_v47 }
 0x1be   :  { %2363 = vadd.xlane.f32.xlu1 %v2362_v19 }
 0x1c1   :  { %2360 = vadd.xlane.f32.xlu0 %v2359_v6 }
 0x243   :  { %v1174_v18 = vpop.xlane.xlu1 %1173 }
 0x244   :  { %v1178_v7 = vmul.f32 0.03125, %v1174_v18 }
 0x246   :  { %v1181_v48 = vsub.f32 %v1162_v40, %v1178_v7  ;;  %v1167_v8 = vpop.xlane.xlu0 %1166 }
 0x247   :  { %v1176_v11 = vmul.f32 0.03125, %v1167_v8  ;;  %v2358_v12 = vpop.xlane.xlu1 %2357 }
 0x248   :  { %v2365_v49 = vmul.f32 0.03125, %v2358_v12  ;;  %v1184_v46 = vmul.f32 %v1181_v48, %v1181_v48 }
 0x249   :  { %v3927_v50 = vsub.f32 %v1160_v52, %v1176_v11 }
 0x24a   :  { %v2368_v51 = vsub.f32 %v2351_v41, %v2365_v49  ;;  %v1170_v54 = vpop.xlane.xlu0 %1169  ;;  %v1191_v28 = vsel %vm1171_vm1, %v1184_v46, 0.0 }
 0x24b   :  { %v1177_v13 = vmul.f32 0.03125, %v1170_v54  ;;  %v2364_v14 = vpop.xlane.xlu1 %2363  ;;  %1192 = vadd.xlane.f32.xlu0 %v1191_v28  ;;  %v1182_v15 = vmul.f32 %v3927_v50, %v3927_v50 }
 0x24c   :  { %v2367_v16 = vmul.f32 0.03125, %v2364_v14  ;;  %v2371_v17 = vmul.f32 %v2368_v51, %v2368_v51 }
 0x24d   :  { %v1180_v21 = vsub.f32 %v1161_v34, %v1177_v13  ;;  %v1185_v0 = vsel %vm40_vm0, %v1182_v15, 0.0 }
 0x24e   :  { %v3932_v55 = vsub.f32 %v2353_v33, %v2367_v16  ;;  %v2361_v56 = vpop.xlane.xlu0 %2360  ;;  %v2374_v61 = vsel %vm40_vm0, %v2371_v17, 0.0 }
 0x24f   :  { %v2366_v20 = vmul.f32 0.03125, %v2361_v56  ;;  %2375 = vadd.xlane.f32.xlu1 %v2374_v61  ;;  %1186 = vadd.xlane.f32.xlu0 %v1185_v0  ;;  %v1183_v23 = vmul.f32 %v1180_v21, %v1180_v21 }
 0x250   :  { %v2373_v29 = vmul.f32 %v3932_v55, %v3932_v55 }
 0x251   :  { %v2369_v25 = vsub.f32 %v2352_v10, %v2366_v20  ;;  %v1188_v26 = vsel %vm40_vm0, %v1183_v23, 0.0 }
 0x252   :  { %v2380_v24 = vsel %vm1171_vm1, %v2373_v29, 0.0 }
 0x253   :  { %1189 = vadd.xlane.f32.xlu1 %v1188_v26  ;;  %v2372_v30 = vmul.f32 %v2369_v25, %v2369_v25 }
 0x255   :  { %v2377_v22 = vsel %vm40_vm0, %v2372_v30, 0.0 }
 0x256   :  { %2378 = vadd.xlane.f32.xlu0 %v2377_v22 }
 0x257   :  { %2381 = vadd.xlane.f32.xlu1 %v2380_v24 }
 0x2d8   :  { %v1193_v53 = vpop.xlane.xlu0 %1192 }
 0x2d9   :  { %v1196_v58 = vmul.f32 0.03125, %v1193_v53 }
 0x2db   :  { %v1199_v35 = vadd.f32 1e-05, %v1196_v58 }
 0x2dc   :  { %v2376_v36 = vpop.xlane.xlu1 %2375  ;;  %v1187_v37 = vpop.xlane.xlu0 %1186 }
 0x2dd   :  { %3184 = vrsqrt.f32 %v1199_v35  ;;  %v2383_v39 = vmul.f32 0.03125, %v2376_v36  ;;  %v1194_v42 = vmul.f32 0.03125, %v1187_v37 }
 0x2df   :  { %v2386_v43 = vadd.f32 1e-05, %v2383_v39  ;;  %v1197_v59 = vadd.f32 1e-05, %v1194_v42 }
 0x2e0   :  { %v1190_v60 = vpop.xlane.xlu1 %1189 }
 0x2e1   :  { %3186 = vrsqrt.f32 %v2386_v43  ;;  %v1195_v31 = vmul.f32 0.03125, %v1190_v60 }
 0x2e2   :  { %3188 = vrsqrt.f32 %v1197_v59 }
 0x2e3   :  { %v1198_v1 = vadd.f32 1e-05, %v1195_v31  ;;  %v2379_v2 = vpop.xlane.xlu0 %2378 }
 0x2e4   :  { %v2384_v3 = vmul.f32 0.03125, %v2379_v2  ;;  %v2382_v27 = vpop.xlane.xlu1 %2381 }
 0x2e5   :  { %3190 = vrsqrt.f32 %v1198_v1  ;;  %v2385_v32 = vmul.f32 0.03125, %v2382_v27 }
 0x2e6   :  { %v2387_v38 = vadd.f32 1e-05, %v2384_v3 }
 0x2e7   :  { %v3185_v40 = vpop.eup %3184  ;;  %v2388_v63 = vadd.f32 1e-05, %v2385_v32 }
 0x2e8   :  { %v1205_v4 = vmul.f32 %v3185_v40, %v1181_v48  ;;  %3192 = vrsqrt.f32 %v2387_v38 }
 0x2e9   :  { %3194 = vrsqrt.f32 %v2388_v63 }
 0x2ea   :  { %v1214_v41 = vmul.f32 %v2514_v62, %v1205_v4 }
 0x2eb   :  { %v3187_v44 = vpop.eup %3186 }
 0x2ec   :  { %v3189_v52 = vpop.eup %3188  ;;  %v1223_v9 = vadd.f32 %v2515_v5, %v1214_v41  ;;  %v2392_v34 = vmul.f32 %v3187_v44, %v2368_v51 }
 0x2ed   :  { %v1203_v57 = vmul.f32 %v3189_v52, %v3927_v50 }
 0x2ee   :  { %1226 = vst.msk [vmem:[%s3978_s5 + $0x10] sm:$0x7] %vm1171_vm1, %v1223_v9  ;;  %v2401_v45 = vmul.f32 %v2514_v62, %v2392_v34 }
 0x2ef   :  { %v3191_v33 = vpop.eup %3190  ;;  %v1212_v47 = vmul.f32 %v2514_v62, %v1203_v57 }
 0x2f0   :  { %v2410_v10 = vadd.f32 %v2515_v5, %v2401_v45  ;;  %v1204_v19 = vmul.f32 %v3191_v33, %v1180_v21 }
 0x2f1   :  { %v1221_v6 = vadd.f32 %v2515_v5, %v1212_v47 }
 0x2f2   :  { %v3193_v18 = vpop.eup %3192  ;;  %2659 = vst.msk [vmem:[%s3978_s5 + $0x18] sm:$0xff] %vm40_vm0, %v2410_v10  ;;  %v1213_v7 = vmul.f32 %v2514_v62, %v1204_v19 }
 0x2f3   :  { %v3195_v48 = vpop.eup %3194  ;;  %1224 = vst.msk [vmem:[%s3978_s5] sm:$0xff] %vm40_vm0, %v1221_v6  ;;  %v2393_v8 = vmul.f32 %v3193_v18, %v2369_v25 }
 0x2f4   :  { %v1222_v11 = vadd.f32 %v2515_v5, %v1213_v7  ;;  %v2394_v12 = vmul.f32 %v3195_v48, %v3932_v55 }
 0x2f5   :  { %v2402_v49 = vmul.f32 %v2514_v62, %v2393_v8 }
 0x2f6   :  { %1225 = vst.msk [vmem:[%s3978_s5 + $0x8] sm:$0xff] %vm40_vm0, %v1222_v11  ;;  %v2403_v46 = vmul.f32 %v2514_v62, %v2394_v12 }
 0x2f7   :  { %v2411_v50 = vadd.f32 %v2515_v5, %v2402_v49 }
 0x2f8   :  { %v2412_v51 = vadd.f32 %v2515_v5, %v2403_v46 }
 0x2f9   :  { %2660 = vst.msk [vmem:[%s3978_s5 + $0x20] sm:$0xff] %vm40_vm0, %v2411_v50 }
 0x2fa   :  { %2661 = vst.msk [vmem:[%s3978_s5 + $0x28] sm:$0x7] %vm1171_vm1, %v2412_v51 }

</bundles_post_ra>
